<compile_context>
chip_gen: v5e
topology: v5e:2x2
jax: 0.10.0
libtpu: 0.0.40
codegen_flags: <defaults>
</compile_context>

<pallas_src>
import functools

import jax
import jax.numpy as jnp
from jax.experimental import pallas as pl
from jax.experimental.pallas import tpu as pltpu

_LANE = 128


def _round_up(n, m):
    return ((n + m - 1) // m) * m


def _cdiv(a, b):
    return (a + b - 1) // b


def _device_kind():
    try:
        return jax.devices()[0].device_kind.lower()
    except Exception:
        return ""


def _auto_chain_dtype(device_kind):
    # bf16 elementwise is native on v6e/v7x; emulated (slow) on v5e and older.
    if ("v6" in device_kind) or ("v7" in device_kind):
        return jnp.bfloat16
    return jnp.float32


def _default_block_batch(B, device_kind):
    max_tb = 2048  # (tb, 128) f32 intermediate = 1 MiB -> well within scoped VMEM
    if "v7" in device_kind:
        # 2 TensorCores: even number of grid steps so the megacore shards 1:1.
        nsteps = max(2, 2 * _cdiv(B, 2 * max_tb))
        tb = _round_up(_cdiv(B, nsteps), 8)
    else:
        # Single TC: per-grid-step overhead (~0.35us) dominates -> fewest steps.
        tb = min(_round_up(B, 8), max_tb)
    return tb


def _pose_net_kernel(x_ref, w_in_ref, w_hid_ref, w_out_ref, b_ref, o_ref,
                     *, num_out, chain_dtype):
    bf16 = jnp.bfloat16
    f32 = jnp.float32
    H = w_hid_ref.shape[-1]
    n_out_pad = w_out_ref.shape[-1]

    def lin(h, w, b):
        # bf16 x bf16 on the MXU, f32 accumulation, f32 bias broadcast.
        return jnp.dot(h.astype(bf16), w, preferred_element_type=f32) + b

    def blk(h, w, b):
        # Linear -> ReLU -> Dropout(identity at inference); residual chain in
        # chain_dtype (bf16 on v6e/v7x halves vld/vst/VALU traffic).
        return jnp.maximum(lin(h, w, b), 0.0).astype(chain_dtype)

    x = x_ref[...]                      # f32 tile; bf16 cast happens inside lin()

    # Packed biases: rows 0..4 are width-H, row 5 is the (padded) output bias.
    b_in = b_ref[0:1, :H]
    b11 = b_ref[1:2, :H]
    b12 = b_ref[2:3, :H]
    b21 = b_ref[3:4, :H]
    b22 = b_ref[4:5, :H]
    b_out = b_ref[5:6, :n_out_pad]

    xin = lin(x, w_in_ref[...], b_in).astype(chain_dtype)   # xin = self.input(xin)
    x1 = blk(xin, w_hid_ref[0], b11) + xin                  # block11 + residual
    x2 = blk(x1, w_hid_ref[1], b12) + x1 + xin              # block12 + residuals
    x3 = blk(x2, w_hid_ref[2], b21) + x2                    # block21 + residual
    x4 = blk(x3, w_hid_ref[3], b22) + x3                    # block22 + residual

    out = lin(x4, w_out_ref[...], b_out)                    # (tb, n_out_pad) f32
    # Narrow masked store of the real logits only (no 64x write amplification).
    o_ref[...] = out[:, :num_out].astype(o_ref.dtype)


def prepare_params(params):
    """One-time, cacheable parameter prep (hoisted out of the per-call path)."""
    F, H = params["w_in"].shape
    num_out = params["w_out"].shape[1]
    n_out_pad = _round_up(num_out, _LANE)   # lane-dense w_out columns (cached, free)
    Wb = max(H, n_out_pad)

    w_in = params["w_in"].astype(jnp.bfloat16)
    w_hid = jnp.stack([params[k].astype(jnp.bfloat16)
                       for k in ("w11", "w12", "w21", "w22")])            # (4,H,H)
    w_out = jnp.pad(params["w_out"],
                    ((0, 0), (0, n_out_pad - num_out))).astype(jnp.bfloat16)

    def brow(name):
        b = params[name].reshape(1, -1).astype(jnp.float32)
        return jnp.pad(b, ((0, 0), (0, Wb - b.shape[1])))

    b_all = jnp.concatenate(
        [brow("b_in"), brow("b11"), brow("b12"), brow("b21"), brow("b22"),
         brow("b_out"), jnp.zeros((2, Wb), jnp.float32)], axis=0)         # (8,Wb)

    return {
        "w_in": w_in, "w_hid": w_hid, "w_out": w_out, "b_all": b_all,
        "num_feature": F, "hidden": H, "num_out": num_out, "n_out_pad": n_out_pad,
    }


def base3d_pose_net_forward(x, prep, *, block_batch=None, chain_dtype=None):
    """x: (B, num_feature) f32. prep: output of prepare_params (cached)."""
    B, F = x.shape
    assert F == prep["num_feature"]
    H, num_out, n_out_pad = prep["hidden"], prep["num_out"], prep["n_out_pad"]
    Wb = prep["b_all"].shape[1]

    kind = _device_kind()
    if chain_dtype is None:
        chain_dtype = _auto_chain_dtype(kind)
    tb = block_batch if block_batch is not None else _default_block_batch(B, kind)
    tb = max(8, tb - tb % 8)
    grid = (_cdiv(B, tb),)

    kernel = functools.partial(_pose_net_kernel, num_out=num_out,
                               chain_dtype=chain_dtype)

    flops = 2 * B * (F * H + 4 * H * H + H * n_out_pad)
    bytes_accessed = (4 * x.size                                   # x in f32
                      + 2 * (prep["w_in"].size + prep["w_hid"].size
                             + prep["w_out"].size)                 # bf16 weights
                      + 4 * prep["b_all"].size                     # f32 biases
                      + 4 * B * num_out)                           # f32 output

    return pl.pallas_call(
        kernel,
        out_shape=jax.ShapeDtypeStruct((B, num_out), jnp.float32),
        grid_spec=pltpu.PrefetchScalarGridSpec(
            num_scalar_prefetch=0,
            grid=grid,
            in_specs=[
                pl.BlockSpec((tb, F), lambda i: (i, 0)),       # x: batch-tiled
                pl.BlockSpec((F, H), lambda i: (0, 0)),        # resident weights
                pl.BlockSpec((4, H, H), lambda i: (0, 0, 0)),
                pl.BlockSpec((H, n_out_pad), lambda i: (0, 0)),
                pl.BlockSpec((8, Wb), lambda i: (0, 0)),       # packed biases
            ],
            out_specs=pl.BlockSpec((tb, num_out), lambda i: (i, 0)),
        ),
        compiler_params=pltpu.CompilerParams(
            dimension_semantics=("parallel",),
        ),
        cost_estimate=pl.CostEstimate(
            flops=flops, transcendentals=0, bytes_accessed=bytes_accessed),
    )(x, prep["w_in"], prep["w_hid"], prep["w_out"], prep["b_all"])


def init_params(key, num_feature, num_out, num_fusion_feature):
    """Deterministic synthetic parameters. Weights stored as (in, out), f32."""
    keys = jax.random.split(key, 12)

    def w(k, fan_in, fan_out):
        bound = 1.0 / jnp.sqrt(fan_in)
        return jax.random.uniform(k, (fan_in, fan_out), jnp.float32, -bound, bound)

    def b(k, fan_in, fan_out):
        bound = 1.0 / jnp.sqrt(fan_in)
        return jax.random.uniform(k, (1, fan_out), jnp.float32, -bound, bound)

    F, H, O = num_feature, num_fusion_feature, num_out
    return {
        "w_in": w(keys[0], F, H), "b_in": b(keys[1], F, H),
        "w11": w(keys[2], H, H), "b11": b(keys[3], H, H),
        "w12": w(keys[4], H, H), "b12": b(keys[5], H, H),
        "w21": w(keys[6], H, H), "b21": b(keys[7], H, H),
        "w22": w(keys[8], H, H), "b22": b(keys[9], H, H),
        "w_out": w(keys[10], H, O), "b_out": b(keys[11], H, O),
    }


def reference_forward(x, p, *, chain_dtype=jnp.float32):
    """Pure-JAX reference mirroring the kernel's mixed precision exactly."""
    bf16 = jnp.bfloat16

    def lin(h, w, b):
        return (jnp.dot(h.astype(bf16), w.astype(bf16),
                        preferred_element_type=jnp.float32)
                + b.astype(jnp.float32))

    def blk(h, w, b):
        return jnp.maximum(lin(h, w, b), 0.0).astype(chain_dtype)

    xin = lin(x, p["w_in"], p["b_in"]).astype(chain_dtype)
    x1 = blk(xin, p["w11"], p["b11"]) + xin
    x2 = blk(x1, p["w12"], p["b12"]) + x1 + xin
    x3 = blk(x2, p["w21"], p["b21"]) + x2
    x4 = blk(x3, p["w22"], p["b22"]) + x3
    return lin(x4, p["w_out"], p["b_out"])


if __name__ == "__main__":
    # Shapes mirroring UnseenSemSegNet's use of base3DPoseNet as the sem-seg head:
    # two stacked samples of num_sample=700 points, 2*fusion features in,
    # 2 logits out (kept small: hidden width 128 instead of 1024).
    B = 1400
    num_feature = 64           # 2 * (small) num_fusion_feature of the backbone MLPs
    num_fusion_feature = 128   # hidden width of the pose-net blocks
    num_out = 2

    key = jax.random.PRNGKey(0)
    k_x, k_p = jax.random.split(key)
    x = jax.random.normal(k_x, (B, num_feature), jnp.float32)
    params = init_params(k_p, num_feature, num_out, num_fusion_feature)

    kind = _device_kind()
    chain_dtype = _auto_chain_dtype(kind)

    prep = prepare_params(params)          # one-time (cacheable) param prep
    ref = reference_forward(x, params, chain_dtype=chain_dtype)

    # 1) device-aware default tiling: grid=(1,) on v5e/v6e, even split on v7x.
    out = base3d_pose_net_forward(x, prep, chain_dtype=chain_dtype)
    out = jax.block_until_ready(out)
    assert out.shape == (B, num_out)
    err = float(jnp.max(jnp.abs(out - ref)))
    assert jnp.allclose(out, ref, atol=2e-2, rtol=2e-2), err

    # 2) multi-step grid with a masked tail block (1400 = 2*512 + 376).
    out2 = base3d_pose_net_forward(x, prep, block_batch=512, chain_dtype=chain_dtype)
    out2 = jax.block_until_ready(out2)
    err2 = float(jnp.max(jnp.abs(out2 - ref)))
    assert jnp.allclose(out2, ref, atol=2e-2, rtol=2e-2), err2

    # TODO(synk): UnseenSemSegNet.balance_sample / sparse-backbone feature gather
    # are host-side data-dependent indexing and are not part of this kernel.
    print("KERNEL_OK")
</pallas_src>

<mosaic_0001>
module attributes {stable_mosaic.version = 11 : i64} {
  func.func @_pose_net_kernel(%arg0: i32, %arg1: memref<1400x64xf32, #tpu.memory_space<vmem>>, %arg2: memref<64x128xbf16, #tpu.memory_space<vmem>>, %arg3: memref<4x128x128xbf16, #tpu.memory_space<vmem>>, %arg4: memref<128x128xbf16, #tpu.memory_space<vmem>>, %arg5: memref<8x128xf32, #tpu.memory_space<vmem>>, %arg6: memref<1400x2xf32, #tpu.memory_space<vmem>>) attributes {dimension_semantics = [#tpu.dimension_semantics<parallel>], iteration_bounds = array<i64: 1>, scalar_prefetch = 0 : i64, scratch_operands = 0 : i64, tpu.core_type = #tpu.core_type<tc>, window_params = [{transform_indices = @transform_0, window_bounds = array<i64: 1400, 64>}, {pipeline_mode = #tpu.pipeline_mode<synchronous>, transform_indices = @transform_1, window_bounds = array<i64: 64, 128>}, {pipeline_mode = #tpu.pipeline_mode<synchronous>, transform_indices = @transform_2, window_bounds = array<i64: 4, 128, 128>}, {pipeline_mode = #tpu.pipeline_mode<synchronous>, transform_indices = @transform_3, window_bounds = array<i64: 128, 128>}, {pipeline_mode = #tpu.pipeline_mode<synchronous>, transform_indices = @transform_4, window_bounds = array<i64: 8, 128>}, {transform_indices = @transform_5, window_bounds = array<i64: 1400, 2>}]} {
    %c0 = arith.constant 0 : index
    %c0_0 = arith.constant 0 : index
    %0 = vector.load %arg1[%c0, %c0_0] : memref<1400x64xf32, #tpu.memory_space<vmem>>, vector<1400x64xf32>
    %c0_1 = arith.constant 0 : index
    %c0_2 = arith.constant 0 : index
    %1 = vector.load %arg5[%c0_1, %c0_2] : memref<8x128xf32, #tpu.memory_space<vmem>>, vector<1x128xf32>
    %c1 = arith.constant 1 : index
    %c0_3 = arith.constant 0 : index
    %2 = vector.load %arg5[%c1, %c0_3] : memref<8x128xf32, #tpu.memory_space<vmem>>, vector<1x128xf32>
    %c2 = arith.constant 2 : index
    %c0_4 = arith.constant 0 : index
    %3 = vector.load %arg5[%c2, %c0_4] : memref<8x128xf32, #tpu.memory_space<vmem>>, vector<1x128xf32>
    %c3 = arith.constant 3 : index
    %c0_5 = arith.constant 0 : index
    %4 = vector.load %arg5[%c3, %c0_5] : memref<8x128xf32, #tpu.memory_space<vmem>>, vector<1x128xf32>
    %c4 = arith.constant 4 : index
    %c0_6 = arith.constant 0 : index
    %5 = vector.load %arg5[%c4, %c0_6] : memref<8x128xf32, #tpu.memory_space<vmem>>, vector<1x128xf32>
    %c5 = arith.constant 5 : index
    %c0_7 = arith.constant 0 : index
    %6 = vector.load %arg5[%c5, %c0_7] : memref<8x128xf32, #tpu.memory_space<vmem>>, vector<1x128xf32>
    %c0_8 = arith.constant 0 : index
    %c0_9 = arith.constant 0 : index
    %7 = vector.load %arg2[%c0_8, %c0_9] : memref<64x128xbf16, #tpu.memory_space<vmem>>, vector<64x128xbf16>
    %8 = arith.truncf %0 : vector<1400x64xf32> to vector<1400x64xbf16>
    %cst = arith.constant dense<0.000000e+00> : vector<1400x128xf32>
    %9 = tpu.matmul %8, %7, %cst {dimension_numbers = #tpu.dot_dimension_numbers<[1], [0], [0], [1], [0, 0, 1, 1], [], []>} : vector<1400x64xbf16>, vector<64x128xbf16>, vector<1400x128xf32> -> vector<1400x128xf32>
    %10 = vector.broadcast %1 : vector<1x128xf32> to vector<1400x128xf32>
    %11 = arith.addf %9, %10 : vector<1400x128xf32>
    %c0_10 = arith.constant 0 : index
    %c0_11 = arith.constant 0 : index
    %c0_12 = arith.constant 0 : index
    %12 = vector.load %arg3[%c0_10, %c0_11, %c0_12] : memref<4x128x128xbf16, #tpu.memory_space<vmem>>, vector<1x128x128xbf16>
    %13 = vector.shape_cast %12 : vector<1x128x128xbf16> to vector<128x128xbf16>
    %14 = arith.truncf %11 : vector<1400x128xf32> to vector<1400x128xbf16>
    %cst_13 = arith.constant dense<0.000000e+00> : vector<1400x128xf32>
    %15 = tpu.matmul %14, %13, %cst_13 {dimension_numbers = #tpu.dot_dimension_numbers<[1], [0], [0], [1], [0, 0, 1, 1], [], []>} : vector<1400x128xbf16>, vector<128x128xbf16>, vector<1400x128xf32> -> vector<1400x128xf32>
    %16 = vector.broadcast %2 : vector<1x128xf32> to vector<1400x128xf32>
    %17 = arith.addf %15, %16 : vector<1400x128xf32>
    %cst_14 = arith.constant 0.000000e+00 : f32
    %18 = vector.broadcast %cst_14 : f32 to vector<1400x128xf32>
    %19 = arith.maximumf %17, %18 : vector<1400x128xf32>
    %20 = arith.addf %19, %11 : vector<1400x128xf32>
    %c1_15 = arith.constant 1 : index
    %c0_16 = arith.constant 0 : index
    %c0_17 = arith.constant 0 : index
    %21 = vector.load %arg3[%c1_15, %c0_16, %c0_17] : memref<4x128x128xbf16, #tpu.memory_space<vmem>>, vector<1x128x128xbf16>
    %22 = vector.shape_cast %21 : vector<1x128x128xbf16> to vector<128x128xbf16>
    %23 = arith.truncf %20 : vector<1400x128xf32> to vector<1400x128xbf16>
    %cst_18 = arith.constant dense<0.000000e+00> : vector<1400x128xf32>
    %24 = tpu.matmul %23, %22, %cst_18 {dimension_numbers = #tpu.dot_dimension_numbers<[1], [0], [0], [1], [0, 0, 1, 1], [], []>} : vector<1400x128xbf16>, vector<128x128xbf16>, vector<1400x128xf32> -> vector<1400x128xf32>
    %25 = vector.broadcast %3 : vector<1x128xf32> to vector<1400x128xf32>
    %26 = arith.addf %24, %25 : vector<1400x128xf32>
    %cst_19 = arith.constant 0.000000e+00 : f32
    %27 = vector.broadcast %cst_19 : f32 to vector<1400x128xf32>
    %28 = arith.maximumf %26, %27 : vector<1400x128xf32>
    %29 = arith.addf %28, %20 : vector<1400x128xf32>
    %30 = arith.addf %29, %11 : vector<1400x128xf32>
    %c2_20 = arith.constant 2 : index
    %c0_21 = arith.constant 0 : index
    %c0_22 = arith.constant 0 : index
    %31 = vector.load %arg3[%c2_20, %c0_21, %c0_22] : memref<4x128x128xbf16, #tpu.memory_space<vmem>>, vector<1x128x128xbf16>
    %32 = vector.shape_cast %31 : vector<1x128x128xbf16> to vector<128x128xbf16>
    %33 = arith.truncf %30 : vector<1400x128xf32> to vector<1400x128xbf16>
    %cst_23 = arith.constant dense<0.000000e+00> : vector<1400x128xf32>
    %34 = tpu.matmul %33, %32, %cst_23 {dimension_numbers = #tpu.dot_dimension_numbers<[1], [0], [0], [1], [0, 0, 1, 1], [], []>} : vector<1400x128xbf16>, vector<128x128xbf16>, vector<1400x128xf32> -> vector<1400x128xf32>
    %35 = vector.broadcast %4 : vector<1x128xf32> to vector<1400x128xf32>
    %36 = arith.addf %34, %35 : vector<1400x128xf32>
    %cst_24 = arith.constant 0.000000e+00 : f32
    %37 = vector.broadcast %cst_24 : f32 to vector<1400x128xf32>
    %38 = arith.maximumf %36, %37 : vector<1400x128xf32>
    %39 = arith.addf %38, %30 : vector<1400x128xf32>
    %c3_25 = arith.constant 3 : index
    %c0_26 = arith.constant 0 : index
    %c0_27 = arith.constant 0 : index
    %40 = vector.load %arg3[%c3_25, %c0_26, %c0_27] : memref<4x128x128xbf16, #tpu.memory_space<vmem>>, vector<1x128x128xbf16>
    %41 = vector.shape_cast %40 : vector<1x128x128xbf16> to vector<128x128xbf16>
    %42 = arith.truncf %39 : vector<1400x128xf32> to vector<1400x128xbf16>
    %cst_28 = arith.constant dense<0.000000e+00> : vector<1400x128xf32>
    %43 = tpu.matmul %42, %41, %cst_28 {dimension_numbers = #tpu.dot_dimension_numbers<[1], [0], [0], [1], [0, 0, 1, 1], [], []>} : vector<1400x128xbf16>, vector<128x128xbf16>, vector<1400x128xf32> -> vector<1400x128xf32>
    %44 = vector.broadcast %5 : vector<1x128xf32> to vector<1400x128xf32>
    %45 = arith.addf %43, %44 : vector<1400x128xf32>
    %cst_29 = arith.constant 0.000000e+00 : f32
    %46 = vector.broadcast %cst_29 : f32 to vector<1400x128xf32>
    %47 = arith.maximumf %45, %46 : vector<1400x128xf32>
    %48 = arith.addf %47, %39 : vector<1400x128xf32>
    %c0_30 = arith.constant 0 : index
    %c0_31 = arith.constant 0 : index
    %49 = vector.load %arg4[%c0_30, %c0_31] : memref<128x128xbf16, #tpu.memory_space<vmem>>, vector<128x128xbf16>
    %50 = arith.truncf %48 : vector<1400x128xf32> to vector<1400x128xbf16>
    %cst_32 = arith.constant dense<0.000000e+00> : vector<1400x128xf32>
    %51 = tpu.matmul %50, %49, %cst_32 {dimension_numbers = #tpu.dot_dimension_numbers<[1], [0], [0], [1], [0, 0, 1, 1], [], []>} : vector<1400x128xbf16>, vector<128x128xbf16>, vector<1400x128xf32> -> vector<1400x128xf32>
    %52 = vector.broadcast %6 : vector<1x128xf32> to vector<1400x128xf32>
    %53 = arith.addf %51, %52 : vector<1400x128xf32>
    %54 = vector.extract_strided_slice %53 {offsets = [0, 0], sizes = [1400, 2], strides = [1, 1]} : vector<1400x128xf32> to vector<1400x2xf32>
    %c0_33 = arith.constant 0 : index
    %c0_34 = arith.constant 0 : index
    %55 = vector.load %arg6[%c0_33, %c0_34] : memref<1400x2xf32, #tpu.memory_space<vmem>>, vector<1400x2xf32>
    tpu.vector_store %arg6[%c0_33, %c0_34], %54 {strides = array<i32>} : memref<1400x2xf32, #tpu.memory_space<vmem>>, vector<1400x2xf32>,
    return
  }
  func.func @transform_0(%arg0: i32) -> (i32, i32) {
    %c0_i32 = arith.constant 0 : i32
    %c0_i32_0 = arith.constant 0 : i32
    return %arg0, %c0_i32 : i32, i32
  }
  func.func @transform_1(%arg0: i32) -> (i32, i32) {
    %c0_i32 = arith.constant 0 : i32
    %c0_i32_0 = arith.constant 0 : i32
    %c0_i32_1 = arith.constant 0 : i32
    return %c0_i32, %c0_i32_0 : i32, i32
  }
  func.func @transform_2(%arg0: i32) -> (i32, i32, i32) {
    %c0_i32 = arith.constant 0 : i32
    %c0_i32_0 = arith.constant 0 : i32
    %c0_i32_1 = arith.constant 0 : i32
    %c0_i32_2 = arith.constant 0 : i32
    return %c0_i32, %c0_i32_0, %c0_i32_1 : i32, i32, i32
  }
  func.func @transform_3(%arg0: i32) -> (i32, i32) {
    %c0_i32 = arith.constant 0 : i32
    %c0_i32_0 = arith.constant 0 : i32
    %c0_i32_1 = arith.constant 0 : i32
    return %c0_i32, %c0_i32_0 : i32, i32
  }
  func.func @transform_4(%arg0: i32) -> (i32, i32) {
    %c0_i32 = arith.constant 0 : i32
    %c0_i32_0 = arith.constant 0 : i32
    %c0_i32_1 = arith.constant 0 : i32
    return %c0_i32, %c0_i32_0 : i32, i32
  }
  func.func @transform_5(%arg0: i32) -> (i32, i32) {
    %c0_i32 = arith.constant 0 : i32
    %c0_i32_0 = arith.constant 0 : i32
    return %arg0, %c0_i32 : i32, i32
  }
}

</mosaic_0001>

<bundles_post_ra>
// kernel: tpu_custom_call.1
= control target key start
LH: loop header
LB: loop body
LE: loop exit
PB: predicated region body
PF: predicated region fallthrough
CT: control target
= control target key end

     0   :  { %vm323_vm0 = vcmask 523264   ;;  %vm5619_vm1 = vcmask 15360   ;;  %s12408_s1 = inlined_call_operand.vmem [shape: bf16[64,128], index: 1, kind: input, shape index: {}]   ;;  %s12409_s4 = inlined_call_operand.vmem [shape: f32[8,128], index: 4, kind: input, shape index: {}]   ;;  %s12410_s0 = inlined_call_operand.vmem [shape: f32[1400,64], index: 0, kind: input, shape index: {}]   ;;  %s12411_s2 = inlined_call_operand.vmem [shape: bf16[4,128,128], index: 2, kind: input, shape index: {}]   ;;  %s12412_s3 = inlined_call_operand.vmem [shape: bf16[128,128], index: 3, kind: input, shape index: {}]   ;;  %s12413_s5 = inlined_call_operand.vmem [shape: f32[1400,2], index: 5, kind: output, shape index: {}]  }
   0x1   :  { %v6114_v0 = vld [vmem:[%s12408_s1 + $0x18] sm:$0xff]  ;;  %v6113_v1 = vld [vmem:[%s12408_s1 + $0x10] sm:$0xff]  ;;  %v6112_v2 = vld [vmem:[%s12408_s1 + $0x8] sm:$0xff] }
   0x2   :  { %592 = vmatpush.bf16.msra.mxu0 %v6114_v0  ;;  %6155 = vmatpush.bf16.msra.mxu3 %v6114_v0  ;;  %v6111_v3 = vld [vmem:[%s12408_s1] sm:$0xff]  ;;  %v22_v5 = vld [vmem:[%s12410_s0 + $0x8] sm:$0xff]  ;;  %v23_v7 = vld [vmem:[%s12410_s0 + $0x10] sm:$0xff] }
   0x3   :  { %v21_v4 = vld [vmem:[%s12410_s0] sm:$0xff]  ;;  %v24_v8 = vld [vmem:[%s12410_s0 + $0x18] sm:$0xff]  ;;  %v26_v11 = vld [vmem:[%s12410_s0 + $0x28] sm:$0xff] }
   0x4   :  { %v210_v6 = vpack.c.bf16 %v22_v5, %v21_v4  ;;  %v211_v9 = vpack.c.bf16 %v24_v8, %v23_v7  ;;  %v25_v10 = vld [vmem:[%s12410_s0 + $0x20] sm:$0xff]  ;;  %v27_v13 = vld [vmem:[%s12410_s0 + $0x30] sm:$0xff]  ;;  %v28_v14 = vld [vmem:[%s12410_s0 + $0x38] sm:$0xff] }
   0x5   :  { %v212_v12 = vpack.c.bf16 %v26_v11, %v25_v10  ;;  %v213_v15 = vpack.c.bf16 %v28_v14, %v27_v13  ;;  %v29_v16 = vld [vmem:[%s12410_s0 + $0x40] sm:$0xff]  ;;  %v30_v17 = vld [vmem:[%s12410_s0 + $0x48] sm:$0xff]  ;;  %v6122_v19 = vld [vmem:[%s12411_s2 + $0x38] sm:$0xff] }
   0x6   :  { %593 = vmatpush.bf16.msra.mxu0 %v6113_v1  ;;  %6156 = vmatpush.bf16.msra.mxu3 %v6113_v1  ;;  %v214_v18 = vpack.c.bf16 %v30_v17, %v29_v16  ;;  %v6121_v20 = vld [vmem:[%s12411_s2 + $0x30] sm:$0xff]  ;;  %v32_v22 = vld [vmem:[%s12410_s0 + $0x58] sm:$0xff]  ;;  %v6120_v24 = vld [vmem:[%s12411_s2 + $0x28] sm:$0xff] }
   0x7   :  { %1189 = vmatpush.bf16.msra.mxu1 %v6122_v19  ;;  %6159 = vmatpush.bf16.msra.mxu2 %v6122_v19  ;;  %v31_v21 = vld [vmem:[%s12410_s0 + $0x50] sm:$0xff]  ;;  %v6119_v25 = vld [vmem:[%s12411_s2 + $0x20] sm:$0xff]  ;;  %v6118_v26 = vld [vmem:[%s12411_s2 + $0x18] sm:$0xff] }
   0x8   :  { %v215_v23 = vpack.c.bf16 %v32_v22, %v31_v21  ;;  %v33_v27 = vld [vmem:[%s12410_s0 + $0x60] sm:$0xff]  ;;  %v34_v28 = vld [vmem:[%s12410_s0 + $0x68] sm:$0xff]  ;;  %v6117_v30 = vld [vmem:[%s12411_s2 + $0x10] sm:$0xff] }
   0x9   :  { %v216_v29 = vpack.c.bf16 %v34_v28, %v33_v27  ;;  %v6116_v31 = vld [vmem:[%s12411_s2 + $0x8] sm:$0xff]  ;;  %v6115_v32 = vld [vmem:[%s12411_s2] sm:$0xff]  ;;  %v35_v33 = vld [vmem:[%s12410_s0 + $0x70] sm:$0xff] }
   0xa   :  { %594 = vmatpush.bf16.msra.mxu0 %v6112_v2  ;;  %6157 = vmatpush.bf16.msra.mxu3 %v6112_v2  ;;  %v36_v34 = vld [vmem:[%s12410_s0 + $0x78] sm:$0xff]  ;;  %v37_v36 = vld [vmem:[%s12410_s0 + $0x80] sm:$0xff]  ;;  %v38_v37 = vld [vmem:[%s12410_s0 + $0x88] sm:$0xff] }
   0xb   :  { %1190 = vmatpush.bf16.msra.mxu1 %v6121_v20  ;;  %6160 = vmatpush.bf16.msra.mxu2 %v6121_v20  ;;  %v217_v35 = vpack.c.bf16 %v36_v34, %v35_v33  ;;  %v218_v38 = vpack.c.bf16 %v38_v37, %v37_v36  ;;  %v6336_v40 = vld [vmem:[%s12409_s4] ss:$0 sm:$0xff]  ;;  %v39_v45 = vld [vmem:[%s12410_s0 + $0x90] sm:$0xff]  ;;  %v40_v46 = vld [vmem:[%s12410_s0 + $0x98] sm:$0xff] }
   0xc   :  { %v219_v47 = vpack.c.bf16 %v40_v46, %v39_v45  ;;  %v41_v53 = vld [vmem:[%s12410_s0 + $0xa0] sm:$0xff]  ;;  %v42_v54 = vld [vmem:[%s12410_s0 + $0xa8] sm:$0xff]  ;;  %v43_v61 = vld [vmem:[%s12410_s0 + $0xb0] sm:$0xff] }
   0xd   :  { %v220_v55 = vpack.c.bf16 %v42_v54, %v41_v53  ;;  %v44_v62 = vld [vmem:[%s12410_s0 + $0xb8] sm:$0xff]  ;;  %v45_v5 = vld [vmem:[%s12410_s0 + $0xc0] sm:$0xff]  ;;  %v47_v13 = vld [vmem:[%s12410_s0 + $0xd0] sm:$0xff] }
   0xe   :  { %595 = vmatpush.bf16.msra.mxu0 %v6111_v3  ;;  %6158 = vmatpush.bf16.msra.mxu3 %v6111_v3  ;;  %v221_v63 = vpack.c.bf16 %v44_v62, %v43_v61  ;;  %v48_v14 = vld [vmem:[%s12410_s0 + $0xd8] sm:$0xff]  ;;  %v49_v21 = vld [vmem:[%s12410_s0 + $0xe0] sm:$0xff]  ;;  %v50_v22 = vld [vmem:[%s12410_s0 + $0xe8] sm:$0xff] }
   0xf   :  { %1191 = vmatpush.bf16.msra.mxu1 %v6120_v24  ;;  %6161 = vmatpush.bf16.msra.mxu2 %v6120_v24  ;;  %v53_v37 = vld [vmem:[%s12410_s0 + $0x100] sm:$0xff] }
  0x11   :  { %5815 = vmatmul.msk.bf16.vlgmr.msra.gmra.mxu0 %vm323_vm0, %v210_v6  ;;  %v46_v6 = vld [vmem:[%s12410_s0 + $0xc8] sm:$0xff] }
  0x12   :  { %v222_v7 = vpack.c.bf16 %v46_v6, %v45_v5 }
  0x13   :  { %1192 = vmatpush.bf16.msra.mxu1 %v6119_v25  ;;  %6162 = vmatpush.bf16.msra.mxu2 %v6119_v25 }
  0x17   :  { %1193 = vmatpush.bf16.msra.mxu1 %v6118_v26  ;;  %6163 = vmatpush.bf16.msra.mxu2 %v6118_v26 }
  0x1b   :  { %1194 = vmatpush.bf16.msra.mxu1 %v6117_v30  ;;  %6164 = vmatpush.bf16.msra.mxu2 %v6117_v30  ;;  %v52_v30 = vld [vmem:[%s12410_s0 + $0xf8] sm:$0xff] }
  0x1f   :  { %1195 = vmatpush.bf16.msra.mxu1 %v6116_v31  ;;  %6165 = vmatpush.bf16.msra.mxu2 %v6116_v31 }
  0x21   :  { %5816 = vmatmul.msk.bf16.gmra.mxu0 %vm323_vm0, %v211_v9 }
  0x23   :  { %1196 = vmatpush.bf16.msra.mxu1 %v6115_v32  ;;  %6166 = vmatpush.bf16.msra.mxu2 %v6115_v32 }
  0x31   :  { %5817 = vmatmul.msk.bf16.gmra.mxu0 %vm323_vm0, %v212_v12 }
  0x41   :  { %5818 = vmatmul.msk.bf16.gmra.mxu0 %vm323_vm0, %v213_v15  ;;  %v223_v15 = vpack.c.bf16 %v48_v14, %v47_v13  ;;  %v59_v13 = vld [vmem:[%s12410_s0 + $0x130] sm:$0xff]  ;;  %v60_v14 = vld [vmem:[%s12410_s0 + $0x138] sm:$0xff] }
  0x51   :  { %5819 = vmatmul.msk.bf16.gmra.mxu0 %vm323_vm0, %v214_v18 }
  0x61   :  { %5820 = vmatmul.msk.bf16.gmra.mxu0 %vm323_vm0, %v215_v23  ;;  %v224_v23 = vpack.c.bf16 %v50_v22, %v49_v21 }
  0x71   :  { %5821 = vmatmul.msk.bf16.gmra.mxu0 %vm323_vm0, %v216_v29  ;;  %v51_v29 = vld [vmem:[%s12410_s0 + $0xf0] sm:$0xff] }
  0x72   :  { %v225_v31 = vpack.c.bf16 %v52_v30, %v51_v29 }
  0x81   :  { %5822 = vmatmul.msk.bf16.gmra.mxu0 %vm323_vm0, %v217_v35 }
  0x8e   :  { %v597_v39 = vpop.f32.mrf.mxu0 }
  0x8f   :  { %v6339_v42 = vadd.f32 %v6336_v40, %v597_v39 }
  0x91   :  { %5823 = vmatmul.msk.bf16.gmra.mxu0 %vm323_vm0, %v218_v38  ;;  %v54_v38 = vld [vmem:[%s12410_s0 + $0x108] sm:$0xff] }
  0x92   :  { %v226_v39 = vpack.c.bf16 %v54_v38, %v53_v37 }
  0x96   :  { %v599_v41 = vpop.f32.mrf.mxu0 }
  0x97   :  { %v6342_v43 = vadd.f32 %v6336_v40, %v599_v41 }
  0x99   :  { %v1052_v44 = vpack.c.bf16 %v6342_v43, %v6339_v42 }
  0x9b   :  { %1197 = vmatmul.bf16.vlgmr.msra.gmra.mxu1 %v1052_v44 }
  0x9e   :  { %v602_v48 = vpop.f32.mrf.mxu0 }
  0x9f   :  { %v6354_v50 = vadd.f32 %v6336_v40, %v602_v48 }
  0xa1   :  { %5824 = vmatmul.msk.bf16.gmra.mxu0 %vm323_vm0, %v219_v47 }
  0xa6   :  { %v604_v49 = vpop.f32.mrf.mxu0 }
  0xa7   :  { %v6357_v51 = vadd.f32 %v6336_v40, %v604_v49  ;;  %v55_v49 = vld [vmem:[%s12410_s0 + $0x110] sm:$0xff] }
  0xa9   :  { %v1053_v52 = vpack.c.bf16 %v6357_v51, %v6354_v50 }
  0xab   :  { %1202 = vmatmul.bf16.gmra.mxu1 %v1053_v52  ;;  %v56_v52 = vld [vmem:[%s12410_s0 + $0x118] sm:$0xff] }
  0xac   :  { %v227_v53 = vpack.c.bf16 %v56_v52, %v55_v49 }
  0xae   :  { %v607_v56 = vpop.f32.mrf.mxu0 }
  0xaf   :  { %v6369_v58 = vadd.f32 %v6336_v40, %v607_v56 }
  0xb1   :  { %5825 = vmatmul.msk.bf16.gmra.mxu0 %vm323_vm0, %v220_v55 }
  0xb6   :  { %v609_v57 = vpop.f32.mrf.mxu0 }
  0xb7   :  { %v6372_v59 = vadd.f32 %v6336_v40, %v609_v57 }
  0xb9   :  { %v1054_v60 = vpack.c.bf16 %v6372_v59, %v6369_v58 }
  0xbb   :  { %1207 = vmatmul.bf16.gmra.mxu1 %v1054_v60 }
  0xbe   :  { %v612_v0 = vpop.f32.mrf.mxu0 }
  0xbf   :  { %v6384_v2 = vadd.f32 %v6336_v40, %v612_v0  ;;  %v58_v0 = vld [vmem:[%s12410_s0 + $0x128] sm:$0xff] }
  0xc1   :  { %5826 = vmatmul.msk.bf16.gmra.mxu0 %vm323_vm0, %v221_v63  ;;  %v57_v63 = vld [vmem:[%s12410_s0 + $0x120] sm:$0xff] }
  0xc6   :  { %v614_v1 = vpop.f32.mrf.mxu0 }
  0xc7   :  { %v6387_v3 = vadd.f32 %v6336_v40, %v614_v1  ;;  %v228_v1 = vpack.c.bf16 %v58_v0, %v57_v63  ;;  %v65_v63 = vld [vmem:[%s12410_s0 + $0x160] sm:$0xff]  ;;  %v66_v0 = vld [vmem:[%s12410_s0 + $0x168] sm:$0xff] }
  0xc9   :  { %v1055_v4 = vpack.c.bf16 %v6387_v3, %v6384_v2 }
  0xcb   :  { %1212 = vmatmul.bf16.gmra.mxu1 %v1055_v4 }
  0xce   :  { %v617_v8 = vpop.f32.mrf.mxu0 }
  0xcf   :  { %v6399_v10 = vadd.f32 %v6336_v40, %v617_v8 }
  0xd1   :  { %5827 = vmatmul.msk.bf16.gmra.mxu0 %vm323_vm0, %v222_v7 }
  0xd6   :  { %v619_v9 = vpop.f32.mrf.mxu0 }
  0xd7   :  { %v6402_v11 = vadd.f32 %v6336_v40, %v619_v9 }
  0xd9   :  { %v1056_v12 = vpack.c.bf16 %v6402_v11, %v6399_v10 }
  0xdb   :  { %1217 = vmatmul.bf16.gmra.mxu1 %v1056_v12 }
  0xde   :  { %v622_v16 = vpop.f32.mrf.mxu0 }
  0xdf   :  { %v6414_v18 = vadd.f32 %v6336_v40, %v622_v16 }
  0xe1   :  { %5828 = vmatmul.msk.bf16.gmra.mxu0 %vm323_vm0, %v223_v15  ;;  %v229_v15 = vpack.c.bf16 %v60_v14, %v59_v13 }
  0xe6   :  { %v624_v17 = vpop.f32.mrf.mxu0 }
  0xe7   :  { %v6417_v19 = vadd.f32 %v6336_v40, %v624_v17 }
  0xe9   :  { %v1057_v20 = vpack.c.bf16 %v6417_v19, %v6414_v18 }
  0xeb   :  { %1222 = vmatmul.bf16.gmra.mxu1 %v1057_v20 }
  0xee   :  { %v627_v24 = vpop.f32.mrf.mxu0 }
  0xef   :  { %v6429_v26 = vadd.f32 %v6336_v40, %v627_v24 }
  0xf1   :  { %5829 = vmatmul.msk.bf16.gmra.mxu0 %vm323_vm0, %v224_v23 }
  0xf6   :  { %v629_v25 = vpop.f32.mrf.mxu0 }
  0xf7   :  { %v6432_v27 = vadd.f32 %v6336_v40, %v629_v25  ;;  %v61_v25 = vld [vmem:[%s12410_s0 + $0x140] sm:$0xff] }
  0xf9   :  { %v1058_v28 = vpack.c.bf16 %v6432_v27, %v6429_v26 }
  0xfb   :  { %1227 = vmatmul.bf16.gmra.mxu1 %v1058_v28  ;;  %v62_v28 = vld [vmem:[%s12410_s0 + $0x148] sm:$0xff] }
  0xfc   :  { %v230_v29 = vpack.c.bf16 %v62_v28, %v61_v25 }
  0xfe   :  { %v632_v32 = vpop.f32.mrf.mxu0 }
  0xff   :  { %v6444_v34 = vadd.f32 %v6336_v40, %v632_v32 }
 0x101   :  { %5830 = vmatmul.msk.bf16.gmra.mxu0 %vm323_vm0, %v225_v31 }
 0x106   :  { %v634_v33 = vpop.f32.mrf.mxu0 }
 0x107   :  { %v6447_v35 = vadd.f32 %v6336_v40, %v634_v33 }
 0x109   :  { %v1059_v36 = vpack.c.bf16 %v6447_v35, %v6444_v34 }
 0x10b   :  { %1232 = vmatmul.bf16.gmra.mxu1 %v1059_v36 }
 0x10e   :  { %v637_v41 = vpop.f32.mrf.mxu0 }
 0x10f   :  { %v6459_v45 = vadd.f32 %v6336_v40, %v637_v41  ;;  %v64_v41 = vld [vmem:[%s12410_s0 + $0x158] sm:$0xff] }
 0x111   :  { %5831 = vmatmul.msk.bf16.gmra.mxu0 %vm323_vm0, %v226_v39  ;;  %v63_v39 = vld [vmem:[%s12410_s0 + $0x150] sm:$0xff] }
 0x116   :  { %v639_v44 = vpop.f32.mrf.mxu0 }
 0x117   :  { %v6462_v46 = vadd.f32 %v6336_v40, %v639_v44  ;;  %v231_v44 = vpack.c.bf16 %v64_v41, %v63_v39 }
 0x118   :  { %v6464_v47 = vpop.f32.mrf.mxu1 }
 0x119   :  { %v1060_v48 = vpack.c.bf16 %v6462_v46, %v6459_v45 }
 0x11b   :  { %1237 = vmatmul.bf16.gmra.mxu1 %v1060_v48 }
 0x11e   :  { %v642_v54 = vpop.f32.mrf.mxu0 }
 0x11f   :  { %v6478_v57 = vadd.f32 %v6336_v40, %v642_v54 }
 0x120   :  { %v6474_v55 = vpop.f32.mrf.mxu1 }
 0x121   :  { %5832 = vmatmul.msk.bf16.gmra.mxu0 %vm323_vm0, %v227_v53 }
 0x126   :  { %v644_v56 = vpop.f32.mrf.mxu0 }
 0x127   :  { %v6481_v60 = vadd.f32 %v6336_v40, %v644_v56 }
 0x128   :  { %v6483_v61 = vpop.f32.mrf.mxu1 }
 0x129   :  { %v1061_v62 = vpack.c.bf16 %v6481_v60, %v6478_v57 }
 0x12b   :  { %1242 = vmatmul.bf16.gmra.mxu1 %v1061_v62 }
 0x12e   :  { %v647_v4 = vpop.f32.mrf.mxu0 }
 0x12f   :  { %v6497_v7 = vadd.f32 %v6336_v40, %v647_v4 }
 0x130   :  { %v6493_v5 = vpop.f32.mrf.mxu1 }
 0x131   :  { %5833 = vmatmul.msk.bf16.gmra.mxu0 %vm323_vm0, %v228_v1  ;;  %v232_v1 = vpack.c.bf16 %v66_v0, %v65_v63 }
 0x136   :  { %v649_v6 = vpop.f32.mrf.mxu0 }
 0x137   :  { %v6500_v8 = vadd.f32 %v6336_v40, %v649_v6 }
 0x138   :  { %v6502_v9 = vpop.f32.mrf.mxu1 }
 0x139   :  { %v1062_v12 = vpack.c.bf16 %v6500_v8, %v6497_v7 }
 0x13b   :  { %1247 = vmatmul.bf16.gmra.mxu1 %v1062_v12 }
 0x13e   :  { %v652_v16 = vpop.f32.mrf.mxu0 }
 0x13f   :  { %v6516_v21 = vadd.f32 %v6336_v40, %v652_v16 }
 0x140   :  { %v6512_v17 = vpop.f32.mrf.mxu1 }
 0x141   :  { %5834 = vmatmul.msk.bf16.gmra.mxu0 %vm323_vm0, %v229_v15  ;;  %12853 = vst [vmem:[#allocation2_spill] sm:$0xff] %v6516_v21 }
 0x146   :  { %v654_v20 = vpop.f32.mrf.mxu0 }
 0x147   :  { %v6519_v22 = vadd.f32 %v6336_v40, %v654_v20  ;;  %v67_v20 = vld [vmem:[%s12410_s0 + $0x170] sm:$0xff] }
 0x148   :  { %v6521_v23 = vpop.f32.mrf.mxu1 }
 0x149   :  { %v1063_v24 = vpack.c.bf16 %v6519_v22, %v6516_v21 }
 0x14b   :  { %1252 = vmatmul.bf16.gmra.mxu1 %v1063_v24  ;;  %v68_v24 = vld [vmem:[%s12410_s0 + $0x178] sm:$0xff] }
 0x14c   :  { %v233_v25 = vpack.c.bf16 %v68_v24, %v67_v20  ;;  %v71_v20 = vld [vmem:[%s12410_s0 + $0x190] sm:$0xff]  ;;  %v72_v24 = vld [vmem:[%s12410_s0 + $0x198] sm:$0xff] }
 0x14e   :  { %v657_v30 = vpop.f32.mrf.mxu0 }
 0x14f   :  { %v6535_v33 = vadd.f32 %v6336_v40, %v657_v30 }
 0x150   :  { %v6531_v31 = vpop.f32.mrf.mxu1 }
 0x151   :  { %5835 = vmatmul.msk.bf16.gmra.mxu0 %vm323_vm0, %v230_v29  ;;  %12854 = vst [vmem:[#allocation3_spill] sm:$0xff] %v6535_v33 }
 0x156   :  { %v659_v32 = vpop.f32.mrf.mxu0 }
 0x157   :  { %v6538_v36 = vadd.f32 %v6336_v40, %v659_v32 }
 0x158   :  { %v6540_v37 = vpop.f32.mrf.mxu1 }
 0x159   :  { %12855 = vst [vmem:[#allocation4_spill] sm:$0xff] %v6538_v36  ;;  %v1064_v38 = vpack.c.bf16 %v6538_v36, %v6535_v33 }
 0x15b   :  { %1257 = vmatmul.bf16.gmra.mxu1 %v1064_v38 }
 0x15e   :  { %v662_v48 = vpop.f32.mrf.mxu0 }
 0x15f   :  { %v6554_v53 = vadd.f32 %v6336_v40, %v662_v48  ;;  %v70_v48 = vld [vmem:[%s12410_s0 + $0x188] sm:$0xff] }
 0x160   :  { %v6550_v49 = vpop.f32.mrf.mxu1 }
 0x161   :  { %5836 = vmatmul.msk.bf16.gmra.mxu0 %vm323_vm0, %v231_v44  ;;  %12856 = vst [vmem:[#allocation5_spill] sm:$0xff] %v6554_v53  ;;  %v69_v44 = vld [vmem:[%s12410_s0 + $0x180] sm:$0xff] }
 0x166   :  { %v664_v52 = vpop.f32.mrf.mxu0 }
 0x167   :  { %v6557_v54 = vadd.f32 %v6336_v40, %v664_v52  ;;  %v234_v52 = vpack.c.bf16 %v70_v48, %v69_v44 }
 0x168   :  { %v6559_v56 = vpop.f32.mrf.mxu1 }
 0x169   :  { %12857 = vst [vmem:[#allocation6_spill] sm:$0xff] %v6557_v54  ;;  %v1065_v62 = vpack.c.bf16 %v6557_v54, %v6554_v53 }
 0x16b   :  { %1262 = vmatmul.bf16.gmra.mxu1 %v1065_v62 }
 0x16e   :  { %v667_v4 = vpop.f32.mrf.mxu0 }
 0x16f   :  { %v6573_v13 = vadd.f32 %v6336_v40, %v667_v4 }
 0x170   :  { %v6569_v6 = vpop.f32.mrf.mxu1 }
 0x171   :  { %5837 = vmatmul.msk.bf16.gmra.mxu0 %vm323_vm0, %v232_v1  ;;  %12858 = vst [vmem:[#allocation7_spill] sm:$0xff] %v6573_v13 }
 0x176   :  { %v669_v12 = vpop.f32.mrf.mxu0 }
 0x177   :  { %v6576_v14 = vadd.f32 %v6336_v40, %v669_v12 }
 0x178   :  { %v6578_v15 = vpop.f32.mrf.mxu1 }
 0x179   :  { %12859 = vst [vmem:[#allocation8_spill] sm:$0xff] %v6576_v14  ;;  %v1066_v16 = vpack.c.bf16 %v6576_v14, %v6573_v13 }
 0x17b   :  { %1267 = vmatmul.bf16.gmra.mxu1 %v1066_v16 }
 0x17e   :  { %v672_v28 = vpop.f32.mrf.mxu0 }
 0x17f   :  { %v6592_v32 = vadd.f32 %v6336_v40, %v672_v28 }
 0x180   :  { %v6588_v29 = vpop.f32.mrf.mxu1 }
 0x181   :  { %5838 = vmatmul.msk.bf16.gmra.mxu0 %vm323_vm0, %v233_v25  ;;  %12860 = vst [vmem:[#allocation9_spill] sm:$0xff] %v6592_v32  ;;  %v235_v25 = vpack.c.bf16 %v72_v24, %v71_v20 }
 0x186   :  { %v674_v30 = vpop.f32.mrf.mxu0 }
 0x187   :  { %v6595_v38 = vadd.f32 %v6336_v40, %v674_v30 }
 0x188   :  { %v6597_v39 = vpop.f32.mrf.mxu1 }
 0x189   :  { %12861 = vst [vmem:[#allocation10_spill] sm:$0xff] %v6595_v38  ;;  %v1067_v41 = vpack.c.bf16 %v6595_v38, %v6592_v32 }
 0x18b   :  { %1272 = vmatmul.bf16.gmra.mxu1 %v1067_v41 }
 0x18e   :  { %v677_v62 = vpop.f32.mrf.mxu0 }
 0x18f   :  { %v6611_v1 = vadd.f32 %v6336_v40, %v677_v62 }
 0x190   :  { %v6607_v63 = vpop.f32.mrf.mxu1 }
 0x191   :  { %5839 = vmatmul.msk.bf16.gmra.mxu0 %vm323_vm0, %v234_v52  ;;  %12862 = vst [vmem:[#allocation11_spill] sm:$0xff] %v6611_v1 }
 0x196   :  { %v679_v0 = vpop.f32.mrf.mxu0 }
 0x197   :  { %v6614_v4 = vadd.f32 %v6336_v40, %v679_v0  ;;  %v73_v0 = vld [vmem:[%s12410_s0 + $0x1a0] sm:$0xff] }
 0x198   :  { %v6616_v12 = vpop.f32.mrf.mxu1 }
 0x199   :  { %12863 = vst [vmem:[#allocation12_spill] sm:$0xff] %v6614_v4  ;;  %v1068_v16 = vpack.c.bf16 %v6614_v4, %v6611_v1 }
 0x19b   :  { %1277 = vmatmul.bf16.gmra.mxu1 %v1068_v16  ;;  %v74_v16 = vld [vmem:[%s12410_s0 + $0x1a8] sm:$0xff] }
 0x19c   :  { %v236_v20 = vpack.c.bf16 %v74_v16, %v73_v0  ;;  %v76_v0 = vld [vmem:[%s12410_s0 + $0x1b8] sm:$0xff] }
 0x19e   :  { %v682_v28 = vpop.f32.mrf.mxu0 }
 0x19f   :  { %v6630_v44 = vadd.f32 %v6336_v40, %v682_v28 }
 0x1a0   :  { %v6626_v30 = vpop.f32.mrf.mxu1 }
 0x1a1   :  { %5840 = vmatmul.msk.bf16.gmra.mxu0 %vm323_vm0, %v235_v25  ;;  %12864 = vst [vmem:[#allocation13_spill] sm:$0xff] %v6630_v44 }
 0x1a6   :  { %v684_v41 = vpop.f32.mrf.mxu0 }
 0x1a7   :  { %v6633_v48 = vadd.f32 %v6336_v40, %v684_v41 }
 0x1a8   :  { %v6635_v52 = vpop.f32.mrf.mxu1 }
 0x1a9   :  { %12865 = vst [vmem:[#allocation14_spill] sm:$0xff] %v6633_v48  ;;  %v1069_v62 = vpack.c.bf16 %v6633_v48, %v6630_v44 }
 0x1ab   :  { %1282 = vmatmul.bf16.gmra.mxu1 %v1069_v62  ;;  %v75_v62 = vld [vmem:[%s12410_s0 + $0x1b0] sm:$0xff] }
 0x1ac   :  { %v237_v16 = vpack.c.bf16 %v76_v0, %v75_v62  ;;  %v78_v62 = vld [vmem:[%s12410_s0 + $0x1c8] sm:$0xff] }
 0x1ae   :  { %v687_v24 = vpop.f32.mrf.mxu0 }
 0x1af   :  { %v6649_v41 = vadd.f32 %v6336_v40, %v687_v24 }
 0x1b0   :  { %v6645_v25 = vpop.f32.mrf.mxu1 }
 0x1b1   :  { %5841 = vmatmul.msk.bf16.gmra.mxu0 %vm323_vm0, %v236_v20  ;;  %12866 = vst [vmem:[#allocation15_spill] sm:$0xff] %v6649_v41 }
 0x1b6   :  { %v689_v28 = vpop.f32.mrf.mxu0 }
 0x1b7   :  { %v6652_v44 = vadd.f32 %v6336_v40, %v689_v28 }
 0x1b8   :  { %v6654_v48 = vpop.f32.mrf.mxu1 }
 0x1b9   :  { %12867 = vst [vmem:[#allocation16_spill] sm:$0xff] %v6652_v44  ;;  %v1070_v1 = vpack.c.bf16 %v6652_v44, %v6649_v41 }
 0x1bb   :  { %1287 = vmatmul.bf16.gmra.mxu1 %v1070_v1  ;;  %v77_v1 = vld [vmem:[%s12410_s0 + $0x1c0] sm:$0xff] }
 0x1bc   :  { %v238_v0 = vpack.c.bf16 %v78_v62, %v77_v1  ;;  %v80_v1 = vld [vmem:[%s12410_s0 + $0x1d8] sm:$0xff] }
 0x1be   :  { %v692_v20 = vpop.f32.mrf.mxu0 }
 0x1bf   :  { %v6668_v4 = vadd.f32 %v6336_v40, %v692_v20 }
 0x1c0   :  { %v6664_v24 = vpop.f32.mrf.mxu1 }
 0x1c1   :  { %5842 = vmatmul.msk.bf16.gmra.mxu0 %vm323_vm0, %v237_v16  ;;  %12868 = vst [vmem:[#allocation17_spill] sm:$0xff] %v6668_v4 }
 0x1c6   :  { %v694_v28 = vpop.f32.mrf.mxu0 }
 0x1c7   :  { %v6671_v41 = vadd.f32 %v6336_v40, %v694_v28 }
 0x1c8   :  { %v6673_v44 = vpop.f32.mrf.mxu1 }
 0x1c9   :  { %12869 = vst [vmem:[#allocation18_spill] sm:$0xff] %v6671_v41  ;;  %v1071_v32 = vpack.c.bf16 %v6671_v41, %v6668_v4 }
 0x1cb   :  { %1292 = vmatmul.bf16.gmra.mxu1 %v1071_v32  ;;  %v79_v32 = vld [vmem:[%s12410_s0 + $0x1d0] sm:$0xff] }
 0x1cc   :  { %v239_v62 = vpack.c.bf16 %v80_v1, %v79_v32  ;;  %v82_v32 = vld [vmem:[%s12410_s0 + $0x1e8] sm:$0xff] }
 0x1ce   :  { %v697_v16 = vpop.f32.mrf.mxu0 }
 0x1cf   :  { %v6687_v38 = vadd.f32 %v6336_v40, %v697_v16 }
 0x1d0   :  { %v6683_v20 = vpop.f32.mrf.mxu1 }
 0x1d1   :  { %5843 = vmatmul.msk.bf16.gmra.mxu0 %vm323_vm0, %v238_v0  ;;  %12870 = vst [vmem:[#allocation19_spill] sm:$0xff] %v6687_v38 }
 0x1d6   :  { %v699_v28 = vpop.f32.mrf.mxu0 }
 0x1d7   :  { %v6690_v4 = vadd.f32 %v6336_v40, %v699_v28 }
 0x1d8   :  { %v6692_v41 = vpop.f32.mrf.mxu1 }
 0x1d9   :  { %12871 = vst [vmem:[#allocation20_spill] sm:$0xff] %v6690_v4  ;;  %v1072_v13 = vpack.c.bf16 %v6690_v4, %v6687_v38 }
 0x1da   :  { %12872 = vst [vmem:[#allocation21_spill] sm:$0xff] %v6692_v41 }
 0x1db   :  { %1297 = vmatmul.bf16.gmra.mxu1 %v1072_v13  ;;  %v81_v13 = vld [vmem:[%s12410_s0 + $0x1e0] sm:$0xff] }
 0x1dc   :  { %v240_v1 = vpack.c.bf16 %v82_v32, %v81_v13  ;;  %v84_v13 = vld [vmem:[%s12410_s0 + $0x1f8] sm:$0xff] }
 0x1de   :  { %v702_v0 = vpop.f32.mrf.mxu0 }
 0x1df   :  { %v6706_v14 = vadd.f32 %v6336_v40, %v702_v0 }
 0x1e0   :  { %v6702_v16 = vpop.f32.mrf.mxu1 }
 0x1e1   :  { %12873 = vst [vmem:[#allocation22_spill] sm:$0xff] %v6702_v16  ;;  %5844 = vmatmul.msk.bf16.gmra.mxu0 %vm323_vm0, %v239_v62  ;;  %v133_v16 = vld [vmem:[%s12410_s0 + $0x380] sm:$0xff] }
 0x1e2   :  { %12874 = vst [vmem:[#allocation23_spill] sm:$0xff] %v6706_v14 }
 0x1e6   :  { %v704_v28 = vpop.f32.mrf.mxu0 }
 0x1e7   :  { %v6709_v38 = vadd.f32 %v6336_v40, %v704_v28 }
 0x1e8   :  { %v6711_v4 = vpop.f32.mrf.mxu1 }
 0x1e9   :  { %12875 = vst [vmem:[#allocation24_spill] sm:$0xff] %v6709_v38  ;;  %v1073_v53 = vpack.c.bf16 %v6709_v38, %v6706_v14 }
 0x1ea   :  { %12876 = vst [vmem:[#allocation25_spill] sm:$0xff] %v6711_v4 }
 0x1eb   :  { %1302 = vmatmul.bf16.gmra.mxu1 %v1073_v53  ;;  %v83_v53 = vld [vmem:[%s12410_s0 + $0x1f0] sm:$0xff] }
 0x1ec   :  { %v241_v32 = vpack.c.bf16 %v84_v13, %v83_v53  ;;  %v86_v53 = vld [vmem:[%s12410_s0 + $0x208] sm:$0xff] }
 0x1ee   :  { %v707_v62 = vpop.f32.mrf.mxu0 }
 0x1ef   :  { %v6725_v54 = vadd.f32 %v6336_v40, %v707_v62 }
 0x1f0   :  { %v6721_v0 = vpop.f32.mrf.mxu1 }
 0x1f1   :  { %12877 = vst [vmem:[#allocation26_spill] sm:$0xff] %v6721_v0  ;;  %5845 = vmatmul.msk.bf16.gmra.mxu0 %vm323_vm0, %v240_v1 }
 0x1f2   :  { %12878 = vst [vmem:[#allocation27_spill] sm:$0xff] %v6725_v54 }
 0x1f6   :  { %v709_v28 = vpop.f32.mrf.mxu0 }
 0x1f7   :  { %v6728_v14 = vadd.f32 %v6336_v40, %v709_v28 }
 0x1f8   :  { %v6730_v38 = vpop.f32.mrf.mxu1 }
 0x1f9   :  { %12879 = vst [vmem:[#allocation28_spill] sm:$0xff] %v6728_v14  ;;  %v1074_v4 = vpack.c.bf16 %v6728_v14, %v6725_v54 }
 0x1fa   :  { %12880 = vst [vmem:[#allocation29_spill] sm:$0xff] %v6730_v38 }
 0x1fb   :  { %1307 = vmatmul.bf16.gmra.mxu1 %v1074_v4  ;;  %v85_v4 = vld [vmem:[%s12410_s0 + $0x200] sm:$0xff] }
 0x1fc   :  { %v242_v13 = vpack.c.bf16 %v86_v53, %v85_v4  ;;  %v88_v4 = vld [vmem:[%s12410_s0 + $0x218] sm:$0xff] }
 0x1fe   :  { %v712_v1 = vpop.f32.mrf.mxu0 }
 0x1ff   :  { %v6744_v38 = vadd.f32 %v6336_v40, %v712_v1 }
 0x200   :  { %v6740_v62 = vpop.f32.mrf.mxu1 }
 0x201   :  { %12881 = vst [vmem:[#allocation30_spill] sm:$0xff] %v6740_v62  ;;  %5846 = vmatmul.msk.bf16.gmra.mxu0 %vm323_vm0, %v241_v32 }
 0x202   :  { %12882 = vst [vmem:[#allocation31_spill] sm:$0xff] %v6744_v38 }
 0x206   :  { %v714_v28 = vpop.f32.mrf.mxu0 }
 0x207   :  { %v6747_v54 = vadd.f32 %v6336_v40, %v714_v28 }
 0x208   :  { %v6749_v14 = vpop.f32.mrf.mxu1 }
 0x209   :  { %12883 = vst [vmem:[#allocation32_spill] sm:$0xff] %v6747_v54  ;;  %v1075_v0 = vpack.c.bf16 %v6747_v54, %v6744_v38 }
 0x20a   :  { %12884 = vst [vmem:[#allocation33_spill] sm:$0xff] %v6749_v14 }
 0x20b   :  { %1312 = vmatmul.bf16.gmra.mxu1 %v1075_v0  ;;  %v87_v0 = vld [vmem:[%s12410_s0 + $0x210] sm:$0xff] }
 0x20c   :  { %v243_v53 = vpack.c.bf16 %v88_v4, %v87_v0  ;;  %v90_v0 = vld [vmem:[%s12410_s0 + $0x228] sm:$0xff] }
 0x20e   :  { %v717_v32 = vpop.f32.mrf.mxu0 }
 0x20f   :  { %v6763_v14 = vadd.f32 %v6336_v40, %v717_v32 }
 0x210   :  { %v6759_v1 = vpop.f32.mrf.mxu1 }
 0x211   :  { %12885 = vst [vmem:[#allocation34_spill] sm:$0xff] %v6759_v1  ;;  %5847 = vmatmul.msk.bf16.gmra.mxu0 %vm323_vm0, %v242_v13 }
 0x212   :  { %12886 = vst [vmem:[#allocation35_spill] sm:$0xff] %v6763_v14 }
 0x216   :  { %v719_v28 = vpop.f32.mrf.mxu0 }
 0x217   :  { %v6766_v38 = vadd.f32 %v6336_v40, %v719_v28 }
 0x218   :  { %v6768_v54 = vpop.f32.mrf.mxu1 }
 0x219   :  { %12887 = vst [vmem:[#allocation36_spill] sm:$0xff] %v6766_v38  ;;  %v1076_v62 = vpack.c.bf16 %v6766_v38, %v6763_v14 }
 0x21a   :  { %12888 = vst [vmem:[#allocation37_spill] sm:$0xff] %v6768_v54 }
 0x21b   :  { %1317 = vmatmul.bf16.gmra.mxu1 %v1076_v62  ;;  %v89_v62 = vld [vmem:[%s12410_s0 + $0x220] sm:$0xff] }
 0x21c   :  { %v244_v4 = vpack.c.bf16 %v90_v0, %v89_v62  ;;  %v92_v62 = vld [vmem:[%s12410_s0 + $0x238] sm:$0xff] }
 0x21e   :  { %v722_v13 = vpop.f32.mrf.mxu0 }
 0x21f   :  { %v6782_v54 = vadd.f32 %v6336_v40, %v722_v13 }
 0x220   :  { %v6778_v32 = vpop.f32.mrf.mxu1 }
 0x221   :  { %12889 = vst [vmem:[#allocation38_spill] sm:$0xff] %v6778_v32  ;;  %5848 = vmatmul.msk.bf16.gmra.mxu0 %vm323_vm0, %v243_v53 }
 0x222   :  { %12890 = vst [vmem:[#allocation39_spill] sm:$0xff] %v6782_v54 }
 0x226   :  { %v724_v28 = vpop.f32.mrf.mxu0 }
 0x227   :  { %v6785_v14 = vadd.f32 %v6336_v40, %v724_v28 }
 0x228   :  { %v6787_v38 = vpop.f32.mrf.mxu1 }
 0x229   :  { %12891 = vst [vmem:[#allocation40_spill] sm:$0xff] %v6785_v14  ;;  %v1077_v1 = vpack.c.bf16 %v6785_v14, %v6782_v54 }
 0x22a   :  { %12892 = vst [vmem:[#allocation41_spill] sm:$0xff] %v6787_v38 }
 0x22b   :  { %1322 = vmatmul.bf16.gmra.mxu1 %v1077_v1  ;;  %v91_v1 = vld [vmem:[%s12410_s0 + $0x230] sm:$0xff] }
 0x22e   :  { %v727_v53 = vpop.f32.mrf.mxu0 }
 0x22f   :  { %v6801_v38 = vadd.f32 %v6336_v40, %v727_v53 }
 0x230   :  { %v6798_v13 = vpop.f32.mrf.mxu1 }
 0x231   :  { %5849 = vmatmul.msk.bf16.gmra.mxu0 %vm323_vm0, %v244_v4  ;;  %12893 = vst [vmem:[#allocation42_spill] sm:$0xff] %v6798_v13  ;;  %v245_v4 = vpack.c.bf16 %v92_v62, %v91_v1  ;;  %v94_v1 = vld [vmem:[%s12410_s0 + $0x248] sm:$0xff] }
 0x232   :  { %12894 = vst [vmem:[#allocation43_spill] sm:$0xff] %v6801_v38 }
 0x236   :  { %v729_v28 = vpop.f32.mrf.mxu0 }
 0x237   :  { %v6804_v54 = vadd.f32 %v6336_v40, %v729_v28 }
 0x238   :  { %v6814_v0 = vpop.f32.mrf.mxu1 }
 0x239   :  { %12895 = vst [vmem:[#allocation44_spill] sm:$0xff] %v6804_v54  ;;  %v1078_v14 = vpack.c.bf16 %v6804_v54, %v6801_v38 }
 0x23a   :  { %12896 = vst [vmem:[#allocation45_spill] sm:$0xff] %v6814_v0 }
 0x23b   :  { %1327 = vmatmul.bf16.gmra.mxu1 %v1078_v14  ;;  %v93_v14 = vld [vmem:[%s12410_s0 + $0x240] sm:$0xff] }
 0x23c   :  { %v246_v62 = vpack.c.bf16 %v94_v1, %v93_v14  ;;  %v96_v14 = vld [vmem:[%s12410_s0 + $0x258] sm:$0xff] }
 0x23e   :  { %v732_v53 = vpop.f32.mrf.mxu0 }
 0x23f   :  { %v6818_v13 = vadd.f32 %v6336_v40, %v732_v53 }
 0x240   :  { %v6820_v38 = vpop.f32.mrf.mxu1 }
 0x241   :  { %5850 = vmatmul.msk.bf16.gmra.mxu0 %vm323_vm0, %v245_v4  ;;  %12897 = vst [vmem:[#allocation46_spill] sm:$0xff] %v6818_v13 }
 0x242   :  { %12898 = vst [vmem:[#allocation47_spill] sm:$0xff] %v6820_v38 }
 0x246   :  { %v734_v28 = vpop.f32.mrf.mxu0 }
 0x247   :  { %v6823_v54 = vadd.f32 %v6336_v40, %v734_v28 }
 0x248   :  { %v6833_v53 = vpop.f32.mrf.mxu1 }
 0x249   :  { %12899 = vst [vmem:[#allocation48_spill] sm:$0xff] %v6823_v54  ;;  %v1079_v32 = vpack.c.bf16 %v6823_v54, %v6818_v13 }
 0x24a   :  { %12900 = vst [vmem:[#allocation49_spill] sm:$0xff] %v6833_v53 }
 0x24b   :  { %1332 = vmatmul.bf16.gmra.mxu1 %v1079_v32  ;;  %v95_v32 = vld [vmem:[%s12410_s0 + $0x250] sm:$0xff] }
 0x24e   :  { %v737_v4 = vpop.f32.mrf.mxu0 }
 0x24f   :  { %v6837_v0 = vadd.f32 %v6336_v40, %v737_v4 }
 0x250   :  { %v6850_v1 = vpop.f32.mrf.mxu1 }
 0x251   :  { %5851 = vmatmul.msk.bf16.gmra.mxu0 %vm323_vm0, %v246_v62  ;;  %12901 = vst [vmem:[#allocation50_spill] sm:$0xff] %v6837_v0  ;;  %v247_v62 = vpack.c.bf16 %v96_v14, %v95_v32  ;;  %v98_v32 = vld [vmem:[%s12410_s0 + $0x268] sm:$0xff] }
 0x252   :  { %12903 = vst [vmem:[#allocation52_spill] sm:$0xff] %v6850_v1 }
 0x256   :  { %v739_v28 = vpop.f32.mrf.mxu0 }
 0x257   :  { %v6840_v13 = vadd.f32 %v6336_v40, %v739_v28 }
 0x258   :  { %v6853_v28 = vpop.f32.mrf.mxu1 }
 0x259   :  { %12902 = vst [vmem:[#allocation51_spill] sm:$0xff] %v6840_v13  ;;  %v1080_v54 = vpack.c.bf16 %v6840_v13, %v6837_v0 }
 0x25a   :  { %12904 = vst [vmem:[#allocation53_spill] sm:$0xff] %v6853_v28 }
 0x25b   :  { %1337 = vmatmul.bf16.gmra.mxu1 %v1080_v54  ;;  %v97_v54 = vld [vmem:[%s12410_s0 + $0x260] sm:$0xff] }
 0x25c   :  { %v248_v14 = vpack.c.bf16 %v98_v32, %v97_v54  ;;  %v100_v54 = vld [vmem:[%s12410_s0 + $0x278] sm:$0xff] }
 0x25e   :  { %v742_v4 = vpop.f32.mrf.mxu0 }
 0x25f   :  { %v6856_v0 = vadd.f32 %v6336_v40, %v742_v4 }
 0x260   :  { %v6869_v28 = vpop.f32.mrf.mxu1 }
 0x261   :  { %5852 = vmatmul.msk.bf16.gmra.mxu0 %vm323_vm0, %v247_v62  ;;  %12905 = vst [vmem:[#allocation54_spill] sm:$0xff] %v6856_v0 }
 0x262   :  { %12907 = vst [vmem:[#allocation56_spill] sm:$0xff] %v6869_v28 }
 0x266   :  { %v744_v53 = vpop.f32.mrf.mxu0 }
 0x267   :  { %v6859_v13 = vadd.f32 %v6336_v40, %v744_v53 }
 0x269   :  { %12906 = vst [vmem:[#allocation55_spill] sm:$0xff] %v6859_v13  ;;  %v1081_v38 = vpack.c.bf16 %v6859_v13, %v6856_v0  ;;  %v6878_v13 = vpop.f32.mrf.mxu1 }
 0x26a   :  { %12910 = vst [vmem:[#allocation59_spill] sm:$0xff] %v6878_v13 }
 0x26b   :  { %1342 = vmatmul.bf16.gmra.mxu1 %v1081_v38  ;;  %v99_v38 = vld [vmem:[%s12410_s0 + $0x270] sm:$0xff] }
 0x26c   :  { %v249_v32 = vpack.c.bf16 %v100_v54, %v99_v38  ;;  %v102_v38 = vld [vmem:[%s12410_s0 + $0x288] sm:$0xff] }
 0x26e   :  { %v747_v62 = vpop.f32.mrf.mxu0 }
 0x26f   :  { %v6873_v4 = vadd.f32 %v6336_v40, %v747_v62 }
 0x271   :  { %5853 = vmatmul.msk.bf16.gmra.mxu0 %vm323_vm0, %v248_v14  ;;  %12908 = vst [vmem:[#allocation57_spill] sm:$0xff] %v6873_v4  ;;  %v6889_v62 = vpop.f32.mrf.mxu1 }
 0x272   :  { %12911 = vst [vmem:[#allocation60_spill] sm:$0xff] %v6889_v62 }
 0x276   :  { %v749_v53 = vpop.f32.mrf.mxu0 }
 0x277   :  { %v6876_v0 = vadd.f32 %v6336_v40, %v749_v53 }
 0x279   :  { %12909 = vst [vmem:[#allocation58_spill] sm:$0xff] %v6876_v0  ;;  %v1082_v1 = vpack.c.bf16 %v6876_v0, %v6873_v4  ;;  %v6905_v54 = vpop.f32.mrf.mxu1 }
 0x27a   :  { %12914 = vst [vmem:[#allocation63_spill] sm:$0xff] %v6905_v54 }
 0x27b   :  { %1347 = vmatmul.bf16.gmra.mxu1 %v1082_v1  ;;  %v101_v1 = vld [vmem:[%s12410_s0 + $0x280] sm:$0xff] }
 0x27e   :  { %v752_v14 = vpop.f32.mrf.mxu0 }
 0x27f   :  { %v6892_v13 = vadd.f32 %v6336_v40, %v752_v14 }
 0x281   :  { %5854 = vmatmul.msk.bf16.gmra.mxu0 %vm323_vm0, %v249_v32  ;;  %12912 = vst [vmem:[#allocation61_spill] sm:$0xff] %v6892_v13  ;;  %v250_v32 = vpack.c.bf16 %v102_v38, %v101_v1  ;;  %v6908_v62 = vpop.f32.mrf.mxu1  ;;  %v104_v1 = vld [vmem:[%s12410_s0 + $0x298] sm:$0xff] }
 0x282   :  { %12915 = vst [vmem:[#allocation64_spill] sm:$0xff] %v6908_v62 }
 0x286   :  { %v754_v53 = vpop.f32.mrf.mxu0 }
 0x287   :  { %v6895_v4 = vadd.f32 %v6336_v40, %v754_v53 }
 0x289   :  { %12913 = vst [vmem:[#allocation62_spill] sm:$0xff] %v6895_v4  ;;  %v1083_v0 = vpack.c.bf16 %v6895_v4, %v6892_v13  ;;  %v6924_v54 = vpop.f32.mrf.mxu1 }
 0x28a   :  { %12918 = vst [vmem:[#allocation67_spill] sm:$0xff] %v6924_v54 }
 0x28b   :  { %1352 = vmatmul.bf16.gmra.mxu1 %v1083_v0  ;;  %v103_v0 = vld [vmem:[%s12410_s0 + $0x290] sm:$0xff] }
 0x28c   :  { %v251_v38 = vpack.c.bf16 %v104_v1, %v103_v0  ;;  %v106_v0 = vld [vmem:[%s12410_s0 + $0x2a8] sm:$0xff] }
 0x28e   :  { %v757_v14 = vpop.f32.mrf.mxu0 }
 0x28f   :  { %v6911_v13 = vadd.f32 %v6336_v40, %v757_v14 }
 0x291   :  { %5855 = vmatmul.msk.bf16.gmra.mxu0 %vm323_vm0, %v250_v32  ;;  %12916 = vst [vmem:[#allocation65_spill] sm:$0xff] %v6911_v13  ;;  %v6941_v1 = vpop.f32.mrf.mxu1 }
 0x292   :  { %12921 = vst [vmem:[#allocation70_spill] sm:$0xff] %v6941_v1  ;;  %v107_v1 = vld [vmem:[%s12410_s0 + $0x2b0] sm:$0xff] }
 0x296   :  { %v759_v53 = vpop.f32.mrf.mxu0 }
 0x297   :  { %v6914_v4 = vadd.f32 %v6336_v40, %v759_v53 }
 0x299   :  { %12917 = vst [vmem:[#allocation66_spill] sm:$0xff] %v6914_v4  ;;  %v1084_v28 = vpack.c.bf16 %v6914_v4, %v6911_v13  ;;  %v6951_v54 = vpop.f32.mrf.mxu1 }
 0x29a   :  { %12922 = vst [vmem:[#allocation71_spill] sm:$0xff] %v6951_v54 }
 0x29b   :  { %1357 = vmatmul.bf16.gmra.mxu1 %v1084_v28  ;;  %v105_v28 = vld [vmem:[%s12410_s0 + $0x2a0] sm:$0xff] }
 0x29e   :  { %v762_v32 = vpop.f32.mrf.mxu0 }
 0x29f   :  { %v6928_v53 = vadd.f32 %v6336_v40, %v762_v32 }
 0x2a1   :  { %5856 = vmatmul.msk.bf16.gmra.mxu0 %vm323_vm0, %v251_v38  ;;  %12919 = vst [vmem:[#allocation68_spill] sm:$0xff] %v6928_v53  ;;  %v252_v38 = vpack.c.bf16 %v106_v0, %v105_v28 }
 0x2a6   :  { %v764_v14 = vpop.f32.mrf.mxu0 }
 0x2a7   :  { %v6931_v13 = vadd.f32 %v6336_v40, %v764_v14  ;;  %v111_v14 = vld [vmem:[%s12410_s0 + $0x2d0] sm:$0xff] }
 0x2a9   :  { %12920 = vst [vmem:[#allocation69_spill] sm:$0xff] %v6931_v13  ;;  %v1085_v4 = vpack.c.bf16 %v6931_v13, %v6928_v53  ;;  %v112_v53 = vld [vmem:[%s12410_s0 + $0x2d8] sm:$0xff] }
 0x2aa   :  { %v255_v13 = vpack.c.bf16 %v112_v53, %v111_v14  ;;  %v6967_v14 = vpop.f32.mrf.mxu1 }
 0x2ab   :  { %1362 = vmatmul.bf16.gmra.mxu1 %v1085_v4  ;;  %12925 = vst [vmem:[#allocation74_spill] sm:$0xff] %v6967_v14  ;;  %v109_v14 = vld [vmem:[%s12410_s0 + $0x2c0] sm:$0xff] }
 0x2ac   :  { %5860 = vmatmul.msk.bf16.vlgmr.msra.gmra.mxu3 %vm323_vm0, %v255_v13  ;;  %v108_v13 = vld [vmem:[%s12410_s0 + $0x2b8] sm:$0xff] }
 0x2ad   :  { %v253_v53 = vpack.c.bf16 %v108_v13, %v107_v1 }
 0x2ae   :  { %v767_v32 = vpop.f32.mrf.mxu0 }
 0x2af   :  { %v6954_v4 = vadd.f32 %v6336_v40, %v767_v32  ;;  %v114_v32 = vld [vmem:[%s12410_s0 + $0x2e8] sm:$0xff] }
 0x2b1   :  { %5857 = vmatmul.msk.bf16.gmra.mxu0 %vm323_vm0, %v252_v38  ;;  %12923 = vst [vmem:[#allocation72_spill] sm:$0xff] %v6954_v4 }
 0x2b2   :  { %v6983_v13 = vpop.f32.mrf.mxu1 }
 0x2b3   :  { %12928 = vst [vmem:[#allocation77_spill] sm:$0xff] %v6983_v13 }
 0x2b6   :  { %v769_v62 = vpop.f32.mrf.mxu0 }
 0x2b7   :  { %v6957_v28 = vadd.f32 %v6336_v40, %v769_v62  ;;  %v113_v62 = vld [vmem:[%s12410_s0 + $0x2e0] sm:$0xff] }
 0x2b9   :  { %12924 = vst [vmem:[#allocation73_spill] sm:$0xff] %v6957_v28  ;;  %v1086_v0 = vpack.c.bf16 %v6957_v28, %v6954_v4  ;;  %v256_v4 = vpack.c.bf16 %v114_v32, %v113_v62  ;;  %v116_v62 = vld [vmem:[%s12410_s0 + $0x2f8] sm:$0xff] }
 0x2bb   :  { %1367 = vmatmul.bf16.gmra.mxu1 %v1086_v0 }
 0x2bc   :  { %5861 = vmatmul.msk.bf16.gmra.mxu3 %vm323_vm0, %v256_v4  ;;  %v110_v4 = vld [vmem:[%s12410_s0 + $0x2c8] sm:$0xff] }
 0x2be   :  { %v772_v38 = vpop.f32.mrf.mxu0 }
 0x2bf   :  { %v6978_v0 = vadd.f32 %v6336_v40, %v772_v38 }
 0x2c1   :  { %5858 = vmatmul.msk.bf16.gmra.mxu0 %vm323_vm0, %v253_v53  ;;  %12926 = vst [vmem:[#allocation75_spill] sm:$0xff] %v6978_v0  ;;  %v254_v53 = vpack.c.bf16 %v110_v4, %v109_v14 }
 0x2c6   :  { %v774_v28 = vpop.f32.mrf.mxu0 }
 0x2c7   :  { %v6981_v1 = vadd.f32 %v6336_v40, %v774_v28  ;;  %v115_v28 = vld [vmem:[%s12410_s0 + $0x2f0] sm:$0xff] }
 0x2c8   :  { %v257_v32 = vpack.c.bf16 %v116_v62, %v115_v28  ;;  %v118_v28 = vld [vmem:[%s12410_s0 + $0x308] sm:$0xff] }
 0x2c9   :  { %12927 = vst [vmem:[#allocation76_spill] sm:$0xff] %v6981_v1  ;;  %v1087_v54 = vpack.c.bf16 %v6981_v1, %v6978_v0  ;;  %v7000_v0 = vpop.f32.mrf.mxu1 }
 0x2ca   :  { %12929 = vst [vmem:[#allocation78_spill] sm:$0xff] %v7000_v0 }
 0x2cb   :  { %1372 = vmatmul.bf16.gmra.mxu1 %v1087_v54 }
 0x2cc   :  { %5862 = vmatmul.msk.bf16.gmra.mxu3 %vm323_vm0, %v257_v32 }
 0x2ce   :  { %v777_v38 = vpop.f32.mrf.mxu0 }
 0x2cf   :  { %v7004_v54 = vadd.f32 %v6336_v40, %v777_v38 }
 0x2d1   :  { %5859 = vmatmul.msk.bf16.gmra.mxu0 %vm323_vm0, %v254_v53  ;;  %12930 = vst [vmem:[#allocation79_spill] sm:$0xff] %v7004_v54  ;;  %v7011_v13 = vpop.f32.mrf.mxu1  ;;  %v117_v53 = vld [vmem:[%s12410_s0 + $0x300] sm:$0xff] }
 0x2d2   :  { %12932 = vst [vmem:[#allocation81_spill] sm:$0xff] %v7011_v13  ;;  %v258_v38 = vpack.c.bf16 %v118_v28, %v117_v53  ;;  %v119_v53 = vld [vmem:[%s12410_s0 + $0x310] sm:$0xff]  ;;  %v120_v28 = vld [vmem:[%s12410_s0 + $0x318] sm:$0xff] }
 0x2d6   :  { %v779_v1 = vpop.f32.mrf.mxu0 }
 0x2d7   :  { %v7007_v14 = vadd.f32 %v6336_v40, %v779_v1 }
 0x2d9   :  { %12931 = vst [vmem:[#allocation80_spill] sm:$0xff] %v7007_v14  ;;  %v1088_v4 = vpack.c.bf16 %v7007_v14, %v7004_v54  ;;  %v7020_v62 = vpop.f32.mrf.mxu1 }
 0x2da   :  { %12933 = vst [vmem:[#allocation82_spill] sm:$0xff] %v7020_v62 }
 0x2db   :  { %1377 = vmatmul.bf16.gmra.mxu1 %v1088_v4 }
 0x2dc   :  { %5863 = vmatmul.msk.bf16.gmra.mxu3 %vm323_vm0, %v258_v38 }
 0x2de   :  { %v782_v33 = vpop.f32.mrf.mxu0 }
 0x2df   :  { %v7023_v32 = vadd.f32 %v6336_v40, %v782_v33  ;;  %v259_v33 = vpack.c.bf16 %v120_v28, %v119_v53  ;;  %v121_v53 = vld [vmem:[%s12410_s0 + $0x320] sm:$0xff]  ;;  %v122_v28 = vld [vmem:[%s12410_s0 + $0x328] sm:$0xff] }
 0x2e1   :  { %12934 = vst [vmem:[#allocation83_spill] sm:$0xff] %v7023_v32  ;;  %v7036_v38 = vpop.f32.mrf.mxu1 }
 0x2e2   :  { %12936 = vst [vmem:[#allocation85_spill] sm:$0xff] %v7036_v38 }
 0x2e6   :  { %v784_v1 = vpop.f32.mrf.mxu0 }
 0x2e7   :  { %v7026_v4 = vadd.f32 %v6336_v40, %v784_v1 }
 0x2e9   :  { %12935 = vst [vmem:[#allocation84_spill] sm:$0xff] %v7026_v4  ;;  %v1089_v54 = vpack.c.bf16 %v7026_v4, %v7023_v32  ;;  %v7047_v4 = vpop.f32.mrf.mxu1 }
 0x2ea   :  { %12939 = vst [vmem:[#allocation88_spill] sm:$0xff] %v7047_v4 }
 0x2eb   :  { %1382 = vmatmul.bf16.gmra.mxu1 %v1089_v54 }
 0x2ec   :  { %5864 = vmatmul.msk.bf16.gmra.mxu3 %vm323_vm0, %v259_v33 }
 0x2ee   :  { %v787_v14 = vpop.f32.mrf.mxu0 }
 0x2ef   :  { %v7040_v13 = vadd.f32 %v6336_v40, %v787_v14  ;;  %v260_v14 = vpack.c.bf16 %v122_v28, %v121_v53  ;;  %v123_v53 = vld [vmem:[%s12410_s0 + $0x330] sm:$0xff]  ;;  %v124_v28 = vld [vmem:[%s12410_s0 + $0x338] sm:$0xff] }
 0x2f1   :  { %12937 = vst [vmem:[#allocation86_spill] sm:$0xff] %v7040_v13  ;;  %v7056_v33 = vpop.f32.mrf.mxu1 }
 0x2f2   :  { %12940 = vst [vmem:[#allocation89_spill] sm:$0xff] %v7056_v33 }
 0x2f6   :  { %v789_v1 = vpop.f32.mrf.mxu0 }
 0x2f7   :  { %v7043_v54 = vadd.f32 %v6336_v40, %v789_v1 }
 0x2f9   :  { %12938 = vst [vmem:[#allocation87_spill] sm:$0xff] %v7043_v54  ;;  %v1090_v32 = vpack.c.bf16 %v7043_v54, %v7040_v13  ;;  %v7066_v4 = vpop.f32.mrf.mxu1 }
 0x2fa   :  { %12943 = vst [vmem:[#allocation92_spill] sm:$0xff] %v7066_v4 }
 0x2fb   :  { %1387 = vmatmul.bf16.gmra.mxu1 %v1090_v32 }
 0x2fc   :  { %5865 = vmatmul.msk.bf16.gmra.mxu3 %vm323_vm0, %v260_v14 }
 0x2fe   :  { %v792_v62 = vpop.f32.mrf.mxu0 }
 0x2ff   :  { %v7059_v13 = vadd.f32 %v6336_v40, %v792_v62  ;;  %v261_v62 = vpack.c.bf16 %v124_v28, %v123_v53  ;;  %v125_v53 = vld [vmem:[%s12410_s0 + $0x340] sm:$0xff]  ;;  %v126_v28 = vld [vmem:[%s12410_s0 + $0x348] sm:$0xff] }
 0x301   :  { %12941 = vst [vmem:[#allocation90_spill] sm:$0xff] %v7059_v13 }
 0x306   :  { %v794_v1 = vpop.f32.mrf.mxu0 }
 0x307   :  { %v7062_v32 = vadd.f32 %v6336_v40, %v794_v1 }
 0x309   :  { %12942 = vst [vmem:[#allocation91_spill] sm:$0xff] %v7062_v32  ;;  %v1091_v54 = vpack.c.bf16 %v7062_v32, %v7059_v13  ;;  %v7081_v13 = vpop.f32.mrf.mxu1 }
 0x30a   :  { %12946 = vst [vmem:[#allocation95_spill] sm:$0xff] %v7081_v13 }
 0x30b   :  { %1392 = vmatmul.bf16.gmra.mxu1 %v1091_v54 }
 0x30c   :  { %5866 = vmatmul.msk.bf16.gmra.mxu3 %vm323_vm0, %v261_v62 }
 0x30e   :  { %v797_v38 = vpop.f32.mrf.mxu0 }
 0x30f   :  { %v7076_v1 = vadd.f32 %v6336_v40, %v797_v38  ;;  %v262_v38 = vpack.c.bf16 %v126_v28, %v125_v53  ;;  %v127_v53 = vld [vmem:[%s12410_s0 + $0x350] sm:$0xff]  ;;  %v128_v28 = vld [vmem:[%s12410_s0 + $0x358] sm:$0xff] }
 0x311   :  { %12944 = vst [vmem:[#allocation93_spill] sm:$0xff] %v7076_v1  ;;  %v7091_v62 = vpop.f32.mrf.mxu1 }
 0x312   :  { %12947 = vst [vmem:[#allocation96_spill] sm:$0xff] %v7091_v62 }
 0x316   :  { %v799_v14 = vpop.f32.mrf.mxu0 }
 0x317   :  { %v7079_v54 = vadd.f32 %v6336_v40, %v799_v14 }
 0x319   :  { %12945 = vst [vmem:[#allocation94_spill] sm:$0xff] %v7079_v54  ;;  %v1092_v32 = vpack.c.bf16 %v7079_v54, %v7076_v1  ;;  %v7102_v54 = vpop.f32.mrf.mxu1 }
 0x31a   :  { %12950 = vst [vmem:[#allocation99_spill] sm:$0xff] %v7102_v54  ;;  %v129_v54 = vld [vmem:[%s12410_s0 + $0x360] sm:$0xff] }
 0x31b   :  { %1397 = vmatmul.bf16.gmra.mxu1 %v1092_v32 }
 0x31c   :  { %5867 = vmatmul.msk.bf16.gmra.mxu3 %vm323_vm0, %v262_v38 }
 0x31e   :  { %v802_v33 = vpop.f32.mrf.mxu0 }
 0x31f   :  { %v7095_v13 = vadd.f32 %v6336_v40, %v802_v33  ;;  %v263_v33 = vpack.c.bf16 %v128_v28, %v127_v53  ;;  %v6130_v53 = vld [vmem:[%s12411_s2 + $0x78] sm:$0xff] }
 0x320   :  { %2141 = vmatpush.bf16.msrb.mxu2 %v6130_v53 }
 0x321   :  { %12948 = vst [vmem:[#allocation97_spill] sm:$0xff] %v7095_v13  ;;  %v7111_v62 = vpop.f32.mrf.mxu1 }
 0x322   :  { %12951 = vst [vmem:[#allocation100_spill] sm:$0xff] %v7111_v62 }
 0x326   :  { %v804_v14 = vpop.f32.mrf.mxu0 }
 0x327   :  { %v7098_v32 = vadd.f32 %v6336_v40, %v804_v14 }
 0x329   :  { %12949 = vst [vmem:[#allocation98_spill] sm:$0xff] %v7098_v32  ;;  %v1093_v1 = vpack.c.bf16 %v7098_v32, %v7095_v13 }
 0x32b   :  { %1402 = vmatmul.bf16.gmra.mxu1 %v1093_v1 }
 0x32c   :  { %5868 = vmatmul.msk.bf16.gmra.mxu3 %vm323_vm0, %v263_v33 }
 0x32e   :  { %v807_v4 = vpop.f32.mrf.mxu0 }
 0x32f   :  { %v822_v14 = vpop.f32.mrf.mxu3  ;;  %v7114_v1 = vadd.f32 %v6336_v40, %v807_v4  ;;  %v7130_v4 = vpop.f32.mrf.mxu1 }
 0x330   :  { %12954 = vst [vmem:[#allocation103_spill] sm:$0xff] %v7130_v4 }
 0x331   :  { %12952 = vst [vmem:[#allocation101_spill] sm:$0xff] %v7114_v1 }
 0x336   :  { %v809_v38 = vpop.f32.mrf.mxu0 }
 0x337   :  { %v7117_v13 = vadd.f32 %v6336_v40, %v809_v38  ;;  %v824_v33 = vpop.f32.mrf.mxu3  ;;  %v130_v40 = vld [vmem:[%s12410_s0 + $0x368] sm:$0xff]  ;;  %v7146_v4 = vpop.f32.mrf.mxu1 }
 0x338   :  { %v264_v38 = vpack.c.bf16 %v130_v40, %v129_v54  ;;  %12957 = vst [vmem:[#allocation106_spill] sm:$0xff] %v7146_v4 }
 0x339   :  { %12953 = vst [vmem:[#allocation102_spill] sm:$0xff] %v7117_v13  ;;  %v1094_v32 = vpack.c.bf16 %v7117_v13, %v7114_v1  ;;  %v7136_v13 = vld [vmem:[%s12409_s4] ss:$0 sm:$0xff] }
 0x33b   :  { %1407 = vmatmul.bf16.gmra.mxu1 %v1094_v32 }
 0x33c   :  { %5869 = vmatmul.msk.bf16.gmra.mxu3 %vm323_vm0, %v264_v38  ;;  %v131_v38 = vld [vmem:[%s12410_s0 + $0x370] sm:$0xff] }
 0x33e   :  { %v812_v28 = vpop.f32.mrf.mxu0 }
 0x33f   :  { %v827_v1 = vpop.f32.mrf.mxu3  ;;  %v7139_v53 = vadd.f32 %v7136_v13, %v812_v28  ;;  %v132_v28 = vld [vmem:[%s12410_s0 + $0x378] sm:$0xff] }
 0x340   :  { %v265_v36 = vpack.c.bf16 %v132_v28, %v131_v38  ;;  %v7174_v28 = vadd.f32 %v7136_v13, %v824_v33 }
 0x341   :  { %12955 = vst [vmem:[#allocation104_spill] sm:$0xff] %v7139_v53 }
 0x342   :  { %12961 = vst [vmem:[#allocation110_spill] sm:$0xff] %v7174_v28 }
 0x346   :  { %v814_v32 = vpop.f32.mrf.mxu0 }
 0x347   :  { %v7142_v62 = vadd.f32 %v7136_v13, %v814_v32  ;;  %v829_v40 = vpop.f32.mrf.mxu3 }
 0x348   :  { %v7189_v33 = vadd.f32 %v7136_v13, %v829_v40 }
 0x349   :  { %12956 = vst [vmem:[#allocation105_spill] sm:$0xff] %v7142_v62  ;;  %v1095_v0 = vpack.c.bf16 %v7142_v62, %v7139_v53 }
 0x34a   :  { %12963 = vst [vmem:[#allocation112_spill] sm:$0xff] %v7189_v33 }
 0x34b   :  { %1412 = vmatmul.bf16.gmra.mxu1 %v1095_v0 }
 0x34c   :  { %5870 = vmatmul.msk.bf16.gmra.mxu3 %vm323_vm0, %v265_v36  ;;  %v134_v36 = vld [vmem:[%s12410_s0 + $0x388] sm:$0xff] }
 0x34d   :  { %v266_v38 = vpack.c.bf16 %v134_v36, %v133_v16  ;;  %v136_v16 = vld [vmem:[%s12410_s0 + $0x398] sm:$0xff] }
 0x34e   :  { %v817_v54 = vpop.f32.mrf.mxu0 }
 0x34f   :  { %v832_v41 = vpop.f32.mrf.mxu3  ;;  %v7156_v53 = vadd.f32 %v7136_v13, %v817_v54  ;;  %v7171_v54 = vadd.f32 %v7136_v13, %v822_v14  ;;  %v7186_v14 = vadd.f32 %v7136_v13, %v827_v1 }
 0x350   :  { %v7201_v1 = vadd.f32 %v7136_v13, %v832_v41 }
 0x351   :  { %12958 = vst [vmem:[#allocation107_spill] sm:$0xff] %v7156_v53 }
 0x352   :  { %12960 = vst [vmem:[#allocation109_spill] sm:$0xff] %v7171_v54 }
 0x353   :  { %12962 = vst [vmem:[#allocation111_spill] sm:$0xff] %v7186_v14 }
 0x354   :  { %12964 = vst [vmem:[#allocation113_spill] sm:$0xff] %v7201_v1 }
 0x356   :  { %v819_v32 = vpop.f32.mrf.mxu0 }
 0x357   :  { %v7159_v0 = vadd.f32 %v7136_v13, %v819_v32  ;;  %v834_v4 = vpop.f32.mrf.mxu3 }
 0x358   :  { %v7204_v40 = vadd.f32 %v7136_v13, %v834_v4 }
 0x359   :  { %12959 = vst [vmem:[#allocation108_spill] sm:$0xff] %v7159_v0  ;;  %v1096_v62 = vpack.c.bf16 %v7159_v0, %v7156_v53  ;;  %v135_v0 = vld [vmem:[%s12410_s0 + $0x390] sm:$0xff] }
 0x35a   :  { %v267_v36 = vpack.c.bf16 %v136_v16, %v135_v0  ;;  %v138_v0 = vld [vmem:[%s12410_s0 + $0x3a8] sm:$0xff]  ;;  %12965 = vst [vmem:[#allocation114_spill] sm:$0xff] %v7204_v40 }
 0x35b   :  { %1417 = vmatmul.bf16.vlgmr.msra.gmra.mxu2 %v1096_v62  ;;  %v1097_v62 = vpack.c.bf16 %v7174_v28, %v7171_v54  ;;  %v137_v28 = vld [vmem:[%s12410_s0 + $0x3a0] sm:$0xff] }
 0x35c   :  { %5871 = vmatmul.msk.bf16.gmra.mxu3 %vm323_vm0, %v266_v38  ;;  %v268_v16 = vpack.c.bf16 %v138_v0, %v137_v28  ;;  %v140_v28 = vld [vmem:[%s12410_s0 + $0x3b8] sm:$0xff] }
 0x35f   :  { %v837_v32 = vpop.f32.mrf.mxu3 }
 0x360   :  { %v7216_v41 = vadd.f32 %v7136_v13, %v837_v32 }
 0x362   :  { %12966 = vst [vmem:[#allocation115_spill] sm:$0xff] %v7216_v41 }
 0x367   :  { %v839_v53 = vpop.f32.mrf.mxu3 }
 0x368   :  { %v7219_v4 = vadd.f32 %v7136_v13, %v839_v53  ;;  %v142_v53 = vld [vmem:[%s12410_s0 + $0x3c8] sm:$0xff] }
 0x36a   :  { %12967 = vst [vmem:[#allocation116_spill] sm:$0xff] %v7219_v4 }
 0x36b   :  { %1422 = vmatmul.bf16.gmra.mxu2 %v1097_v62  ;;  %v1098_v62 = vpack.c.bf16 %v7189_v33, %v7186_v14  ;;  %v139_v33 = vld [vmem:[%s12410_s0 + $0x3b0] sm:$0xff] }
 0x36c   :  { %5872 = vmatmul.msk.bf16.gmra.mxu3 %vm323_vm0, %v267_v36  ;;  %v269_v0 = vpack.c.bf16 %v140_v28, %v139_v33  ;;  %v141_v33 = vld [vmem:[%s12410_s0 + $0x3c0] sm:$0xff] }
 0x36d   :  { %v270_v32 = vpack.c.bf16 %v142_v53, %v141_v33  ;;  %v144_v33 = vld [vmem:[%s12410_s0 + $0x3d8] sm:$0xff] }
 0x36f   :  { %v842_v38 = vpop.f32.mrf.mxu3 }
 0x370   :  { %v7234_v28 = vadd.f32 %v7136_v13, %v842_v38 }
 0x372   :  { %12968 = vst [vmem:[#allocation117_spill] sm:$0xff] %v7234_v28 }
 0x377   :  { %v844_v54 = vpop.f32.mrf.mxu3 }
 0x37b   :  { %1427 = vmatmul.bf16.gmra.mxu2 %v1098_v62  ;;  %v1099_v62 = vpack.c.bf16 %v7204_v40, %v7201_v1  ;;  %v1100_v1 = vpack.c.bf16 %v7219_v4, %v7216_v41  ;;  %v143_v4 = vld [vmem:[%s12410_s0 + $0x3d0] sm:$0xff] }
 0x37c   :  { %5873 = vmatmul.msk.bf16.gmra.mxu3 %vm323_vm0, %v268_v16  ;;  %v6129_v16 = vld [vmem:[%s12411_s2 + $0x70] sm:$0xff]  ;;  %v271_v53 = vpack.c.bf16 %v144_v33, %v143_v4  ;;  %v146_v4 = vld [vmem:[%s12410_s0 + $0x3e8] sm:$0xff] }
 0x37d   :  { %2142 = vmatpush.bf16.msrb.mxu2 %v6129_v16 }
 0x37f   :  { %v847_v36 = vpop.f32.mrf.mxu3 }
 0x387   :  { %v849_v14 = vpop.f32.mrf.mxu3 }
 0x388   :  { %v7252_v38 = vadd.f32 %v7136_v13, %v849_v14 }
 0x38a   :  { %12971 = vst [vmem:[#allocation120_spill] sm:$0xff] %v7252_v38 }
 0x38b   :  { %1432 = vmatmul.bf16.gmra.mxu2 %v1099_v62 }
 0x38c   :  { %5874 = vmatmul.msk.bf16.gmra.mxu3 %vm323_vm0, %v269_v0  ;;  %v7237_v0 = vadd.f32 %v7136_v13, %v844_v54  ;;  %v7249_v54 = vadd.f32 %v7136_v13, %v847_v36 }
 0x38e   :  { %12969 = vst [vmem:[#allocation118_spill] sm:$0xff] %v7237_v0 }
 0x38f   :  { %v852_v62 = vpop.f32.mrf.mxu3  ;;  %12970 = vst [vmem:[#allocation119_spill] sm:$0xff] %v7249_v54 }
 0x390   :  { %v7264_v14 = vadd.f32 %v7136_v13, %v852_v62 }
 0x392   :  { %12972 = vst [vmem:[#allocation121_spill] sm:$0xff] %v7264_v14 }
 0x397   :  { %v854_v40 = vpop.f32.mrf.mxu3 }
 0x398   :  { %v7267_v36 = vadd.f32 %v7136_v13, %v854_v40 }
 0x39a   :  { %12973 = vst [vmem:[#allocation122_spill] sm:$0xff] %v7267_v36 }
 0x39b   :  { %1437 = vmatmul.bf16.gmra.mxu2 %v1100_v1  ;;  %v1101_v1 = vpack.c.bf16 %v7237_v0, %v7234_v28  ;;  %v145_v0 = vld [vmem:[%s12410_s0 + $0x3e0] sm:$0xff] }
 0x39c   :  { %5875 = vmatmul.msk.bf16.gmra.mxu3 %vm323_vm0, %v270_v32  ;;  %v272_v33 = vpack.c.bf16 %v146_v4, %v145_v0  ;;  %v148_v0 = vld [vmem:[%s12410_s0 + $0x3f8] sm:$0xff] }
 0x39f   :  { %v857_v16 = vpop.f32.mrf.mxu3 }
 0x3a0   :  { %v7279_v40 = vadd.f32 %v7136_v13, %v857_v16  ;;  %v150_v16 = vld [vmem:[%s12410_s0 + $0x408] sm:$0xff] }
 0x3a2   :  { %12974 = vst [vmem:[#allocation123_spill] sm:$0xff] %v7279_v40 }
 0x3a7   :  { %v859_v41 = vpop.f32.mrf.mxu3 }
 0x3a8   :  { %v7282_v62 = vadd.f32 %v7136_v13, %v859_v41  ;;  %v6138_v41 = vld [vmem:[%s12411_s2 + $0xb8] sm:$0xff] }
 0x3a9   :  { %3268 = vmatpush.bf16.msrb.mxu3 %v6138_v41 }
 0x3aa   :  { %12975 = vst [vmem:[#allocation124_spill] sm:$0xff] %v7282_v62 }
 0x3ab   :  { %1442 = vmatmul.bf16.gmra.mxu2 %v1101_v1  ;;  %v1102_v1 = vpack.c.bf16 %v7252_v38, %v7249_v54  ;;  %v147_v38 = vld [vmem:[%s12410_s0 + $0x3f0] sm:$0xff] }
 0x3ac   :  { %5876 = vmatmul.msk.bf16.gmra.mxu3 %vm323_vm0, %v271_v53  ;;  %v273_v4 = vpack.c.bf16 %v148_v0, %v147_v38  ;;  %v149_v38 = vld [vmem:[%s12410_s0 + $0x400] sm:$0xff] }
 0x3ad   :  { %v274_v0 = vpack.c.bf16 %v150_v16, %v149_v38  ;;  %v6128_v38 = vld [vmem:[%s12411_s2 + $0x68] sm:$0xff] }
 0x3ae   :  { %2143 = vmatpush.bf16.msrb.mxu2 %v6128_v38 }
 0x3af   :  { %v862_v32 = vpop.f32.mrf.mxu3 }
 0x3b7   :  { %v864_v28 = vpop.f32.mrf.mxu3 }
 0x3bb   :  { %1447 = vmatmul.bf16.gmra.mxu2 %v1102_v1  ;;  %v1103_v1 = vpack.c.bf16 %v7267_v36, %v7264_v14 }
 0x3bc   :  { %5877 = vmatmul.msk.bf16.gmra.mxu3 %vm323_vm0, %v272_v33 }
 0x3bf   :  { %v867_v53 = vpop.f32.mrf.mxu3 }
 0x3c7   :  { %v869_v54 = vpop.f32.mrf.mxu3 }
 0x3cb   :  { %1452 = vmatmul.bf16.gmra.mxu2 %v1103_v1  ;;  %v1104_v1 = vpack.c.bf16 %v7282_v62, %v7279_v40 }
 0x3cc   :  { %5878 = vmatmul.msk.bf16.gmra.mxu3 %vm323_vm0, %v273_v4  ;;  %v7299_v4 = vadd.f32 %v7136_v13, %v862_v32 }
 0x3ce   :  { %12977 = vst [vmem:[#allocation126_spill] sm:$0xff] %v7299_v4 }
 0x3cf   :  { %v872_v33 = vpop.f32.mrf.mxu3 }
 0x3d7   :  { %v874_v36 = vpop.f32.mrf.mxu3 }
 0x3db   :  { %1457 = vmatmul.bf16.gmra.mxu2 %v1104_v1  ;;  %v7302_v1 = vadd.f32 %v7136_v13, %v864_v28  ;;  %v151_v28 = vld [vmem:[%s12410_s0 + $0x410] sm:$0xff] }
 0x3dc   :  { %5879 = vmatmul.msk.bf16.gmra.mxu3 %vm323_vm0, %v274_v0  ;;  %v152_v0 = vld [vmem:[%s12410_s0 + $0x418] sm:$0xff] }
 0x3dd   :  { %12978 = vst [vmem:[#allocation127_spill] sm:$0xff] %v7302_v1  ;;  %v275_v41 = vpack.c.bf16 %v152_v0, %v151_v28  ;;  %v153_v28 = vld [vmem:[%s12410_s0 + $0x420] sm:$0xff]  ;;  %v7340_v0 = vadd.f32 %v7136_v13, %v872_v33  ;;  %v156_v33 = vld [vmem:[%s12410_s0 + $0x438] sm:$0xff] }
 0x3de   :  { %v7286_v14 = vpop.f32.mrf.mxu2 }
 0x3df   :  { %12976 = vst [vmem:[#allocation125_spill] sm:$0xff] %v7286_v14  ;;  %v877_v62 = vpop.f32.mrf.mxu3  ;;  %v1105_v14 = vpack.c.bf16 %v7302_v1, %v7299_v4  ;;  %v7324_v4 = vadd.f32 %v7136_v13, %v869_v54 }
 0x3e0   :  { %12985 = vst [vmem:[#allocation134_spill] sm:$0xff] %v7340_v0 }
 0x3e1   :  { %12982 = vst [vmem:[#allocation131_spill] sm:$0xff] %v7324_v4 }
 0x3e6   :  { %v7304_v40 = vpop.f32.mrf.mxu2 }
 0x3e7   :  { %12979 = vst [vmem:[#allocation128_spill] sm:$0xff] %v7304_v40  ;;  %v879_v32 = vpop.f32.mrf.mxu3 }
 0x3eb   :  { %1462 = vmatmul.bf16.gmra.mxu2 %v1105_v14  ;;  %v7321_v14 = vadd.f32 %v7136_v13, %v867_v53  ;;  %v154_v53 = vld [vmem:[%s12410_s0 + $0x428] sm:$0xff] }
 0x3ec   :  { %5880 = vmatmul.msk.bf16.gmra.mxu3 %vm323_vm0, %v275_v41  ;;  %v276_v54 = vpack.c.bf16 %v154_v53, %v153_v28  ;;  %v7343_v41 = vadd.f32 %v7136_v13, %v874_v36  ;;  %v155_v28 = vld [vmem:[%s12410_s0 + $0x430] sm:$0xff]  ;;  %v7359_v53 = vadd.f32 %v7136_v13, %v877_v62  ;;  %v158_v62 = vld [vmem:[%s12410_s0 + $0x448] sm:$0xff] }
 0x3ed   :  { %12981 = vst [vmem:[#allocation130_spill] sm:$0xff] %v7321_v14  ;;  %v277_v36 = vpack.c.bf16 %v156_v33, %v155_v28  ;;  %v157_v28 = vld [vmem:[%s12410_s0 + $0x440] sm:$0xff] }
 0x3ee   :  { %v7311_v16 = vpop.f32.mrf.mxu2  ;;  %12986 = vst [vmem:[#allocation135_spill] sm:$0xff] %v7343_v41 }
 0x3ef   :  { %12980 = vst [vmem:[#allocation129_spill] sm:$0xff] %v7311_v16  ;;  %v882_v1 = vpop.f32.mrf.mxu3  ;;  %v1106_v16 = vpack.c.bf16 %v7324_v4, %v7321_v14  ;;  %v1107_v4 = vpack.c.bf16 %v7343_v41, %v7340_v0 }
 0x3f0   :  { %12989 = vst [vmem:[#allocation138_spill] sm:$0xff] %v7359_v53  ;;  %v7378_v33 = vadd.f32 %v7136_v13, %v882_v1  ;;  %v160_v1 = vld [vmem:[%s12410_s0 + $0x458] sm:$0xff] }
 0x3f2   :  { %12993 = vst [vmem:[#allocation142_spill] sm:$0xff] %v7378_v33 }
 0x3f6   :  { %v7326_v38 = vpop.f32.mrf.mxu2 }
 0x3f7   :  { %12983 = vst [vmem:[#allocation132_spill] sm:$0xff] %v7326_v38  ;;  %v884_v21 = vpop.f32.mrf.mxu3 }
 0x3fb   :  { %1467 = vmatmul.bf16.gmra.mxu2 %v1106_v16 }
 0x3fc   :  { %5881 = vmatmul.msk.bf16.gmra.mxu3 %vm323_vm0, %v276_v54  ;;  %v7362_v54 = vadd.f32 %v7136_v13, %v879_v32  ;;  %v278_v32 = vpack.c.bf16 %v158_v62, %v157_v28  ;;  %v159_v28 = vld [vmem:[%s12410_s0 + $0x450] sm:$0xff] }
 0x3fe   :  { %v7330_v40 = vpop.f32.mrf.mxu2  ;;  %12990 = vst [vmem:[#allocation139_spill] sm:$0xff] %v7362_v54  ;;  %v1108_v41 = vpack.c.bf16 %v7362_v54, %v7359_v53 }
 0x3ff   :  { %12984 = vst [vmem:[#allocation133_spill] sm:$0xff] %v7330_v40  ;;  %v887_v14 = vpop.f32.mrf.mxu3 }
 0x400   :  { %v7397_v62 = vadd.f32 %v7136_v13, %v887_v14  ;;  %v161_v14 = vld [vmem:[%s12410_s0 + $0x460] sm:$0xff] }
 0x402   :  { %12997 = vst [vmem:[#allocation146_spill] sm:$0xff] %v7397_v62 }
 0x406   :  { %v7345_v16 = vpop.f32.mrf.mxu2 }
 0x407   :  { %12987 = vst [vmem:[#allocation136_spill] sm:$0xff] %v7345_v16  ;;  %v889_v38 = vpop.f32.mrf.mxu3 }
 0x40b   :  { %1472 = vmatmul.bf16.gmra.mxu2 %v1107_v4 }
 0x40c   :  { %5882 = vmatmul.msk.bf16.gmra.mxu3 %vm323_vm0, %v277_v36  ;;  %v7381_v36 = vadd.f32 %v7136_v13, %v884_v21  ;;  %v279_v21 = vpack.c.bf16 %v160_v1, %v159_v28 }
 0x40e   :  { %v7349_v40 = vpop.f32.mrf.mxu2  ;;  %12994 = vst [vmem:[#allocation143_spill] sm:$0xff] %v7381_v36  ;;  %v1109_v54 = vpack.c.bf16 %v7381_v36, %v7378_v33 }
 0x40f   :  { %12988 = vst [vmem:[#allocation137_spill] sm:$0xff] %v7349_v40  ;;  %v892_v0 = vpop.f32.mrf.mxu3 }
 0x416   :  { %v7364_v4 = vpop.f32.mrf.mxu2 }
 0x417   :  { %12991 = vst [vmem:[#allocation140_spill] sm:$0xff] %v7364_v4  ;;  %v894_v16 = vpop.f32.mrf.mxu3 }
 0x41b   :  { %1477 = vmatmul.bf16.gmra.mxu2 %v1108_v41 }
 0x41c   :  { %5883 = vmatmul.msk.bf16.gmra.mxu3 %vm323_vm0, %v278_v32  ;;  %v7400_v32 = vadd.f32 %v7136_v13, %v889_v38  ;;  %v162_v38 = vld [vmem:[%s12410_s0 + $0x468] sm:$0xff] }
 0x41e   :  { %v7368_v40 = vpop.f32.mrf.mxu2  ;;  %12998 = vst [vmem:[#allocation147_spill] sm:$0xff] %v7400_v32  ;;  %v1110_v36 = vpack.c.bf16 %v7400_v32, %v7397_v62  ;;  %v7425_v62 = vadd.f32 %v7136_v13, %v894_v16 }
 0x41f   :  { %12992 = vst [vmem:[#allocation141_spill] sm:$0xff] %v7368_v40  ;;  %v897_v53 = vpop.f32.mrf.mxu3 }
 0x420   :  { %13002 = vst [vmem:[#allocation151_spill] sm:$0xff] %v7425_v62 }
 0x426   :  { %v7383_v41 = vpop.f32.mrf.mxu2 }
 0x427   :  { %12995 = vst [vmem:[#allocation144_spill] sm:$0xff] %v7383_v41  ;;  %v899_v4 = vpop.f32.mrf.mxu3 }
 0x42b   :  { %1482 = vmatmul.bf16.gmra.mxu2 %v1109_v54 }
 0x42c   :  { %5884 = vmatmul.msk.bf16.gmra.mxu3 %vm323_vm0, %v279_v21  ;;  %v280_v21 = vpack.c.bf16 %v162_v38, %v161_v14 }
 0x42e   :  { %v7387_v40 = vpop.f32.mrf.mxu2 }
 0x42f   :  { %12996 = vst [vmem:[#allocation145_spill] sm:$0xff] %v7387_v40  ;;  %v902_v33 = vpop.f32.mrf.mxu3  ;;  %v6137_v40 = vld [vmem:[%s12411_s2 + $0xb0] sm:$0xff] }
 0x430   :  { %3269 = vmatpush.bf16.msrb.mxu3 %v6137_v40  ;;  %v7422_v40 = vadd.f32 %v7136_v13, %v892_v0  ;;  %v164_v0 = vld [vmem:[%s12410_s0 + $0x478] sm:$0xff] }
 0x432   :  { %13001 = vst [vmem:[#allocation150_spill] sm:$0xff] %v7422_v40 }
 0x436   :  { %v7402_v54 = vpop.f32.mrf.mxu2 }
 0x437   :  { %12999 = vst [vmem:[#allocation148_spill] sm:$0xff] %v7402_v54  ;;  %v904_v1 = vpop.f32.mrf.mxu3  ;;  %v1111_v54 = vpack.c.bf16 %v7425_v62, %v7422_v40  ;;  %v7447_v40 = vadd.f32 %v7136_v13, %v899_v4 }
 0x439   :  { %13006 = vst [vmem:[#allocation155_spill] sm:$0xff] %v7447_v40 }
 0x43b   :  { %1487 = vmatmul.bf16.gmra.mxu2 %v1110_v36  ;;  %v6127_v36 = vld [vmem:[%s12411_s2 + $0x60] sm:$0xff] }
 0x43c   :  { %5885 = vmatmul.msk.bf16.gmra.mxu3 %vm323_vm0, %v280_v21  ;;  %2144 = vmatpush.bf16.msrb.mxu2 %v6127_v36  ;;  %v163_v21 = vld [vmem:[%s12410_s0 + $0x470] sm:$0xff]  ;;  %v6146_v36 = vld [vmem:[%s12411_s2 + $0xf8] sm:$0xff] }
 0x43d   :  { %v281_v16 = vpack.c.bf16 %v164_v0, %v163_v21  ;;  %4220 = vmatpush.bf16.msrb.mxu0 %v6146_v36  ;;  %v7463_v36 = vadd.f32 %v7136_v13, %v902_v33  ;;  %v168_v33 = vld [vmem:[%s12410_s0 + $0x498] sm:$0xff] }
 0x43e   :  { %v7409_v28 = vpop.f32.mrf.mxu2 }
 0x43f   :  { %13000 = vst [vmem:[#allocation149_spill] sm:$0xff] %v7409_v28  ;;  %v907_v28 = vpop.f32.mrf.mxu3 }
 0x440   :  { %13009 = vst [vmem:[#allocation158_spill] sm:$0xff] %v7463_v36 }
 0x446   :  { %v7427_v32 = vpop.f32.mrf.mxu2 }
 0x447   :  { %13003 = vst [vmem:[#allocation152_spill] sm:$0xff] %v7427_v32  ;;  %v909_v38 = vpop.f32.mrf.mxu3 }
 0x44b   :  { %1492 = vmatmul.bf16.gmra.mxu2 %v1111_v54  ;;  %v7444_v54 = vadd.f32 %v7136_v13, %v897_v53  ;;  %v166_v53 = vld [vmem:[%s12410_s0 + $0x488] sm:$0xff] }
 0x44c   :  { %5886 = vmatmul.msk.bf16.gmra.mxu3 %vm323_vm0, %v281_v16  ;;  %v165_v16 = vld [vmem:[%s12410_s0 + $0x480] sm:$0xff] }
 0x44d   :  { %13005 = vst [vmem:[#allocation154_spill] sm:$0xff] %v7444_v54  ;;  %v1112_v32 = vpack.c.bf16 %v7447_v40, %v7444_v54  ;;  %v282_v4 = vpack.c.bf16 %v166_v53, %v165_v16  ;;  %v7466_v54 = vadd.f32 %v7136_v13, %v904_v1  ;;  %v167_v16 = vld [vmem:[%s12410_s0 + $0x490] sm:$0xff]  ;;  %v7482_v53 = vadd.f32 %v7136_v13, %v907_v28  ;;  %v170_v28 = vld [vmem:[%s12410_s0 + $0x4a8] sm:$0xff] }
 0x44e   :  { %v7431_v14 = vpop.f32.mrf.mxu2  ;;  %v283_v1 = vpack.c.bf16 %v168_v33, %v167_v16  ;;  %v169_v16 = vld [vmem:[%s12410_s0 + $0x4a0] sm:$0xff] }
 0x44f   :  { %13004 = vst [vmem:[#allocation153_spill] sm:$0xff] %v7431_v14  ;;  %v912_v14 = vpop.f32.mrf.mxu3 }
 0x450   :  { %13010 = vst [vmem:[#allocation159_spill] sm:$0xff] %v7466_v54  ;;  %v7501_v33 = vadd.f32 %v7136_v13, %v912_v14  ;;  %v171_v14 = vld [vmem:[%s12410_s0 + $0x4b0] sm:$0xff] }
 0x451   :  { %13013 = vst [vmem:[#allocation162_spill] sm:$0xff] %v7482_v53 }
 0x452   :  { %13017 = vst [vmem:[#allocation166_spill] sm:$0xff] %v7501_v33 }
 0x456   :  { %v7449_v62 = vpop.f32.mrf.mxu2 }
 0x457   :  { %13007 = vst [vmem:[#allocation156_spill] sm:$0xff] %v7449_v62  ;;  %v914_v0 = vpop.f32.mrf.mxu3 }
 0x45b   :  { %1497 = vmatmul.bf16.gmra.mxu2 %v1112_v32 }
 0x45c   :  { %5887 = vmatmul.msk.bf16.gmra.mxu3 %vm323_vm0, %v282_v4  ;;  %v7485_v4 = vadd.f32 %v7136_v13, %v909_v38  ;;  %v284_v38 = vpack.c.bf16 %v170_v28, %v169_v16 }
 0x45e   :  { %v7453_v21 = vpop.f32.mrf.mxu2  ;;  %13014 = vst [vmem:[#allocation163_spill] sm:$0xff] %v7485_v4 }
 0x45f   :  { %13008 = vst [vmem:[#allocation157_spill] sm:$0xff] %v7453_v21  ;;  %v917_v40 = vpop.f32.mrf.mxu3  ;;  %v1113_v21 = vpack.c.bf16 %v7466_v54, %v7463_v36  ;;  %v1114_v54 = vpack.c.bf16 %v7485_v4, %v7482_v53 }
 0x466   :  { %v7468_v32 = vpop.f32.mrf.mxu2 }
 0x467   :  { %13011 = vst [vmem:[#allocation160_spill] sm:$0xff] %v7468_v32  ;;  %v919_v41 = vpop.f32.mrf.mxu3 }
 0x46b   :  { %1502 = vmatmul.bf16.gmra.mxu2 %v1113_v21 }
 0x46c   :  { %5888 = vmatmul.msk.bf16.gmra.mxu3 %vm323_vm0, %v283_v1  ;;  %v7504_v1 = vadd.f32 %v7136_v13, %v914_v0  ;;  %v172_v0 = vld [vmem:[%s12410_s0 + $0x4b8] sm:$0xff] }
 0x46e   :  { %v7472_v62 = vpop.f32.mrf.mxu2  ;;  %13018 = vst [vmem:[#allocation167_spill] sm:$0xff] %v7504_v1  ;;  %v1115_v4 = vpack.c.bf16 %v7504_v1, %v7501_v33  ;;  %v7526_v33 = vadd.f32 %v7136_v13, %v919_v41  ;;  %v173_v41 = vld [vmem:[%s12410_s0 + $0x4c0] sm:$0xff] }
 0x46f   :  { %13012 = vst [vmem:[#allocation161_spill] sm:$0xff] %v7472_v62  ;;  %v922_v36 = vpop.f32.mrf.mxu3 }
 0x470   :  { %13022 = vst [vmem:[#allocation171_spill] sm:$0xff] %v7526_v33 }
 0x476   :  { %v7487_v21 = vpop.f32.mrf.mxu2 }
 0x477   :  { %13015 = vst [vmem:[#allocation164_spill] sm:$0xff] %v7487_v21  ;;  %v924_v32 = vpop.f32.mrf.mxu3 }
 0x47b   :  { %1507 = vmatmul.bf16.gmra.mxu2 %v1114_v54 }
 0x47c   :  { %5889 = vmatmul.msk.bf16.gmra.mxu3 %vm323_vm0, %v284_v38  ;;  %v285_v38 = vpack.c.bf16 %v172_v0, %v171_v14 }
 0x47e   :  { %v7491_v62 = vpop.f32.mrf.mxu2 }
 0x47f   :  { %13016 = vst [vmem:[#allocation165_spill] sm:$0xff] %v7491_v62  ;;  %v927_v53 = vpop.f32.mrf.mxu3  ;;  %v6136_v62 = vld [vmem:[%s12411_s2 + $0xa8] sm:$0xff] }
 0x480   :  { %3270 = vmatpush.bf16.msrb.mxu3 %v6136_v62 }
 0x486   :  { %v7506_v54 = vpop.f32.mrf.mxu2 }
 0x487   :  { %13019 = vst [vmem:[#allocation168_spill] sm:$0xff] %v7506_v54  ;;  %v929_v28 = vpop.f32.mrf.mxu3  ;;  %v6126_v54 = vld [vmem:[%s12411_s2 + $0x58] sm:$0xff] }
 0x488   :  { %2145 = vmatpush.bf16.msrb.mxu2 %v6126_v54 }
 0x48b   :  { %1512 = vmatmul.bf16.gmra.mxu2 %v1115_v4  ;;  %v7523_v4 = vadd.f32 %v7136_v13, %v917_v40  ;;  %v174_v40 = vld [vmem:[%s12410_s0 + $0x4c8] sm:$0xff] }
 0x48c   :  { %5890 = vmatmul.msk.bf16.gmra.mxu3 %vm323_vm0, %v285_v38  ;;  %v286_v38 = vpack.c.bf16 %v174_v40, %v173_v41  ;;  %v175_v41 = vld [vmem:[%s12410_s0 + $0x4d0] sm:$0xff] }
 0x48d   :  { %13021 = vst [vmem:[#allocation170_spill] sm:$0xff] %v7523_v4  ;;  %v6145_v40 = vld [vmem:[%s12411_s2 + $0xf0] sm:$0xff] }
 0x48e   :  { %v7513_v16 = vpop.f32.mrf.mxu2  ;;  %4221 = vmatpush.bf16.msrb.mxu0 %v6145_v40 }
 0x48f   :  { %13020 = vst [vmem:[#allocation169_spill] sm:$0xff] %v7513_v16  ;;  %v932_v1 = vpop.f32.mrf.mxu3  ;;  %v1116_v16 = vpack.c.bf16 %v7526_v33, %v7523_v4  ;;  %v7548_v4 = vadd.f32 %v7136_v13, %v924_v32 }
 0x490   :  { %v7586_v40 = vadd.f32 %v7136_v13, %v932_v1  ;;  %v180_v1 = vld [vmem:[%s12410_s0 + $0x4f8] sm:$0xff] }
 0x491   :  { %13026 = vst [vmem:[#allocation175_spill] sm:$0xff] %v7548_v4 }
 0x492   :  { %13033 = vst [vmem:[#allocation182_spill] sm:$0xff] %v7586_v40 }
 0x496   :  { %v7528_v62 = vpop.f32.mrf.mxu2 }
 0x497   :  { %13023 = vst [vmem:[#allocation172_spill] sm:$0xff] %v7528_v62  ;;  %v934_v0 = vpop.f32.mrf.mxu3 }
 0x49b   :  { %1517 = vmatmul.bf16.gmra.mxu2 %v1116_v16  ;;  %v7545_v16 = vadd.f32 %v7136_v13, %v922_v36  ;;  %v176_v36 = vld [vmem:[%s12410_s0 + $0x4d8] sm:$0xff] }
 0x49c   :  { %5891 = vmatmul.msk.bf16.gmra.mxu3 %vm323_vm0, %v286_v38  ;;  %v287_v32 = vpack.c.bf16 %v176_v36, %v175_v41  ;;  %v7570_v38 = vadd.f32 %v7136_v13, %v929_v28 }
 0x49d   :  { %13025 = vst [vmem:[#allocation174_spill] sm:$0xff] %v7545_v16 }
 0x49e   :  { %v7535_v14 = vpop.f32.mrf.mxu2  ;;  %13030 = vst [vmem:[#allocation179_spill] sm:$0xff] %v7570_v38 }
 0x49f   :  { %13024 = vst [vmem:[#allocation173_spill] sm:$0xff] %v7535_v14  ;;  %v937_v33 = vpop.f32.mrf.mxu3  ;;  %v1117_v14 = vpack.c.bf16 %v7548_v4, %v7545_v16 }
 0x4a6   :  { %v7550_v54 = vpop.f32.mrf.mxu2 }
 0x4a7   :  { %13027 = vst [vmem:[#allocation176_spill] sm:$0xff] %v7550_v54  ;;  %v939_v21 = vpop.f32.mrf.mxu3 }
 0x4ab   :  { %1522 = vmatmul.bf16.gmra.mxu2 %v1117_v14  ;;  %v7567_v14 = vadd.f32 %v7136_v13, %v927_v53  ;;  %v178_v53 = vld [vmem:[%s12410_s0 + $0x4e8] sm:$0xff] }
 0x4ac   :  { %5892 = vmatmul.msk.bf16.gmra.mxu3 %vm323_vm0, %v287_v32  ;;  %v177_v32 = vld [vmem:[%s12410_s0 + $0x4e0] sm:$0xff] }
 0x4ad   :  { %13029 = vst [vmem:[#allocation178_spill] sm:$0xff] %v7567_v14  ;;  %v288_v28 = vpack.c.bf16 %v178_v53, %v177_v32  ;;  %v179_v32 = vld [vmem:[%s12410_s0 + $0x4f0] sm:$0xff]  ;;  %v7605_v53 = vadd.f32 %v7136_v13, %v937_v33  ;;  %v182_v33 = vld [vmem:[%s12410_s0 + $0x508] sm:$0xff] }
 0x4ae   :  { %v7554_v62 = vpop.f32.mrf.mxu2 }
 0x4af   :  { %13028 = vst [vmem:[#allocation177_spill] sm:$0xff] %v7554_v62  ;;  %v942_v4 = vpop.f32.mrf.mxu3  ;;  %v1118_v62 = vpack.c.bf16 %v7570_v38, %v7567_v14  ;;  %v7589_v14 = vadd.f32 %v7136_v13, %v934_v0  ;;  %v289_v0 = vpack.c.bf16 %v180_v1, %v179_v32  ;;  %v181_v32 = vld [vmem:[%s12410_s0 + $0x500] sm:$0xff] }
 0x4b0   :  { %13037 = vst [vmem:[#allocation186_spill] sm:$0xff] %v7605_v53  ;;  %v6135_v1 = vld [vmem:[%s12411_s2 + $0xa0] sm:$0xff] }
 0x4b1   :  { %13034 = vst [vmem:[#allocation183_spill] sm:$0xff] %v7589_v14  ;;  %3271 = vmatpush.bf16.msrb.mxu3 %v6135_v1  ;;  %v6125_v1 = vld [vmem:[%s12411_s2 + $0x50] sm:$0xff] }
 0x4b2   :  { %2146 = vmatpush.bf16.msrb.mxu2 %v6125_v1 }
 0x4b6   :  { %v7572_v16 = vpop.f32.mrf.mxu2 }
 0x4b7   :  { %13031 = vst [vmem:[#allocation180_spill] sm:$0xff] %v7572_v16  ;;  %v944_v36 = vpop.f32.mrf.mxu3 }
 0x4bb   :  { %1527 = vmatmul.bf16.gmra.mxu2 %v1118_v62 }
 0x4bc   :  { %5893 = vmatmul.msk.bf16.gmra.mxu3 %vm323_vm0, %v288_v28  ;;  %v7608_v28 = vadd.f32 %v7136_v13, %v939_v21  ;;  %v290_v21 = vpack.c.bf16 %v182_v33, %v181_v32 }
 0x4be   :  { %v7576_v41 = vpop.f32.mrf.mxu2  ;;  %13038 = vst [vmem:[#allocation187_spill] sm:$0xff] %v7608_v28 }
 0x4bf   :  { %13032 = vst [vmem:[#allocation181_spill] sm:$0xff] %v7576_v41  ;;  %v947_v38 = vpop.f32.mrf.mxu3  ;;  %v1119_v41 = vpack.c.bf16 %v7589_v14, %v7586_v40  ;;  %v1120_v14 = vpack.c.bf16 %v7608_v28, %v7605_v53 }
 0x4c6   :  { %v7591_v62 = vpop.f32.mrf.mxu2 }
 0x4c7   :  { %13035 = vst [vmem:[#allocation184_spill] sm:$0xff] %v7591_v62  ;;  %v949_v54 = vpop.f32.mrf.mxu3 }
 0x4cb   :  { %1532 = vmatmul.bf16.gmra.mxu2 %v1119_v41 }
 0x4cc   :  { %5894 = vmatmul.msk.bf16.gmra.mxu3 %vm323_vm0, %v289_v0  ;;  %v7630_v0 = vadd.f32 %v7136_v13, %v944_v36 }
 0x4ce   :  { %v7595_v16 = vpop.f32.mrf.mxu2  ;;  %13042 = vst [vmem:[#allocation191_spill] sm:$0xff] %v7630_v0 }
 0x4cf   :  { %13036 = vst [vmem:[#allocation185_spill] sm:$0xff] %v7595_v16  ;;  %v952_v40 = vpop.f32.mrf.mxu3 }
 0x4d6   :  { %v7610_v41 = vpop.f32.mrf.mxu2 }
 0x4d7   :  { %13039 = vst [vmem:[#allocation188_spill] sm:$0xff] %v7610_v41  ;;  %v954_v62 = vpop.f32.mrf.mxu3 }
 0x4db   :  { %1537 = vmatmul.bf16.gmra.mxu2 %v1120_v14  ;;  %v7627_v14 = vadd.f32 %v7136_v13, %v942_v4  ;;  %v184_v4 = vld [vmem:[%s12410_s0 + $0x518] sm:$0xff] }
 0x4dc   :  { %5895 = vmatmul.msk.bf16.gmra.mxu3 %vm323_vm0, %v290_v21  ;;  %v183_v21 = vld [vmem:[%s12410_s0 + $0x510] sm:$0xff] }
 0x4dd   :  { %13041 = vst [vmem:[#allocation190_spill] sm:$0xff] %v7627_v14  ;;  %v291_v36 = vpack.c.bf16 %v184_v4, %v183_v21 }
 0x4de   :  { %v7614_v16 = vpop.f32.mrf.mxu2 }
 0x4df   :  { %13040 = vst [vmem:[#allocation189_spill] sm:$0xff] %v7614_v16  ;;  %v957_v28 = vpop.f32.mrf.mxu3  ;;  %v1121_v16 = vpack.c.bf16 %v7630_v0, %v7627_v14  ;;  %v7652_v14 = vadd.f32 %v7136_v13, %v947_v38  ;;  %v7655_v0 = vadd.f32 %v7136_v13, %v949_v54  ;;  %v185_v38 = vld [vmem:[%s12410_s0 + $0x520] sm:$0xff]  ;;  %v186_v54 = vld [vmem:[%s12410_s0 + $0x528] sm:$0xff] }
 0x4e0   :  { %v292_v1 = vpack.c.bf16 %v186_v54, %v185_v38 }
 0x4e1   :  { %13045 = vst [vmem:[#allocation194_spill] sm:$0xff] %v7652_v14  ;;  %v1122_v4 = vpack.c.bf16 %v7655_v0, %v7652_v14  ;;  %v7674_v14 = vadd.f32 %v7136_v13, %v954_v62  ;;  %v188_v62 = vld [vmem:[%s12410_s0 + $0x538] sm:$0xff] }
 0x4e2   :  { %13046 = vst [vmem:[#allocation195_spill] sm:$0xff] %v7655_v0 }
 0x4e3   :  { %13050 = vst [vmem:[#allocation199_spill] sm:$0xff] %v7674_v14 }
 0x4e6   :  { %v7632_v53 = vpop.f32.mrf.mxu2 }
 0x4e7   :  { %13043 = vst [vmem:[#allocation192_spill] sm:$0xff] %v7632_v53  ;;  %v959_v33 = vpop.f32.mrf.mxu3 }
 0x4eb   :  { %1542 = vmatmul.bf16.gmra.mxu2 %v1121_v16  ;;  %v6154_v16 = vld [vmem:[%s12412_s3 + $0x38] sm:$0xff] }
 0x4ec   :  { %5896 = vmatmul.msk.bf16.gmra.mxu3 %vm323_vm0, %v291_v36  ;;  %5171 = vmatpush.bf16.msrb.mxu1 %v6154_v16  ;;  %v7671_v16 = vadd.f32 %v7136_v13, %v952_v40  ;;  %v187_v40 = vld [vmem:[%s12410_s0 + $0x530] sm:$0xff] }
 0x4ee   :  { %v7636_v32 = vpop.f32.mrf.mxu2  ;;  %13049 = vst [vmem:[#allocation198_spill] sm:$0xff] %v7671_v16 }
 0x4ef   :  { %13044 = vst [vmem:[#allocation193_spill] sm:$0xff] %v7636_v32  ;;  %v962_v21 = vpop.f32.mrf.mxu3 }
 0x4f6   :  { %v7657_v32 = vpop.f32.mrf.mxu2 }
 0x4f7   :  { %13047 = vst [vmem:[#allocation196_spill] sm:$0xff] %v7657_v32  ;;  %v964_v53 = vpop.f32.mrf.mxu3  ;;  %v6144_v32 = vld [vmem:[%s12411_s2 + $0xe8] sm:$0xff] }
 0x4f8   :  { %4222 = vmatpush.bf16.msrb.mxu0 %v6144_v32 }
 0x4fb   :  { %1547 = vmatmul.bf16.gmra.mxu2 %v1122_v4 }
 0x4fc   :  { %5897 = vmatmul.msk.bf16.gmra.mxu3 %vm323_vm0, %v292_v1  ;;  %v293_v1 = vpack.c.bf16 %v188_v62, %v187_v40  ;;  %v189_v40 = vld [vmem:[%s12410_s0 + $0x540] sm:$0xff]  ;;  %v7712_v62 = vadd.f32 %v7136_v13, %v962_v21  ;;  %v192_v21 = vld [vmem:[%s12410_s0 + $0x558] sm:$0xff] }
 0x4fe   :  { %v7661_v36 = vpop.f32.mrf.mxu2  ;;  %13057 = vst [vmem:[#allocation206_spill] sm:$0xff] %v7712_v62 }
 0x4ff   :  { %13048 = vst [vmem:[#allocation197_spill] sm:$0xff] %v7661_v36  ;;  %v967_v0 = vpop.f32.mrf.mxu3  ;;  %v1123_v36 = vpack.c.bf16 %v7674_v14, %v7671_v16  ;;  %v7696_v16 = vadd.f32 %v7136_v13, %v959_v33 }
 0x501   :  { %13054 = vst [vmem:[#allocation203_spill] sm:$0xff] %v7696_v16 }
 0x506   :  { %v7676_v4 = vpop.f32.mrf.mxu2 }
 0x507   :  { %13051 = vst [vmem:[#allocation200_spill] sm:$0xff] %v7676_v4  ;;  %v969_v54 = vpop.f32.mrf.mxu3 }
 0x50b   :  { %1552 = vmatmul.bf16.gmra.mxu2 %v1123_v36  ;;  %v7693_v36 = vadd.f32 %v7136_v13, %v957_v28  ;;  %v190_v28 = vld [vmem:[%s12410_s0 + $0x548] sm:$0xff] }
 0x50c   :  { %5898 = vmatmul.msk.bf16.gmra.mxu3 %vm323_vm0, %v293_v1  ;;  %v294_v33 = vpack.c.bf16 %v190_v28, %v189_v40  ;;  %v7715_v1 = vadd.f32 %v7136_v13, %v964_v53  ;;  %v191_v40 = vld [vmem:[%s12410_s0 + $0x550] sm:$0xff]  ;;  %v7731_v28 = vadd.f32 %v7136_v13, %v967_v0  ;;  %v193_v0 = vld [vmem:[%s12410_s0 + $0x560] sm:$0xff] }
 0x50d   :  { %13053 = vst [vmem:[#allocation202_spill] sm:$0xff] %v7693_v36  ;;  %v295_v53 = vpack.c.bf16 %v192_v21, %v191_v40 }
 0x50e   :  { %v7683_v38 = vpop.f32.mrf.mxu2  ;;  %13058 = vst [vmem:[#allocation207_spill] sm:$0xff] %v7715_v1 }
 0x50f   :  { %13052 = vst [vmem:[#allocation201_spill] sm:$0xff] %v7683_v38  ;;  %v972_v14 = vpop.f32.mrf.mxu3  ;;  %v1124_v38 = vpack.c.bf16 %v7696_v16, %v7693_v36  ;;  %v1125_v16 = vpack.c.bf16 %v7715_v1, %v7712_v62 }
 0x510   :  { %13061 = vst [vmem:[#allocation210_spill] sm:$0xff] %v7731_v28 }
 0x516   :  { %v7698_v32 = vpop.f32.mrf.mxu2 }
 0x517   :  { %13055 = vst [vmem:[#allocation204_spill] sm:$0xff] %v7698_v32  ;;  %v974_v41 = vpop.f32.mrf.mxu3 }
 0x51b   :  { %1557 = vmatmul.bf16.gmra.mxu2 %v1124_v38 }
 0x51c   :  { %5899 = vmatmul.msk.bf16.gmra.mxu3 %vm323_vm0, %v294_v33  ;;  %v7734_v33 = vadd.f32 %v7136_v13, %v969_v54  ;;  %v194_v54 = vld [vmem:[%s12410_s0 + $0x568] sm:$0xff] }
 0x51e   :  { %v7702_v4 = vpop.f32.mrf.mxu2  ;;  %13062 = vst [vmem:[#allocation211_spill] sm:$0xff] %v7734_v33  ;;  %v1126_v1 = vpack.c.bf16 %v7734_v33, %v7731_v28  ;;  %v7756_v28 = vadd.f32 %v7136_v13, %v974_v41 }
 0x51f   :  { %13056 = vst [vmem:[#allocation205_spill] sm:$0xff] %v7702_v4  ;;  %v977_v36 = vpop.f32.mrf.mxu3 }
 0x520   :  { %13066 = vst [vmem:[#allocation215_spill] sm:$0xff] %v7756_v28 }
 0x526   :  { %v7717_v38 = vpop.f32.mrf.mxu2 }
 0x527   :  { %13059 = vst [vmem:[#allocation208_spill] sm:$0xff] %v7717_v38  ;;  %v979_v32 = vpop.f32.mrf.mxu3 }
 0x52b   :  { %1562 = vmatmul.bf16.gmra.mxu2 %v1125_v16 }
 0x52c   :  { %5900 = vmatmul.msk.bf16.gmra.mxu3 %vm323_vm0, %v295_v53  ;;  %v296_v53 = vpack.c.bf16 %v194_v54, %v193_v0  ;;  %v6153_v0 = vld [vmem:[%s12412_s3 + $0x30] sm:$0xff]  ;;  %v7771_v54 = vadd.f32 %v7136_v13, %v977_v36 }
 0x52d   :  { %5172 = vmatpush.bf16.msrb.mxu1 %v6153_v0 }
 0x52e   :  { %v7721_v4 = vpop.f32.mrf.mxu2  ;;  %13069 = vst [vmem:[#allocation218_spill] sm:$0xff] %v7771_v54 }
 0x52f   :  { %13060 = vst [vmem:[#allocation209_spill] sm:$0xff] %v7721_v4  ;;  %v982_v62 = vpop.f32.mrf.mxu3  ;;  %v6134_v4 = vld [vmem:[%s12411_s2 + $0x98] sm:$0xff] }
 0x530   :  { %3272 = vmatpush.bf16.msrb.mxu3 %v6134_v4 }
 0x536   :  { %v7736_v16 = vpop.f32.mrf.mxu2 }
 0x537   :  { %13063 = vst [vmem:[#allocation212_spill] sm:$0xff] %v7736_v16  ;;  %v984_v21 = vpop.f32.mrf.mxu3  ;;  %v6124_v16 = vld [vmem:[%s12411_s2 + $0x48] sm:$0xff] }
 0x538   :  { %2147 = vmatpush.bf16.msrb.mxu2 %v6124_v16 }
 0x53b   :  { %1567 = vmatmul.bf16.gmra.mxu2 %v1126_v1  ;;  %v7753_v1 = vadd.f32 %v7136_v13, %v972_v14 }
 0x53c   :  { %5901 = vmatmul.msk.bf16.gmra.mxu3 %vm323_vm0, %v296_v53  ;;  %v7774_v53 = vadd.f32 %v7136_v13, %v979_v32  ;;  %v6143_v32 = vld [vmem:[%s12411_s2 + $0xe0] sm:$0xff] }
 0x53d   :  { %13065 = vst [vmem:[#allocation214_spill] sm:$0xff] %v7753_v1  ;;  %4223 = vmatpush.bf16.msrb.mxu0 %v6143_v32 }
 0x53e   :  { %v7743_v40 = vpop.f32.mrf.mxu2  ;;  %13070 = vst [vmem:[#allocation219_spill] sm:$0xff] %v7774_v53  ;;  %v1128_v16 = vpack.c.bf16 %v7774_v53, %v7771_v54 }
 0x53f   :  { %13064 = vst [vmem:[#allocation213_spill] sm:$0xff] %v7743_v40  ;;  %v987_v33 = vpop.f32.mrf.mxu3  ;;  %v1127_v40 = vpack.c.bf16 %v7756_v28, %v7753_v1  ;;  %v195_v28 = vld [vmem:[%s12410_s0 + $0x570] sm:$0xff] }
 0x540   :  { %v297_v0 = vpack.c.bf16 %v195_v28, %v195_v28  ;;  %v7802_v53 = vadd.f32 %v7136_v13, %v987_v33 }
 0x542   :  { %13077 = vst [vmem:[#allocation226_spill] sm:$0xff] %v7802_v53 }
 0x546   :  { %v7758_v4 = vpop.f32.mrf.mxu2 }
 0x547   :  { %13067 = vst [vmem:[#allocation216_spill] sm:$0xff] %v7758_v4  ;;  %v989_v41 = vpop.f32.mrf.mxu3  ;;  %v7793_v4 = vadd.f32 %v7136_v13, %v984_v21 }
 0x549   :  { %13074 = vst [vmem:[#allocation223_spill] sm:$0xff] %v7793_v4 }
 0x54b   :  { %1572 = vmatmul.bf16.gmra.mxu2 %v1127_v40 }
 0x54c   :  { %5902 = vmatmul.msk.bf16.gmra.mxu3 %vm323_vm0, %v297_v0 }
 0x54e   :  { %v7768_v14 = vpop.f32.mrf.mxu2 }
 0x54f   :  { %13068 = vst [vmem:[#allocation217_spill] sm:$0xff] %v7768_v14  ;;  %v992_v1 = vpop.f32.mrf.mxu3 }
 0x556   :  { %v7776_v40 = vpop.f32.mrf.mxu2 }
 0x557   :  { %13071 = vst [vmem:[#allocation220_spill] sm:$0xff] %v7776_v40  ;;  %v994_v36 = vpop.f32.mrf.mxu3  ;;  %v7790_v40 = vadd.f32 %v7136_v13, %v982_v62  ;;  %v7805_v62 = vadd.f32 %v7136_v13, %v989_v41 }
 0x559   :  { %13073 = vst [vmem:[#allocation222_spill] sm:$0xff] %v7790_v40  ;;  %v1130_v32 = vpack.c.bf16 %v7805_v62, %v7802_v53 }
 0x55a   :  { %13078 = vst [vmem:[#allocation227_spill] sm:$0xff] %v7805_v62 }
 0x55b   :  { %1577 = vmatmul.bf16.gmra.mxu2 %v1128_v16  ;;  %v1129_v16 = vpack.c.bf16 %v7793_v4, %v7790_v40  ;;  %v7817_v4 = vadd.f32 %v7136_v13, %v994_v36 }
 0x55d   :  { %13082 = vst [vmem:[#allocation231_spill] sm:$0xff] %v7817_v4 }
 0x55e   :  { %v7784_v14 = vpop.f32.mrf.mxu2 }
 0x55f   :  { %13072 = vst [vmem:[#allocation221_spill] sm:$0xff] %v7784_v14  ;;  %v997_v28 = vpop.f32.mrf.mxu3 }
 0x566   :  { %v7795_v38 = vpop.f32.mrf.mxu2 }
 0x567   :  { %13075 = vst [vmem:[#allocation224_spill] sm:$0xff] %v7795_v38  ;;  %v999_v54 = vpop.f32.mrf.mxu3 }
 0x568   :  { %v7832_v36 = vadd.f32 %v7136_v13, %v999_v54  ;;  %v6152_v54 = vld [vmem:[%s12412_s3 + $0x28] sm:$0xff] }
 0x569   :  { %5173 = vmatpush.bf16.msrb.mxu1 %v6152_v54 }
 0x56a   :  { %13086 = vst [vmem:[#allocation235_spill] sm:$0xff] %v7832_v36 }
 0x56b   :  { %1582 = vmatmul.bf16.gmra.mxu2 %v1129_v16  ;;  %v7814_v16 = vadd.f32 %v7136_v13, %v992_v1  ;;  %v7829_v1 = vadd.f32 %v7136_v13, %v997_v28 }
 0x56d   :  { %13081 = vst [vmem:[#allocation230_spill] sm:$0xff] %v7814_v16 }
 0x56e   :  { %v7799_v0 = vpop.f32.mrf.mxu2  ;;  %13085 = vst [vmem:[#allocation234_spill] sm:$0xff] %v7829_v1 }
 0x56f   :  { %13076 = vst [vmem:[#allocation225_spill] sm:$0xff] %v7799_v0  ;;  %v1002_v21 = vpop.f32.mrf.mxu3  ;;  %v1131_v0 = vpack.c.bf16 %v7817_v4, %v7814_v16 }
 0x570   :  { %v7847_v28 = vadd.f32 %v7136_v13, %v1002_v21 }
 0x572   :  { %13089 = vst [vmem:[#allocation238_spill] sm:$0xff] %v7847_v28 }
 0x576   :  { %v7807_v14 = vpop.f32.mrf.mxu2 }
 0x577   :  { %13079 = vst [vmem:[#allocation228_spill] sm:$0xff] %v7807_v14  ;;  %v1004_v40 = vpop.f32.mrf.mxu3 }
 0x57b   :  { %1587 = vmatmul.bf16.gmra.mxu2 %v1130_v32  ;;  %v6133_v32 = vld [vmem:[%s12411_s2 + $0x90] sm:$0xff] }
 0x57c   :  { %3273 = vmatpush.bf16.msrb.mxu3 %v6133_v32  ;;  %v7850_v32 = vadd.f32 %v7136_v13, %v1004_v40 }
 0x57e   :  { %v7811_v38 = vpop.f32.mrf.mxu2  ;;  %13090 = vst [vmem:[#allocation239_spill] sm:$0xff] %v7850_v32 }
 0x57f   :  { %13080 = vst [vmem:[#allocation229_spill] sm:$0xff] %v7811_v38  ;;  %v1007_v41 = vpop.f32.mrf.mxu3 }
 0x586   :  { %v7819_v33 = vpop.f32.mrf.mxu2 }
 0x587   :  { %13083 = vst [vmem:[#allocation232_spill] sm:$0xff] %v7819_v33  ;;  %v1009_v53 = vpop.f32.mrf.mxu3  ;;  %v7859_v33 = vadd.f32 %v7136_v13, %v1007_v41 }
 0x588   :  { %v7862_v21 = vadd.f32 %v7136_v13, %v1009_v53 }
 0x589   :  { %13093 = vst [vmem:[#allocation242_spill] sm:$0xff] %v7859_v33 }
 0x58a   :  { %13094 = vst [vmem:[#allocation243_spill] sm:$0xff] %v7862_v21  ;;  %v1134_v54 = vpack.c.bf16 %v7862_v21, %v7859_v33 }
 0x58b   :  { %1592 = vmatmul.bf16.gmra.mxu2 %v1131_v0  ;;  %v1132_v0 = vpack.c.bf16 %v7832_v36, %v7829_v1  ;;  %v1133_v36 = vpack.c.bf16 %v7850_v32, %v7847_v28 }
 0x58e   :  { %v7823_v14 = vpop.f32.mrf.mxu2 }
 0x58f   :  { %13084 = vst [vmem:[#allocation233_spill] sm:$0xff] %v7823_v14  ;;  %v1012_v38 = vpop.f32.mrf.mxu3  ;;  %v6123_v14 = vld [vmem:[%s12411_s2 + $0x40] sm:$0xff] }
 0x590   :  { %2148 = vmatpush.bf16.msrb.mxu2 %v6123_v14  ;;  %v7874_v41 = vadd.f32 %v7136_v13, %v1012_v38 }
 0x592   :  { %13097 = vst [vmem:[#allocation246_spill] sm:$0xff] %v7874_v41 }
 0x596   :  { %v7834_v62 = vpop.f32.mrf.mxu2 }
 0x597   :  { %13087 = vst [vmem:[#allocation236_spill] sm:$0xff] %v7834_v62  ;;  %v1014_v4 = vpop.f32.mrf.mxu3 }
 0x598   :  { %v7877_v53 = vadd.f32 %v7136_v13, %v1014_v4 }
 0x59a   :  { %13098 = vst [vmem:[#allocation247_spill] sm:$0xff] %v7877_v53  ;;  %v1135_v33 = vpack.c.bf16 %v7877_v53, %v7874_v41 }
 0x59b   :  { %1597 = vmatmul.bf16.gmra.mxu2 %v1132_v0 }
 0x59e   :  { %v7838_v16 = vpop.f32.mrf.mxu2 }
 0x59f   :  { %13088 = vst [vmem:[#allocation237_spill] sm:$0xff] %v7838_v16  ;;  %v1017_v1 = vpop.f32.mrf.mxu3 }
 0x5a6   :  { %v7852_v0 = vpop.f32.mrf.mxu2 }
 0x5a7   :  { %13091 = vst [vmem:[#allocation240_spill] sm:$0xff] %v7852_v0  ;;  %v1019_v62 = vpop.f32.mrf.mxu3 }
 0x5ab   :  { %1602 = vmatmul.bf16.gmra.mxu2 %v1133_v36  ;;  %v6142_v36 = vld [vmem:[%s12411_s2 + $0xd8] sm:$0xff] }
 0x5ac   :  { %4224 = vmatpush.bf16.msrb.mxu0 %v6142_v36  ;;  %v7886_v36 = vadd.f32 %v7136_v13, %v1017_v1 }
 0x5ae   :  { %v7856_v16 = vpop.f32.mrf.mxu2  ;;  %13101 = vst [vmem:[#allocation250_spill] sm:$0xff] %v7886_v36 }
 0x5af   :  { %13092 = vst [vmem:[#allocation241_spill] sm:$0xff] %v7856_v16  ;;  %v1022_v14 = vpop.f32.mrf.mxu3 }
 0x5b0   :  { %v7901_v1 = vadd.f32 %v7136_v13, %v1022_v14 }
 0x5b2   :  { %13105 = vst [vmem:[#allocation254_spill] sm:$0xff] %v7901_v1 }
 0x5b6   :  { %v7864_v40 = vpop.f32.mrf.mxu2 }
 0x5b7   :  { %13095 = vst [vmem:[#allocation244_spill] sm:$0xff] %v7864_v40  ;;  %v1024_v32 = vpop.f32.mrf.mxu3 }
 0x5bb   :  { %1607 = vmatmul.bf16.gmra.mxu2 %v1134_v54 }
 0x5be   :  { %v7871_v28 = vpop.f32.mrf.mxu2 }
 0x5bf   :  { %13096 = vst [vmem:[#allocation245_spill] sm:$0xff] %v7871_v28  ;;  %v1027_v54 = vpop.f32.mrf.mxu3  ;;  %v7889_v28 = vadd.f32 %v7136_v13, %v1019_v62  ;;  %v7904_v62 = vadd.f32 %v7136_v13, %v1024_v32 }
 0x5c1   :  { %13102 = vst [vmem:[#allocation251_spill] sm:$0xff] %v7889_v28  ;;  %v1136_v4 = vpack.c.bf16 %v7889_v28, %v7886_v36  ;;  %v7913_v28 = vadd.f32 %v7136_v13, %v1027_v54 }
 0x5c2   :  { %13106 = vst [vmem:[#allocation255_spill] sm:$0xff] %v7904_v62 }
 0x5c3   :  { %13109 = vst [vmem:[#allocation258_spill] sm:$0xff] %v7913_v28 }
 0x5c6   :  { %v7879_v16 = vpop.f32.mrf.mxu2 }
 0x5c7   :  { %13099 = vst [vmem:[#allocation248_spill] sm:$0xff] %v7879_v16  ;;  %v1029_v40 = vpop.f32.mrf.mxu3 }
 0x5cb   :  { %1612 = vmatmul.bf16.gmra.mxu2 %v1135_v33  ;;  %v6132_v33 = vld [vmem:[%s12411_s2 + $0x88] sm:$0xff] }
 0x5cc   :  { %3274 = vmatpush.bf16.msrb.mxu3 %v6132_v33 }
 0x5ce   :  { %v7883_v21 = vpop.f32.mrf.mxu2 }
 0x5cf   :  { %13100 = vst [vmem:[#allocation249_spill] sm:$0xff] %v7883_v21  ;;  %v1032_v41 = vpop.f32.mrf.mxu3 }
 0x5d6   :  { %v7891_v38 = vpop.f32.mrf.mxu2 }
 0x5d7   :  { %13103 = vst [vmem:[#allocation252_spill] sm:$0xff] %v7891_v38  ;;  %v1034_v21 = vpop.f32.mrf.mxu3  ;;  %v13144_v38 = vld [vmem:[#allocation7_spill] sm:$0xff] }
 0x5d8   :  { %v6151_v21 = vld [vmem:[%s12412_s3 + $0x20] sm:$0xff] }
 0x5d9   :  { %5174 = vmatpush.bf16.msrb.mxu1 %v6151_v21 }
 0x5db   :  { %1617 = vmatmul.bf16.gmra.mxu2 %v1136_v4  ;;  %v1137_v4 = vpack.c.bf16 %v7904_v62, %v7901_v1 }
 0x5de   :  { %v7895_v16 = vpop.f32.mrf.mxu2 }
 0x5df   :  { %13104 = vst [vmem:[#allocation253_spill] sm:$0xff] %v7895_v16  ;;  %v7916_v16 = vadd.f32 %v7136_v13, %v1029_v40 }
 0x5e1   :  { %13110 = vst [vmem:[#allocation259_spill] sm:$0xff] %v7916_v16  ;;  %v1138_v32 = vpack.c.bf16 %v7916_v16, %v7913_v28  ;;  %v7937_v28 = vld [vmem:[%s12409_s4 + $0x1] ss:$0 sm:$0xff] }
 0x5e6   :  { %v7906_v53 = vpop.f32.mrf.mxu2 }
 0x5e7   :  { %13107 = vst [vmem:[#allocation256_spill] sm:$0xff] %v7906_v53 }
 0x5eb   :  { %1622 = vmatmul.bf16.gmra.mxu2 %v1137_v4  ;;  %v7928_v4 = vadd.f32 %v7136_v13, %v1032_v41  ;;  %v1199_v13 = vadd.f32 %v7937_v28, %v6464_v47  ;;  %v1206_v47 = vadd.f32 %v7937_v28, %v6493_v5  ;;  %v1211_v5 = vadd.f32 %v7937_v28, %v6512_v17  ;;  %v6131_v17 = vld [vmem:[%s12411_s2 + $0x80] sm:$0xff] }
 0x5ec   :  { %3275 = vmatpush.bf16.msrb.mxu3 %v6131_v17 }
 0x5ed   :  { %13113 = vst [vmem:[#allocation262_spill] sm:$0xff] %v7928_v4  ;;  %v1139_v40 = vpack.c.bf16 %v7928_v4, %v7928_v4  ;;  %v1637_v16 = vmax.f32 %v1199_v13, 0.0  ;;  %v1204_v13 = vadd.f32 %v7937_v28, %v6483_v61  ;;  %v1209_v61 = vadd.f32 %v7937_v28, %v6502_v9 }
 0x5ee   :  { %v7910_v36 = vpop.f32.mrf.mxu2  ;;  %v1216_v9 = vadd.f32 %v7937_v28, %v6531_v31  ;;  %v1221_v31 = vadd.f32 %v7937_v28, %v6550_v49 }
 0x5ef   :  { %13108 = vst [vmem:[#allocation257_spill] sm:$0xff] %v7910_v36  ;;  %v7951_v62 = vadd.f32 %v1637_v16, %v6339_v42  ;;  %v1639_v16 = vmax.f32 %v1204_v13, 0.0  ;;  %v1641_v13 = vmax.f32 %v1209_v61, 0.0  ;;  %v1214_v61 = vadd.f32 %v7937_v28, %v6521_v23 }
 0x5f0   :  { %v1219_v23 = vadd.f32 %v7937_v28, %v6540_v37  ;;  %v1226_v37 = vadd.f32 %v7937_v28, %v6569_v6  ;;  %v1231_v6 = vadd.f32 %v7937_v28, %v6588_v29 }
 0x5f6   :  { %v7918_v14 = vpop.f32.mrf.mxu2 }
 0x5f7   :  { %13111 = vst [vmem:[#allocation260_spill] sm:$0xff] %v7918_v14 }
 0x5fb   :  { %1627 = vmatmul.bf16.gmra.mxu2 %v1138_v32  ;;  %v1201_v32 = vadd.f32 %v7937_v28, %v6474_v55  ;;  %v6141_v55 = vld [vmem:[%s12411_s2 + $0xd0] sm:$0xff] }
 0x5fc   :  { %4225 = vmatpush.bf16.msrb.mxu0 %v6141_v55 }
 0x5fd   :  { %v1638_v41 = vmax.f32 %v1201_v32, 0.0 }
 0x5fe   :  { %v7925_v33 = vpop.f32.mrf.mxu2 }
 0x5ff   :  { %13112 = vst [vmem:[#allocation261_spill] sm:$0xff] %v7925_v33  ;;  %v7946_v1 = vadd.f32 %v1638_v41, %v6342_v43  ;;  %v1640_v41 = vmax.f32 %v1206_v47, 0.0  ;;  %v1642_v47 = vmax.f32 %v1211_v5, 0.0 }
 0x606   :  { %v7930_v54 = vpop.f32.mrf.mxu2 }
 0x607   :  { %13114 = vst [vmem:[#allocation263_spill] sm:$0xff] %v7930_v54 }
 0x60b   :  { %1632 = vmatmul.bf16.gmra.mxu2 %v1139_v40  ;;  %v2004_v40 = vpack.c.bf16 %v7946_v1, %v7951_v62 }
 0x60e   :  { %v7941_v21 = vpop.f32.mrf.mxu2 }
 0x60f   :  { %13115 = vst [vmem:[#allocation264_spill] sm:$0xff] %v7941_v21  ;;  %v7965_v21 = vadd.f32 %v1640_v41, %v6357_v51  ;;  %v7981_v41 = vadd.f32 %v1642_v47, %v6372_v59  ;;  %v1644_v47 = vmax.f32 %v1216_v9, 0.0  ;;  %v1646_v9 = vmax.f32 %v1221_v31, 0.0 }
 0x616   :  { %v7948_v4 = vpop.f32.mrf.mxu2 }
 0x617   :  { %13116 = vst [vmem:[#allocation265_spill] sm:$0xff] %v7948_v4 }
 0x61b   :  { %2149 = vmatmul.bf16.vlgmr.msrb.gmra.mxu2 %v2004_v40  ;;  %v7970_v40 = vadd.f32 %v1639_v16, %v6354_v50  ;;  %v7986_v16 = vadd.f32 %v1641_v13, %v6369_v58  ;;  %v1643_v13 = vmax.f32 %v1214_v61, 0.0  ;;  %v1645_v61 = vmax.f32 %v1219_v23, 0.0 }
 0x61c   :  { %v1224_v23 = vadd.f32 %v7937_v28, %v6559_v56  ;;  %v1229_v56 = vadd.f32 %v7937_v28, %v6578_v15  ;;  %v1236_v15 = vadd.f32 %v7937_v28, %v6607_v63  ;;  %v1241_v63 = vadd.f32 %v7937_v28, %v6626_v30 }
 0x61d   :  { %v2005_v33 = vpack.c.bf16 %v7965_v21, %v7970_v40  ;;  %v1246_v30 = vadd.f32 %v7937_v28, %v6645_v25 }
 0x61e   :  { %v7960_v32 = vpop.f32.mrf.mxu2 }
 0x61f   :  { %13117 = vst [vmem:[#allocation266_spill] sm:$0xff] %v7960_v32 }
 0x626   :  { %v7967_v4 = vpop.f32.mrf.mxu2 }
 0x627   :  { %13118 = vst [vmem:[#allocation267_spill] sm:$0xff] %v7967_v4 }
 0x62b   :  { %2154 = vmatmul.bf16.gmra.mxu2 %v2005_v33  ;;  %v2006_v33 = vpack.c.bf16 %v7981_v41, %v7986_v16 }
 0x62e   :  { %v7976_v55 = vpop.f32.mrf.mxu2 }
 0x62f   :  { %13119 = vst [vmem:[#allocation268_spill] sm:$0xff] %v7976_v55  ;;  %v8000_v55 = vadd.f32 %v1644_v47, %v6387_v3  ;;  %v6150_v47 = vld [vmem:[%s12412_s3 + $0x18] sm:$0xff] }
 0x630   :  { %5175 = vmatpush.bf16.msrb.mxu1 %v6150_v47 }
 0x636   :  { %v7983_v32 = vpop.f32.mrf.mxu2 }
 0x637   :  { %13120 = vst [vmem:[#allocation269_spill] sm:$0xff] %v7983_v32 }
 0x63b   :  { %2159 = vmatmul.bf16.gmra.mxu2 %v2006_v33  ;;  %v8005_v33 = vadd.f32 %v1643_v13, %v6384_v2  ;;  %v8019_v13 = vadd.f32 %v1646_v9, %v6402_v11  ;;  %v1648_v9 = vmax.f32 %v1226_v37, 0.0  ;;  %v1650_v37 = vmax.f32 %v1231_v6, 0.0 }
 0x63d   :  { %v2007_v4 = vpack.c.bf16 %v8000_v55, %v8005_v33  ;;  %v8035_v47 = vadd.f32 %v1648_v9, %v6417_v19  ;;  %v6140_v9 = vld [vmem:[%s12411_s2 + $0xc8] sm:$0xff] }
 0x63e   :  { %v7995_v5 = vpop.f32.mrf.mxu2  ;;  %4226 = vmatpush.bf16.msrb.mxu0 %v6140_v9 }
 0x63f   :  { %13121 = vst [vmem:[#allocation270_spill] sm:$0xff] %v7995_v5 }
 0x646   :  { %v8002_v32 = vpop.f32.mrf.mxu2 }
 0x647   :  { %13122 = vst [vmem:[#allocation271_spill] sm:$0xff] %v8002_v32 }
 0x64b   :  { %2164 = vmatmul.bf16.gmra.mxu2 %v2007_v4  ;;  %v8024_v4 = vadd.f32 %v1645_v61, %v6399_v10 }
 0x64d   :  { %v2008_v49 = vpack.c.bf16 %v8019_v13, %v8024_v4 }
 0x64e   :  { %v8011_v17 = vpop.f32.mrf.mxu2 }
 0x64f   :  { %13123 = vst [vmem:[#allocation272_spill] sm:$0xff] %v8011_v17  ;;  %v1647_v17 = vmax.f32 %v1224_v23, 0.0  ;;  %v1649_v23 = vmax.f32 %v1229_v56, 0.0  ;;  %v1234_v56 = vadd.f32 %v7937_v28, %v6597_v39  ;;  %v1239_v39 = vadd.f32 %v7937_v28, %v6616_v12  ;;  %v8098_v12 = vld [vmem:[%s12409_s4 + $0x2] ss:$0 sm:$0xff] }
 0x651   :  { %v8040_v61 = vadd.f32 %v1647_v17, %v6414_v18  ;;  %v8054_v17 = vadd.f32 %v1650_v37, %v6432_v27  ;;  %v1652_v37 = vmax.f32 %v1236_v15, 0.0  ;;  %v1654_v15 = vmax.f32 %v1241_v63, 0.0 }
 0x653   :  { %v8070_v9 = vadd.f32 %v1652_v37, %v6447_v35  ;;  %v8086_v37 = vadd.f32 %v1654_v15, %v6462_v46 }
 0x656   :  { %v8021_v5 = vpop.f32.mrf.mxu2 }
 0x657   :  { %13124 = vst [vmem:[#allocation273_spill] sm:$0xff] %v8021_v5 }
 0x65b   :  { %2169 = vmatmul.bf16.gmra.mxu2 %v2008_v49  ;;  %v2009_v49 = vpack.c.bf16 %v8035_v47, %v8040_v61 }
 0x65e   :  { %v8030_v31 = vpop.f32.mrf.mxu2 }
 0x65f   :  { %13125 = vst [vmem:[#allocation274_spill] sm:$0xff] %v8030_v31 }
 0x666   :  { %v8037_v5 = vpop.f32.mrf.mxu2 }
 0x667   :  { %13126 = vst [vmem:[#allocation275_spill] sm:$0xff] %v8037_v5 }
 0x66b   :  { %2174 = vmatmul.bf16.gmra.mxu2 %v2009_v49  ;;  %v8059_v49 = vadd.f32 %v1649_v23, %v6429_v26 }
 0x66d   :  { %v2010_v29 = vpack.c.bf16 %v8054_v17, %v8059_v49 }
 0x66e   :  { %v8046_v31 = vpop.f32.mrf.mxu2 }
 0x66f   :  { %13127 = vst [vmem:[#allocation276_spill] sm:$0xff] %v8046_v31  ;;  %v1651_v31 = vmax.f32 %v1234_v56, 0.0  ;;  %v1653_v56 = vmax.f32 %v1239_v39, 0.0  ;;  %v1244_v39 = vadd.f32 %v7937_v28, %v6635_v52 }
 0x671   :  { %v8075_v23 = vadd.f32 %v1651_v31, %v6444_v34  ;;  %v8089_v31 = vadd.f32 %v1653_v56, %v6459_v45  ;;  %v1655_v56 = vmax.f32 %v1244_v39, 0.0  ;;  %v1251_v39 = vadd.f32 %v7937_v28, %v6664_v24 }
 0x673   :  { %v8107_v25 = vadd.f32 %v1655_v56, %v6478_v57 }
 0x676   :  { %v8056_v5 = vpop.f32.mrf.mxu2 }
 0x677   :  { %13128 = vst [vmem:[#allocation277_spill] sm:$0xff] %v8056_v5 }
 0x67b   :  { %2179 = vmatmul.bf16.gmra.mxu2 %v2010_v29  ;;  %v2011_v29 = vpack.c.bf16 %v8070_v9, %v8075_v23 }
 0x67e   :  { %v8065_v6 = vpop.f32.mrf.mxu2 }
 0x67f   :  { %13129 = vst [vmem:[#allocation278_spill] sm:$0xff] %v8065_v6 }
 0x686   :  { %v8072_v5 = vpop.f32.mrf.mxu2 }
 0x687   :  { %13130 = vst [vmem:[#allocation279_spill] sm:$0xff] %v8072_v5 }
 0x68b   :  { %2184 = vmatmul.bf16.gmra.mxu2 %v2011_v29  ;;  %v2012_v29 = vpack.c.bf16 %v8086_v37, %v8089_v31 }
 0x68e   :  { %v8081_v6 = vpop.f32.mrf.mxu2 }
 0x68f   :  { %13131 = vst [vmem:[#allocation280_spill] sm:$0xff] %v8081_v6 }
 0x696   :  { %v1635_v5 = vpop.f32.mrf.mxu2 }
 0x697   :  { %v1656_v5 = vmax.f32 %v1246_v30, 0.0 }
 0x699   :  { %v8104_v6 = vadd.f32 %v1656_v5, %v6481_v60 }
 0x69b   :  { %2189 = vmatmul.bf16.gmra.mxu2 %v2012_v29  ;;  %v2013_v52 = vpack.c.bf16 %v8104_v6, %v8107_v25 }
 0x69e   :  { %v2150_v63 = vpop.f32.mrf.mxu2 }
 0x69f   :  { %v2151_v15 = vadd.f32 %v8098_v12, %v2150_v63  ;;  %v6149_v63 = vld [vmem:[%s12412_s3 + $0x10] sm:$0xff] }
 0x6a0   :  { %5176 = vmatpush.bf16.msrb.mxu1 %v6149_v63 }
 0x6a1   :  { %v2589_v29 = vmax.f32 %v2151_v15, 0.0 }
 0x6a3   :  { %v2764_v36 = vadd.f32 %v2589_v29, %v7951_v62 }
 0x6a5   :  { %v8120_v5 = vadd.f32 %v2764_v36, %v6339_v42 }
 0x6a6   :  { %v2152_v32 = vpop.f32.mrf.mxu2 }
 0x6a7   :  { %v2153_v54 = vadd.f32 %v8098_v12, %v2152_v32 }
 0x6a9   :  { %v2590_v14 = vmax.f32 %v2153_v54, 0.0  ;;  %v1249_v54 = vadd.f32 %v7937_v28, %v6654_v48 }
 0x6ab   :  { %v2765_v30 = vadd.f32 %v2590_v14, %v7946_v1  ;;  %2194 = vmatmul.bf16.gmra.mxu2 %v2013_v52  ;;  %v1658_v14 = vmax.f32 %v1251_v39, 0.0  ;;  %v1657_v56 = vmax.f32 %v1249_v54, 0.0  ;;  %v1256_v39 = vadd.f32 %v7937_v28, %v6683_v20 }
 0x6ad   :  { %v8123_v32 = vadd.f32 %v2765_v30, %v6342_v43  ;;  %v8131_v24 = vadd.f32 %v1658_v14, %v6500_v8  ;;  %v8134_v43 = vadd.f32 %v1657_v56, %v6497_v7 }
 0x6ae   :  { %v2155_v62 = vpop.f32.mrf.mxu2 }
 0x6af   :  { %v3131_v1 = vpack.c.bf16 %v8123_v32, %v8120_v5  ;;  %v2156_v15 = vadd.f32 %v8098_v12, %v2155_v62  ;;  %v2014_v30 = vpack.c.bf16 %v8131_v24, %v8134_v43 }
 0x6b1   :  { %3276 = vmatmul.bf16.vlgmr.msrb.gmra.mxu3 %v3131_v1  ;;  %v2591_v42 = vmax.f32 %v2156_v15, 0.0  ;;  %v1660_v15 = vmax.f32 %v1256_v39, 0.0  ;;  %v13133_v39 = vld [vmem:[#allocation22_spill] sm:$0xff] }
 0x6b3   :  { %v2766_v48 = vadd.f32 %v2591_v42, %v7970_v40  ;;  %v1254_v40 = vadd.f32 %v7937_v28, %v6673_v44  ;;  %v8155_v20 = vadd.f32 %v1660_v15, %v6519_v22  ;;  %v13134_v15 = vld [vmem:[#allocation21_spill] sm:$0xff] }
 0x6b5   :  { %v8144_v62 = vadd.f32 %v2766_v48, %v6354_v50  ;;  %v1659_v56 = vmax.f32 %v1254_v40, 0.0 }
 0x6b6   :  { %v2157_v36 = vpop.f32.mrf.mxu2 }
 0x6b7   :  { %v2158_v29 = vadd.f32 %v8098_v12, %v2157_v36  ;;  %v13132_v36 = vld [vmem:[#allocation2_spill] sm:$0xff] }
 0x6b9   :  { %v2592_v52 = vmax.f32 %v2158_v29, 0.0 }
 0x6bb   :  { %v2767_v63 = vadd.f32 %v2592_v52, %v7965_v21  ;;  %2199 = vmatmul.bf16.gmra.mxu2 %v2014_v30 }
 0x6bd   :  { %v8147_v54 = vadd.f32 %v2767_v63, %v6357_v51  ;;  %v8158_v51 = vadd.f32 %v1659_v56, %v13132_v36  ;;  %v6139_v63 = vld [vmem:[%s12411_s2 + $0xc0] sm:$0xff] }
 0x6be   :  { %v2160_v1 = vpop.f32.mrf.mxu2  ;;  %4227 = vmatpush.bf16.msrb.mxu0 %v6139_v63 }
 0x6bf   :  { %v3132_v14 = vpack.c.bf16 %v8147_v54, %v8144_v62  ;;  %v2161_v21 = vadd.f32 %v8098_v12, %v2160_v1  ;;  %v2015_v52 = vpack.c.bf16 %v8155_v20, %v8158_v51  ;;  %v1261_v1 = vadd.f32 %v7937_v28, %v13133_v39 }
 0x6c1   :  { %3281 = vmatmul.bf16.gmra.mxu3 %v3132_v14  ;;  %v2593_v50 = vmax.f32 %v2161_v21, 0.0  ;;  %v1259_v21 = vadd.f32 %v7937_v28, %v13134_v15  ;;  %v1662_v56 = vmax.f32 %v1261_v1, 0.0  ;;  %v13137_v15 = vld [vmem:[#allocation26_spill] sm:$0xff] }
 0x6c3   :  { %v2768_v44 = vadd.f32 %v2593_v50, %v7986_v16 }
 0x6c5   :  { %v8171_v40 = vadd.f32 %v2768_v44, %v6369_v58 }
 0x6c6   :  { %v2162_v42 = vpop.f32.mrf.mxu2 }
 0x6c7   :  { %v2163_v29 = vadd.f32 %v8098_v12, %v2162_v42  ;;  %v1661_v42 = vmax.f32 %v1259_v21, 0.0  ;;  %v1266_v21 = vadd.f32 %v7937_v28, %v13137_v15  ;;  %v13140_v15 = vld [vmem:[#allocation5_spill] sm:$0xff] }
 0x6c9   :  { %v2594_v48 = vmax.f32 %v2163_v29, 0.0  ;;  %v13135_v29 = vld [vmem:[#allocation4_spill] sm:$0xff] }
 0x6cb   :  { %v2769_v30 = vadd.f32 %v2594_v48, %v7981_v41  ;;  %2204 = vmatmul.bf16.gmra.mxu2 %v2015_v52  ;;  %v8182_v48 = vadd.f32 %v1662_v56, %v13135_v29 }
 0x6cd   :  { %v8174_v14 = vadd.f32 %v2769_v30, %v6372_v59  ;;  %v13136_v59 = vld [vmem:[#allocation3_spill] sm:$0xff] }
 0x6ce   :  { %v2165_v16 = vpop.f32.mrf.mxu2  ;;  %v8185_v52 = vadd.f32 %v1661_v42, %v13136_v59  ;;  %v13138_v42 = vld [vmem:[#allocation25_spill] sm:$0xff] }
 0x6cf   :  { %v3133_v41 = vpack.c.bf16 %v8174_v14, %v8171_v40  ;;  %v2166_v50 = vadd.f32 %v8098_v12, %v2165_v16 }
 0x6d0   :  { %v2016_v1 = vpack.c.bf16 %v8182_v48, %v8185_v52 }
 0x6d1   :  { %3286 = vmatmul.bf16.gmra.mxu3 %v3133_v41  ;;  %v2595_v58 = vmax.f32 %v2166_v50, 0.0 }
 0x6d3   :  { %v2770_v63 = vadd.f32 %v2595_v58, %v8005_v33  ;;  %v1264_v33 = vadd.f32 %v7937_v28, %v13138_v42 }
 0x6d5   :  { %v8195_v41 = vadd.f32 %v2770_v63, %v6384_v2 }
 0x6d6   :  { %v2167_v44 = vpop.f32.mrf.mxu2 }
 0x6d7   :  { %v2168_v30 = vadd.f32 %v8098_v12, %v2167_v44  ;;  %v1664_v44 = vmax.f32 %v1266_v21, 0.0 }
 0x6d9   :  { %v2596_v39 = vmax.f32 %v2168_v30, 0.0  ;;  %v1663_v30 = vmax.f32 %v1264_v33, 0.0  ;;  %v13141_v33 = vld [vmem:[#allocation30_spill] sm:$0xff] }
 0x6db   :  { %v2771_v16 = vadd.f32 %v2596_v39, %v8000_v55  ;;  %2209 = vmatmul.bf16.gmra.mxu2 %v2016_v1  ;;  %v13139_v39 = vld [vmem:[#allocation6_spill] sm:$0xff] }
 0x6dc   :  { %v8206_v1 = vadd.f32 %v1664_v44, %v13139_v39 }
 0x6dd   :  { %v8198_v56 = vadd.f32 %v2771_v16, %v6387_v3  ;;  %v8209_v3 = vadd.f32 %v1663_v30, %v13140_v15 }
 0x6de   :  { %v2170_v50 = vpop.f32.mrf.mxu2 }
 0x6df   :  { %v3134_v58 = vpack.c.bf16 %v8198_v56, %v8195_v41  ;;  %v2171_v55 = vadd.f32 %v8098_v12, %v2170_v50  ;;  %v2017_v21 = vpack.c.bf16 %v8206_v1, %v8209_v3 }
 0x6e1   :  { %3291 = vmatmul.bf16.gmra.mxu3 %v3134_v58  ;;  %v2597_v2 = vmax.f32 %v2171_v55, 0.0  ;;  %v1271_v58 = vadd.f32 %v7937_v28, %v13141_v33 }
 0x6e3   :  { %v2772_v42 = vadd.f32 %v2597_v2, %v8024_v4 }
 0x6e5   :  { %v8219_v44 = vadd.f32 %v2772_v42, %v6399_v10 }
 0x6e6   :  { %v2172_v63 = vpop.f32.mrf.mxu2 }
 0x6e7   :  { %v2173_v16 = vadd.f32 %v8098_v12, %v2172_v63  ;;  %v13142_v63 = vld [vmem:[#allocation29_spill] sm:$0xff] }
 0x6e8   :  { %v1269_v4 = vadd.f32 %v7937_v28, %v13142_v63 }
 0x6e9   :  { %v2598_v53 = vmax.f32 %v2173_v16, 0.0  ;;  %v1666_v16 = vmax.f32 %v1271_v58, 0.0 }
 0x6eb   :  { %v2773_v50 = vadd.f32 %v2598_v53, %v8019_v13  ;;  %2214 = vmatmul.bf16.gmra.mxu2 %v2017_v21  ;;  %v1665_v13 = vmax.f32 %v1269_v4, 0.0  ;;  %v13143_v21 = vld [vmem:[#allocation8_spill] sm:$0xff]  ;;  %v13145_v4 = vld [vmem:[#allocation34_spill] sm:$0xff] }
 0x6ec   :  { %v8230_v33 = vadd.f32 %v1666_v16, %v13143_v21 }
 0x6ed   :  { %v8222_v55 = vadd.f32 %v2773_v50, %v6402_v11  ;;  %v8233_v11 = vadd.f32 %v1665_v13, %v13144_v38 }
 0x6ee   :  { %v2175_v30 = vpop.f32.mrf.mxu2 }
 0x6ef   :  { %v3135_v2 = vpack.c.bf16 %v8222_v55, %v8219_v44  ;;  %v2176_v53 = vadd.f32 %v8098_v12, %v2175_v30  ;;  %v2018_v58 = vpack.c.bf16 %v8230_v33, %v8233_v11 }
 0x6f1   :  { %3296 = vmatmul.bf16.gmra.mxu3 %v3135_v2  ;;  %v2599_v10 = vmax.f32 %v2176_v53, 0.0  ;;  %v1276_v2 = vadd.f32 %v7937_v28, %v13145_v4 }
 0x6f3   :  { %v2774_v63 = vadd.f32 %v2599_v10, %v8040_v61 }
 0x6f5   :  { %v8243_v16 = vadd.f32 %v2774_v63, %v6414_v18 }
 0x6f6   :  { %v2177_v42 = vpop.f32.mrf.mxu2 }
 0x6f7   :  { %v2178_v50 = vadd.f32 %v8098_v12, %v2177_v42  ;;  %v13146_v42 = vld [vmem:[#allocation33_spill] sm:$0xff] }
 0x6f8   :  { %v1274_v61 = vadd.f32 %v7937_v28, %v13146_v42 }
 0x6f9   :  { %v2600_v0 = vmax.f32 %v2178_v50, 0.0  ;;  %v1668_v50 = vmax.f32 %v1276_v2, 0.0 }
 0x6fb   :  { %v2775_v30 = vadd.f32 %v2600_v0, %v8035_v47  ;;  %2219 = vmatmul.bf16.gmra.mxu2 %v2018_v58  ;;  %v1667_v47 = vmax.f32 %v1274_v61, 0.0  ;;  %v13147_v58 = vld [vmem:[#allocation10_spill] sm:$0xff] }
 0x6fc   :  { %v8254_v4 = vadd.f32 %v1668_v50, %v13147_v58  ;;  %v13150_v50 = vld [vmem:[#allocation38_spill] sm:$0xff] }
 0x6fd   :  { %v8246_v53 = vadd.f32 %v2775_v30, %v6417_v19  ;;  %v6148_v19 = vld [vmem:[%s12412_s3 + $0x8] sm:$0xff]  ;;  %v13149_v30 = vld [vmem:[#allocation9_spill] sm:$0xff] }
 0x6fe   :  { %v2180_v13 = vpop.f32.mrf.mxu2  ;;  %13148 = vst [vmem:[#allocation2_spill] sm:$0xff] %v8254_v4  ;;  %v8260_v21 = vadd.f32 %v1667_v47, %v13149_v30  ;;  %5177 = vmatpush.bf16.msrb.mxu1 %v6148_v19  ;;  %v13151_v19 = vld [vmem:[#allocation37_spill] sm:$0xff]  ;;  %v13153_v30 = vld [vmem:[#allocation11_spill] sm:$0xff] }
 0x6ff   :  { %v3136_v10 = vpack.c.bf16 %v8246_v53, %v8243_v16  ;;  %v2181_v0 = vadd.f32 %v8098_v12, %v2180_v13 }
 0x700   :  { %v2019_v61 = vpack.c.bf16 %v8254_v4, %v8260_v21 }
 0x701   :  { %3301 = vmatmul.bf16.gmra.mxu3 %v3136_v10  ;;  %v2601_v18 = vmax.f32 %v2181_v0, 0.0  ;;  %v1281_v0 = vadd.f32 %v7937_v28, %v13150_v50 }
 0x703   :  { %v2776_v2 = vadd.f32 %v2601_v18, %v8059_v49  ;;  %v1279_v49 = vadd.f32 %v7937_v28, %v13151_v19 }
 0x705   :  { %v8270_v58 = vadd.f32 %v2776_v2, %v6429_v26 }
 0x706   :  { %v2182_v63 = vpop.f32.mrf.mxu2 }
 0x707   :  { %v2183_v42 = vadd.f32 %v8098_v12, %v2182_v63 }
 0x709   :  { %v2602_v13 = vmax.f32 %v2183_v42, 0.0  ;;  %v1670_v42 = vmax.f32 %v1281_v0, 0.0 }
 0x70b   :  { %v2777_v10 = vadd.f32 %v2602_v13, %v8054_v17  ;;  %2224 = vmatmul.bf16.gmra.mxu2 %v2019_v61  ;;  %v1669_v13 = vmax.f32 %v1279_v49, 0.0  ;;  %v13152_v61 = vld [vmem:[#allocation12_spill] sm:$0xff]  ;;  %v13154_v49 = vld [vmem:[#allocation42_spill] sm:$0xff] }
 0x70c   :  { %v8281_v50 = vadd.f32 %v1670_v42, %v13152_v61  ;;  %v13157_v61 = vld [vmem:[#allocation13_spill] sm:$0xff] }
 0x70d   :  { %v8273_v47 = vadd.f32 %v2777_v10, %v6432_v27  ;;  %v8284_v27 = vadd.f32 %v1669_v13, %v13153_v30 }
 0x70e   :  { %v2185_v63 = vpop.f32.mrf.mxu2 }
 0x70f   :  { %v3137_v18 = vpack.c.bf16 %v8273_v47, %v8270_v58  ;;  %v2186_v17 = vadd.f32 %v8098_v12, %v2185_v63  ;;  %v2020_v0 = vpack.c.bf16 %v8281_v50, %v8284_v27 }
 0x711   :  { %3306 = vmatmul.bf16.gmra.mxu3 %v3137_v18  ;;  %v2603_v26 = vmax.f32 %v2186_v17, 0.0  ;;  %v1286_v18 = vadd.f32 %v7937_v28, %v13154_v49 }
 0x713   :  { %v2778_v19 = vadd.f32 %v2603_v26, %v8075_v23 }
 0x715   :  { %v8294_v42 = vadd.f32 %v2778_v19, %v6444_v34 }
 0x716   :  { %v2187_v2 = vpop.f32.mrf.mxu2 }
 0x717   :  { %v2188_v10 = vadd.f32 %v8098_v12, %v2187_v2  ;;  %v13155_v2 = vld [vmem:[#allocation41_spill] sm:$0xff] }
 0x718   :  { %v1284_v23 = vadd.f32 %v7937_v28, %v13155_v2 }
 0x719   :  { %v2604_v4 = vmax.f32 %v2188_v10, 0.0  ;;  %v1672_v10 = vmax.f32 %v1286_v18, 0.0 }
 0x71b   :  { %v2779_v63 = vadd.f32 %v2604_v4, %v8070_v9  ;;  %2229 = vmatmul.bf16.gmra.mxu2 %v2020_v0  ;;  %v1671_v4 = vmax.f32 %v1284_v23, 0.0  ;;  %v13156_v0 = vld [vmem:[#allocation14_spill] sm:$0xff]  ;;  %v13158_v23 = vld [vmem:[#allocation47_spill] sm:$0xff] }
 0x71c   :  { %v8305_v49 = vadd.f32 %v1672_v10, %v13156_v0 }
 0x71d   :  { %v8297_v17 = vadd.f32 %v2779_v63, %v6447_v35  ;;  %v8308_v35 = vadd.f32 %v1671_v4, %v13157_v61 }
 0x71e   :  { %v2190_v13 = vpop.f32.mrf.mxu2 }
 0x71f   :  { %v3138_v26 = vpack.c.bf16 %v8297_v17, %v8294_v42  ;;  %v2191_v9 = vadd.f32 %v8098_v12, %v2190_v13  ;;  %v2021_v18 = vpack.c.bf16 %v8305_v49, %v8308_v35 }
 0x721   :  { %3311 = vmatmul.bf16.gmra.mxu3 %v3138_v26  ;;  %v2605_v34 = vmax.f32 %v2191_v9, 0.0  ;;  %v1291_v26 = vadd.f32 %v7937_v28, %v13158_v23  ;;  %v13162_v23 = vld [vmem:[#allocation16_spill] sm:$0xff] }
 0x723   :  { %v2780_v2 = vadd.f32 %v2605_v34, %v8089_v31 }
 0x725   :  { %v8318_v10 = vadd.f32 %v2780_v2, %v6459_v45 }
 0x726   :  { %v2192_v19 = vpop.f32.mrf.mxu2 }
 0x727   :  { %v2193_v63 = vadd.f32 %v8098_v12, %v2192_v19  ;;  %13159 = vst [vmem:[#allocation22_spill] sm:$0xff] %v8318_v10  ;;  %v13161_v19 = vld [vmem:[#allocation45_spill] sm:$0xff] }
 0x728   :  { %v1289_v31 = vadd.f32 %v7937_v28, %v13161_v19 }
 0x729   :  { %v2606_v30 = vmax.f32 %v2193_v63, 0.0  ;;  %v1674_v63 = vmax.f32 %v1291_v26, 0.0 }
 0x72b   :  { %v2781_v13 = vadd.f32 %v2606_v30, %v8086_v37  ;;  %2234 = vmatmul.bf16.gmra.mxu2 %v2021_v18  ;;  %v1673_v30 = vmax.f32 %v1289_v31, 0.0  ;;  %v8329_v0 = vadd.f32 %v1674_v63, %v13162_v23  ;;  %v13165_v23 = vld [vmem:[#allocation52_spill] sm:$0xff] }
 0x72d   :  { %v8321_v9 = vadd.f32 %v2781_v13, %v6462_v46  ;;  %13163 = vst [vmem:[#allocation4_spill] sm:$0xff] %v8329_v0  ;;  %v8334_v46 = vld [vmem:[%s12409_s4 + $0x3] ss:$0 sm:$0xff]  ;;  %v13164_v13 = vld [vmem:[#allocation15_spill] sm:$0xff] }
 0x72e   :  { %v2195_v4 = vpop.f32.mrf.mxu2  ;;  %v8337_v19 = vadd.f32 %v1673_v30, %v13164_v13 }
 0x72f   :  { %13160 = vst [vmem:[#allocation21_spill] sm:$0xff] %v8321_v9  ;;  %v3139_v34 = vpack.c.bf16 %v8321_v9, %v8318_v10  ;;  %v2196_v37 = vadd.f32 %v8098_v12, %v2195_v4  ;;  %v1296_v9 = vadd.f32 %v7937_v28, %v13165_v23 }
 0x730   :  { %v2022_v63 = vpack.c.bf16 %v8329_v0, %v8337_v19 }
 0x731   :  { %3316 = vmatmul.bf16.gmra.mxu3 %v3139_v34  ;;  %v2607_v45 = vmax.f32 %v2196_v37, 0.0 }
 0x733   :  { %v2782_v4 = vadd.f32 %v2607_v45, %v8107_v25  ;;  %v13166_v45 = vld [vmem:[#allocation49_spill] sm:$0xff] }
 0x734   :  { %v3277_v18 = vpop.f32.mrf.mxu3 }
 0x735   :  { %v3278_v31 = vadd.f32 %v8334_v46, %v3277_v18  ;;  %v8348_v30 = vadd.f32 %v2782_v4, %v6478_v57 }
 0x736   :  { %v2197_v2 = vpop.f32.mrf.mxu2 }
 0x737   :  { %v2198_v26 = vadd.f32 %v8098_v12, %v2197_v2  ;;  %v3716_v13 = vmax.f32 %v3278_v31, 0.0 }
 0x739   :  { %v2608_v34 = vmax.f32 %v2198_v26, 0.0  ;;  %v1294_v26 = vadd.f32 %v7937_v28, %v13166_v45  ;;  %v8359_v23 = vadd.f32 %v3716_v13, %v8120_v5  ;;  %v13168_v45 = vld [vmem:[#allocation17_spill] sm:$0xff] }
 0x73b   :  { %v2783_v37 = vadd.f32 %v2608_v34, %v8104_v6  ;;  %2239 = vmatmul.bf16.gmra.mxu2 %v2022_v63  ;;  %v1676_v34 = vmax.f32 %v1296_v9, 0.0  ;;  %v13167_v63 = vld [vmem:[#allocation18_spill] sm:$0xff] }
 0x73c   :  { %v3279_v10 = vpop.f32.mrf.mxu3 }
 0x73d   :  { %v3280_v2 = vadd.f32 %v8334_v46, %v3279_v10  ;;  %v8352_v25 = vadd.f32 %v2783_v37, %v6481_v60  ;;  %v1675_v60 = vmax.f32 %v1294_v26, 0.0  ;;  %v8368_v37 = vadd.f32 %v1676_v34, %v13167_v63  ;;  %v13169_v34 = vld [vmem:[#allocation56_spill] sm:$0xff] }
 0x73e   :  { %v2200_v18 = vpop.f32.mrf.mxu2 }
 0x73f   :  { %v3717_v0 = vmax.f32 %v3280_v2, 0.0  ;;  %v3140_v6 = vpack.c.bf16 %v8352_v25, %v8348_v30  ;;  %v2201_v10 = vadd.f32 %v8098_v12, %v2200_v18  ;;  %v8371_v5 = vadd.f32 %v1675_v60, %v13168_v45 }
 0x741   :  { %v8362_v57 = vadd.f32 %v3717_v0, %v8123_v32  ;;  %3321 = vmatmul.bf16.gmra.mxu3 %v3140_v6  ;;  %v2609_v2 = vmax.f32 %v2201_v10, 0.0  ;;  %v2023_v26 = vpack.c.bf16 %v8368_v37, %v8371_v5  ;;  %v1301_v10 = vadd.f32 %v7937_v28, %v13169_v34  ;;  %v13171_v34 = vld [vmem:[#allocation20_spill] sm:$0xff] }
 0x743   :  { %v4083_v4 = vpack.c.bf16 %v8362_v57, %v8359_v23  ;;  %v2784_v0 = vadd.f32 %v2609_v2, %v8134_v43  ;;  %v13170_v2 = vld [vmem:[#allocation53_spill] sm:$0xff] }
 0x744   :  { %v3282_v31 = vpop.f32.mrf.mxu3 }
 0x745   :  { %4228 = vmatmul.bf16.vlgmr.msrb.gmra.mxu0 %v4083_v4  ;;  %v3283_v13 = vadd.f32 %v8334_v46, %v3282_v31  ;;  %v8382_v60 = vadd.f32 %v2784_v0, %v6497_v7 }
 0x746   :  { %v2202_v9 = vpop.f32.mrf.mxu2 }
 0x747   :  { %v2203_v32 = vadd.f32 %v8098_v12, %v2202_v9  ;;  %v3718_v63 = vmax.f32 %v3283_v13, 0.0 }
 0x749   :  { %v2610_v18 = vmax.f32 %v2203_v32, 0.0  ;;  %v1299_v32 = vadd.f32 %v7937_v28, %v13170_v2  ;;  %v13172_v2 = vld [vmem:[#allocation19_spill] sm:$0xff] }
 0x74b   :  { %v2785_v6 = vadd.f32 %v2610_v18, %v8131_v24  ;;  %2244 = vmatmul.bf16.gmra.mxu2 %v2023_v26  ;;  %v1678_v18 = vmax.f32 %v1301_v10, 0.0  ;;  %v8393_v26 = vadd.f32 %v3718_v63, %v8144_v62 }
 0x74c   :  { %v3284_v4 = vpop.f32.mrf.mxu3 }
 0x74d   :  { %v3285_v9 = vadd.f32 %v8334_v46, %v3284_v4  ;;  %v8386_v43 = vadd.f32 %v2785_v6, %v6500_v8  ;;  %v1677_v8 = vmax.f32 %v1299_v32, 0.0  ;;  %v8402_v4 = vadd.f32 %v1678_v18, %v13171_v34  ;;  %v6147_v18 = vld [vmem:[%s12412_s3] sm:$0xff] }
 0x74e   :  { %v2205_v31 = vpop.f32.mrf.mxu2  ;;  %5178 = vmatpush.bf16.msrb.mxu1 %v6147_v18 }
 0x74f   :  { %v3719_v45 = vmax.f32 %v3285_v9, 0.0  ;;  %v3141_v24 = vpack.c.bf16 %v8386_v43, %v8382_v60  ;;  %v2206_v0 = vadd.f32 %v8098_v12, %v2205_v31  ;;  %v8405_v62 = vadd.f32 %v1677_v8, %v13172_v2 }
 0x751   :  { %v8396_v7 = vadd.f32 %v3719_v45, %v8147_v54  ;;  %3326 = vmatmul.bf16.gmra.mxu3 %v3141_v24  ;;  %v2611_v9 = vmax.f32 %v2206_v0, 0.0  ;;  %v2024_v32 = vpack.c.bf16 %v8402_v4, %v8405_v62  ;;  %v13173_v0 = vld [vmem:[#allocation60_spill] sm:$0xff] }
 0x752   :  { %v1306_v8 = vadd.f32 %v7937_v28, %v13173_v0 }
 0x753   :  { %v4084_v13 = vpack.c.bf16 %v8396_v7, %v8393_v26  ;;  %v2786_v63 = vadd.f32 %v2611_v9, %v8158_v51 }
 0x754   :  { %v3287_v6 = vpop.f32.mrf.mxu3  ;;  %v1680_v0 = vmax.f32 %v1306_v8, 0.0 }
 0x755   :  { %4233 = vmatmul.bf16.gmra.mxu0 %v4084_v13  ;;  %v3288_v45 = vadd.f32 %v8334_v46, %v3287_v6 }
 0x756   :  { %v2207_v10 = vpop.f32.mrf.mxu2 }
 0x757   :  { %v2208_v54 = vadd.f32 %v8098_v12, %v2207_v10  ;;  %v8419_v10 = vadd.f32 %v2786_v63, %v13132_v36  ;;  %v3720_v51 = vmax.f32 %v3288_v45, 0.0 }
 0x759   :  { %v2612_v31 = vmax.f32 %v2208_v54, 0.0  ;;  %v13174_v54 = vld [vmem:[#allocation59_spill] sm:$0xff]  ;;  %v8430_v2 = vadd.f32 %v3720_v51, %v8171_v40 }
 0x75a   :  { %v13177_v51 = vld [vmem:[#allocation23_spill] sm:$0xff] }
 0x75b   :  { %v2787_v24 = vadd.f32 %v2612_v31, %v8155_v20  ;;  %2249 = vmatmul.bf16.gmra.mxu2 %v2024_v32  ;;  %v1304_v31 = vadd.f32 %v7937_v28, %v13174_v54 }
 0x75c   :  { %v3289_v13 = vpop.f32.mrf.mxu3 }
 0x75d   :  { %v3290_v6 = vadd.f32 %v8334_v46, %v3289_v13  ;;  %v8423_v9 = vadd.f32 %v2787_v24, %v6519_v22  ;;  %v8436_v22 = vpop.f32.mrf.mxu1  ;;  %v1679_v45 = vmax.f32 %v1304_v31, 0.0  ;;  %v13176_v13 = vld [vmem:[#allocation24_spill] sm:$0xff] }
 0x75e   :  { %v2210_v20 = vpop.f32.mrf.mxu2  ;;  %13175 = vst [vmem:[#allocation3_spill] sm:$0xff] %v8436_v22 }
 0x75f   :  { %v3721_v32 = vmax.f32 %v3290_v6, 0.0  ;;  %v3142_v34 = vpack.c.bf16 %v8423_v9, %v8419_v10  ;;  %v2211_v63 = vadd.f32 %v8098_v12, %v2210_v20  ;;  %v8441_v6 = vadd.f32 %v1680_v0, %v13176_v13  ;;  %v13178_v0 = vld [vmem:[#allocation64_spill] sm:$0xff] }
 0x760   :  { %v8444_v54 = vadd.f32 %v1679_v45, %v13177_v51 }
 0x761   :  { %v8433_v36 = vadd.f32 %v3721_v32, %v8174_v14  ;;  %3331 = vmatmul.bf16.gmra.mxu3 %v3142_v34  ;;  %v2613_v8 = vmax.f32 %v2211_v63, 0.0  ;;  %v1311_v63 = vadd.f32 %v7937_v28, %v13178_v0 }
 0x762   :  { %v2025_v32 = vpack.c.bf16 %v8441_v6, %v8444_v54 }
 0x763   :  { %v4085_v24 = vpack.c.bf16 %v8433_v36, %v8430_v2  ;;  %v2788_v34 = vadd.f32 %v2613_v8, %v8185_v52  ;;  %v1682_v0 = vmax.f32 %v1311_v63, 0.0 }
 0x764   :  { %v3292_v18 = vpop.f32.mrf.mxu3 }
 0x765   :  { %4238 = vmatmul.bf16.gmra.mxu0 %v4085_v24  ;;  %v3293_v20 = vadd.f32 %v8334_v46, %v3292_v18  ;;  %v8454_v24 = vpop.f32.mrf.mxu1  ;;  %v8457_v13 = vadd.f32 %v2788_v34, %v13136_v59 }
 0x766   :  { %v2212_v40 = vpop.f32.mrf.mxu2  ;;  %13179 = vst [vmem:[#allocation26_spill] sm:$0xff] %v8454_v24 }
 0x767   :  { %v2213_v14 = vadd.f32 %v8098_v12, %v2212_v40  ;;  %v3722_v40 = vmax.f32 %v3293_v20, 0.0 }
 0x769   :  { %v2614_v31 = vmax.f32 %v2213_v14, 0.0  ;;  %v13181_v14 = vld [vmem:[#allocation63_spill] sm:$0xff]  ;;  %v8468_v24 = vadd.f32 %v3722_v40, %v8195_v41 }
 0x76a   :  { %v13184_v40 = vld [vmem:[#allocation27_spill] sm:$0xff] }
 0x76b   :  { %v2789_v22 = vadd.f32 %v2614_v31, %v8182_v48  ;;  %2254 = vmatmul.bf16.gmra.mxu2 %v2025_v32  ;;  %v1309_v48 = vadd.f32 %v7937_v28, %v13181_v14 }
 0x76c   :  { %v3294_v45 = vpop.f32.mrf.mxu3 }
 0x76d   :  { %v3295_v52 = vadd.f32 %v8334_v46, %v3294_v45  ;;  %v8461_v18 = vadd.f32 %v2789_v22, %v13135_v29  ;;  %v1681_v29 = vmax.f32 %v1309_v48, 0.0  ;;  %v13182_v45 = vld [vmem:[#allocation28_spill] sm:$0xff]  ;;  %v8479_v63 = vpop.f32.mrf.mxu1 }
 0x76e   :  { %v2215_v8 = vpop.f32.mrf.mxu2  ;;  %13183 = vst [vmem:[#allocation6_spill] sm:$0xff] %v8479_v63 }
 0x76f   :  { %13180 = vst [vmem:[#allocation25_spill] sm:$0xff] %v8461_v18  ;;  %v3723_v31 = vmax.f32 %v3295_v52, 0.0  ;;  %v3143_v32 = vpack.c.bf16 %v8461_v18, %v8457_v13  ;;  %v2216_v34 = vadd.f32 %v8098_v12, %v2215_v8  ;;  %v8477_v52 = vadd.f32 %v1682_v0, %v13182_v45 }
 0x770   :  { %v8482_v18 = vadd.f32 %v1681_v29, %v13184_v40 }
 0x771   :  { %v8471_v59 = vadd.f32 %v3723_v31, %v8198_v56  ;;  %3336 = vmatmul.bf16.gmra.mxu3 %v3143_v32  ;;  %v2615_v14 = vmax.f32 %v2216_v34, 0.0  ;;  %v13185_v34 = vld [vmem:[#allocation70_spill] sm:$0xff] }
 0x772   :  { %v2026_v32 = vpack.c.bf16 %v8477_v52, %v8482_v18 }
 0x773   :  { %v4086_v22 = vpack.c.bf16 %v8471_v59, %v8468_v24  ;;  %v2790_v8 = vadd.f32 %v2615_v14, %v8209_v3  ;;  %v13186_v14 = vld [vmem:[#allocation67_spill] sm:$0xff] }
 0x774   :  { %v3297_v20 = vpop.f32.mrf.mxu3 }
 0x775   :  { %4243 = vmatmul.bf16.gmra.mxu0 %v4086_v22  ;;  %v3298_v48 = vadd.f32 %v8334_v46, %v3297_v20  ;;  %v1316_v22 = vadd.f32 %v7937_v28, %v13185_v34  ;;  %v8493_v29 = vadd.f32 %v2790_v8, %v13140_v15  ;;  %v13188_v34 = vld [vmem:[#allocation32_spill] sm:$0xff] }
 0x776   :  { %v2217_v41 = vpop.f32.mrf.mxu2 }
 0x777   :  { %v2218_v56 = vadd.f32 %v8098_v12, %v2217_v41  ;;  %v3724_v45 = vmax.f32 %v3298_v48, 0.0 }
 0x779   :  { %v2616_v31 = vmax.f32 %v2218_v56, 0.0  ;;  %v1314_v56 = vadd.f32 %v7937_v28, %v13186_v14  ;;  %v8506_v15 = vadd.f32 %v3724_v45, %v8219_v44 }
 0x77b   :  { %v2791_v0 = vadd.f32 %v2616_v31, %v8206_v1  ;;  %2259 = vmatmul.bf16.gmra.mxu2 %v2026_v32  ;;  %v8503_v31 = vpop.f32.mrf.mxu1  ;;  %v1684_v32 = vmax.f32 %v1316_v22, 0.0 }
 0x77c   :  { %v3299_v63 = vpop.f32.mrf.mxu3  ;;  %13187 = vst [vmem:[#allocation5_spill] sm:$0xff] %v8503_v31  ;;  %v13190_v31 = vld [vmem:[#allocation31_spill] sm:$0xff] }
 0x77d   :  { %v3300_v41 = vadd.f32 %v8334_v46, %v3299_v63  ;;  %v8497_v3 = vadd.f32 %v2791_v0, %v13139_v39  ;;  %v1683_v63 = vmax.f32 %v1314_v56, 0.0 }
 0x77e   :  { %v2220_v20 = vpop.f32.mrf.mxu2 }
 0x77f   :  { %v3725_v40 = vmax.f32 %v3300_v41, 0.0  ;;  %v3144_v1 = vpack.c.bf16 %v8497_v3, %v8493_v29  ;;  %v2221_v39 = vadd.f32 %v8098_v12, %v2220_v20  ;;  %v8515_v41 = vadd.f32 %v1684_v32, %v13188_v34 }
 0x780   :  { %v8518_v44 = vadd.f32 %v1683_v63, %v13190_v31  ;;  %v13195_v31 = vld [vmem:[#allocation71_spill] sm:$0xff] }
 0x781   :  { %v8509_v8 = vadd.f32 %v3725_v40, %v8222_v55  ;;  %3341 = vmatmul.bf16.gmra.mxu3 %v3144_v1  ;;  %13189 = vst [vmem:[#allocation30_spill] sm:$0xff] %v8515_v41  ;;  %v2617_v14 = vmax.f32 %v2221_v39, 0.0  ;;  %v13192_v39 = vld [vmem:[#allocation74_spill] sm:$0xff] }
 0x782   :  { %v2027_v56 = vpack.c.bf16 %v8515_v41, %v8518_v44 }
 0x783   :  { %v4087_v48 = vpack.c.bf16 %v8509_v8, %v8506_v15  ;;  %v2792_v45 = vadd.f32 %v2617_v14, %v8233_v11  ;;  %v8525_v1 = vpop.f32.mrf.mxu1 }
 0x784   :  { %v3302_v0 = vpop.f32.mrf.mxu3  ;;  %13191 = vst [vmem:[#allocation29_spill] sm:$0xff] %v8525_v1  ;;  %v1319_v1 = vadd.f32 %v7937_v28, %v13195_v31 }
 0x785   :  { %4248 = vmatmul.bf16.gmra.mxu0 %v4087_v48  ;;  %v3303_v40 = vadd.f32 %v8334_v46, %v3302_v0  ;;  %v1321_v48 = vadd.f32 %v7937_v28, %v13192_v39  ;;  %v8531_v34 = vadd.f32 %v2792_v45, %v13144_v38  ;;  %v13193_v0 = vld [vmem:[#allocation8_spill] sm:$0xff] }
 0x786   :  { %v2222_v22 = vpop.f32.mrf.mxu2 }
 0x787   :  { %v2223_v55 = vadd.f32 %v8098_v12, %v2222_v22  ;;  %v3726_v22 = vmax.f32 %v3303_v40, 0.0  ;;  %v1685_v40 = vmax.f32 %v1319_v1, 0.0 }
 0x789   :  { %v2618_v20 = vmax.f32 %v2223_v55, 0.0 }
 0x78b   :  { %v2793_v32 = vadd.f32 %v2618_v20, %v8230_v33  ;;  %2264 = vmatmul.bf16.gmra.mxu2 %v2027_v56  ;;  %v1686_v20 = vmax.f32 %v1321_v48, 0.0  ;;  %v8542_v56 = vadd.f32 %v3726_v22, %v8243_v16  ;;  %v8550_v39 = vpop.f32.mrf.mxu1  ;;  %v13199_v22 = vld [vmem:[#allocation35_spill] sm:$0xff] }
 0x78c   :  { %v3304_v63 = vpop.f32.mrf.mxu3  ;;  %13196 = vst [vmem:[#allocation34_spill] sm:$0xff] %v8550_v39  ;;  %v13200_v39 = vld [vmem:[#allocation2_spill] sm:$0xff] }
 0x78d   :  { %v3305_v11 = vadd.f32 %v8334_v46, %v3304_v63  ;;  %v8535_v14 = vadd.f32 %v2793_v32, %v13193_v0  ;;  %v13197_v63 = vld [vmem:[#allocation36_spill] sm:$0xff]  ;;  %v8556_v0 = vadd.f32 %v1685_v40, %v13199_v22 }
 0x78e   :  { %v2225_v55 = vpop.f32.mrf.mxu2 }
 0x78f   :  { %13194 = vst [vmem:[#allocation7_spill] sm:$0xff] %v8535_v14  ;;  %v3727_v41 = vmax.f32 %v3305_v11, 0.0  ;;  %v3145_v33 = vpack.c.bf16 %v8535_v14, %v8531_v34  ;;  %v2226_v45 = vadd.f32 %v8098_v12, %v2225_v55  ;;  %v8553_v11 = vadd.f32 %v1686_v20, %v13197_v63  ;;  %v13201_v20 = vld [vmem:[#allocation78_spill] sm:$0xff]  ;;  %v13202_v63 = vld [vmem:[#allocation9_spill] sm:$0xff] }
 0x791   :  { %v8545_v38 = vadd.f32 %v3727_v41, %v8246_v53  ;;  %3346 = vmatmul.bf16.gmra.mxu3 %v3145_v33  ;;  %13198 = vst [vmem:[#allocation33_spill] sm:$0xff] %v8553_v11  ;;  %v2619_v48 = vmax.f32 %v2226_v45, 0.0  ;;  %v2028_v33 = vpack.c.bf16 %v8553_v11, %v8556_v0  ;;  %v1326_v45 = vadd.f32 %v7937_v28, %v13201_v20  ;;  %v13205_v11 = vld [vmem:[#allocation77_spill] sm:$0xff] }
 0x793   :  { %v4088_v32 = vpack.c.bf16 %v8545_v38, %v8542_v56  ;;  %v2794_v41 = vadd.f32 %v2619_v48, %v8260_v21  ;;  %v13203_v21 = vld [vmem:[#allocation10_spill] sm:$0xff]  ;;  %v1688_v20 = vmax.f32 %v1326_v45, 0.0 }
 0x794   :  { %v3307_v31 = vpop.f32.mrf.mxu3 }
 0x795   :  { %4253 = vmatmul.bf16.gmra.mxu0 %v4088_v32  ;;  %v3308_v1 = vadd.f32 %v8334_v46, %v3307_v31  ;;  %v8567_v40 = vadd.f32 %v2794_v41, %v13202_v63  ;;  %v8573_v31 = vpop.f32.mrf.mxu1 }
 0x796   :  { %v2227_v16 = vpop.f32.mrf.mxu2  ;;  %13204 = vst [vmem:[#allocation38_spill] sm:$0xff] %v8573_v31  ;;  %v13208_v31 = vld [vmem:[#allocation39_spill] sm:$0xff] }
 0x797   :  { %v2228_v53 = vadd.f32 %v8098_v12, %v2227_v16  ;;  %v3728_v22 = vmax.f32 %v3308_v1, 0.0 }
 0x799   :  { %v2620_v55 = vmax.f32 %v2228_v53, 0.0  ;;  %v8580_v63 = vadd.f32 %v3728_v22, %v8270_v58 }
 0x79b   :  { %v2795_v14 = vadd.f32 %v2620_v55, %v13200_v39  ;;  %2269 = vmatmul.bf16.gmra.mxu2 %v2028_v33  ;;  %v1324_v39 = vadd.f32 %v7937_v28, %v13205_v11  ;;  %v13206_v28 = vld [vmem:[#allocation40_spill] sm:$0xff] }
 0x79c   :  { %v3309_v32 = vpop.f32.mrf.mxu3  ;;  %v8589_v11 = vadd.f32 %v1688_v20, %v13206_v28  ;;  %v13212_v28 = vld [vmem:[#allocation11_spill] sm:$0xff] }
 0x79d   :  { %v3310_v16 = vadd.f32 %v8334_v46, %v3309_v32  ;;  %v8571_v48 = vadd.f32 %v2795_v14, %v13203_v21  ;;  %v1687_v1 = vmax.f32 %v1324_v39, 0.0  ;;  %v8595_v22 = vpop.f32.mrf.mxu1 }
 0x79e   :  { %v2230_v53 = vpop.f32.mrf.mxu2  ;;  %13207 = vst [vmem:[#allocation37_spill] sm:$0xff] %v8589_v11 }
 0x79f   :  { %v3729_v55 = vmax.f32 %v3310_v16, 0.0  ;;  %v3146_v33 = vpack.c.bf16 %v8571_v48, %v8567_v40  ;;  %v2231_v14 = vadd.f32 %v8098_v12, %v2230_v53  ;;  %v8592_v58 = vadd.f32 %v1687_v1, %v13208_v31  ;;  %13210 = vst [vmem:[#allocation41_spill] sm:$0xff] %v8595_v22  ;;  %v13211_v1 = vld [vmem:[#allocation82_spill] sm:$0xff] }
 0x7a1   :  { %v8583_v41 = vadd.f32 %v3729_v55, %v8273_v47  ;;  %3351 = vmatmul.bf16.gmra.mxu3 %v3146_v33  ;;  %v2621_v16 = vmax.f32 %v2231_v14, 0.0  ;;  %13209 = vst [vmem:[#allocation42_spill] sm:$0xff] %v8592_v58  ;;  %v2029_v33 = vpack.c.bf16 %v8589_v11, %v8592_v58  ;;  %v8605_v14 = vld [vmem:[%s12409_s4 + $0x1] ss:$0 sm:$0xff] }
 0x7a3   :  { %v4089_v32 = vpack.c.bf16 %v8583_v41, %v8580_v63  ;;  %v2796_v53 = vadd.f32 %v2621_v16, %v8284_v27 }
 0x7a4   :  { %v3312_v21 = vpop.f32.mrf.mxu3 }
 0x7a5   :  { %4258 = vmatmul.bf16.gmra.mxu0 %v4089_v32  ;;  %v3313_v39 = vadd.f32 %v8334_v46, %v3312_v21  ;;  %v1331_v32 = vadd.f32 %v8605_v14, %v13211_v1  ;;  %v8610_v27 = vadd.f32 %v2796_v53, %v13212_v28 }
 0x7a6   :  { %v2232_v45 = vpop.f32.mrf.mxu2 }
 0x7a7   :  { %v2233_v47 = vadd.f32 %v8098_v12, %v2232_v45  ;;  %13213 = vst [vmem:[#allocation13_spill] sm:$0xff] %v8610_v27  ;;  %v3730_v21 = vmax.f32 %v3313_v39, 0.0  ;;  %v1690_v58 = vmax.f32 %v1331_v32, 0.0  ;;  %v8627_v39 = vpop.f32.mrf.mxu1 }
 0x7a8   :  { %13217 = vst [vmem:[#allocation45_spill] sm:$0xff] %v8627_v39 }
 0x7a9   :  { %v2622_v55 = vmax.f32 %v2233_v47, 0.0  ;;  %v13214_v47 = vld [vmem:[#allocation12_spill] sm:$0xff]  ;;  %v8621_v1 = vadd.f32 %v3730_v21, %v8294_v42  ;;  %v13220_v21 = vld [vmem:[#allocation43_spill] sm:$0xff] }
 0x7ab   :  { %v2797_v20 = vadd.f32 %v2622_v55, %v8281_v50  ;;  %2274 = vmatmul.bf16.gmra.mxu2 %v2029_v33  ;;  %v13216_v55 = vld [vmem:[#allocation81_spill] sm:$0xff] }
 0x7ac   :  { %v3314_v45 = vpop.f32.mrf.mxu3  ;;  %v1329_v33 = vadd.f32 %v8605_v14, %v13216_v55 }
 0x7ad   :  { %v3315_v16 = vadd.f32 %v8334_v46, %v3314_v45  ;;  %v8614_v31 = vadd.f32 %v2797_v20, %v13214_v47  ;;  %v13218_v47 = vld [vmem:[#allocation44_spill] sm:$0xff] }
 0x7ae   :  { %v2235_v50 = vpop.f32.mrf.mxu2  ;;  %v1689_v20 = vmax.f32 %v1329_v33, 0.0  ;;  %v8632_v55 = vadd.f32 %v1690_v58, %v13218_v47  ;;  %v13222_v58 = vld [vmem:[#allocation88_spill] sm:$0xff] }
 0x7af   :  { %13215 = vst [vmem:[#allocation47_spill] sm:$0xff] %v8614_v31  ;;  %v3731_v22 = vmax.f32 %v3315_v16, 0.0  ;;  %v3147_v11 = vpack.c.bf16 %v8614_v31, %v8610_v27  ;;  %v2236_v53 = vadd.f32 %v8098_v12, %v2235_v50  ;;  %v13239_v27 = vld [vmem:[#allocation16_spill] sm:$0xff] }
 0x7b0   :  { %13219 = vst [vmem:[#allocation52_spill] sm:$0xff] %v8632_v55  ;;  %v8635_v31 = vadd.f32 %v1689_v20, %v13220_v21  ;;  %v13227_v21 = vld [vmem:[#allocation85_spill] sm:$0xff] }
 0x7b1   :  { %v8624_v28 = vadd.f32 %v3731_v22, %v8297_v17  ;;  %3356 = vmatmul.bf16.gmra.mxu3 %v3147_v11  ;;  %v2623_v32 = vmax.f32 %v2236_v53, 0.0  ;;  %v1336_v53 = vadd.f32 %v8605_v14, %v13222_v58 }
 0x7b2   :  { %13221 = vst [vmem:[#allocation49_spill] sm:$0xff] %v8635_v31  ;;  %v2030_v33 = vpack.c.bf16 %v8632_v55, %v8635_v31  ;;  %v13228_v55 = vld [vmem:[#allocation22_spill] sm:$0xff] }
 0x7b3   :  { %v4090_v45 = vpack.c.bf16 %v8624_v28, %v8621_v1  ;;  %v2798_v11 = vadd.f32 %v2623_v32, %v8308_v35 }
 0x7b4   :  { %v3317_v16 = vpop.f32.mrf.mxu3 }
 0x7b5   :  { %4263 = vmatmul.bf16.gmra.mxu0 %v4090_v45  ;;  %v3318_v22 = vadd.f32 %v8334_v46, %v3317_v16  ;;  %v8645_v45 = vpop.f32.mrf.mxu1  ;;  %v8648_v47 = vadd.f32 %v2798_v11, %v13157_v61  ;;  %v13225_v16 = vld [vmem:[#allocation14_spill] sm:$0xff]  ;;  %v13230_v11 = vld [vmem:[#allocation21_spill] sm:$0xff] }
 0x7b6   :  { %v2237_v42 = vpop.f32.mrf.mxu2  ;;  %13223 = vst [vmem:[#allocation56_spill] sm:$0xff] %v8645_v45  ;;  %v1692_v45 = vmax.f32 %v1336_v53, 0.0  ;;  %v13232_v53 = vld [vmem:[#allocation48_spill] sm:$0xff] }
 0x7b7   :  { %v2238_v17 = vadd.f32 %v8098_v12, %v2237_v42  ;;  %13224 = vst [vmem:[#allocation53_spill] sm:$0xff] %v8648_v47  ;;  %v3732_v42 = vmax.f32 %v3318_v22, 0.0 }
 0x7b9   :  { %v2624_v50 = vmax.f32 %v2238_v17, 0.0  ;;  %v8660_v61 = vadd.f32 %v3732_v42, %v13228_v55 }
 0x7bb   :  { %v2799_v39 = vadd.f32 %v2624_v50, %v8305_v49  ;;  %2279 = vmatmul.bf16.gmra.mxu2 %v2030_v33  ;;  %v1334_v49 = vadd.f32 %v8605_v14, %v13227_v21  ;;  %13229 = vst [vmem:[#allocation59_spill] sm:$0xff] %v8660_v61  ;;  %v8668_v21 = vld [vmem:[%s12409_s4 + $0x4] ss:$0 sm:$0xff] }
 0x7bc   :  { %v3319_v20 = vpop.f32.mrf.mxu3 }
 0x7bd   :  { %v3320_v35 = vadd.f32 %v8334_v46, %v3319_v20  ;;  %v8652_v32 = vadd.f32 %v2799_v39, %v13225_v16  ;;  %v1691_v20 = vmax.f32 %v1334_v49, 0.0  ;;  %v8675_v55 = vpop.f32.mrf.mxu1 }
 0x7be   :  { %v2240_v17 = vpop.f32.mrf.mxu2  ;;  %13234 = vst [vmem:[#allocation63_spill] sm:$0xff] %v8675_v55 }
 0x7bf   :  { %13226 = vst [vmem:[#allocation60_spill] sm:$0xff] %v8652_v32  ;;  %v3733_v50 = vmax.f32 %v3320_v35, 0.0  ;;  %v3148_v33 = vpack.c.bf16 %v8652_v32, %v8648_v47  ;;  %v2241_v58 = vadd.f32 %v8098_v12, %v2240_v17  ;;  %v8673_v32 = vadd.f32 %v1692_v45, %v13232_v53 }
 0x7c1   :  { %v8663_v22 = vadd.f32 %v3733_v50, %v13230_v11  ;;  %3361 = vmatmul.bf16.gmra.mxu3 %v3148_v33  ;;  %v2625_v16 = vmax.f32 %v2241_v58, 0.0  ;;  %13233 = vst [vmem:[#allocation64_spill] sm:$0xff] %v8673_v32  ;;  %v13235_v50 = vld [vmem:[#allocation46_spill] sm:$0xff] }
 0x7c2   :  { %v4229_v39 = vpop.f32.mrf.mxu0  ;;  %v8678_v33 = vadd.f32 %v1691_v20, %v13235_v50  ;;  %v13237_v20 = vld [vmem:[#allocation92_spill] sm:$0xff]  ;;  %v13238_v50 = vld [vmem:[#allocation15_spill] sm:$0xff] }
 0x7c3   :  { %13231 = vst [vmem:[#allocation23_spill] sm:$0xff] %v8663_v22  ;;  %v4091_v35 = vpack.c.bf16 %v8663_v22, %v8660_v61  ;;  %v4230_v49 = vadd.f32 %v8668_v21, %v4229_v39  ;;  %v2800_v47 = vadd.f32 %v2625_v16, %v8337_v19  ;;  %v13236_v61 = vld [vmem:[#allocation4_spill] sm:$0xff]  ;;  %v1341_v39 = vadd.f32 %v8605_v14, %v13237_v20 }
 0x7c4   :  { %v3322_v17 = vpop.f32.mrf.mxu3  ;;  %v2031_v45 = vpack.c.bf16 %v8673_v32, %v8678_v33 }
 0x7c5   :  { %4268 = vmatmul.bf16.gmra.mxu0 %v4091_v35  ;;  %v3323_v22 = vadd.f32 %v8334_v46, %v3322_v17  ;;  %v4668_v35 = vmax.f32 %v4230_v49, 0.0  ;;  %v13241_v49 = vld [vmem:[#allocation89_spill] sm:$0xff] }
 0x7c6   :  { %v2242_v42 = vpop.f32.mrf.mxu2 }
 0x7c7   :  { %v2243_v11 = vadd.f32 %v8098_v12, %v2242_v42  ;;  %v8691_v42 = vadd.f32 %v2800_v47, %v13238_v50  ;;  %v3734_v16 = vmax.f32 %v3323_v22, 0.0  ;;  %v8703_v50 = vpop.f32.mrf.mxu1  ;;  %v1694_v22 = vmax.f32 %v1341_v39, 0.0 }
 0x7c9   :  { %v2626_v58 = vmax.f32 %v2243_v11, 0.0 }
 0x7ca   :  { %v4231_v53 = vpop.f32.mrf.mxu0 }
 0x7cb   :  { %v2801_v55 = vadd.f32 %v2626_v58, %v13236_v61  ;;  %v4232_v31 = vadd.f32 %v8668_v21, %v4231_v53  ;;  %2284 = vmatmul.bf16.gmra.mxu2 %v2031_v45  ;;  %v1339_v61 = vadd.f32 %v8605_v14, %v13241_v49  ;;  %v4843_v53 = vadd.f32 %v4668_v35, %v8359_v23  ;;  %v13242_v49 = vld [vmem:[#allocation51_spill] sm:$0xff] }
 0x7cc   :  { %v3324_v19 = vpop.f32.mrf.mxu3 }
 0x7cd   :  { %v4669_v17 = vmax.f32 %v4232_v31, 0.0  ;;  %v3325_v11 = vadd.f32 %v8334_v46, %v3324_v19  ;;  %v8695_v32 = vadd.f32 %v2801_v55, %v13239_v27  ;;  %v8707_v27 = vadd.f32 %v3734_v16, %v8348_v30  ;;  %v13243_v30 = vld [vmem:[#allocation50_spill] sm:$0xff] }
 0x7ce   :  { %v2245_v58 = vpop.f32.mrf.mxu2  ;;  %v1693_v35 = vmax.f32 %v1339_v61, 0.0  ;;  %v8724_v16 = vld [vmem:[%s12409_s4 + $0x2] ss:$0 sm:$0xff] }
 0x7cf   :  { %13240 = vst [vmem:[#allocation70_spill] sm:$0xff] %v8695_v32  ;;  %v4844_v45 = vadd.f32 %v4669_v17, %v8362_v57  ;;  %v3735_v20 = vmax.f32 %v3325_v11, 0.0  ;;  %v3149_v47 = vpack.c.bf16 %v8695_v32, %v8691_v42  ;;  %v2246_v31 = vadd.f32 %v8098_v12, %v2245_v58 }
 0x7d0   :  { %v8715_v32 = vadd.f32 %v1694_v22, %v13242_v49  ;;  %v8718_v39 = vadd.f32 %v1693_v35, %v13243_v30  ;;  %v13245_v35 = vld [vmem:[#allocation96_spill] sm:$0xff]  ;;  %v13247_v30 = vld [vmem:[#allocation18_spill] sm:$0xff] }
 0x7d1   :  { %v5034_v55 = vpack.c.bf16 %v4844_v45, %v4843_v53  ;;  %v8710_v19 = vadd.f32 %v3735_v20, %v8352_v25  ;;  %3366 = vmatmul.bf16.gmra.mxu3 %v3149_v47  ;;  %v2627_v17 = vmax.f32 %v2246_v31, 0.0  ;;  %v8731_v47 = vpop.f32.mrf.mxu1 }
 0x7d2   :  { %v4234_v23 = vpop.f32.mrf.mxu0  ;;  %v2032_v20 = vpack.c.bf16 %v8715_v32, %v8718_v39  ;;  %13244 = vst [vmem:[#allocation67_spill] sm:$0xff] %v8731_v47 }
 0x7d3   :  { %5179 = vmatmul.bf16.vlgmr.msrb.gmra.mxu1 %v5034_v55  ;;  %v4092_v57 = vpack.c.bf16 %v8710_v19, %v8707_v27  ;;  %v4235_v25 = vadd.f32 %v8668_v21, %v4234_v23  ;;  %v2802_v58 = vadd.f32 %v2627_v17, %v8371_v5 }
 0x7d4   :  { %v3327_v11 = vpop.f32.mrf.mxu3 }
 0x7d5   :  { %4273 = vmatmul.bf16.gmra.mxu0 %v4092_v57  ;;  %v3328_v53 = vadd.f32 %v8334_v46, %v3327_v11  ;;  %v4670_v22 = vmax.f32 %v4235_v25, 0.0  ;;  %v1346_v57 = vadd.f32 %v8605_v14, %v13245_v35  ;;  %v13248_v25 = vld [vmem:[#allocation95_spill] sm:$0xff] }
 0x7d6   :  { %v2247_v12 = vpop.f32.mrf.mxu2 }
 0x7d7   :  { %v2248_v61 = vadd.f32 %v8724_v16, %v2247_v12  ;;  %v13246_v12 = vld [vmem:[#allocation17_spill] sm:$0xff]  ;;  %v3736_v11 = vmax.f32 %v3328_v53, 0.0 }
 0x7d8   :  { %v8738_v5 = vadd.f32 %v2802_v58, %v13246_v12 }
 0x7d9   :  { %v2628_v45 = vmax.f32 %v2248_v61, 0.0  ;;  %v8752_v12 = vadd.f32 %v3736_v11, %v8382_v60  ;;  %v13251_v11 = vld [vmem:[#allocation54_spill] sm:$0xff] }
 0x7da   :  { %v4236_v31 = vpop.f32.mrf.mxu0 }
 0x7db   :  { %v2803_v55 = vadd.f32 %v2628_v45, %v8368_v37  ;;  %v4237_v23 = vadd.f32 %v8668_v21, %v4236_v31  ;;  %2289 = vmatmul.bf16.gmra.mxu2 %v2032_v20  ;;  %v1344_v37 = vadd.f32 %v8605_v14, %v13248_v25  ;;  %v4845_v20 = vadd.f32 %v4670_v22, %v8393_v26 }
 0x7dc   :  { %v3329_v17 = vpop.f32.mrf.mxu3 }
 0x7dd   :  { %v4671_v61 = vmax.f32 %v4237_v23, 0.0  ;;  %v3330_v49 = vadd.f32 %v8334_v46, %v3329_v17  ;;  %v8742_v47 = vadd.f32 %v2803_v55, %v13247_v30  ;;  %v1696_v23 = vmax.f32 %v1346_v57, 0.0 }
 0x7de   :  { %v2250_v45 = vpop.f32.mrf.mxu2  ;;  %v1695_v25 = vmax.f32 %v1344_v37, 0.0 }
 0x7df   :  { %v4846_v31 = vadd.f32 %v4671_v61, %v8396_v7  ;;  %v3737_v35 = vmax.f32 %v3330_v49, 0.0  ;;  %v3150_v58 = vpack.c.bf16 %v8742_v47, %v8738_v5  ;;  %v2251_v53 = vadd.f32 %v8724_v16, %v2250_v45  ;;  %v8759_v7 = vpop.f32.mrf.mxu1  ;;  %v13249_v61 = vld [vmem:[#allocation55_spill] sm:$0xff] }
 0x7e0   :  { %v8762_v57 = vadd.f32 %v1696_v23, %v13249_v61  ;;  %v13253_v61 = vld [vmem:[#allocation19_spill] sm:$0xff] }
 0x7e1   :  { %v8755_v30 = vadd.f32 %v3737_v35, %v8386_v43  ;;  %3371 = vmatmul.bf16.gmra.mxu3 %v3150_v58  ;;  %v5035_v55 = vpack.c.bf16 %v4846_v31, %v4845_v20  ;;  %v2629_v49 = vmax.f32 %v2251_v53, 0.0  ;;  %v8765_v43 = vadd.f32 %v1695_v25, %v13251_v11  ;;  %v13252_v25 = vld [vmem:[#allocation100_spill] sm:$0xff] }
 0x7e2   :  { %v4239_v17 = vpop.f32.mrf.mxu0  ;;  %13250 = vst [vmem:[#allocation74_spill] sm:$0xff] %v8762_v57  ;;  %v13254_v11 = vld [vmem:[#allocation20_spill] sm:$0xff] }
 0x7e3   :  { %5184 = vmatmul.bf16.gmra.mxu1 %v5035_v55  ;;  %v4093_v26 = vpack.c.bf16 %v8755_v30, %v8752_v12  ;;  %v4240_v45 = vadd.f32 %v8668_v21, %v4239_v17  ;;  %v2804_v20 = vadd.f32 %v2629_v49, %v8405_v62  ;;  %v2033_v58 = vpack.c.bf16 %v8762_v57, %v8765_v43 }
 0x7e4   :  { %v3332_v22 = vpop.f32.mrf.mxu3  ;;  %v1351_v17 = vadd.f32 %v8605_v14, %v13252_v25 }
 0x7e5   :  { %4278 = vmatmul.bf16.gmra.mxu0 %v4093_v26  ;;  %v3333_v31 = vadd.f32 %v8334_v46, %v3332_v22  ;;  %v4672_v23 = vmax.f32 %v4240_v45, 0.0  ;;  %v13255_v45 = vld [vmem:[#allocation99_spill] sm:$0xff] }
 0x7e6   :  { %v2252_v60 = vpop.f32.mrf.mxu2 }
 0x7e7   :  { %v2253_v37 = vadd.f32 %v8724_v16, %v2252_v60  ;;  %v8778_v60 = vadd.f32 %v2804_v20, %v13253_v61  ;;  %v3738_v49 = vmax.f32 %v3333_v31, 0.0 }
 0x7e9   :  { %v2630_v35 = vmax.f32 %v2253_v37, 0.0 }
 0x7ea   :  { %v4241_v53 = vpop.f32.mrf.mxu0 }
 0x7eb   :  { %v2805_v55 = vadd.f32 %v2630_v35, %v8402_v4  ;;  %v4242_v26 = vadd.f32 %v8668_v21, %v4241_v53  ;;  %2294 = vmatmul.bf16.gmra.mxu2 %v2033_v58  ;;  %v1349_v4 = vadd.f32 %v8605_v14, %v13255_v45  ;;  %v8786_v35 = vpop.f32.mrf.mxu1  ;;  %v4847_v53 = vadd.f32 %v4672_v23, %v8430_v2 }
 0x7ec   :  { %v3334_v62 = vpop.f32.mrf.mxu3  ;;  %13256 = vst [vmem:[#allocation8_spill] sm:$0xff] %v8786_v35 }
 0x7ed   :  { %v4673_v22 = vmax.f32 %v4242_v26, 0.0  ;;  %v3335_v37 = vadd.f32 %v8334_v46, %v3334_v62  ;;  %v8782_v57 = vadd.f32 %v2805_v55, %v13254_v11  ;;  %v1698_v26 = vmax.f32 %v1351_v17, 0.0 }
 0x7ee   :  { %v2255_v58 = vpop.f32.mrf.mxu2  ;;  %v8794_v11 = vadd.f32 %v3738_v49, %v8419_v10  ;;  %v1697_v35 = vmax.f32 %v1349_v4, 0.0  ;;  %v13258_v10 = vld [vmem:[#allocation57_spill] sm:$0xff] }
 0x7ef   :  { %v4848_v25 = vadd.f32 %v4673_v22, %v8433_v36  ;;  %v3739_v61 = vmax.f32 %v3335_v37, 0.0  ;;  %v3151_v20 = vpack.c.bf16 %v8782_v57, %v8778_v60  ;;  %v2256_v31 = vadd.f32 %v8724_v16, %v2255_v58  ;;  %v13257_v22 = vld [vmem:[#allocation58_spill] sm:$0xff] }
 0x7f0   :  { %v8802_v37 = vadd.f32 %v1698_v26, %v13257_v22  ;;  %v8805_v49 = vadd.f32 %v1697_v35, %v13258_v10  ;;  %v13260_v22 = vld [vmem:[#allocation24_spill] sm:$0xff] }
 0x7f1   :  { %v8797_v55 = vadd.f32 %v3739_v61, %v8423_v9  ;;  %3376 = vmatmul.bf16.gmra.mxu3 %v3151_v20  ;;  %v5036_v62 = vpack.c.bf16 %v4848_v25, %v4847_v53  ;;  %v2631_v36 = vmax.f32 %v2256_v31, 0.0 }
 0x7f2   :  { %v4244_v45 = vpop.f32.mrf.mxu0  ;;  %v2034_v20 = vpack.c.bf16 %v8802_v37, %v8805_v49 }
 0x7f3   :  { %5189 = vmatmul.bf16.gmra.mxu1 %v5036_v62  ;;  %v4094_v2 = vpack.c.bf16 %v8797_v55, %v8794_v11  ;;  %v4245_v9 = vadd.f32 %v8668_v21, %v4244_v45  ;;  %v8809_v53 = vpop.f32.mrf.mxu1  ;;  %v2806_v4 = vadd.f32 %v2631_v36, %v8444_v54  ;;  %v13259_v45 = vld [vmem:[#allocation106_spill] sm:$0xff] }
 0x7f4   :  { %v3337_v23 = vpop.f32.mrf.mxu3 }
 0x7f5   :  { %4283 = vmatmul.bf16.gmra.mxu0 %v4094_v2  ;;  %v3338_v25 = vadd.f32 %v8334_v46, %v3337_v23  ;;  %v4674_v26 = vmax.f32 %v4245_v9, 0.0  ;;  %v1356_v2 = vadd.f32 %v8605_v14, %v13259_v45  ;;  %v13262_v9 = vld [vmem:[#allocation103_spill] sm:$0xff] }
 0x7f6   :  { %v2257_v17 = vpop.f32.mrf.mxu2 }
 0x7f7   :  { %v2258_v58 = vadd.f32 %v8724_v16, %v2257_v17  ;;  %v8820_v17 = vadd.f32 %v2806_v4, %v13177_v51  ;;  %v3740_v36 = vmax.f32 %v3338_v25, 0.0  ;;  %v1700_v25 = vmax.f32 %v1356_v2, 0.0 }
 0x7f9   :  { %v2632_v61 = vmax.f32 %v2258_v58, 0.0 }
 0x7fa   :  { %v4246_v31 = vpop.f32.mrf.mxu0 }
 0x7fb   :  { %v2807_v62 = vadd.f32 %v2632_v61, %v8441_v6  ;;  %v4247_v35 = vadd.f32 %v8668_v21, %v4246_v31  ;;  %2299 = vmatmul.bf16.gmra.mxu2 %v2034_v20  ;;  %v1354_v6 = vadd.f32 %v8605_v14, %v13262_v9  ;;  %v4849_v20 = vadd.f32 %v4674_v26, %v8468_v24  ;;  %v8839_v9 = vpop.f32.mrf.mxu1 }
 0x7fc   :  { %v3339_v54 = vpop.f32.mrf.mxu3 }
 0x7fd   :  { %v4675_v23 = vmax.f32 %v4247_v35, 0.0  ;;  %v3340_v58 = vadd.f32 %v8334_v46, %v3339_v54  ;;  %v8824_v10 = vadd.f32 %v2807_v62, %v13260_v22  ;;  %v8834_v35 = vadd.f32 %v3740_v36, %v8457_v13  ;;  %v13263_v22 = vld [vmem:[#allocation25_spill] sm:$0xff] }
 0x7fe   :  { %v2260_v61 = vpop.f32.mrf.mxu2  ;;  %v1699_v26 = vmax.f32 %v1354_v6, 0.0  ;;  %v13266_v36 = vld [vmem:[#allocation61_spill] sm:$0xff] }
 0x7ff   :  { %13261 = vst [vmem:[#allocation71_spill] sm:$0xff] %v8824_v10  ;;  %v4850_v31 = vadd.f32 %v4675_v23, %v8471_v59  ;;  %v3741_v45 = vmax.f32 %v3340_v58, 0.0  ;;  %v3152_v51 = vpack.c.bf16 %v8824_v10, %v8820_v17  ;;  %v2261_v4 = vadd.f32 %v8724_v16, %v2260_v61  ;;  %v13264_v61 = vld [vmem:[#allocation62_spill] sm:$0xff] }
 0x800   :  { %v8844_v2 = vadd.f32 %v1700_v25, %v13264_v61 }
 0x801   :  { %v8837_v62 = vadd.f32 %v3741_v45, %v13263_v22  ;;  %3381 = vmatmul.bf16.gmra.mxu3 %v3152_v51  ;;  %v5037_v54 = vpack.c.bf16 %v4850_v31, %v4849_v20  ;;  %v2633_v23 = vmax.f32 %v2261_v4, 0.0  ;;  %v8847_v45 = vadd.f32 %v1699_v26, %v13266_v36  ;;  %v13268_v26 = vld [vmem:[#allocation26_spill] sm:$0xff] }
 0x802   :  { %v4249_v24 = vpop.f32.mrf.mxu0  ;;  %13265 = vst [vmem:[#allocation2_spill] sm:$0xff] %v8844_v2 }
 0x803   :  { %5194 = vmatmul.bf16.gmra.mxu1 %v5037_v54  ;;  %v4095_v59 = vpack.c.bf16 %v8837_v62, %v8834_v35  ;;  %13267 = vst [vmem:[#allocation78_spill] sm:$0xff] %v8847_v45  ;;  %v4250_v20 = vadd.f32 %v8668_v21, %v4249_v24  ;;  %v2808_v6 = vadd.f32 %v2633_v23, %v8482_v18  ;;  %v8859_v36 = vpop.f32.mrf.mxu1 }
 0x804   :  { %v3342_v58 = vpop.f32.mrf.mxu3  ;;  %v2035_v4 = vpack.c.bf16 %v8844_v2, %v8847_v45  ;;  %v1361_v24 = vadd.f32 %v8605_v14, %v13268_v26  ;;  %v13270_v45 = vld [vmem:[#allocation28_spill] sm:$0xff] }
 0x805   :  { %4288 = vmatmul.bf16.gmra.mxu0 %v4095_v59  ;;  %v3343_v51 = vadd.f32 %v8334_v46, %v3342_v58  ;;  %v4676_v25 = vmax.f32 %v4250_v20, 0.0 }
 0x806   :  { %v2262_v13 = vpop.f32.mrf.mxu2 }
 0x807   :  { %v2263_v31 = vadd.f32 %v8724_v16, %v2262_v13  ;;  %v13269_v13 = vld [vmem:[#allocation27_spill] sm:$0xff]  ;;  %v3742_v58 = vmax.f32 %v3343_v51, 0.0 }
 0x808   :  { %v8862_v18 = vadd.f32 %v2808_v6, %v13269_v13 }
 0x809   :  { %v2634_v22 = vmax.f32 %v2263_v31, 0.0  ;;  %v8876_v13 = vadd.f32 %v3742_v58, %v8493_v29  ;;  %v13274_v58 = vld [vmem:[#allocation65_spill] sm:$0xff] }
 0x80a   :  { %v4251_v54 = vpop.f32.mrf.mxu0 }
 0x80b   :  { %v2809_v59 = vadd.f32 %v2634_v22, %v8477_v52  ;;  %v4252_v61 = vadd.f32 %v8668_v21, %v4251_v54  ;;  %2304 = vmatmul.bf16.gmra.mxu2 %v2035_v4  ;;  %v13271_v52 = vld [vmem:[#allocation3_spill] sm:$0xff]  ;;  %v4851_v54 = vadd.f32 %v4676_v25, %v8506_v15  ;;  %v13272_v25 = vld [vmem:[#allocation66_spill] sm:$0xff] }
 0x80c   :  { %v3344_v23 = vpop.f32.mrf.mxu3  ;;  %v1359_v22 = vadd.f32 %v8605_v14, %v13271_v52 }
 0x80d   :  { %v4677_v31 = vmax.f32 %v4252_v61, 0.0  ;;  %v3345_v2 = vadd.f32 %v8334_v46, %v3344_v23  ;;  %v8866_v20 = vadd.f32 %v2809_v59, %v13270_v45  ;;  %v1702_v61 = vmax.f32 %v1361_v24, 0.0  ;;  %v8886_v24 = vpop.f32.mrf.mxu1 }
 0x80e   :  { %v2265_v4 = vpop.f32.mrf.mxu2  ;;  %v1701_v52 = vmax.f32 %v1359_v22, 0.0 }
 0x80f   :  { %v4852_v26 = vadd.f32 %v4677_v31, %v8509_v8  ;;  %v3743_v10 = vmax.f32 %v3345_v2, 0.0  ;;  %v3153_v6 = vpack.c.bf16 %v8866_v20, %v8862_v18  ;;  %v2266_v51 = vadd.f32 %v8724_v16, %v2265_v4 }
 0x810   :  { %v8884_v31 = vadd.f32 %v1702_v61, %v13272_v25 }
 0x811   :  { %v8879_v45 = vadd.f32 %v3743_v10, %v8497_v3  ;;  %3386 = vmatmul.bf16.gmra.mxu3 %v3153_v6  ;;  %v5038_v59 = vpack.c.bf16 %v4852_v26, %v4851_v54  ;;  %v2635_v8 = vmax.f32 %v2266_v51, 0.0  ;;  %v8889_v3 = vadd.f32 %v1701_v52, %v13274_v58  ;;  %v13277_v52 = vld [vmem:[#allocation5_spill] sm:$0xff]  ;;  %v13278_v58 = vld [vmem:[#allocation31_spill] sm:$0xff] }
 0x812   :  { %v4254_v23 = vpop.f32.mrf.mxu0  ;;  %13273 = vst [vmem:[#allocation9_spill] sm:$0xff] %v8884_v31 }
 0x813   :  { %5199 = vmatmul.bf16.gmra.mxu1 %v5038_v59  ;;  %v4096_v15 = vpack.c.bf16 %v8879_v45, %v8876_v13  ;;  %13275 = vst [vmem:[#allocation10_spill] sm:$0xff] %v8889_v3  ;;  %v4255_v10 = vadd.f32 %v8668_v21, %v4254_v23  ;;  %v2810_v4 = vadd.f32 %v2635_v8, %v8518_v44  ;;  %v13276_v59 = vld [vmem:[#allocation30_spill] sm:$0xff] }
 0x814   :  { %v3347_v2 = vpop.f32.mrf.mxu3  ;;  %v2036_v6 = vpack.c.bf16 %v8884_v31, %v8889_v3  ;;  %v1366_v23 = vadd.f32 %v8605_v14, %v13277_v52 }
 0x815   :  { %4293 = vmatmul.bf16.gmra.mxu0 %v4096_v15  ;;  %v3348_v54 = vadd.f32 %v8334_v46, %v3347_v2  ;;  %v4678_v61 = vmax.f32 %v4255_v10, 0.0  ;;  %v8907_v2 = vld [vmem:[%s12409_s4 + $0x3] ss:$0 sm:$0xff]  ;;  %v8919_v52 = vpop.f32.mrf.mxu1 }
 0x816   :  { %v2267_v29 = vpop.f32.mrf.mxu2 }
 0x817   :  { %v2268_v22 = vadd.f32 %v8724_v16, %v2267_v29  ;;  %v8902_v29 = vadd.f32 %v2810_v4, %v13278_v58  ;;  %v3744_v8 = vmax.f32 %v3348_v54, 0.0  ;;  %v4853_v58 = vadd.f32 %v4678_v61, %v8542_v56 }
 0x819   :  { %v2636_v26 = vmax.f32 %v2268_v22, 0.0  ;;  %13279 = vst [vmem:[#allocation77_spill] sm:$0xff] %v8902_v29  ;;  %v13280_v22 = vld [vmem:[#allocation32_spill] sm:$0xff] }
 0x81a   :  { %v4256_v51 = vpop.f32.mrf.mxu0 }
 0x81b   :  { %v2811_v15 = vadd.f32 %v2636_v26, %v13276_v59  ;;  %v4257_v25 = vadd.f32 %v8668_v21, %v4256_v51  ;;  %2309 = vmatmul.bf16.gmra.mxu2 %v2036_v6  ;;  %v13282_v6 = vld [vmem:[#allocation6_spill] sm:$0xff] }
 0x81c   :  { %v3349_v44 = vpop.f32.mrf.mxu3  ;;  %v1364_v51 = vadd.f32 %v8605_v14, %v13282_v6 }
 0x81d   :  { %v4679_v46 = vmax.f32 %v4257_v25, 0.0  ;;  %v3350_v10 = vadd.f32 %v8907_v2, %v3349_v44  ;;  %v8911_v26 = vadd.f32 %v2811_v15, %v13280_v22  ;;  %v1704_v44 = vmax.f32 %v1366_v23, 0.0  ;;  %v13283_v22 = vld [vmem:[#allocation7_spill] sm:$0xff] }
 0x81e   :  { %v2270_v59 = vpop.f32.mrf.mxu2  ;;  %v8923_v15 = vadd.f32 %v3744_v8, %v8531_v34  ;;  %v1703_v61 = vmax.f32 %v1364_v51, 0.0  ;;  %v13286_v34 = vld [vmem:[#allocation68_spill] sm:$0xff] }
 0x81f   :  { %13281 = vst [vmem:[#allocation82_spill] sm:$0xff] %v8911_v26  ;;  %v4854_v4 = vadd.f32 %v4679_v46, %v8545_v38  ;;  %v3745_v54 = vmax.f32 %v3350_v10, 0.0  ;;  %v3154_v25 = vpack.c.bf16 %v8911_v26, %v8902_v29  ;;  %v2271_v31 = vadd.f32 %v8724_v16, %v2270_v59  ;;  %v13284_v26 = vld [vmem:[#allocation69_spill] sm:$0xff] }
 0x820   :  { %v8931_v29 = vadd.f32 %v1704_v44, %v13284_v26  ;;  %v8934_v8 = vadd.f32 %v1703_v61, %v13286_v34  ;;  %v13290_v26 = vld [vmem:[#allocation35_spill] sm:$0xff] }
 0x821   :  { %v8926_v3 = vadd.f32 %v3745_v54, %v13283_v22  ;;  %3391 = vmatmul.bf16.gmra.mxu3 %v3154_v25  ;;  %v5039_v6 = vpack.c.bf16 %v4854_v4, %v4853_v58  ;;  %v2637_v46 = vmax.f32 %v2271_v31, 0.0  ;;  %v8942_v25 = vpop.f32.mrf.mxu1 }
 0x822   :  { %v4259_v56 = vpop.f32.mrf.mxu0  ;;  %13285 = vst [vmem:[#allocation11_spill] sm:$0xff] %v8931_v29  ;;  %v2037_v31 = vpack.c.bf16 %v8931_v29, %v8934_v8  ;;  %v13292_v29 = vld [vmem:[#allocation36_spill] sm:$0xff] }
 0x823   :  { %5204 = vmatmul.bf16.gmra.mxu1 %v5039_v6  ;;  %v4097_v38 = vpack.c.bf16 %v8926_v3, %v8923_v15  ;;  %13287 = vst [vmem:[#allocation12_spill] sm:$0xff] %v8934_v8  ;;  %v4260_v59 = vadd.f32 %v8668_v21, %v4259_v56  ;;  %v2812_v51 = vadd.f32 %v2637_v46, %v8556_v0  ;;  %v13288_v6 = vld [vmem:[#allocation33_spill] sm:$0xff]  ;;  %v13289_v56 = vld [vmem:[#allocation34_spill] sm:$0xff] }
 0x824   :  { %v3352_v10 = vpop.f32.mrf.mxu3 }
 0x825   :  { %4298 = vmatmul.bf16.gmra.mxu0 %v4097_v38  ;;  %v3353_v4 = vadd.f32 %v8907_v2, %v3352_v10  ;;  %v4680_v22 = vmax.f32 %v4260_v59, 0.0  ;;  %v8949_v0 = vadd.f32 %v2812_v51, %v13290_v26  ;;  %v13294_v59 = vld [vmem:[#allocation29_spill] sm:$0xff] }
 0x826   :  { %v2272_v23 = vpop.f32.mrf.mxu2 }
 0x827   :  { %v2273_v58 = vadd.f32 %v8724_v16, %v2272_v23  ;;  %v1371_v23 = vadd.f32 %v8605_v14, %v13289_v56  ;;  %13291 = vst [vmem:[#allocation81_spill] sm:$0xff] %v8949_v0  ;;  %v3746_v10 = vmax.f32 %v3353_v4, 0.0 }
 0x829   :  { %v2638_v54 = vmax.f32 %v2273_v58, 0.0  ;;  %v1706_v4 = vmax.f32 %v1371_v23, 0.0 }
 0x82a   :  { %v4261_v44 = vpop.f32.mrf.mxu0 }
 0x82b   :  { %v2813_v38 = vadd.f32 %v2638_v54, %v13288_v6  ;;  %v4262_v61 = vadd.f32 %v8668_v21, %v4261_v44  ;;  %2314 = vmatmul.bf16.gmra.mxu2 %v2037_v31  ;;  %v1369_v54 = vadd.f32 %v8605_v14, %v13294_v59  ;;  %v4855_v31 = vadd.f32 %v4680_v22, %v8580_v63 }
 0x82c   :  { %v3354_v46 = vpop.f32.mrf.mxu3 }
 0x82d   :  { %v4681_v58 = vmax.f32 %v4262_v61, 0.0  ;;  %v3355_v34 = vadd.f32 %v8907_v2, %v3354_v46  ;;  %v8953_v8 = vadd.f32 %v2813_v38, %v13292_v29  ;;  %v8963_v61 = vadd.f32 %v3746_v10, %v8567_v40  ;;  %v13299_v10 = vld [vmem:[#allocation72_spill] sm:$0xff] }
 0x82e   :  { %v2275_v6 = vpop.f32.mrf.mxu2  ;;  %v1705_v59 = vmax.f32 %v1369_v54, 0.0 }
 0x82f   :  { %13293 = vst [vmem:[#allocation88_spill] sm:$0xff] %v8953_v8  ;;  %v4856_v44 = vadd.f32 %v4681_v58, %v8583_v41  ;;  %v3747_v56 = vmax.f32 %v3355_v34, 0.0  ;;  %v3155_v26 = vpack.c.bf16 %v8953_v8, %v8949_v0  ;;  %v2276_v51 = vadd.f32 %v8724_v16, %v2275_v6  ;;  %v8970_v41 = vpop.f32.mrf.mxu1  ;;  %v13297_v58 = vld [vmem:[#allocation73_spill] sm:$0xff]  ;;  %v13306_v0 = vld [vmem:[#allocation40_spill] sm:$0xff] }
 0x830   :  { %13295 = vst [vmem:[#allocation14_spill] sm:$0xff] %v8963_v61  ;;  %v8973_v23 = vadd.f32 %v1706_v4, %v13297_v58  ;;  %v13302_v58 = vld [vmem:[#allocation37_spill] sm:$0xff] }
 0x831   :  { %v8966_v29 = vadd.f32 %v3747_v56, %v8571_v48  ;;  %3396 = vmatmul.bf16.gmra.mxu3 %v3155_v26  ;;  %v5040_v38 = vpack.c.bf16 %v4856_v44, %v4855_v31  ;;  %v2639_v34 = vmax.f32 %v2276_v51, 0.0  ;;  %v8976_v48 = vadd.f32 %v1705_v59, %v13299_v10  ;;  %v13301_v31 = vld [vmem:[#allocation42_spill] sm:$0xff]  ;;  %v13303_v59 = vld [vmem:[#allocation41_spill] sm:$0xff]  ;;  %v13304_v10 = vld [vmem:[#allocation39_spill] sm:$0xff] }
 0x832   :  { %v4264_v46 = vpop.f32.mrf.mxu0  ;;  %13298 = vst [vmem:[#allocation22_spill] sm:$0xff] %v8973_v23 }
 0x833   :  { %13296 = vst [vmem:[#allocation85_spill] sm:$0xff] %v8966_v29  ;;  %5209 = vmatmul.bf16.gmra.mxu1 %v5040_v38  ;;  %v4098_v63 = vpack.c.bf16 %v8966_v29, %v8963_v61  ;;  %v4265_v6 = vadd.f32 %v8668_v21, %v4264_v46  ;;  %v2814_v44 = vadd.f32 %v2639_v34, %v13301_v31 }
 0x834   :  { %v3357_v22 = vpop.f32.mrf.mxu3  ;;  %13300 = vst [vmem:[#allocation21_spill] sm:$0xff] %v8976_v48  ;;  %v2038_v51 = vpack.c.bf16 %v8973_v23, %v8976_v48  ;;  %v1376_v46 = vadd.f32 %v8605_v14, %v13303_v59 }
 0x835   :  { %4303 = vmatmul.bf16.gmra.mxu0 %v4098_v63  ;;  %v3358_v56 = vadd.f32 %v8907_v2, %v3357_v22  ;;  %v4682_v4 = vmax.f32 %v4265_v6, 0.0  ;;  %v13308_v6 = vld [vmem:[#allocation38_spill] sm:$0xff] }
 0x836   :  { %v2277_v40 = vpop.f32.mrf.mxu2 }
 0x837   :  { %v2278_v54 = vadd.f32 %v8724_v16, %v2277_v40  ;;  %v8989_v40 = vadd.f32 %v2814_v44, %v13304_v10  ;;  %v3748_v31 = vmax.f32 %v3358_v56, 0.0  ;;  %v1708_v56 = vmax.f32 %v1376_v46, 0.0 }
 0x839   :  { %v2640_v26 = vmax.f32 %v2278_v54, 0.0  ;;  %13305 = vst [vmem:[#allocation4_spill] sm:$0xff] %v8989_v40 }
 0x83a   :  { %v4266_v38 = vpop.f32.mrf.mxu0 }
 0x83b   :  { %v2815_v63 = vadd.f32 %v2640_v26, %v13302_v58  ;;  %v4267_v8 = vadd.f32 %v8668_v21, %v4266_v38  ;;  %2319 = vmatmul.bf16.gmra.mxu2 %v2038_v51  ;;  %v1374_v58 = vadd.f32 %v8605_v14, %v13308_v6  ;;  %v8997_v26 = vpop.f32.mrf.mxu1  ;;  %v4857_v38 = vadd.f32 %v4682_v4, %v8621_v1 }
 0x83c   :  { %v3359_v34 = vpop.f32.mrf.mxu3  ;;  %13309 = vst [vmem:[#allocation15_spill] sm:$0xff] %v8997_v26 }
 0x83d   :  { %v4683_v22 = vmax.f32 %v4267_v8, 0.0  ;;  %v3360_v54 = vadd.f32 %v8907_v2, %v3359_v34  ;;  %v8993_v23 = vadd.f32 %v2815_v63, %v13306_v0  ;;  %v13310_v34 = vld [vmem:[#allocation13_spill] sm:$0xff]  ;;  %v13312_v63 = vld [vmem:[#allocation47_spill] sm:$0xff]  ;;  %v1707_v61 = vmax.f32 %v1374_v58, 0.0 }
 0x83e   :  { %v2280_v51 = vpop.f32.mrf.mxu2  ;;  %v9005_v0 = vadd.f32 %v3748_v31, %v13310_v34  ;;  %v13316_v31 = vld [vmem:[#allocation75_spill] sm:$0xff]  ;;  %v13318_v58 = vld [vmem:[#allocation49_spill] sm:$0xff] }
 0x83f   :  { %13307 = vst [vmem:[#allocation92_spill] sm:$0xff] %v8993_v23  ;;  %v4858_v59 = vadd.f32 %v4683_v22, %v8624_v28  ;;  %v3749_v10 = vmax.f32 %v3360_v54, 0.0  ;;  %v3156_v44 = vpack.c.bf16 %v8993_v23, %v8989_v40  ;;  %v2281_v8 = vadd.f32 %v8724_v16, %v2280_v51  ;;  %v13314_v22 = vld [vmem:[#allocation76_spill] sm:$0xff] }
 0x840   :  { %13311 = vst [vmem:[#allocation16_spill] sm:$0xff] %v9005_v0  ;;  %v9013_v54 = vadd.f32 %v1708_v56, %v13314_v22  ;;  %v9016_v51 = vadd.f32 %v1707_v61, %v13316_v31  ;;  %v13321_v31 = vld [vmem:[#allocation43_spill] sm:$0xff] }
 0x841   :  { %v9008_v48 = vadd.f32 %v3749_v10, %v13312_v63  ;;  %3401 = vmatmul.bf16.gmra.mxu3 %v3156_v44  ;;  %v5041_v6 = vpack.c.bf16 %v4858_v59, %v4857_v38  ;;  %v2641_v28 = vmax.f32 %v2281_v8, 0.0 }
 0x842   :  { %v4269_v29 = vpop.f32.mrf.mxu0  ;;  %13315 = vst [vmem:[#allocation96_spill] sm:$0xff] %v9013_v54  ;;  %v2039_v56 = vpack.c.bf16 %v9013_v54, %v9016_v51  ;;  %v13324_v54 = vld [vmem:[#allocation59_spill] sm:$0xff] }
 0x843   :  { %13313 = vst [vmem:[#allocation89_spill] sm:$0xff] %v9008_v48  ;;  %5214 = vmatmul.bf16.gmra.mxu1 %v5041_v6  ;;  %v4099_v1 = vpack.c.bf16 %v9008_v48, %v9005_v0  ;;  %v4270_v10 = vadd.f32 %v8668_v21, %v4269_v29  ;;  %v9020_v59 = vpop.f32.mrf.mxu1  ;;  %v2816_v44 = vadd.f32 %v2641_v28, %v13318_v58  ;;  %v13320_v29 = vld [vmem:[#allocation56_spill] sm:$0xff]  ;;  %v13326_v0 = vld [vmem:[#allocation53_spill] sm:$0xff] }
 0x844   :  { %v3362_v4 = vpop.f32.mrf.mxu3  ;;  %13317 = vst [vmem:[#allocation17_spill] sm:$0xff] %v9016_v51 }
 0x845   :  { %4308 = vmatmul.bf16.gmra.mxu0 %v4099_v1  ;;  %v3363_v34 = vadd.f32 %v8907_v2, %v3362_v4  ;;  %v4684_v6 = vmax.f32 %v4270_v10, 0.0  ;;  %v13319_v1 = vld [vmem:[#allocation52_spill] sm:$0xff]  ;;  %v9031_v23 = vadd.f32 %v2816_v44, %v13321_v31  ;;  %v9037_v10 = vld [vmem:[%s12409_s4 + $0x5] ss:$0 sm:$0xff]  ;;  %v13325_v44 = vld [vmem:[#allocation23_spill] sm:$0xff] }
 0x846   :  { %v2282_v46 = vpop.f32.mrf.mxu2 }
 0x847   :  { %v2283_v38 = vadd.f32 %v8724_v16, %v2282_v46  ;;  %v1381_v46 = vadd.f32 %v8605_v14, %v13320_v29  ;;  %v3750_v58 = vmax.f32 %v3363_v34, 0.0  ;;  %v4859_v31 = vadd.f32 %v4684_v6, %v13324_v54 }
 0x849   :  { %v2642_v8 = vmax.f32 %v2283_v38, 0.0 }
 0x84a   :  { %v4271_v63 = vpop.f32.mrf.mxu0 }
 0x84b   :  { %v2817_v22 = vadd.f32 %v2642_v8, %v13319_v1  ;;  %v4272_v61 = vadd.f32 %v8668_v21, %v4271_v63  ;;  %2324 = vmatmul.bf16.gmra.mxu2 %v2039_v56  ;;  %v13322_v8 = vld [vmem:[#allocation44_spill] sm:$0xff]  ;;  %v13323_v56 = vld [vmem:[#allocation45_spill] sm:$0xff] }
 0x84c   :  { %v3364_v28 = vpop.f32.mrf.mxu3  ;;  %v1379_v63 = vadd.f32 %v8605_v14, %v13323_v56 }
 0x84d   :  { %v4685_v4 = vmax.f32 %v4272_v61, 0.0  ;;  %v3365_v38 = vadd.f32 %v8907_v2, %v3364_v28  ;;  %v9040_v1 = vadd.f32 %v2817_v22, %v13322_v8  ;;  %v1710_v28 = vmax.f32 %v1381_v46, 0.0  ;;  %v13327_v8 = vld [vmem:[#allocation60_spill] sm:$0xff] }
 0x84e   :  { %v2285_v29 = vpop.f32.mrf.mxu2  ;;  %v9050_v22 = vadd.f32 %v3750_v58, %v13326_v0 }
 0x84f   :  { %v4860_v51 = vadd.f32 %v4685_v4, %v13325_v44  ;;  %v3751_v34 = vmax.f32 %v3365_v38, 0.0  ;;  %v3157_v61 = vpack.c.bf16 %v9040_v1, %v9031_v23  ;;  %v2286_v40 = vadd.f32 %v8724_v16, %v2285_v29  ;;  %v13328_v38 = vld [vmem:[#allocation80_spill] sm:$0xff]  ;;  %v13330_v44 = vld [vmem:[#allocation79_spill] sm:$0xff] }
 0x850   :  { %v5180_v48 = vpop.f32.mrf.mxu1  ;;  %v1709_v4 = vmax.f32 %v1379_v63, 0.0  ;;  %v9063_v29 = vadd.f32 %v1710_v28, %v13328_v38  ;;  %v13331_v38 = vld [vmem:[#allocation64_spill] sm:$0xff] }
 0x851   :  { %v9053_v26 = vadd.f32 %v3751_v34, %v13327_v8  ;;  %v5181_v56 = vadd.f32 %v9037_v10, %v5180_v48  ;;  %3406 = vmatmul.bf16.gmra.mxu3 %v3157_v61  ;;  %v5042_v54 = vpack.c.bf16 %v4860_v51, %v4859_v31  ;;  %v2643_v0 = vmax.f32 %v2286_v40, 0.0 }
 0x852   :  { %v4274_v6 = vpop.f32.mrf.mxu0  ;;  %13329 = vst [vmem:[#allocation18_spill] sm:$0xff] %v9063_v29  ;;  %v9066_v51 = vadd.f32 %v1709_v4, %v13330_v44  ;;  %v13334_v44 = vld [vmem:[#allocation63_spill] sm:$0xff] }
 0x853   :  { %5620 = vst.msk [vmem:[%s12413_s5] sm:$0xff] %vm5619_vm1, %v5181_v56  ;;  %5219 = vmatmul.bf16.gmra.mxu1 %v5042_v54  ;;  %v4100_v46 = vpack.c.bf16 %v9053_v26, %v9050_v22  ;;  %v4275_v63 = vadd.f32 %v8668_v21, %v4274_v6  ;;  %v2818_v34 = vadd.f32 %v2643_v0, %v8678_v33  ;;  %v13332_v0 = vld [vmem:[#allocation46_spill] sm:$0xff] }
 0x854   :  { %v3367_v58 = vpop.f32.mrf.mxu3  ;;  %v2040_v28 = vpack.c.bf16 %v9063_v29, %v9066_v51  ;;  %v1386_v6 = vadd.f32 %v8605_v14, %v8703_v50 }
 0x855   :  { %4313 = vmatmul.bf16.gmra.mxu0 %v4100_v46  ;;  %v3368_v8 = vadd.f32 %v8907_v2, %v3367_v58  ;;  %v4686_v46 = vmax.f32 %v4275_v63, 0.0  ;;  %v9084_v58 = vadd.f32 %v2818_v34, %v13332_v0 }
 0x856   :  { %v2287_v48 = vpop.f32.mrf.mxu2  ;;  %v1712_v0 = vmax.f32 %v1386_v6, 0.0 }
 0x857   :  { %v2288_v31 = vadd.f32 %v8724_v16, %v2287_v48 }
 0x858   :  { %v5182_v61 = vpop.f32.mrf.mxu1 }
 0x859   :  { %v2644_v56 = vmax.f32 %v2288_v31, 0.0  ;;  %v5183_v40 = vadd.f32 %v9037_v10, %v5182_v61  ;;  %v3752_v31 = vmax.f32 %v3368_v8, 0.0 }
 0x85a   :  { %v4276_v54 = vpop.f32.mrf.mxu0 }
 0x85b   :  { %v2819_v4 = vadd.f32 %v2644_v56, %v13331_v38  ;;  %5621 = vst.msk [vmem:[%s12413_s5 + $0x8] sm:$0xff] %vm5619_vm1, %v5183_v40  ;;  %v4277_v33 = vadd.f32 %v8668_v21, %v4276_v54  ;;  %2329 = vmatmul.bf16.gmra.mxu2 %v2040_v28  ;;  %v13333_v38 = vld [vmem:[#allocation48_spill] sm:$0xff]  ;;  %v1384_v40 = vadd.f32 %v8605_v14, %v13334_v44 }
 0x85c   :  { %v3369_v48 = vpop.f32.mrf.mxu3  ;;  %v4861_v28 = vadd.f32 %v4686_v46, %v8707_v27 }
 0x85d   :  { %v4687_v61 = vmax.f32 %v4277_v33, 0.0  ;;  %v3370_v63 = vadd.f32 %v8907_v2, %v3369_v48  ;;  %v9088_v56 = vadd.f32 %v2819_v4, %v13333_v38  ;;  %v9098_v48 = vadd.f32 %v3752_v31, %v8691_v42  ;;  %v13335_v4 = vld [vmem:[#allocation70_spill] sm:$0xff]  ;;  %v13336_v31 = vld [vmem:[#allocation84_spill] sm:$0xff] }
 0x85e   :  { %v2290_v29 = vpop.f32.mrf.mxu2 }
 0x85f   :  { %v4862_v54 = vadd.f32 %v4687_v61, %v8710_v19  ;;  %v3753_v50 = vmax.f32 %v3370_v63, 0.0  ;;  %v3158_v34 = vpack.c.bf16 %v9088_v56, %v9084_v58  ;;  %v2291_v8 = vadd.f32 %v8724_v16, %v2290_v29 }
 0x860   :  { %v5185_v33 = vpop.f32.mrf.mxu1  ;;  %v1711_v19 = vmax.f32 %v1384_v40, 0.0  ;;  %v9111_v61 = vadd.f32 %v1712_v0, %v13336_v31  ;;  %v13340_v31 = vld [vmem:[#allocation67_spill] sm:$0xff] }
 0x861   :  { %v9101_v38 = vadd.f32 %v3753_v50, %v13335_v4  ;;  %v5186_v44 = vadd.f32 %v9037_v10, %v5185_v33  ;;  %3411 = vmatmul.bf16.gmra.mxu3 %v3158_v34  ;;  %v5043_v27 = vpack.c.bf16 %v4862_v54, %v4861_v28  ;;  %v2645_v42 = vmax.f32 %v2291_v8, 0.0  ;;  %v13337_v50 = vld [vmem:[#allocation83_spill] sm:$0xff] }
 0x862   :  { %v4279_v46 = vpop.f32.mrf.mxu0  ;;  %v9114_v28 = vadd.f32 %v1711_v19, %v13337_v50 }
 0x863   :  { %5622 = vst.msk [vmem:[%s12413_s5 + $0x10] sm:$0xff] %vm5619_vm1, %v5186_v44  ;;  %5224 = vmatmul.bf16.gmra.mxu1 %v5043_v27  ;;  %v4101_v29 = vpack.c.bf16 %v9101_v38, %v9098_v48  ;;  %v4280_v40 = vadd.f32 %v8668_v21, %v4279_v46  ;;  %v2820_v34 = vadd.f32 %v2645_v42, %v8718_v39  ;;  %v13338_v42 = vld [vmem:[#allocation50_spill] sm:$0xff] }
 0x864   :  { %v3372_v6 = vpop.f32.mrf.mxu3  ;;  %v2041_v0 = vpack.c.bf16 %v9111_v61, %v9114_v28  ;;  %v1391_v46 = vadd.f32 %v8605_v14, %v8759_v7 }
 0x865   :  { %4318 = vmatmul.bf16.gmra.mxu0 %v4101_v29  ;;  %v3373_v4 = vadd.f32 %v8907_v2, %v3372_v6  ;;  %v4688_v29 = vmax.f32 %v4280_v40, 0.0  ;;  %v9132_v6 = vadd.f32 %v2820_v34, %v13338_v42 }
 0x866   :  { %v2292_v63 = vpop.f32.mrf.mxu2  ;;  %v1714_v42 = vmax.f32 %v1391_v46, 0.0  ;;  %v13341_v46 = vld [vmem:[#allocation87_spill] sm:$0xff] }
 0x867   :  { %v2293_v54 = vadd.f32 %v8724_v16, %v2292_v63 }
 0x868   :  { %v5187_v33 = vpop.f32.mrf.mxu1 }
 0x869   :  { %v2646_v44 = vmax.f32 %v2293_v54, 0.0  ;;  %v5188_v8 = vadd.f32 %v9037_v10, %v5187_v33  ;;  %v3754_v54 = vmax.f32 %v3373_v4, 0.0 }
 0x86a   :  { %v4281_v27 = vpop.f32.mrf.mxu0 }
 0x86b   :  { %v2821_v19 = vadd.f32 %v2646_v44, %v8715_v32  ;;  %5623 = vst.msk [vmem:[%s12413_s5 + $0x18] sm:$0xff] %vm5619_vm1, %v5188_v8  ;;  %v4282_v39 = vadd.f32 %v8668_v21, %v4281_v27  ;;  %2334 = vmatmul.bf16.gmra.mxu2 %v2041_v0  ;;  %v13339_v32 = vld [vmem:[#allocation51_spill] sm:$0xff]  ;;  %v1389_v8 = vadd.f32 %v8605_v14, %v13340_v31 }
 0x86c   :  { %v3374_v63 = vpop.f32.mrf.mxu3  ;;  %v4863_v0 = vadd.f32 %v4688_v29, %v8752_v12 }
 0x86d   :  { %v4689_v33 = vmax.f32 %v4282_v39, 0.0  ;;  %v3375_v40 = vadd.f32 %v8907_v2, %v3374_v63  ;;  %v9136_v44 = vadd.f32 %v2821_v19, %v13339_v32  ;;  %v9146_v63 = vadd.f32 %v3754_v54, %v8738_v5 }
 0x86e   :  { %v2295_v50 = vpop.f32.mrf.mxu2 }
 0x86f   :  { %v4864_v27 = vadd.f32 %v4689_v33, %v8755_v30  ;;  %v3755_v7 = vmax.f32 %v3375_v40, 0.0  ;;  %v3159_v34 = vpack.c.bf16 %v9136_v44, %v9132_v6  ;;  %v2296_v4 = vadd.f32 %v8724_v16, %v2295_v50  ;;  %v13342_v33 = vld [vmem:[#allocation86_spill] sm:$0xff] }
 0x870   :  { %v5190_v39 = vpop.f32.mrf.mxu1  ;;  %v1713_v30 = vmax.f32 %v1389_v8, 0.0 }
 0x871   :  { %v9149_v19 = vadd.f32 %v3755_v7, %v8742_v47  ;;  %v5191_v14 = vadd.f32 %v9037_v10, %v5190_v39  ;;  %3416 = vmatmul.bf16.gmra.mxu3 %v3159_v34  ;;  %v5044_v12 = vpack.c.bf16 %v4864_v27, %v4863_v0  ;;  %v2647_v5 = vmax.f32 %v2296_v4, 0.0 }
 0x872   :  { %v4284_v31 = vpop.f32.mrf.mxu0  ;;  %v9159_v47 = vadd.f32 %v1714_v42, %v13341_v46  ;;  %v9162_v40 = vadd.f32 %v1713_v30, %v13342_v33 }
 0x873   :  { %5624 = vst.msk [vmem:[%s12413_s5 + $0x20] sm:$0xff] %vm5619_vm1, %v5191_v14  ;;  %5229 = vmatmul.bf16.gmra.mxu1 %v5044_v12  ;;  %v4102_v50 = vpack.c.bf16 %v9149_v19, %v9146_v63  ;;  %v4285_v32 = vadd.f32 %v8668_v21, %v4284_v31  ;;  %v2822_v0 = vadd.f32 %v2647_v5, %v8765_v43  ;;  %v13343_v12 = vld [vmem:[#allocation74_spill] sm:$0xff] }
 0x874   :  { %v3377_v29 = vpop.f32.mrf.mxu3  ;;  %v2042_v42 = vpack.c.bf16 %v9159_v47, %v9162_v40  ;;  %v9180_v31 = vld [vmem:[%s12409_s4 + $0x1] ss:$0 sm:$0xff] }
 0x875   :  { %4323 = vmatmul.bf16.gmra.mxu0 %v4102_v50  ;;  %v3378_v7 = vadd.f32 %v8907_v2, %v3377_v29  ;;  %v4690_v14 = vmax.f32 %v4285_v32, 0.0  ;;  %v1396_v50 = vadd.f32 %v9180_v31, %v8809_v53  ;;  %v13344_v5 = vld [vmem:[#allocation54_spill] sm:$0xff] }
 0x876   :  { %v2297_v54 = vpop.f32.mrf.mxu2  ;;  %v9185_v29 = vadd.f32 %v2822_v0, %v13344_v5 }
 0x877   :  { %v2298_v8 = vadd.f32 %v8724_v16, %v2297_v54  ;;  %v3756_v32 = vmax.f32 %v3378_v7, 0.0  ;;  %v1716_v5 = vmax.f32 %v1396_v50, 0.0 }
 0x878   :  { %v5192_v27 = vpop.f32.mrf.mxu1 }
 0x879   :  { %v2648_v34 = vmax.f32 %v2298_v8, 0.0  ;;  %v5193_v4 = vadd.f32 %v9037_v10, %v5192_v27 }
 0x87a   :  { %v4286_v39 = vpop.f32.mrf.mxu0 }
 0x87b   :  { %v2823_v30 = vadd.f32 %v2648_v34, %v13343_v12  ;;  %5625 = vst.msk [vmem:[%s12413_s5 + $0x28] sm:$0xff] %vm5619_vm1, %v5193_v4  ;;  %v4287_v43 = vadd.f32 %v8668_v21, %v4286_v39  ;;  %2339 = vmatmul.bf16.gmra.mxu2 %v2042_v42  ;;  %v13345_v34 = vld [vmem:[#allocation55_spill] sm:$0xff]  ;;  %v13346_v21 = vld [vmem:[#allocation8_spill] sm:$0xff]  ;;  %v4865_v12 = vadd.f32 %v4690_v14, %v8794_v11 }
 0x87c   :  { %v3379_v54 = vpop.f32.mrf.mxu3  ;;  %v1394_v42 = vadd.f32 %v9180_v31, %v13346_v21  ;;  %v13348_v21 = vld [vmem:[#allocation90_spill] sm:$0xff] }
 0x87d   :  { %v4691_v8 = vmax.f32 %v4287_v43, 0.0  ;;  %v3380_v27 = vadd.f32 %v8907_v2, %v3379_v54  ;;  %v9189_v4 = vadd.f32 %v2823_v30, %v13345_v34  ;;  %v9199_v54 = vadd.f32 %v3756_v32, %v8778_v60 }
 0x87e   :  { %v2300_v39 = vpop.f32.mrf.mxu2 }
 0x87f   :  { %v4866_v46 = vadd.f32 %v4691_v8, %v8797_v55  ;;  %v3757_v53 = vmax.f32 %v3380_v27, 0.0  ;;  %v3160_v0 = vpack.c.bf16 %v9189_v4, %v9185_v29  ;;  %v2301_v7 = vadd.f32 %v8724_v16, %v2300_v39  ;;  %v13347_v8 = vld [vmem:[#allocation91_spill] sm:$0xff] }
 0x880   :  { %v5195_v43 = vpop.f32.mrf.mxu1  ;;  %v1715_v55 = vmax.f32 %v1394_v42, 0.0  ;;  %v9220_v42 = vld [vmem:[%s12409_s4 + $0x4] ss:$0 sm:$0xff] }
 0x881   :  { %v9202_v30 = vadd.f32 %v3757_v53, %v8782_v57  ;;  %v5196_v34 = vadd.f32 %v9037_v10, %v5195_v43  ;;  %3421 = vmatmul.bf16.gmra.mxu3 %v3160_v0  ;;  %v5045_v11 = vpack.c.bf16 %v4866_v46, %v4865_v12  ;;  %v2649_v60 = vmax.f32 %v2301_v7, 0.0 }
 0x882   :  { %v4289_v14 = vpop.f32.mrf.mxu0  ;;  %v9212_v57 = vadd.f32 %v1716_v5, %v13347_v8  ;;  %v9215_v46 = vadd.f32 %v1715_v55, %v13348_v21 }
 0x883   :  { %5626 = vst.msk [vmem:[%s12413_s5 + $0x30] sm:$0xff] %vm5619_vm1, %v5196_v34  ;;  %5234 = vmatmul.bf16.gmra.mxu1 %v5045_v11  ;;  %v4103_v50 = vpack.c.bf16 %v9202_v30, %v9199_v54  ;;  %v4290_v39 = vadd.f32 %v9220_v42, %v4289_v14  ;;  %v2824_v53 = vadd.f32 %v2649_v60, %v8805_v49  ;;  %v13349_v60 = vld [vmem:[#allocation57_spill] sm:$0xff] }
 0x884   :  { %v3382_v32 = vpop.f32.mrf.mxu3  ;;  %v2043_v34 = vpack.c.bf16 %v9212_v57, %v9215_v46  ;;  %v1401_v14 = vadd.f32 %v9180_v31, %v8859_v36 }
 0x885   :  { %4328 = vmatmul.bf16.gmra.mxu0 %v4103_v50  ;;  %v3383_v5 = vadd.f32 %v8907_v2, %v3382_v32  ;;  %v4692_v55 = vmax.f32 %v4290_v39, 0.0  ;;  %v9238_v32 = vadd.f32 %v2824_v53, %v13349_v60 }
 0x886   :  { %v2302_v27 = vpop.f32.mrf.mxu2  ;;  %v1718_v60 = vmax.f32 %v1401_v14, 0.0  ;;  %v13352_v14 = vld [vmem:[#allocation94_spill] sm:$0xff] }
 0x887   :  { %v2303_v12 = vadd.f32 %v8724_v16, %v2302_v27 }
 0x888   :  { %v5197_v0 = vpop.f32.mrf.mxu1 }
 0x889   :  { %v2650_v7 = vmax.f32 %v2303_v12, 0.0  ;;  %v5198_v43 = vadd.f32 %v9037_v10, %v5197_v0  ;;  %v3758_v12 = vmax.f32 %v3383_v5, 0.0 }
 0x88a   :  { %v4291_v11 = vpop.f32.mrf.mxu0 }
 0x88b   :  { %v2825_v50 = vadd.f32 %v2650_v7, %v8802_v37  ;;  %5627 = vst.msk [vmem:[%s12413_s5 + $0x38] sm:$0xff] %vm5619_vm1, %v5198_v43  ;;  %v4292_v49 = vadd.f32 %v9220_v42, %v4291_v11  ;;  %2344 = vmatmul.bf16.gmra.mxu2 %v2043_v34  ;;  %v13350_v37 = vld [vmem:[#allocation58_spill] sm:$0xff]  ;;  %v1399_v43 = vadd.f32 %v9180_v31, %v8839_v9 }
 0x88c   :  { %v3384_v27 = vpop.f32.mrf.mxu3  ;;  %v4867_v34 = vadd.f32 %v4692_v55, %v8834_v35 }
 0x88d   :  { %v4693_v0 = vmax.f32 %v4292_v49, 0.0  ;;  %v3385_v39 = vadd.f32 %v8907_v2, %v3384_v27  ;;  %v9242_v7 = vadd.f32 %v2825_v50, %v13350_v37  ;;  %v9252_v27 = vadd.f32 %v3758_v12, %v8820_v17  ;;  %v13351_v50 = vld [vmem:[#allocation71_spill] sm:$0xff] }
 0x88e   :  { %v2305_v8 = vpop.f32.mrf.mxu2  ;;  %v9265_v12 = vadd.f32 %v1718_v60, %v13352_v14 }
 0x88f   :  { %v4868_v11 = vadd.f32 %v4693_v0, %v8837_v62  ;;  %v3759_v36 = vmax.f32 %v3385_v39, 0.0  ;;  %v3161_v53 = vpack.c.bf16 %v9242_v7, %v9238_v32  ;;  %v2306_v5 = vadd.f32 %v8724_v16, %v2305_v8  ;;  %v13354_v39 = vld [vmem:[#allocation93_spill] sm:$0xff] }
 0x890   :  { %v5200_v49 = vpop.f32.mrf.mxu1  ;;  %v1717_v62 = vmax.f32 %v1399_v43, 0.0  ;;  %13353 = vst [vmem:[#allocation95_spill] sm:$0xff] %v9265_v12 }
 0x891   :  { %v9255_v37 = vadd.f32 %v3759_v36, %v13351_v50  ;;  %v5201_v9 = vadd.f32 %v9037_v10, %v5200_v49  ;;  %3426 = vmatmul.bf16.gmra.mxu3 %v3161_v53  ;;  %v5046_v35 = vpack.c.bf16 %v4868_v11, %v4867_v34  ;;  %v2651_v17 = vmax.f32 %v2306_v5, 0.0  ;;  %v9274_v11 = vld [vmem:[%s12409_s4 + $0x2] ss:$0 sm:$0xff] }
 0x892   :  { %v4294_v55 = vpop.f32.mrf.mxu0  ;;  %v9268_v34 = vadd.f32 %v1717_v62, %v13354_v39  ;;  %v13355_v53 = vld [vmem:[#allocation78_spill] sm:$0xff] }
 0x893   :  { %5628 = vst.msk [vmem:[%s12413_s5 + $0x40] sm:$0xff] %vm5619_vm1, %v5201_v9  ;;  %5239 = vmatmul.bf16.gmra.mxu1 %v5046_v35  ;;  %v4104_v16 = vpack.c.bf16 %v9255_v37, %v9252_v27  ;;  %v4295_v43 = vadd.f32 %v9220_v42, %v4294_v55  ;;  %v2826_v5 = vadd.f32 %v2651_v17, %v13355_v53 }
 0x894   :  { %v3387_v8 = vpop.f32.mrf.mxu3  ;;  %v2044_v35 = vpack.c.bf16 %v9265_v12, %v9268_v34 }
 0x895   :  { %4333 = vmatmul.bf16.gmra.mxu0 %v4104_v16  ;;  %v3388_v60 = vadd.f32 %v8907_v2, %v3387_v8  ;;  %v4694_v55 = vmax.f32 %v4295_v43, 0.0  ;;  %v13356_v16 = vld [vmem:[#allocation2_spill] sm:$0xff]  ;;  %v1406_v8 = vadd.f32 %v9180_v31, %v8919_v52 }
 0x896   :  { %v2307_v0 = vpop.f32.mrf.mxu2 }
 0x897   :  { %v2308_v36 = vadd.f32 %v9274_v11, %v2307_v0  ;;  %v13357_v0 = vld [vmem:[#allocation61_spill] sm:$0xff] }
 0x898   :  { %v5202_v49 = vpop.f32.mrf.mxu1 }
 0x899   :  { %v2652_v50 = vmax.f32 %v2308_v36, 0.0  ;;  %v5203_v9 = vadd.f32 %v9037_v10, %v5202_v49  ;;  %v9291_v36 = vadd.f32 %v2826_v5, %v13357_v0  ;;  %v3760_v49 = vmax.f32 %v3388_v60, 0.0 }
 0x89a   :  { %v4296_v62 = vpop.f32.mrf.mxu0  ;;  %v1720_v0 = vmax.f32 %v1406_v8, 0.0  ;;  %v13359_v8 = vld [vmem:[#allocation98_spill] sm:$0xff] }
 0x89b   :  { %v2827_v14 = vadd.f32 %v2652_v50, %v13356_v16  ;;  %5629 = vst.msk [vmem:[%s12413_s5 + $0x48] sm:$0xff] %vm5619_vm1, %v5203_v9  ;;  %v4297_v17 = vadd.f32 %v9220_v42, %v4296_v62  ;;  %2349 = vmatmul.bf16.gmra.mxu2 %v2044_v35  ;;  %v13358_v50 = vld [vmem:[#allocation62_spill] sm:$0xff]  ;;  %v1404_v9 = vadd.f32 %v9180_v31, %v8886_v24 }
 0x89c   :  { %v3389_v53 = vpop.f32.mrf.mxu3  ;;  %v4869_v35 = vadd.f32 %v4694_v55, %v8876_v13 }
 0x89d   :  { %v4695_v39 = vmax.f32 %v4297_v17, 0.0  ;;  %v3390_v43 = vadd.f32 %v8907_v2, %v3389_v53  ;;  %v9295_v16 = vadd.f32 %v2827_v14, %v13358_v50  ;;  %v9305_v53 = vadd.f32 %v3760_v49, %v8862_v18 }
 0x89e   :  { %v2310_v12 = vpop.f32.mrf.mxu2 }
 0x89f   :  { %v4870_v62 = vadd.f32 %v4695_v39, %v8879_v45  ;;  %v3761_v52 = vmax.f32 %v3390_v43, 0.0  ;;  %v3162_v5 = vpack.c.bf16 %v9295_v16, %v9291_v36  ;;  %v2311_v60 = vadd.f32 %v9274_v11, %v2310_v12  ;;  %v13361_v43 = vld [vmem:[#allocation97_spill] sm:$0xff] }
 0x8a0   :  { %v5205_v17 = vpop.f32.mrf.mxu1  ;;  %v1719_v45 = vmax.f32 %v1404_v9, 0.0 }
 0x8a1   :  { %v9308_v14 = vadd.f32 %v3761_v52, %v8866_v20  ;;  %v5206_v24 = vadd.f32 %v9037_v10, %v5205_v17  ;;  %3431 = vmatmul.bf16.gmra.mxu3 %v3162_v5  ;;  %v5047_v13 = vpack.c.bf16 %v4870_v62, %v4869_v35  ;;  %v2653_v18 = vmax.f32 %v2311_v60, 0.0  ;;  %v13362_v62 = vld [vmem:[#allocation10_spill] sm:$0xff] }
 0x8a2   :  { %v4299_v55 = vpop.f32.mrf.mxu0  ;;  %v9318_v20 = vadd.f32 %v1720_v0, %v13359_v8  ;;  %v9321_v50 = vadd.f32 %v1719_v45, %v13361_v43  ;;  %v13363_v8 = vld [vmem:[#allocation9_spill] sm:$0xff] }
 0x8a3   :  { %5630 = vst.msk [vmem:[%s12413_s5 + $0x50] sm:$0xff] %vm5619_vm1, %v5206_v24  ;;  %5244 = vmatmul.bf16.gmra.mxu1 %v5047_v13  ;;  %v4105_v12 = vpack.c.bf16 %v9308_v14, %v9305_v53  ;;  %v4300_v9 = vadd.f32 %v9220_v42, %v4299_v55  ;;  %v2828_v52 = vadd.f32 %v2653_v18, %v13362_v62 }
 0x8a4   :  { %v3392_v39 = vpop.f32.mrf.mxu3  ;;  %13360 = vst [vmem:[#allocation100_spill] sm:$0xff] %v9318_v20  ;;  %v2045_v0 = vpack.c.bf16 %v9318_v20, %v9321_v50  ;;  %v1411_v18 = vadd.f32 %v9180_v31, %v8970_v41 }
 0x8a5   :  { %4338 = vmatmul.bf16.gmra.mxu0 %v4105_v12  ;;  %v3393_v17 = vadd.f32 %v8907_v2, %v3392_v39  ;;  %v4696_v12 = vmax.f32 %v4300_v9, 0.0  ;;  %v13364_v39 = vld [vmem:[#allocation65_spill] sm:$0xff] }
 0x8a6   :  { %v2312_v49 = vpop.f32.mrf.mxu2 }
 0x8a7   :  { %v2313_v35 = vadd.f32 %v9274_v11, %v2312_v49  ;;  %v9339_v49 = vadd.f32 %v2828_v52, %v13364_v39  ;;  %v3762_v62 = vmax.f32 %v3393_v17, 0.0  ;;  %v1722_v39 = vmax.f32 %v1411_v18, 0.0 }
 0x8a8   :  { %v5207_v5 = vpop.f32.mrf.mxu1 }
 0x8a9   :  { %v2654_v24 = vmax.f32 %v2313_v35, 0.0  ;;  %v5208_v60 = vadd.f32 %v9037_v10, %v5207_v5  ;;  %13365 = vst [vmem:[#allocation19_spill] sm:$0xff] %v9339_v49 }
 0x8aa   :  { %v4301_v13 = vpop.f32.mrf.mxu0 }
 0x8ab   :  { %v2829_v45 = vadd.f32 %v2654_v24, %v13363_v8  ;;  %5631 = vst.msk [vmem:[%s12413_s5 + $0x58] sm:$0xff] %vm5619_vm1, %v5208_v60  ;;  %v4302_v55 = vadd.f32 %v9220_v42, %v4301_v13  ;;  %2354 = vmatmul.bf16.gmra.mxu2 %v2045_v0  ;;  %v13366_v8 = vld [vmem:[#allocation66_spill] sm:$0xff]  ;;  %v1409_v60 = vadd.f32 %v9180_v31, %v8942_v25 }
 0x8ac   :  { %v3394_v35 = vpop.f32.mrf.mxu3  ;;  %v4871_v0 = vadd.f32 %v4696_v12, %v8923_v15 }
 0x8ad   :  { %v4697_v5 = vmax.f32 %v4302_v55, 0.0  ;;  %v3395_v9 = vadd.f32 %v8907_v2, %v3394_v35  ;;  %v9343_v24 = vadd.f32 %v2829_v45, %v13366_v8  ;;  %v13368_v35 = vld [vmem:[#allocation77_spill] sm:$0xff]  ;;  %v13369_v45 = vld [vmem:[#allocation82_spill] sm:$0xff] }
 0x8ae   :  { %v2315_v43 = vpop.f32.mrf.mxu2  ;;  %v9353_v20 = vadd.f32 %v3762_v62, %v13368_v35 }
 0x8af   :  { %13367 = vst [vmem:[#allocation20_spill] sm:$0xff] %v9343_v24  ;;  %v4872_v13 = vadd.f32 %v4697_v5, %v8926_v3  ;;  %v3763_v41 = vmax.f32 %v3395_v9, 0.0  ;;  %v3163_v52 = vpack.c.bf16 %v9343_v24, %v9339_v49  ;;  %v2316_v17 = vadd.f32 %v9274_v11, %v2315_v43  ;;  %v13371_v5 = vld [vmem:[#allocation102_spill] sm:$0xff]  ;;  %v13376_v24 = vld [vmem:[#allocation11_spill] sm:$0xff] }
 0x8b0   :  { %v5210_v55 = vpop.f32.mrf.mxu1  ;;  %v1721_v3 = vmax.f32 %v1409_v60, 0.0  ;;  %v9366_v9 = vadd.f32 %v1722_v39, %v13371_v5 }
 0x8b1   :  { %v9356_v8 = vadd.f32 %v3763_v41, %v13369_v45  ;;  %v5211_v25 = vadd.f32 %v9037_v10, %v5210_v55  ;;  %3436 = vmatmul.bf16.gmra.mxu3 %v3163_v52  ;;  %v5048_v15 = vpack.c.bf16 %v4872_v13, %v4871_v0  ;;  %v2655_v18 = vmax.f32 %v2316_v17, 0.0  ;;  %v13373_v52 = vld [vmem:[#allocation101_spill] sm:$0xff]  ;;  %v13375_v55 = vld [vmem:[#allocation12_spill] sm:$0xff] }
 0x8b2   :  { %v4304_v12 = vpop.f32.mrf.mxu0  ;;  %13372 = vst [vmem:[#allocation106_spill] sm:$0xff] %v9366_v9  ;;  %v9369_v0 = vadd.f32 %v1721_v3, %v13373_v52  ;;  %v13381_v52 = vld [vmem:[#allocation15_spill] sm:$0xff] }
 0x8b3   :  { %13370 = vst [vmem:[#allocation99_spill] sm:$0xff] %v9356_v8  ;;  %5249 = vmatmul.bf16.gmra.mxu1 %v5048_v15  ;;  %v4106_v43 = vpack.c.bf16 %v9356_v8, %v9353_v20  ;;  %v4305_v60 = vadd.f32 %v9220_v42, %v4304_v12  ;;  %v2830_v35 = vadd.f32 %v2655_v18, %v13375_v55 }
 0x8b4   :  { %5632 = vst.msk [vmem:[%s12413_s5 + $0x60] sm:$0xff] %vm5619_vm1, %v5211_v25  ;;  %v3397_v62 = vpop.f32.mrf.mxu3  ;;  %v2046_v39 = vpack.c.bf16 %v9366_v9, %v9369_v0  ;;  %v1416_v18 = vadd.f32 %v9180_v31, %v9020_v59 }
 0x8b5   :  { %4343 = vmatmul.bf16.gmra.mxu0 %v4106_v43  ;;  %13374 = vst [vmem:[#allocation24_spill] sm:$0xff] %v9369_v0  ;;  %v3398_v25 = vadd.f32 %v8907_v2, %v3397_v62  ;;  %v4698_v5 = vmax.f32 %v4305_v60, 0.0  ;;  %v13377_v62 = vld [vmem:[#allocation68_spill] sm:$0xff]  ;;  %v13383_v0 = vld [vmem:[#allocation85_spill] sm:$0xff] }
 0x8b6   :  { %v2317_v41 = vpop.f32.mrf.mxu2 }
 0x8b7   :  { %v2318_v13 = vadd.f32 %v9274_v11, %v2317_v41  ;;  %v9387_v41 = vadd.f32 %v2830_v35, %v13377_v62  ;;  %v3764_v55 = vmax.f32 %v3398_v25, 0.0  ;;  %v1724_v62 = vmax.f32 %v1416_v18, 0.0 }
 0x8b8   :  { %v5212_v45 = vpop.f32.mrf.mxu1 }
 0x8b9   :  { %v2656_v15 = vmax.f32 %v2318_v13, 0.0  ;;  %v5213_v17 = vadd.f32 %v9037_v10, %v5212_v45  ;;  %13378 = vst [vmem:[#allocation103_spill] sm:$0xff] %v9387_v41 }
 0x8ba   :  { %v4306_v43 = vpop.f32.mrf.mxu0 }
 0x8bb   :  { %v2831_v3 = vadd.f32 %v2656_v15, %v13376_v24  ;;  %5633 = vst.msk [vmem:[%s12413_s5 + $0x68] sm:$0xff] %vm5619_vm1, %v5213_v17  ;;  %v4307_v12 = vadd.f32 %v9220_v42, %v4306_v43  ;;  %2359 = vmatmul.bf16.gmra.mxu2 %v2046_v39  ;;  %v13379_v24 = vld [vmem:[#allocation69_spill] sm:$0xff]  ;;  %v1414_v17 = vadd.f32 %v9180_v31, %v13381_v52  ;;  %v13382_v43 = vld [vmem:[#allocation14_spill] sm:$0xff] }
 0x8bc   :  { %v3399_v13 = vpop.f32.mrf.mxu3  ;;  %v4873_v39 = vadd.f32 %v4698_v5, %v13382_v43 }
 0x8bd   :  { %v4699_v45 = vmax.f32 %v4307_v12, 0.0  ;;  %v3400_v60 = vadd.f32 %v8907_v2, %v3399_v13  ;;  %v9391_v15 = vadd.f32 %v2831_v3, %v13379_v24  ;;  %v13384_v13 = vld [vmem:[#allocation81_spill] sm:$0xff]  ;;  %v13385_v3 = vld [vmem:[#allocation88_spill] sm:$0xff] }
 0x8be   :  { %v2320_v9 = vpop.f32.mrf.mxu2  ;;  %v9401_v8 = vadd.f32 %v3764_v55, %v13384_v13 }
 0x8bf   :  { %13380 = vst [vmem:[#allocation25_spill] sm:$0xff] %v9391_v15  ;;  %v4874_v49 = vadd.f32 %v4699_v45, %v13383_v0  ;;  %v3765_v59 = vmax.f32 %v3400_v60, 0.0  ;;  %v3164_v35 = vpack.c.bf16 %v9391_v15, %v9387_v41  ;;  %v2321_v25 = vadd.f32 %v9274_v11, %v2320_v9  ;;  %v13387_v45 = vld [vmem:[#allocation105_spill] sm:$0xff]  ;;  %v13392_v15 = vld [vmem:[#allocation22_spill] sm:$0xff] }
 0x8c0   :  { %v5215_v12 = vpop.f32.mrf.mxu1  ;;  %v1723_v0 = vmax.f32 %v1414_v17, 0.0  ;;  %v9414_v60 = vadd.f32 %v1724_v62, %v13387_v45  ;;  %v13400_v41 = vld [vmem:[#allocation89_spill] sm:$0xff] }
 0x8c1   :  { %v9404_v24 = vadd.f32 %v3765_v59, %v13385_v3  ;;  %v5216_v52 = vadd.f32 %v9037_v10, %v5215_v12  ;;  %3441 = vmatmul.bf16.gmra.mxu3 %v3164_v35  ;;  %v5049_v5 = vpack.c.bf16 %v4874_v49, %v4873_v39  ;;  %v2657_v18 = vmax.f32 %v2321_v25, 0.0  ;;  %v13389_v35 = vld [vmem:[#allocation104_spill] sm:$0xff]  ;;  %v13391_v12 = vld [vmem:[#allocation21_spill] sm:$0xff] }
 0x8c2   :  { %v4309_v43 = vpop.f32.mrf.mxu0  ;;  %13388 = vst [vmem:[#allocation27_spill] sm:$0xff] %v9414_v60  ;;  %v9417_v49 = vadd.f32 %v1723_v0, %v13389_v35 }
 0x8c3   :  { %13386 = vst [vmem:[#allocation26_spill] sm:$0xff] %v9404_v24  ;;  %5254 = vmatmul.bf16.gmra.mxu1 %v5049_v5  ;;  %v4107_v9 = vpack.c.bf16 %v9404_v24, %v9401_v8  ;;  %v4310_v17 = vadd.f32 %v9220_v42, %v4309_v43  ;;  %v2832_v13 = vadd.f32 %v2657_v18, %v13391_v12  ;;  %v13393_v18 = vld [vmem:[#allocation128_spill] sm:$0xff] }
 0x8c4   :  { %5634 = vst.msk [vmem:[%s12413_s5 + $0x70] sm:$0xff] %vm5619_vm1, %v5216_v52  ;;  %v3402_v55 = vpop.f32.mrf.mxu3  ;;  %v2047_v62 = vpack.c.bf16 %v9414_v60, %v9417_v49  ;;  %v13398_v60 = vld [vmem:[#allocation125_spill] sm:$0xff] }
 0x8c5   :  { %4348 = vmatmul.bf16.gmra.mxu0 %v4107_v9  ;;  %13390 = vst [vmem:[#allocation28_spill] sm:$0xff] %v9417_v49  ;;  %v3403_v52 = vadd.f32 %v8907_v2, %v3402_v55  ;;  %v4700_v45 = vmax.f32 %v4310_v17, 0.0  ;;  %v1421_v55 = vadd.f32 %v9180_v31, %v13393_v18 }
 0x8c6   :  { %v2322_v59 = vpop.f32.mrf.mxu2 }
 0x8c7   :  { %v2323_v39 = vadd.f32 %v9274_v11, %v2322_v59  ;;  %v13394_v59 = vld [vmem:[#allocation72_spill] sm:$0xff] }
 0x8c8   :  { %v5217_v3 = vpop.f32.mrf.mxu1 }
 0x8c9   :  { %v2658_v5 = vmax.f32 %v2323_v39, 0.0  ;;  %v5218_v25 = vadd.f32 %v9037_v10, %v5217_v3  ;;  %v9435_v39 = vadd.f32 %v2832_v13, %v13394_v59  ;;  %v3766_v3 = vmax.f32 %v3403_v52, 0.0 }
 0x8ca   :  { %v4311_v9 = vpop.f32.mrf.mxu0  ;;  %v1726_v59 = vmax.f32 %v1421_v55, 0.0 }
 0x8cb   :  { %v2833_v0 = vadd.f32 %v2658_v5, %v13392_v15  ;;  %5635 = vst.msk [vmem:[%s12413_s5 + $0x78] sm:$0xff] %vm5619_vm1, %v5218_v25  ;;  %v4312_v43 = vadd.f32 %v9220_v42, %v4311_v9  ;;  %2364 = vmatmul.bf16.gmra.mxu2 %v2047_v62  ;;  %v13396_v15 = vld [vmem:[#allocation73_spill] sm:$0xff]  ;;  %v1419_v25 = vadd.f32 %v9180_v31, %v13398_v60  ;;  %v13399_v9 = vld [vmem:[#allocation16_spill] sm:$0xff] }
 0x8cc   :  { %13395 = vst [vmem:[#allocation3_spill] sm:$0xff] %v9435_v39  ;;  %v3404_v12 = vpop.f32.mrf.mxu3  ;;  %v4875_v62 = vadd.f32 %v4700_v45, %v13399_v9 }
 0x8cd   :  { %v4701_v35 = vmax.f32 %v4312_v43, 0.0  ;;  %v3405_v17 = vadd.f32 %v8907_v2, %v3404_v12  ;;  %v9439_v5 = vadd.f32 %v2833_v0, %v13396_v15  ;;  %v13401_v2 = vld [vmem:[#allocation4_spill] sm:$0xff] }
 0x8ce   :  { %v2325_v49 = vpop.f32.mrf.mxu2  ;;  %v9449_v12 = vadd.f32 %v3766_v3, %v13401_v2  ;;  %v13402_v0 = vld [vmem:[#allocation92_spill] sm:$0xff] }
 0x8cf   :  { %13397 = vst [vmem:[#allocation30_spill] sm:$0xff] %v9439_v5  ;;  %v4876_v24 = vadd.f32 %v4701_v35, %v13400_v41  ;;  %v3767_v18 = vmax.f32 %v3405_v17, 0.0  ;;  %v3165_v13 = vpack.c.bf16 %v9439_v5, %v9435_v39  ;;  %v2326_v52 = vadd.f32 %v9274_v11, %v2325_v49  ;;  %v13403_v3 = vld [vmem:[#allocation108_spill] sm:$0xff]  ;;  %v13412_v5 = vld [vmem:[#allocation129_spill] sm:$0xff] }
 0x8d0   :  { %v5220_v43 = vpop.f32.mrf.mxu1  ;;  %v1725_v41 = vmax.f32 %v1419_v25, 0.0  ;;  %v9462_v17 = vadd.f32 %v1726_v59, %v13403_v3  ;;  %v13408_v3 = vld [vmem:[#allocation96_spill] sm:$0xff] }
 0x8d1   :  { %v9452_v15 = vadd.f32 %v3767_v18, %v13402_v0  ;;  %v5221_v60 = vadd.f32 %v9037_v10, %v5220_v43  ;;  %3446 = vmatmul.bf16.gmra.mxu3 %v3165_v13  ;;  %v5050_v45 = vpack.c.bf16 %v4876_v24, %v4875_v62  ;;  %v2659_v49 = vmax.f32 %v2326_v52, 0.0  ;;  %v13405_v13 = vld [vmem:[#allocation107_spill] sm:$0xff]  ;;  %v13407_v43 = vld [vmem:[#allocation17_spill] sm:$0xff]  ;;  %v9473_v52 = vld [vmem:[%s12409_s4 + $0x3] ss:$0 sm:$0xff] }
 0x8d2   :  { %v4314_v9 = vpop.f32.mrf.mxu0  ;;  %13404 = vst [vmem:[#allocation5_spill] sm:$0xff] %v9462_v17  ;;  %v9465_v24 = vadd.f32 %v1725_v41, %v13405_v13 }
 0x8d3   :  { %5636 = vst.msk [vmem:[%s12413_s5 + $0x80] sm:$0xff] %vm5619_vm1, %v5221_v60  ;;  %5259 = vmatmul.bf16.gmra.mxu1 %v5050_v45  ;;  %v4108_v35 = vpack.c.bf16 %v9452_v15, %v9449_v12  ;;  %v4315_v25 = vadd.f32 %v9220_v42, %v4314_v9  ;;  %v2834_v2 = vadd.f32 %v2659_v49, %v13407_v43  ;;  %v13409_v43 = vld [vmem:[#allocation132_spill] sm:$0xff] }
 0x8d4   :  { %v3407_v55 = vpop.f32.mrf.mxu3  ;;  %13406 = vst [vmem:[#allocation31_spill] sm:$0xff] %v9465_v24  ;;  %v2048_v41 = vpack.c.bf16 %v9462_v17, %v9465_v24 }
 0x8d5   :  { %4353 = vmatmul.bf16.gmra.mxu0 %v4108_v35  ;;  %v3408_v59 = vadd.f32 %v9473_v52, %v3407_v55  ;;  %v4702_v9 = vmax.f32 %v4315_v25, 0.0  ;;  %v1426_v55 = vadd.f32 %v9180_v31, %v13409_v43 }
 0x8d6   :  { %v2327_v18 = vpop.f32.mrf.mxu2 }
 0x8d7   :  { %v2328_v62 = vadd.f32 %v9274_v11, %v2327_v18  ;;  %v3768_v17 = vmax.f32 %v3408_v59, 0.0 }
 0x8d8   :  { %v5222_v0 = vpop.f32.mrf.mxu1 }
 0x8d9   :  { %v2660_v60 = vmax.f32 %v2328_v62, 0.0  ;;  %v5223_v45 = vadd.f32 %v9037_v10, %v5222_v0  ;;  %v13410_v62 = vld [vmem:[#allocation75_spill] sm:$0xff] }
 0x8da   :  { %v4316_v35 = vpop.f32.mrf.mxu0  ;;  %v9488_v0 = vadd.f32 %v2834_v2, %v13410_v62  ;;  %v1728_v62 = vmax.f32 %v1426_v55, 0.0 }
 0x8db   :  { %v2835_v18 = vadd.f32 %v2660_v60, %v13408_v3  ;;  %5637 = vst.msk [vmem:[%s12413_s5 + $0x88] sm:$0xff] %vm5619_vm1, %v5223_v45  ;;  %v4317_v49 = vadd.f32 %v9220_v42, %v4316_v35  ;;  %2369 = vmatmul.bf16.gmra.mxu2 %v2048_v41  ;;  %v13411_v3 = vld [vmem:[#allocation76_spill] sm:$0xff]  ;;  %v1424_v45 = vadd.f32 %v9180_v31, %v13412_v5 }
 0x8dc   :  { %v3409_v13 = vpop.f32.mrf.mxu3  ;;  %v4877_v41 = vadd.f32 %v4702_v9, %v9050_v22 }
 0x8dd   :  { %v4703_v24 = vmax.f32 %v4317_v49, 0.0  ;;  %v3410_v25 = vadd.f32 %v9473_v52, %v3409_v13  ;;  %v9492_v60 = vadd.f32 %v2835_v18, %v13411_v3  ;;  %v9502_v13 = vadd.f32 %v3768_v17, %v9031_v23 }
 0x8de   :  { %v2330_v39 = vpop.f32.mrf.mxu2 }
 0x8df   :  { %v4878_v35 = vadd.f32 %v4703_v24, %v9053_v26  ;;  %v3769_v43 = vmax.f32 %v3410_v25, 0.0  ;;  %v3166_v2 = vpack.c.bf16 %v9492_v60, %v9488_v0  ;;  %v2331_v59 = vadd.f32 %v9274_v11, %v2330_v39  ;;  %v13413_v24 = vld [vmem:[#allocation110_spill] sm:$0xff]  ;;  %v13415_v25 = vld [vmem:[#allocation109_spill] sm:$0xff] }
 0x8e0   :  { %v5225_v49 = vpop.f32.mrf.mxu1  ;;  %v1727_v26 = vmax.f32 %v1424_v45, 0.0 }
 0x8e1   :  { %v9505_v18 = vadd.f32 %v3769_v43, %v9040_v1  ;;  %v5226_v5 = vadd.f32 %v9037_v10, %v5225_v49  ;;  %3451 = vmatmul.bf16.gmra.mxu3 %v3166_v2  ;;  %v5051_v22 = vpack.c.bf16 %v4878_v35, %v4877_v41  ;;  %v2661_v23 = vmax.f32 %v2331_v59, 0.0 }
 0x8e2   :  { %v4319_v9 = vpop.f32.mrf.mxu0  ;;  %v9515_v1 = vadd.f32 %v1728_v62, %v13413_v24  ;;  %v9518_v3 = vadd.f32 %v1727_v26, %v13415_v25  ;;  %v13420_v25 = vld [vmem:[#allocation133_spill] sm:$0xff] }
 0x8e3   :  { %5638 = vst.msk [vmem:[%s12413_s5 + $0x90] sm:$0xff] %vm5619_vm1, %v5226_v5  ;;  %5264 = vmatmul.bf16.gmra.mxu1 %v5051_v22  ;;  %v4109_v39 = vpack.c.bf16 %v9505_v18, %v9502_v13  ;;  %v4320_v45 = vadd.f32 %v9220_v42, %v4319_v9  ;;  %v2836_v35 = vadd.f32 %v2661_v23, %v9066_v51  ;;  %v13417_v9 = vld [vmem:[#allocation136_spill] sm:$0xff] }
 0x8e4   :  { %v3412_v17 = vpop.f32.mrf.mxu3  ;;  %13414 = vst [vmem:[#allocation32_spill] sm:$0xff] %v9515_v1  ;;  %v2049_v62 = vpack.c.bf16 %v9515_v1, %v9518_v3  ;;  %v1431_v23 = vadd.f32 %v9180_v31, %v13417_v9 }
 0x8e5   :  { %4358 = vmatmul.bf16.gmra.mxu0 %v4109_v39  ;;  %v3413_v2 = vadd.f32 %v9473_v52, %v3412_v17  ;;  %v4704_v22 = vmax.f32 %v4320_v45, 0.0  ;;  %v13416_v39 = vld [vmem:[#allocation18_spill] sm:$0xff]  ;;  %v13418_v17 = vld [vmem:[#allocation79_spill] sm:$0xff] }
 0x8e6   :  { %v2332_v55 = vpop.f32.mrf.mxu2 }
 0x8e7   :  { %v2333_v41 = vadd.f32 %v9274_v11, %v2332_v55  ;;  %v9536_v55 = vadd.f32 %v2836_v35, %v13418_v17  ;;  %v1730_v17 = vmax.f32 %v1431_v23, 0.0  ;;  %v13421_v23 = vld [vmem:[#allocation112_spill] sm:$0xff] }
 0x8e8   :  { %v5227_v43 = vpop.f32.mrf.mxu1 }
 0x8e9   :  { %v2662_v49 = vmax.f32 %v2333_v41, 0.0  ;;  %v5228_v59 = vadd.f32 %v9037_v10, %v5227_v43  ;;  %v3770_v43 = vmax.f32 %v3413_v2, 0.0 }
 0x8ea   :  { %v4321_v5 = vpop.f32.mrf.mxu0 }
 0x8eb   :  { %v2837_v26 = vadd.f32 %v2662_v49, %v13416_v39  ;;  %5639 = vst.msk [vmem:[%s12413_s5 + $0x98] sm:$0xff] %vm5619_vm1, %v5228_v59  ;;  %v4322_v51 = vadd.f32 %v9220_v42, %v4321_v5  ;;  %2374 = vmatmul.bf16.gmra.mxu2 %v2049_v62  ;;  %v13419_v49 = vld [vmem:[#allocation80_spill] sm:$0xff]  ;;  %v1429_v59 = vadd.f32 %v9180_v31, %v13420_v25 }
 0x8ec   :  { %v3414_v41 = vpop.f32.mrf.mxu3  ;;  %v4879_v62 = vadd.f32 %v4704_v22, %v9098_v48 }
 0x8ed   :  { %v4705_v24 = vmax.f32 %v4322_v51, 0.0  ;;  %v3415_v45 = vadd.f32 %v9473_v52, %v3414_v41  ;;  %v9540_v39 = vadd.f32 %v2837_v26, %v13419_v49  ;;  %v9550_v41 = vadd.f32 %v3770_v43, %v9084_v58 }
 0x8ee   :  { %v2335_v1 = vpop.f32.mrf.mxu2 }
 0x8ef   :  { %v4880_v5 = vadd.f32 %v4705_v24, %v9101_v38  ;;  %v3771_v9 = vmax.f32 %v3415_v45, 0.0  ;;  %v3167_v35 = vpack.c.bf16 %v9540_v39, %v9536_v55  ;;  %v2336_v2 = vadd.f32 %v9274_v11, %v2335_v1  ;;  %v13422_v45 = vld [vmem:[#allocation111_spill] sm:$0xff] }
 0x8f0   :  { %v5230_v51 = vpop.f32.mrf.mxu1  ;;  %v1729_v38 = vmax.f32 %v1429_v59, 0.0 }
 0x8f1   :  { %v9553_v26 = vadd.f32 %v3771_v9, %v9088_v56  ;;  %v5231_v25 = vadd.f32 %v9037_v10, %v5230_v51  ;;  %3456 = vmatmul.bf16.gmra.mxu3 %v3167_v35  ;;  %v5052_v48 = vpack.c.bf16 %v4880_v5, %v4879_v62  ;;  %v2663_v58 = vmax.f32 %v2336_v2, 0.0 }
 0x8f2   :  { %v4324_v22 = vpop.f32.mrf.mxu0  ;;  %v9563_v56 = vadd.f32 %v1730_v17, %v13421_v23  ;;  %v9566_v49 = vadd.f32 %v1729_v38, %v13422_v45 }
 0x8f3   :  { %5640 = vst.msk [vmem:[%s12413_s5 + $0xa0] sm:$0xff] %vm5619_vm1, %v5231_v25  ;;  %5269 = vmatmul.bf16.gmra.mxu1 %v5052_v48  ;;  %v4110_v24 = vpack.c.bf16 %v9553_v26, %v9550_v41  ;;  %v4325_v59 = vadd.f32 %v9220_v42, %v4324_v22  ;;  %v2838_v5 = vadd.f32 %v2663_v58, %v9114_v28  ;;  %v13423_v22 = vld [vmem:[#allocation140_spill] sm:$0xff]  ;;  %v13424_v58 = vld [vmem:[#allocation83_spill] sm:$0xff] }
 0x8f4   :  { %v3417_v1 = vpop.f32.mrf.mxu3  ;;  %v2050_v17 = vpack.c.bf16 %v9563_v56, %v9566_v49 }
 0x8f5   :  { %4363 = vmatmul.bf16.gmra.mxu0 %v4110_v24  ;;  %v3418_v35 = vadd.f32 %v9473_v52, %v3417_v1  ;;  %v4706_v48 = vmax.f32 %v4325_v59, 0.0  ;;  %v1436_v24 = vadd.f32 %v9180_v31, %v13423_v22 }
 0x8f6   :  { %v2337_v43 = vpop.f32.mrf.mxu2 }
 0x8f7   :  { %v2338_v62 = vadd.f32 %v9274_v11, %v2337_v43  ;;  %v3772_v43 = vmax.f32 %v3418_v35, 0.0 }
 0x8f8   :  { %v5232_v9 = vpop.f32.mrf.mxu1 }
 0x8f9   :  { %v2664_v51 = vmax.f32 %v2338_v62, 0.0  ;;  %v5233_v2 = vadd.f32 %v9037_v10, %v5232_v9  ;;  %v9584_v10 = vadd.f32 %v2838_v5, %v13424_v58  ;;  %v1732_v58 = vmax.f32 %v1436_v24, 0.0 }
 0x8fa   :  { %v4326_v25 = vpop.f32.mrf.mxu0 }
 0x8fb   :  { %v2839_v38 = vadd.f32 %v2664_v51, %v9111_v61  ;;  %5641 = vst.msk [vmem:[%s12413_s5 + $0xa8] sm:$0xff] %vm5619_vm1, %v5233_v2  ;;  %v4327_v28 = vadd.f32 %v9220_v42, %v4326_v25  ;;  %2379 = vmatmul.bf16.gmra.mxu2 %v2050_v17  ;;  %v13425_v61 = vld [vmem:[#allocation84_spill] sm:$0xff]  ;;  %v13426_v51 = vld [vmem:[#allocation137_spill] sm:$0xff]  ;;  %v4881_v17 = vadd.f32 %v4706_v48, %v9146_v63  ;;  %v9606_v63 = vld [vmem:[%s12409_s4 + $0x5] ss:$0 sm:$0xff] }
 0x8fc   :  { %v3419_v1 = vpop.f32.mrf.mxu3  ;;  %v1434_v2 = vadd.f32 %v9180_v31, %v13426_v51  ;;  %v13428_v51 = vld [vmem:[#allocation113_spill] sm:$0xff] }
 0x8fd   :  { %v4707_v62 = vmax.f32 %v4327_v28, 0.0  ;;  %v3420_v59 = vadd.f32 %v9473_v52, %v3419_v1  ;;  %v9588_v9 = vadd.f32 %v2839_v38, %v13425_v61  ;;  %v9598_v1 = vadd.f32 %v3772_v43, %v9132_v6  ;;  %v13427_v43 = vld [vmem:[#allocation114_spill] sm:$0xff] }
 0x8fe   :  { %v2340_v23 = vpop.f32.mrf.mxu2  ;;  %v1731_v24 = vmax.f32 %v1434_v2, 0.0 }
 0x8ff   :  { %v4882_v25 = vadd.f32 %v4707_v62, %v9149_v19  ;;  %v3773_v22 = vmax.f32 %v3420_v59, 0.0  ;;  %v3168_v5 = vpack.c.bf16 %v9588_v9, %v9584_v10  ;;  %v2341_v35 = vadd.f32 %v9274_v11, %v2340_v23 }
 0x900   :  { %v5235_v28 = vpop.f32.mrf.mxu1  ;;  %v9616_v59 = vadd.f32 %v1732_v58, %v13427_v43  ;;  %v13431_v43 = vld [vmem:[#allocation141_spill] sm:$0xff] }
 0x901   :  { %v9601_v38 = vadd.f32 %v3773_v22, %v9136_v44  ;;  %v5236_v19 = vadd.f32 %v9606_v63, %v5235_v28  ;;  %3461 = vmatmul.bf16.gmra.mxu3 %v3168_v5  ;;  %v5053_v48 = vpack.c.bf16 %v4882_v25, %v4881_v17  ;;  %v2665_v44 = vmax.f32 %v2341_v35, 0.0 }
 0x902   :  { %v4329_v62 = vpop.f32.mrf.mxu0  ;;  %v9619_v17 = vadd.f32 %v1731_v24, %v13428_v51 }
 0x903   :  { %5642 = vst.msk [vmem:[%s12413_s5 + $0xb0] sm:$0xff] %vm5619_vm1, %v5236_v19  ;;  %5274 = vmatmul.bf16.gmra.mxu1 %v5053_v48  ;;  %v4111_v6 = vpack.c.bf16 %v9601_v38, %v9598_v1  ;;  %v4330_v2 = vadd.f32 %v9220_v42, %v4329_v62  ;;  %v2840_v22 = vadd.f32 %v2665_v44, %v9162_v40  ;;  %v13429_v62 = vld [vmem:[#allocation144_spill] sm:$0xff] }
 0x904   :  { %v3422_v23 = vpop.f32.mrf.mxu3  ;;  %v2051_v58 = vpack.c.bf16 %v9616_v59, %v9619_v17  ;;  %v1441_v44 = vadd.f32 %v9180_v31, %v13429_v62 }
 0x905   :  { %4368 = vmatmul.bf16.gmra.mxu0 %v4111_v6  ;;  %v3423_v28 = vadd.f32 %v9473_v52, %v3422_v23  ;;  %v4708_v6 = vmax.f32 %v4330_v2, 0.0  ;;  %v9637_v23 = vadd.f32 %v2840_v22, %v13342_v33 }
 0x906   :  { %v2342_v61 = vpop.f32.mrf.mxu2  ;;  %v1734_v22 = vmax.f32 %v1441_v44, 0.0 }
 0x907   :  { %v2343_v25 = vadd.f32 %v9274_v11, %v2342_v61 }
 0x908   :  { %v5237_v5 = vpop.f32.mrf.mxu1 }
 0x909   :  { %v2666_v19 = vmax.f32 %v2343_v25, 0.0  ;;  %v5238_v35 = vadd.f32 %v9606_v63, %v5237_v5  ;;  %v3774_v25 = vmax.f32 %v3423_v28, 0.0 }
 0x90a   :  { %v4331_v48 = vpop.f32.mrf.mxu0 }
 0x90b   :  { %v2841_v24 = vadd.f32 %v2666_v19, %v9159_v47  ;;  %5643 = vst.msk [vmem:[%s12413_s5 + $0xb8] sm:$0xff] %vm5619_vm1, %v5238_v35  ;;  %v4332_v40 = vadd.f32 %v9220_v42, %v4331_v48  ;;  %2384 = vmatmul.bf16.gmra.mxu2 %v2051_v58  ;;  %v13430_v47 = vld [vmem:[#allocation87_spill] sm:$0xff]  ;;  %v1439_v35 = vadd.f32 %v9180_v31, %v13431_v43 }
 0x90c   :  { %v3424_v61 = vpop.f32.mrf.mxu3  ;;  %v4883_v58 = vadd.f32 %v4708_v6, %v9199_v54 }
 0x90d   :  { %v4709_v5 = vmax.f32 %v4332_v40, 0.0  ;;  %v3425_v2 = vadd.f32 %v9473_v52, %v3424_v61  ;;  %v9641_v19 = vadd.f32 %v2841_v24, %v13430_v47  ;;  %v9651_v61 = vadd.f32 %v3774_v25, %v9185_v29  ;;  %v13432_v25 = vld [vmem:[#allocation116_spill] sm:$0xff] }
 0x90e   :  { %v2345_v51 = vpop.f32.mrf.mxu2 }
 0x90f   :  { %v4884_v48 = vadd.f32 %v4709_v5, %v9202_v30  ;;  %v3775_v62 = vmax.f32 %v3425_v2, 0.0  ;;  %v3169_v33 = vpack.c.bf16 %v9641_v19, %v9637_v23  ;;  %v2346_v28 = vadd.f32 %v9274_v11, %v2345_v51  ;;  %v13433_v2 = vld [vmem:[#allocation115_spill] sm:$0xff] }
 0x910   :  { %v5240_v40 = vpop.f32.mrf.mxu1  ;;  %v1733_v30 = vmax.f32 %v1439_v35, 0.0 }
 0x911   :  { %v9654_v24 = vadd.f32 %v3775_v62, %v9189_v4  ;;  %v5241_v43 = vadd.f32 %v9606_v63, %v5240_v40  ;;  %3466 = vmatmul.bf16.gmra.mxu3 %v3169_v33  ;;  %v5054_v54 = vpack.c.bf16 %v4884_v48, %v4883_v58  ;;  %v2667_v29 = vmax.f32 %v2346_v28, 0.0 }
 0x912   :  { %v4334_v6 = vpop.f32.mrf.mxu0  ;;  %v9664_v4 = vadd.f32 %v1734_v22, %v13432_v25  ;;  %v9667_v47 = vadd.f32 %v1733_v30, %v13433_v2 }
 0x913   :  { %5644 = vst.msk [vmem:[%s12413_s5 + $0xc0] sm:$0xff] %vm5619_vm1, %v5241_v43  ;;  %5279 = vmatmul.bf16.gmra.mxu1 %v5054_v54  ;;  %v4112_v51 = vpack.c.bf16 %v9654_v24, %v9651_v61  ;;  %v4335_v35 = vadd.f32 %v9220_v42, %v4334_v6  ;;  %v2842_v48 = vadd.f32 %v2667_v29, %v9215_v46  ;;  %v13434_v6 = vld [vmem:[#allocation148_spill] sm:$0xff] }
 0x914   :  { %v3427_v44 = vpop.f32.mrf.mxu3  ;;  %v2052_v22 = vpack.c.bf16 %v9664_v4, %v9667_v47 }
 0x915   :  { %4373 = vmatmul.bf16.gmra.mxu0 %v4112_v51  ;;  %v3428_v33 = vadd.f32 %v9473_v52, %v3427_v44  ;;  %v4710_v54 = vmax.f32 %v4335_v35, 0.0  ;;  %v1446_v51 = vadd.f32 %v9180_v31, %v13434_v6  ;;  %v9685_v29 = vadd.f32 %v2842_v48, %v13348_v21 }
 0x916   :  { %v2347_v5 = vpop.f32.mrf.mxu2 }
 0x917   :  { %v2348_v58 = vadd.f32 %v9274_v11, %v2347_v5  ;;  %v3776_v5 = vmax.f32 %v3428_v33, 0.0  ;;  %v1736_v48 = vmax.f32 %v1446_v51, 0.0 }
 0x918   :  { %v5242_v62 = vpop.f32.mrf.mxu1 }
 0x919   :  { %v2668_v40 = vmax.f32 %v2348_v58, 0.0  ;;  %v5243_v28 = vadd.f32 %v9606_v63, %v5242_v62 }
 0x91a   :  { %v4336_v43 = vpop.f32.mrf.mxu0 }
 0x91b   :  { %v2843_v30 = vadd.f32 %v2668_v40, %v9212_v57  ;;  %5645 = vst.msk [vmem:[%s12413_s5 + $0xc8] sm:$0xff] %vm5619_vm1, %v5243_v28  ;;  %v4337_v46 = vadd.f32 %v9220_v42, %v4336_v43  ;;  %2389 = vmatmul.bf16.gmra.mxu2 %v2052_v22  ;;  %v13435_v57 = vld [vmem:[#allocation91_spill] sm:$0xff]  ;;  %v13436_v40 = vld [vmem:[#allocation145_spill] sm:$0xff]  ;;  %v4885_v22 = vadd.f32 %v4710_v54, %v9252_v27 }
 0x91c   :  { %v3429_v44 = vpop.f32.mrf.mxu3  ;;  %v1444_v28 = vadd.f32 %v9180_v31, %v13436_v40 }
 0x91d   :  { %v4711_v58 = vmax.f32 %v4337_v46, 0.0  ;;  %v3430_v35 = vadd.f32 %v9473_v52, %v3429_v44  ;;  %v9689_v62 = vadd.f32 %v2843_v30, %v13435_v57  ;;  %v9699_v44 = vadd.f32 %v3776_v5, %v9238_v32  ;;  %v13437_v5 = vld [vmem:[#allocation118_spill] sm:$0xff] }
 0x91e   :  { %v2350_v25 = vpop.f32.mrf.mxu2 }
 0x91f   :  { %v4886_v43 = vadd.f32 %v4711_v58, %v9255_v37  ;;  %v3777_v6 = vmax.f32 %v3430_v35, 0.0  ;;  %v3170_v21 = vpack.c.bf16 %v9689_v62, %v9685_v29  ;;  %v2351_v33 = vadd.f32 %v9274_v11, %v2350_v25  ;;  %v13438_v35 = vld [vmem:[#allocation117_spill] sm:$0xff] }
 0x920   :  { %v5245_v46 = vpop.f32.mrf.mxu1  ;;  %v1735_v37 = vmax.f32 %v1444_v28, 0.0 }
 0x921   :  { %v9702_v30 = vadd.f32 %v3777_v6, %v9242_v7  ;;  %v5246_v57 = vadd.f32 %v9606_v63, %v5245_v46  ;;  %3471 = vmatmul.bf16.gmra.mxu3 %v3170_v21  ;;  %v5055_v27 = vpack.c.bf16 %v4886_v43, %v4885_v22  ;;  %v2669_v32 = vmax.f32 %v2351_v33, 0.0 }
 0x922   :  { %v4339_v54 = vpop.f32.mrf.mxu0  ;;  %v9712_v7 = vadd.f32 %v1736_v48, %v13437_v5  ;;  %v9715_v40 = vadd.f32 %v1735_v37, %v13438_v35 }
 0x923   :  { %5646 = vst.msk [vmem:[%s12413_s5 + $0xd0] sm:$0xff] %vm5619_vm1, %v5246_v57  ;;  %5284 = vmatmul.bf16.gmra.mxu1 %v5055_v27  ;;  %v4113_v25 = vpack.c.bf16 %v9702_v30, %v9699_v44  ;;  %v4340_v28 = vadd.f32 %v9220_v42, %v4339_v54  ;;  %v2844_v43 = vadd.f32 %v2669_v32, %v9268_v34  ;;  %v13440_v54 = vld [vmem:[#allocation152_spill] sm:$0xff] }
 0x924   :  { %v3432_v51 = vpop.f32.mrf.mxu3  ;;  %v2053_v48 = vpack.c.bf16 %v9712_v7, %v9715_v40  ;;  %v1451_v32 = vadd.f32 %v9180_v31, %v13440_v54 }
 0x925   :  { %4378 = vmatmul.bf16.gmra.mxu0 %v4113_v25  ;;  %v3433_v21 = vadd.f32 %v9473_v52, %v3432_v51  ;;  %v4712_v27 = vmax.f32 %v4340_v28, 0.0  ;;  %v13439_v25 = vld [vmem:[#allocation95_spill] sm:$0xff]  ;;  %v13441_v51 = vld [vmem:[#allocation93_spill] sm:$0xff] }
 0x926   :  { %v2352_v58 = vpop.f32.mrf.mxu2 }
 0x927   :  { %v2353_v22 = vadd.f32 %v9274_v11, %v2352_v58  ;;  %v9733_v58 = vadd.f32 %v2844_v43, %v13441_v51  ;;  %v4887_v43 = vadd.f32 %v4712_v27, %v9305_v53  ;;  %v1738_v51 = vmax.f32 %v1451_v32, 0.0 }
 0x928   :  { %v5247_v6 = vpop.f32.mrf.mxu1 }
 0x929   :  { %v2670_v46 = vmax.f32 %v2353_v22, 0.0  ;;  %v5248_v33 = vadd.f32 %v9606_v63, %v5247_v6  ;;  %13442 = vst [vmem:[#allocation6_spill] sm:$0xff] %v9733_v58  ;;  %v3778_v6 = vmax.f32 %v3433_v21, 0.0 }
 0x92a   :  { %v4341_v57 = vpop.f32.mrf.mxu0 }
 0x92b   :  { %v2845_v37 = vadd.f32 %v2670_v46, %v13439_v25  ;;  %5647 = vst.msk [vmem:[%s12413_s5 + $0xd8] sm:$0xff] %vm5619_vm1, %v5248_v33  ;;  %v4342_v34 = vadd.f32 %v9220_v42, %v4341_v57  ;;  %2394 = vmatmul.bf16.gmra.mxu2 %v2053_v48  ;;  %v13443_v46 = vld [vmem:[#allocation94_spill] sm:$0xff]  ;;  %v13445_v48 = vld [vmem:[#allocation149_spill] sm:$0xff] }
 0x92c   :  { %v3434_v22 = vpop.f32.mrf.mxu3  ;;  %v9742_v33 = vld [vmem:[%s12409_s4 + $0x1] ss:$0 sm:$0xff] }
 0x92d   :  { %v4713_v5 = vmax.f32 %v4342_v34, 0.0  ;;  %v3435_v28 = vadd.f32 %v9473_v52, %v3434_v22  ;;  %v9737_v25 = vadd.f32 %v2845_v37, %v13443_v46  ;;  %v1449_v57 = vadd.f32 %v9742_v33, %v13445_v48 }
 0x92e   :  { %v2355_v31 = vpop.f32.mrf.mxu2  ;;  %v9752_v46 = vadd.f32 %v3778_v6, %v9291_v36  ;;  %v13446_v6 = vld [vmem:[#allocation120_spill] sm:$0xff] }
 0x92f   :  { %13444 = vst [vmem:[#allocation7_spill] sm:$0xff] %v9737_v25  ;;  %v4888_v54 = vadd.f32 %v4713_v5, %v9308_v14  ;;  %v3779_v21 = vmax.f32 %v3435_v28, 0.0  ;;  %v3171_v34 = vpack.c.bf16 %v9737_v25, %v9733_v58  ;;  %v2356_v37 = vadd.f32 %v9274_v11, %v2355_v31  ;;  %v13448_v31 = vld [vmem:[#allocation119_spill] sm:$0xff] }
 0x930   :  { %v5250_v22 = vpop.f32.mrf.mxu1  ;;  %v1737_v14 = vmax.f32 %v1449_v57, 0.0 }
 0x931   :  { %v9755_v35 = vadd.f32 %v3779_v21, %v9295_v16  ;;  %v5251_v48 = vadd.f32 %v9606_v63, %v5250_v22  ;;  %3476 = vmatmul.bf16.gmra.mxu3 %v3171_v34  ;;  %v5056_v53 = vpack.c.bf16 %v4888_v54, %v4887_v43  ;;  %v2671_v36 = vmax.f32 %v2356_v37, 0.0 }
 0x932   :  { %v4344_v27 = vpop.f32.mrf.mxu0  ;;  %v9765_v16 = vadd.f32 %v1738_v51, %v13446_v6  ;;  %v9768_v43 = vadd.f32 %v1737_v14, %v13448_v31  ;;  %v13450_v6 = vld [vmem:[#allocation100_spill] sm:$0xff]  ;;  %v13455_v31 = vld [vmem:[#allocation153_spill] sm:$0xff] }
 0x933   :  { %5648 = vst.msk [vmem:[%s12413_s5 + $0xe0] sm:$0xff] %vm5619_vm1, %v5251_v48  ;;  %5289 = vmatmul.bf16.gmra.mxu1 %v5056_v53  ;;  %v4114_v5 = vpack.c.bf16 %v9755_v35, %v9752_v46  ;;  %v4345_v57 = vadd.f32 %v9220_v42, %v4344_v27  ;;  %v2846_v21 = vadd.f32 %v2671_v36, %v9321_v50  ;;  %v9785_v42 = vld [vmem:[%s12409_s4 + $0x4] ss:$0 sm:$0xff]  ;;  %v13451_v27 = vld [vmem:[#allocation156_spill] sm:$0xff] }
 0x934   :  { %v3437_v32 = vpop.f32.mrf.mxu3  ;;  %13447 = vst [vmem:[#allocation33_spill] sm:$0xff] %v9765_v16  ;;  %v2054_v51 = vpack.c.bf16 %v9765_v16, %v9768_v43  ;;  %v1456_v36 = vadd.f32 %v9742_v33, %v13451_v27  ;;  %v1454_v16 = vadd.f32 %v9742_v33, %v13455_v31 }
 0x935   :  { %4383 = vmatmul.bf16.gmra.mxu0 %v4114_v5  ;;  %13449 = vst [vmem:[#allocation34_spill] sm:$0xff] %v9768_v43  ;;  %v3438_v22 = vadd.f32 %v9473_v52, %v3437_v32  ;;  %v4714_v5 = vmax.f32 %v4345_v57, 0.0  ;;  %v13452_v32 = vld [vmem:[#allocation97_spill] sm:$0xff] }
 0x936   :  { %v2357_v28 = vpop.f32.mrf.mxu2 }
 0x937   :  { %v2358_v54 = vadd.f32 %v9274_v11, %v2357_v28  ;;  %v9791_v28 = vadd.f32 %v2846_v21, %v13452_v32  ;;  %v3780_v57 = vmax.f32 %v3438_v22, 0.0  ;;  %v1740_v32 = vmax.f32 %v1456_v36, 0.0 }
 0x938   :  { %v5252_v34 = vpop.f32.mrf.mxu1 }
 0x939   :  { %v2672_v48 = vmax.f32 %v2358_v54, 0.0  ;;  %v5253_v37 = vadd.f32 %v9606_v63, %v5252_v34 }
 0x93a   :  { %v4346_v53 = vpop.f32.mrf.mxu0 }
 0x93b   :  { %v2847_v14 = vadd.f32 %v2672_v48, %v13450_v6  ;;  %5649 = vst.msk [vmem:[%s12413_s5 + $0xe8] sm:$0xff] %vm5619_vm1, %v5253_v37  ;;  %v4347_v50 = vadd.f32 %v9785_v42, %v4346_v53  ;;  %2399 = vmatmul.bf16.gmra.mxu2 %v2054_v51  ;;  %v13453_v48 = vld [vmem:[#allocation98_spill] sm:$0xff]  ;;  %v4889_v51 = vadd.f32 %v4714_v5, %v9353_v20  ;;  %v13456_v53 = vld [vmem:[#allocation99_spill] sm:$0xff] }
 0x93c   :  { %v3439_v6 = vpop.f32.mrf.mxu3 }
 0x93d   :  { %v4715_v54 = vmax.f32 %v4347_v50, 0.0  ;;  %v3440_v34 = vadd.f32 %v9473_v52, %v3439_v6  ;;  %v9795_v37 = vadd.f32 %v2847_v14, %v13453_v48  ;;  %v13457_v6 = vld [vmem:[#allocation19_spill] sm:$0xff]  ;;  %v13458_v14 = vld [vmem:[#allocation20_spill] sm:$0xff] }
 0x93e   :  { %v2360_v43 = vpop.f32.mrf.mxu2  ;;  %v9805_v58 = vadd.f32 %v3780_v57, %v13457_v6 }
 0x93f   :  { %13454 = vst [vmem:[#allocation35_spill] sm:$0xff] %v9795_v37  ;;  %v4890_v25 = vadd.f32 %v4715_v54, %v13456_v53  ;;  %v3781_v27 = vmax.f32 %v3440_v34, 0.0  ;;  %v3172_v21 = vpack.c.bf16 %v9795_v37, %v9791_v28  ;;  %v2361_v22 = vadd.f32 %v9274_v11, %v2360_v43  ;;  %v13459_v34 = vld [vmem:[#allocation122_spill] sm:$0xff] }
 0x940   :  { %v5255_v50 = vpop.f32.mrf.mxu1  ;;  %v1739_v54 = vmax.f32 %v1454_v16, 0.0  ;;  %v9818_v53 = vadd.f32 %v1740_v32, %v13459_v34  ;;  %v13464_v37 = vld [vmem:[#allocation106_spill] sm:$0xff] }
 0x941   :  { %v9808_v48 = vadd.f32 %v3781_v27, %v13458_v14  ;;  %v5256_v31 = vadd.f32 %v9606_v63, %v5255_v50  ;;  %3481 = vmatmul.bf16.gmra.mxu3 %v3172_v21  ;;  %v5057_v20 = vpack.c.bf16 %v4890_v25, %v4889_v51  ;;  %v2673_v36 = vmax.f32 %v2361_v22, 0.0  ;;  %v13461_v21 = vld [vmem:[#allocation121_spill] sm:$0xff]  ;;  %v13463_v50 = vld [vmem:[#allocation24_spill] sm:$0xff] }
 0x942   :  { %v4349_v5 = vpop.f32.mrf.mxu0  ;;  %13460 = vst [vmem:[#allocation36_spill] sm:$0xff] %v9818_v53  ;;  %v9821_v25 = vadd.f32 %v1739_v54, %v13461_v21  ;;  %v13470_v21 = vld [vmem:[#allocation157_spill] sm:$0xff] }
 0x943   :  { %5650 = vst.msk [vmem:[%s12413_s5 + $0xf0] sm:$0xff] %vm5619_vm1, %v5256_v31  ;;  %5294 = vmatmul.bf16.gmra.mxu1 %v5057_v20  ;;  %v4115_v43 = vpack.c.bf16 %v9808_v48, %v9805_v58  ;;  %v4350_v16 = vadd.f32 %v9785_v42, %v4349_v5  ;;  %v2848_v6 = vadd.f32 %v2673_v36, %v13463_v50  ;;  %v13465_v5 = vld [vmem:[#allocation160_spill] sm:$0xff] }
 0x944   :  { %v3442_v57 = vpop.f32.mrf.mxu3  ;;  %13462 = vst [vmem:[#allocation29_spill] sm:$0xff] %v9821_v25  ;;  %v2055_v32 = vpack.c.bf16 %v9818_v53, %v9821_v25  ;;  %v1461_v36 = vadd.f32 %v9742_v33, %v13465_v5 }
 0x945   :  { %4388 = vmatmul.bf16.gmra.mxu0 %v4115_v43  ;;  %v3443_v31 = vadd.f32 %v9473_v52, %v3442_v57  ;;  %v4716_v34 = vmax.f32 %v4350_v16, 0.0  ;;  %v13466_v57 = vld [vmem:[#allocation101_spill] sm:$0xff] }
 0x946   :  { %v2362_v27 = vpop.f32.mrf.mxu2 }
 0x947   :  { %v2363_v51 = vadd.f32 %v9274_v11, %v2362_v27  ;;  %v9839_v27 = vadd.f32 %v2848_v6, %v13466_v57  ;;  %v3782_v50 = vmax.f32 %v3443_v31, 0.0  ;;  %v1742_v57 = vmax.f32 %v1461_v36, 0.0  ;;  %v9854_v31 = vld [vmem:[%s12409_s4 + $0x2] ss:$0 sm:$0xff] }
 0x948   :  { %v5257_v14 = vpop.f32.mrf.mxu1 }
 0x949   :  { %v2674_v20 = vmax.f32 %v2363_v51, 0.0  ;;  %v5258_v22 = vadd.f32 %v9606_v63, %v5257_v14  ;;  %13467 = vst [vmem:[#allocation42_spill] sm:$0xff] %v9839_v27 }
 0x94a   :  { %v4351_v43 = vpop.f32.mrf.mxu0 }
 0x94b   :  { %v2849_v54 = vadd.f32 %v2674_v20, %v13464_v37  ;;  %5651 = vst.msk [vmem:[%s12413_s5 + $0xf8] sm:$0xff] %vm5619_vm1, %v5258_v22  ;;  %v4352_v11 = vadd.f32 %v9785_v42, %v4351_v43  ;;  %2404 = vmatmul.bf16.gmra.mxu2 %v2055_v32  ;;  %v13468_v37 = vld [vmem:[#allocation102_spill] sm:$0xff]  ;;  %v1459_v22 = vadd.f32 %v9742_v33, %v13470_v21 }
 0x94c   :  { %v3444_v51 = vpop.f32.mrf.mxu3  ;;  %v4891_v32 = vadd.f32 %v4716_v34, %v9401_v8  ;;  %v13471_v43 = vld [vmem:[#allocation26_spill] sm:$0xff] }
 0x94d   :  { %v4717_v14 = vmax.f32 %v4352_v11, 0.0  ;;  %v3445_v16 = vadd.f32 %v9473_v52, %v3444_v51  ;;  %v9843_v20 = vadd.f32 %v2849_v54, %v13468_v37  ;;  %v13472_v51 = vld [vmem:[#allocation103_spill] sm:$0xff]  ;;  %v13474_v37 = vld [vmem:[#allocation25_spill] sm:$0xff]  ;;  %v1741_v36 = vmax.f32 %v1459_v22, 0.0 }
 0x94e   :  { %v2365_v53 = vpop.f32.mrf.mxu2  ;;  %v9858_v21 = vadd.f32 %v3782_v50, %v13472_v51  ;;  %v13476_v51 = vld [vmem:[#allocation124_spill] sm:$0xff] }
 0x94f   :  { %13469 = vst [vmem:[#allocation37_spill] sm:$0xff] %v9843_v20  ;;  %v4892_v25 = vadd.f32 %v4717_v14, %v13471_v43  ;;  %v3783_v5 = vmax.f32 %v3445_v16, 0.0  ;;  %v3173_v6 = vpack.c.bf16 %v9843_v20, %v9839_v27  ;;  %v2366_v54 = vadd.f32 %v9854_v31, %v2365_v53 }
 0x950   :  { %v5260_v11 = vpop.f32.mrf.mxu1  ;;  %13473 = vst [vmem:[#allocation41_spill] sm:$0xff] %v9858_v21 }
 0x951   :  { %v9861_v8 = vadd.f32 %v3783_v5, %v13474_v37  ;;  %v5261_v34 = vadd.f32 %v9606_v63, %v5260_v11  ;;  %3486 = vmatmul.bf16.gmra.mxu3 %v3173_v6  ;;  %v5058_v14 = vpack.c.bf16 %v4892_v25, %v4891_v32  ;;  %v2675_v50 = vmax.f32 %v2366_v54, 0.0  ;;  %v13478_v6 = vld [vmem:[#allocation123_spill] sm:$0xff]  ;;  %v13480_v37 = vld [vmem:[#allocation28_spill] sm:$0xff] }
 0x952   :  { %v4354_v16 = vpop.f32.mrf.mxu0  ;;  %v9871_v5 = vadd.f32 %v1742_v57, %v13476_v51  ;;  %v9874_v25 = vadd.f32 %v1741_v36, %v13478_v6 }
 0x953   :  { %13475 = vst [vmem:[#allocation39_spill] sm:$0xff] %v9861_v8  ;;  %5299 = vmatmul.bf16.gmra.mxu1 %v5058_v14  ;;  %v4116_v53 = vpack.c.bf16 %v9861_v8, %v9858_v21  ;;  %v4355_v22 = vadd.f32 %v9785_v42, %v4354_v16  ;;  %v13481_v8 = vld [vmem:[#allocation27_spill] sm:$0xff] }
 0x954   :  { %5652 = vst.msk [vmem:[%s12413_s5 + $0x100] sm:$0xff] %vm5619_vm1, %v5261_v34  ;;  %v3447_v43 = vpop.f32.mrf.mxu3  ;;  %v2850_v34 = vadd.f32 %v2675_v50, %v13480_v37  ;;  %v2056_v57 = vpack.c.bf16 %v9871_v5, %v9874_v25  ;;  %v13482_v50 = vld [vmem:[#allocation164_spill] sm:$0xff] }
 0x955   :  { %13477 = vst [vmem:[#allocation40_spill] sm:$0xff] %v9871_v5  ;;  %4393 = vmatmul.bf16.gmra.mxu0 %v4116_v53  ;;  %v3448_v20 = vadd.f32 %v9473_v52, %v3447_v43  ;;  %v4718_v51 = vmax.f32 %v4355_v22, 0.0  ;;  %v1466_v43 = vadd.f32 %v9742_v33, %v13482_v50  ;;  %v13486_v5 = vld [vmem:[#allocation161_spill] sm:$0xff] }
 0x956   :  { %v2367_v11 = vpop.f32.mrf.mxu2  ;;  %13479 = vst [vmem:[#allocation38_spill] sm:$0xff] %v9874_v25 }
 0x957   :  { %v2368_v32 = vadd.f32 %v9854_v31, %v2367_v11  ;;  %v13483_v11 = vld [vmem:[#allocation104_spill] sm:$0xff] }
 0x958   :  { %v5262_v14 = vpop.f32.mrf.mxu1 }
 0x959   :  { %v2676_v27 = vmax.f32 %v2368_v32, 0.0  ;;  %v5263_v54 = vadd.f32 %v9606_v63, %v5262_v14  ;;  %v9892_v32 = vadd.f32 %v2850_v34, %v13483_v11  ;;  %v3784_v14 = vmax.f32 %v3448_v20, 0.0 }
 0x95a   :  { %v4356_v53 = vpop.f32.mrf.mxu0  ;;  %v1744_v11 = vmax.f32 %v1466_v43, 0.0 }
 0x95b   :  { %v2851_v36 = vadd.f32 %v2676_v27, %v13481_v8  ;;  %5653 = vst.msk [vmem:[%s12413_s5 + $0x108] sm:$0xff] %vm5619_vm1, %v5263_v54  ;;  %v4357_v16 = vadd.f32 %v9785_v42, %v4356_v53  ;;  %2409 = vmatmul.bf16.gmra.mxu2 %v2056_v57  ;;  %v13484_v27 = vld [vmem:[#allocation105_spill] sm:$0xff]  ;;  %v1464_v54 = vadd.f32 %v9742_v33, %v13486_v5 }
 0x95c   :  { %v3449_v37 = vpop.f32.mrf.mxu3  ;;  %v4893_v57 = vadd.f32 %v4718_v51, %v9449_v12 }
 0x95d   :  { %v4719_v6 = vmax.f32 %v4357_v16, 0.0  ;;  %v3450_v22 = vadd.f32 %v9473_v52, %v3449_v37  ;;  %v9896_v8 = vadd.f32 %v2851_v36, %v13484_v27  ;;  %v13487_v37 = vld [vmem:[#allocation3_spill] sm:$0xff]  ;;  %v13488_v36 = vld [vmem:[#allocation30_spill] sm:$0xff] }
 0x95e   :  { %v2370_v25 = vpop.f32.mrf.mxu2  ;;  %v9906_v21 = vadd.f32 %v3784_v14, %v13487_v37  ;;  %v13489_v14 = vld [vmem:[#allocation127_spill] sm:$0xff] }
 0x95f   :  { %13485 = vst [vmem:[#allocation13_spill] sm:$0xff] %v9896_v8  ;;  %v4894_v53 = vadd.f32 %v4719_v6, %v9452_v15  ;;  %v3785_v50 = vmax.f32 %v3450_v22, 0.0  ;;  %v3174_v34 = vpack.c.bf16 %v9896_v8, %v9892_v32  ;;  %v2371_v20 = vadd.f32 %v9854_v31, %v2370_v25  ;;  %v13494_v8 = vld [vmem:[#allocation5_spill] sm:$0xff] }
 0x960   :  { %v5265_v16 = vpop.f32.mrf.mxu1  ;;  %v1743_v15 = vmax.f32 %v1464_v54, 0.0  ;;  %v9919_v22 = vadd.f32 %v1744_v11, %v13489_v14 }
 0x961   :  { %v9909_v27 = vadd.f32 %v3785_v50, %v13488_v36  ;;  %v5266_v5 = vadd.f32 %v9606_v63, %v5265_v16  ;;  %3491 = vmatmul.bf16.gmra.mxu3 %v3174_v34  ;;  %v5059_v12 = vpack.c.bf16 %v4894_v53, %v4893_v57  ;;  %v2677_v25 = vmax.f32 %v2371_v20, 0.0  ;;  %v13491_v34 = vld [vmem:[#allocation126_spill] sm:$0xff]  ;;  %v13493_v16 = vld [vmem:[#allocation31_spill] sm:$0xff] }
 0x962   :  { %v4359_v51 = vpop.f32.mrf.mxu0  ;;  %13490 = vst [vmem:[#allocation47_spill] sm:$0xff] %v9919_v22  ;;  %v9922_v57 = vadd.f32 %v1743_v15, %v13491_v34 }
 0x963   :  { %5654 = vst.msk [vmem:[%s12413_s5 + $0x110] sm:$0xff] %vm5619_vm1, %v5266_v5  ;;  %5304 = vmatmul.bf16.gmra.mxu1 %v5059_v12  ;;  %v4117_v6 = vpack.c.bf16 %v9909_v27, %v9906_v21  ;;  %v4360_v54 = vadd.f32 %v9785_v42, %v4359_v51  ;;  %v2852_v37 = vadd.f32 %v2677_v25, %v13493_v16  ;;  %v13495_v25 = vld [vmem:[#allocation168_spill] sm:$0xff] }
 0x964   :  { %v3452_v43 = vpop.f32.mrf.mxu3  ;;  %13492 = vst [vmem:[#allocation49_spill] sm:$0xff] %v9922_v57  ;;  %v2057_v11 = vpack.c.bf16 %v9919_v22, %v9922_v57  ;;  %v13498_v22 = vld [vmem:[#allocation165_spill] sm:$0xff] }
 0x965   :  { %4398 = vmatmul.bf16.gmra.mxu0 %v4117_v6  ;;  %v3453_v5 = vadd.f32 %v9473_v52, %v3452_v43  ;;  %v4720_v14 = vmax.f32 %v4360_v54, 0.0  ;;  %v1471_v43 = vadd.f32 %v9742_v33, %v13495_v25 }
 0x966   :  { %v2372_v50 = vpop.f32.mrf.mxu2 }
 0x967   :  { %v2373_v53 = vadd.f32 %v9854_v31, %v2372_v50  ;;  %v13496_v50 = vld [vmem:[#allocation107_spill] sm:$0xff] }
 0x968   :  { %v5267_v36 = vpop.f32.mrf.mxu1 }
 0x969   :  { %v2678_v12 = vmax.f32 %v2373_v53, 0.0  ;;  %v5268_v20 = vadd.f32 %v9606_v63, %v5267_v36  ;;  %v9940_v53 = vadd.f32 %v2852_v37, %v13496_v50  ;;  %v3786_v36 = vmax.f32 %v3453_v5, 0.0 }
 0x96a   :  { %v4361_v6 = vpop.f32.mrf.mxu0  ;;  %v1746_v50 = vmax.f32 %v1471_v43, 0.0  ;;  %v13499_v43 = vld [vmem:[#allocation131_spill] sm:$0xff] }
 0x96b   :  { %v2853_v15 = vadd.f32 %v2678_v12, %v13494_v8  ;;  %5655 = vst.msk [vmem:[%s12413_s5 + $0x118] sm:$0xff] %vm5619_vm1, %v5268_v20  ;;  %v4362_v51 = vadd.f32 %v9785_v42, %v4361_v6  ;;  %2414 = vmatmul.bf16.gmra.mxu2 %v2057_v11  ;;  %v13497_v8 = vld [vmem:[#allocation108_spill] sm:$0xff]  ;;  %v1469_v20 = vadd.f32 %v9742_v33, %v13498_v22 }
 0x96c   :  { %v3454_v16 = vpop.f32.mrf.mxu3  ;;  %v4895_v11 = vadd.f32 %v4720_v14, %v9502_v13 }
 0x96d   :  { %v4721_v34 = vmax.f32 %v4362_v51, 0.0  ;;  %v3455_v54 = vadd.f32 %v9473_v52, %v3454_v16  ;;  %v9944_v12 = vadd.f32 %v2853_v15, %v13497_v8  ;;  %v9954_v16 = vadd.f32 %v3786_v36, %v9488_v0 }
 0x96e   :  { %v2375_v57 = vpop.f32.mrf.mxu2 }
 0x96f   :  { %v4896_v6 = vadd.f32 %v4721_v34, %v9505_v18  ;;  %v3787_v25 = vmax.f32 %v3455_v54, 0.0  ;;  %v3175_v37 = vpack.c.bf16 %v9944_v12, %v9940_v53  ;;  %v2376_v5 = vadd.f32 %v9854_v31, %v2375_v57  ;;  %v13501_v54 = vld [vmem:[#allocation130_spill] sm:$0xff] }
 0x970   :  { %v5270_v51 = vpop.f32.mrf.mxu1  ;;  %v1745_v18 = vmax.f32 %v1469_v20, 0.0 }
 0x971   :  { %v9957_v15 = vadd.f32 %v3787_v25, %v9492_v60  ;;  %v5271_v22 = vadd.f32 %v9606_v63, %v5270_v51  ;;  %3496 = vmatmul.bf16.gmra.mxu3 %v3175_v37  ;;  %v5060_v13 = vpack.c.bf16 %v4896_v6, %v4895_v11  ;;  %v2679_v0 = vmax.f32 %v2376_v5, 0.0 }
 0x972   :  { %v4364_v14 = vpop.f32.mrf.mxu0  ;;  %v9967_v60 = vadd.f32 %v1746_v50, %v13499_v43  ;;  %v9970_v8 = vadd.f32 %v1745_v18, %v13501_v54  ;;  %v13506_v54 = vld [vmem:[#allocation169_spill] sm:$0xff] }
 0x973   :  { %5656 = vst.msk [vmem:[%s12413_s5 + $0x120] sm:$0xff] %vm5619_vm1, %v5271_v22  ;;  %5309 = vmatmul.bf16.gmra.mxu1 %v5060_v13  ;;  %v4118_v34 = vpack.c.bf16 %v9957_v15, %v9954_v16  ;;  %v4365_v20 = vadd.f32 %v9785_v42, %v4364_v14  ;;  %v2854_v6 = vadd.f32 %v2679_v0, %v9518_v3  ;;  %v13503_v14 = vld [vmem:[#allocation172_spill] sm:$0xff] }
 0x974   :  { %v3457_v57 = vpop.f32.mrf.mxu3  ;;  %13500 = vst [vmem:[#allocation52_spill] sm:$0xff] %v9967_v60  ;;  %v2058_v50 = vpack.c.bf16 %v9967_v60, %v9970_v8  ;;  %v1476_v0 = vadd.f32 %v9742_v33, %v13503_v14 }
 0x975   :  { %4403 = vmatmul.bf16.gmra.mxu0 %v4118_v34  ;;  %v3458_v37 = vadd.f32 %v9473_v52, %v3457_v57  ;;  %v4722_v13 = vmax.f32 %v4365_v20, 0.0  ;;  %v13502_v34 = vld [vmem:[#allocation32_spill] sm:$0xff]  ;;  %v13504_v57 = vld [vmem:[#allocation109_spill] sm:$0xff] }
 0x976   :  { %v2377_v36 = vpop.f32.mrf.mxu2 }
 0x977   :  { %v2378_v11 = vadd.f32 %v9854_v31, %v2377_v36  ;;  %v9988_v36 = vadd.f32 %v2854_v6, %v13504_v57  ;;  %v1748_v57 = vmax.f32 %v1476_v0, 0.0  ;;  %v13507_v0 = vld [vmem:[#allocation135_spill] sm:$0xff] }
 0x978   :  { %v5272_v25 = vpop.f32.mrf.mxu1 }
 0x979   :  { %v2680_v51 = vmax.f32 %v2378_v11, 0.0  ;;  %v5273_v5 = vadd.f32 %v9606_v63, %v5272_v25  ;;  %v3788_v25 = vmax.f32 %v3458_v37, 0.0 }
 0x97a   :  { %v4366_v22 = vpop.f32.mrf.mxu0 }
 0x97b   :  { %v2855_v18 = vadd.f32 %v2680_v51, %v13502_v34  ;;  %5657 = vst.msk [vmem:[%s12413_s5 + $0x128] sm:$0xff] %vm5619_vm1, %v5273_v5  ;;  %v4367_v3 = vadd.f32 %v9785_v42, %v4366_v22  ;;  %2419 = vmatmul.bf16.gmra.mxu2 %v2058_v50  ;;  %v13505_v51 = vld [vmem:[#allocation110_spill] sm:$0xff]  ;;  %v1474_v5 = vadd.f32 %v9742_v33, %v13506_v54 }
 0x97c   :  { %v3459_v11 = vpop.f32.mrf.mxu3  ;;  %v4897_v50 = vadd.f32 %v4722_v13, %v9550_v41 }
 0x97d   :  { %v4723_v43 = vmax.f32 %v4367_v3, 0.0  ;;  %v3460_v20 = vadd.f32 %v9473_v52, %v3459_v11  ;;  %v9992_v34 = vadd.f32 %v2855_v18, %v13505_v51  ;;  %v10002_v11 = vadd.f32 %v3788_v25, %v9536_v55 }
 0x97e   :  { %v2380_v60 = vpop.f32.mrf.mxu2 }
 0x97f   :  { %v4898_v22 = vadd.f32 %v4723_v43, %v9553_v26  ;;  %v3789_v14 = vmax.f32 %v3460_v20, 0.0  ;;  %v3176_v6 = vpack.c.bf16 %v9992_v34, %v9988_v36  ;;  %v2381_v37 = vadd.f32 %v9854_v31, %v2380_v60  ;;  %v13508_v20 = vld [vmem:[#allocation134_spill] sm:$0xff] }
 0x980   :  { %v5275_v3 = vpop.f32.mrf.mxu1  ;;  %v1747_v26 = vmax.f32 %v1474_v5, 0.0 }
 0x981   :  { %v10005_v18 = vadd.f32 %v3789_v14, %v9540_v39  ;;  %v5276_v54 = vadd.f32 %v9606_v63, %v5275_v3  ;;  %3501 = vmatmul.bf16.gmra.mxu3 %v3176_v6  ;;  %v5061_v41 = vpack.c.bf16 %v4898_v22, %v4897_v50  ;;  %v2681_v55 = vmax.f32 %v2381_v37, 0.0 }
 0x982   :  { %v4369_v13 = vpop.f32.mrf.mxu0  ;;  %v10015_v39 = vadd.f32 %v1748_v57, %v13507_v0  ;;  %v10018_v51 = vadd.f32 %v1747_v26, %v13508_v20 }
 0x983   :  { %5658 = vst.msk [vmem:[%s12413_s5 + $0x130] sm:$0xff] %vm5619_vm1, %v5276_v54  ;;  %5314 = vmatmul.bf16.gmra.mxu1 %v5061_v41  ;;  %v4119_v43 = vpack.c.bf16 %v10005_v18, %v10002_v11  ;;  %v4370_v5 = vadd.f32 %v9785_v42, %v4369_v13  ;;  %v2856_v22 = vadd.f32 %v2681_v55, %v9566_v49  ;;  %v13509_v13 = vld [vmem:[#allocation176_spill] sm:$0xff] }
 0x984   :  { %v3462_v60 = vpop.f32.mrf.mxu3  ;;  %v2059_v57 = vpack.c.bf16 %v10015_v39, %v10018_v51 }
 0x985   :  { %4408 = vmatmul.bf16.gmra.mxu0 %v4119_v43  ;;  %v3463_v6 = vadd.f32 %v9473_v52, %v3462_v60  ;;  %v4724_v41 = vmax.f32 %v4370_v5, 0.0  ;;  %v1481_v52 = vadd.f32 %v9742_v33, %v13509_v13  ;;  %v10036_v43 = vadd.f32 %v2856_v22, %v13422_v45 }
 0x986   :  { %v2382_v25 = vpop.f32.mrf.mxu2 }
 0x987   :  { %v2383_v50 = vadd.f32 %v9854_v31, %v2382_v25  ;;  %v3790_v60 = vmax.f32 %v3463_v6, 0.0  ;;  %v4899_v45 = vadd.f32 %v4724_v41, %v9598_v1 }
 0x988   :  { %v5277_v14 = vpop.f32.mrf.mxu1 }
 0x989   :  { %v2682_v3 = vmax.f32 %v2383_v50, 0.0  ;;  %v5278_v37 = vadd.f32 %v9606_v63, %v5277_v14  ;;  %v13510_v50 = vld [vmem:[#allocation112_spill] sm:$0xff] }
 0x98a   :  { %v4371_v54 = vpop.f32.mrf.mxu0 }
 0x98b   :  { %v2857_v26 = vadd.f32 %v2682_v3, %v9563_v56  ;;  %5659 = vst.msk [vmem:[%s12413_s5 + $0x138] sm:$0xff] %vm5619_vm1, %v5278_v37  ;;  %v4372_v49 = vadd.f32 %v9785_v42, %v4371_v54  ;;  %2424 = vmatmul.bf16.gmra.mxu2 %v2059_v57  ;;  %v10041_v56 = vld [vmem:[%s12409_s4 + $0x3] ss:$0 sm:$0xff]  ;;  %v13511_v3 = vld [vmem:[#allocation173_spill] sm:$0xff] }
 0x98c   :  { %v3464_v55 = vpop.f32.mrf.mxu3  ;;  %v1479_v37 = vadd.f32 %v9742_v33, %v13511_v3 }
 0x98d   :  { %v4725_v25 = vmax.f32 %v4372_v49, 0.0  ;;  %v3465_v5 = vadd.f32 %v10041_v56, %v3464_v55  ;;  %v10045_v14 = vadd.f32 %v2857_v26, %v13510_v50  ;;  %v1750_v49 = vmax.f32 %v1481_v52, 0.0 }
 0x98e   :  { %v2385_v57 = vpop.f32.mrf.mxu2  ;;  %v10055_v55 = vadd.f32 %v3790_v60, %v9584_v10 }
 0x98f   :  { %v4900_v22 = vadd.f32 %v4725_v25, %v9601_v38  ;;  %v3791_v6 = vmax.f32 %v3465_v5, 0.0  ;;  %v3177_v54 = vpack.c.bf16 %v10045_v14, %v10036_v43  ;;  %v2386_v13 = vadd.f32 %v9854_v31, %v2385_v57  ;;  %v13512_v25 = vld [vmem:[#allocation139_spill] sm:$0xff]  ;;  %v13513_v5 = vld [vmem:[#allocation138_spill] sm:$0xff] }
 0x990   :  { %v5280_v0 = vpop.f32.mrf.mxu1  ;;  %v1749_v38 = vmax.f32 %v1479_v37, 0.0 }
 0x991   :  { %v10058_v26 = vadd.f32 %v3791_v6, %v9588_v9  ;;  %v5281_v50 = vadd.f32 %v9606_v63, %v5280_v0  ;;  %3506 = vmatmul.bf16.gmra.mxu3 %v3177_v54  ;;  %v5062_v1 = vpack.c.bf16 %v4900_v22, %v4899_v45  ;;  %v2683_v10 = vmax.f32 %v2386_v13, 0.0 }
 0x992   :  { %v4374_v41 = vpop.f32.mrf.mxu0  ;;  %v10068_v9 = vadd.f32 %v1750_v49, %v13512_v25  ;;  %v10071_v3 = vadd.f32 %v1749_v38, %v13513_v5  ;;  %v13517_v25 = vld [vmem:[#allocation177_spill] sm:$0xff] }
 0x993   :  { %5660 = vst.msk [vmem:[%s12413_s5 + $0x140] sm:$0xff] %vm5619_vm1, %v5281_v50  ;;  %5319 = vmatmul.bf16.gmra.mxu1 %v5062_v1  ;;  %v4120_v52 = vpack.c.bf16 %v10058_v26, %v10055_v55  ;;  %v4375_v37 = vadd.f32 %v9785_v42, %v4374_v41  ;;  %v2858_v45 = vadd.f32 %v2683_v10, %v9619_v17  ;;  %v13514_v41 = vld [vmem:[#allocation180_spill] sm:$0xff]  ;;  %v13515_v10 = vld [vmem:[#allocation113_spill] sm:$0xff] }
 0x994   :  { %v3467_v60 = vpop.f32.mrf.mxu3  ;;  %v2060_v49 = vpack.c.bf16 %v10068_v9, %v10071_v3 }
 0x995   :  { %4413 = vmatmul.bf16.gmra.mxu0 %v4120_v52  ;;  %v3468_v6 = vadd.f32 %v10041_v56, %v3467_v60  ;;  %v4726_v1 = vmax.f32 %v4375_v37, 0.0  ;;  %v1486_v52 = vadd.f32 %v9742_v33, %v13514_v41  ;;  %v10089_v60 = vadd.f32 %v2858_v45, %v13515_v10 }
 0x996   :  { %v2387_v0 = vpop.f32.mrf.mxu2 }
 0x997   :  { %v2388_v57 = vadd.f32 %v9854_v31, %v2387_v0  ;;  %v1752_v10 = vmax.f32 %v1486_v52, 0.0 }
 0x998   :  { %v5282_v22 = vpop.f32.mrf.mxu1 }
 0x999   :  { %v2684_v54 = vmax.f32 %v2388_v57, 0.0  ;;  %v5283_v13 = vadd.f32 %v9606_v63, %v5282_v22  ;;  %v3792_v57 = vmax.f32 %v3468_v6, 0.0 }
 0x99a   :  { %v4376_v50 = vpop.f32.mrf.mxu0 }
 0x99b   :  { %v2859_v38 = vadd.f32 %v2684_v54, %v9616_v59  ;;  %5661 = vst.msk [vmem:[%s12413_s5 + $0x148] sm:$0xff] %vm5619_vm1, %v5283_v13  ;;  %v4377_v17 = vadd.f32 %v9785_v42, %v4376_v50  ;;  %2429 = vmatmul.bf16.gmra.mxu2 %v2060_v49  ;;  %v13516_v59 = vld [vmem:[#allocation114_spill] sm:$0xff]  ;;  %v1484_v13 = vadd.f32 %v9742_v33, %v13517_v25 }
 0x99c   :  { %v3469_v0 = vpop.f32.mrf.mxu3  ;;  %v4901_v49 = vadd.f32 %v4726_v1, %v9651_v61 }
 0x99d   :  { %v4727_v22 = vmax.f32 %v4377_v17, 0.0  ;;  %v3470_v37 = vadd.f32 %v10041_v56, %v3469_v0  ;;  %v10093_v54 = vadd.f32 %v2859_v38, %v13516_v59  ;;  %v10103_v0 = vadd.f32 %v3792_v57, %v9637_v23  ;;  %v13518_v57 = vld [vmem:[#allocation143_spill] sm:$0xff] }
 0x99e   :  { %v2390_v5 = vpop.f32.mrf.mxu2 }
 0x99f   :  { %v4902_v50 = vadd.f32 %v4727_v22, %v9654_v24  ;;  %v3793_v41 = vmax.f32 %v3470_v37, 0.0  ;;  %v3178_v45 = vpack.c.bf16 %v10093_v54, %v10089_v60  ;;  %v2391_v6 = vadd.f32 %v9854_v31, %v2390_v5  ;;  %v13519_v37 = vld [vmem:[#allocation142_spill] sm:$0xff] }
 0x9a0   :  { %v5285_v17 = vpop.f32.mrf.mxu1  ;;  %v1751_v24 = vmax.f32 %v1484_v13, 0.0 }
 0x9a1   :  { %v10106_v38 = vadd.f32 %v3793_v41, %v9641_v19  ;;  %v5286_v25 = vadd.f32 %v9606_v63, %v5285_v17  ;;  %3511 = vmatmul.bf16.gmra.mxu3 %v3178_v45  ;;  %v5063_v61 = vpack.c.bf16 %v4902_v50, %v4901_v49  ;;  %v2685_v23 = vmax.f32 %v2391_v6, 0.0 }
 0x9a2   :  { %v4379_v1 = vpop.f32.mrf.mxu0  ;;  %v10116_v19 = vadd.f32 %v1752_v10, %v13518_v57  ;;  %v10119_v59 = vadd.f32 %v1751_v24, %v13519_v37 }
 0x9a3   :  { %5662 = vst.msk [vmem:[%s12413_s5 + $0x150] sm:$0xff] %vm5619_vm1, %v5286_v25  ;;  %5324 = vmatmul.bf16.gmra.mxu1 %v5063_v61  ;;  %v4121_v5 = vpack.c.bf16 %v10106_v38, %v10103_v0  ;;  %v4380_v13 = vadd.f32 %v9785_v42, %v4379_v1  ;;  %v2860_v50 = vadd.f32 %v2685_v23, %v9667_v47  ;;  %v13520_v1 = vld [vmem:[#allocation184_spill] sm:$0xff] }
 0x9a4   :  { %v3472_v52 = vpop.f32.mrf.mxu3  ;;  %v2061_v10 = vpack.c.bf16 %v10116_v19, %v10119_v59 }
 0x9a5   :  { %4418 = vmatmul.bf16.gmra.mxu0 %v4121_v5  ;;  %v3473_v45 = vadd.f32 %v10041_v56, %v3472_v52  ;;  %v4728_v61 = vmax.f32 %v4380_v13, 0.0  ;;  %v1491_v5 = vadd.f32 %v9742_v33, %v13520_v1  ;;  %v10137_v23 = vadd.f32 %v2860_v50, %v13433_v2 }
 0x9a6   :  { %v2392_v22 = vpop.f32.mrf.mxu2 }
 0x9a7   :  { %v2393_v49 = vadd.f32 %v9854_v31, %v2392_v22  ;;  %v3794_v22 = vmax.f32 %v3473_v45, 0.0  ;;  %v1754_v50 = vmax.f32 %v1491_v5, 0.0 }
 0x9a8   :  { %v5287_v41 = vpop.f32.mrf.mxu1 }
 0x9a9   :  { %v2686_v17 = vmax.f32 %v2393_v49, 0.0  ;;  %v5288_v6 = vadd.f32 %v9606_v63, %v5287_v41 }
 0x9aa   :  { %v4381_v25 = vpop.f32.mrf.mxu0 }
 0x9ab   :  { %v2861_v24 = vadd.f32 %v2686_v17, %v9664_v4  ;;  %5663 = vst.msk [vmem:[%s12413_s5 + $0x158] sm:$0xff] %vm5619_vm1, %v5288_v6  ;;  %v4382_v47 = vadd.f32 %v9785_v42, %v4381_v25  ;;  %2434 = vmatmul.bf16.gmra.mxu2 %v2061_v10  ;;  %v13521_v4 = vld [vmem:[#allocation116_spill] sm:$0xff]  ;;  %v13522_v17 = vld [vmem:[#allocation181_spill] sm:$0xff]  ;;  %v4903_v10 = vadd.f32 %v4728_v61, %v9699_v44 }
 0x9ac   :  { %v3474_v52 = vpop.f32.mrf.mxu3  ;;  %v1489_v6 = vadd.f32 %v9742_v33, %v13522_v17 }
 0x9ad   :  { %v4729_v49 = vmax.f32 %v4382_v47, 0.0  ;;  %v3475_v13 = vadd.f32 %v10041_v56, %v3474_v52  ;;  %v10141_v41 = vadd.f32 %v2861_v24, %v13521_v4  ;;  %v10151_v52 = vadd.f32 %v3794_v22, %v9685_v29  ;;  %v13523_v22 = vld [vmem:[#allocation147_spill] sm:$0xff] }
 0x9ae   :  { %v2395_v57 = vpop.f32.mrf.mxu2 }
 0x9af   :  { %v4904_v25 = vadd.f32 %v4729_v49, %v9702_v30  ;;  %v3795_v1 = vmax.f32 %v3475_v13, 0.0  ;;  %v3179_v2 = vpack.c.bf16 %v10141_v41, %v10137_v23  ;;  %v2396_v45 = vadd.f32 %v9854_v31, %v2395_v57  ;;  %v13525_v49 = vld [vmem:[#allocation146_spill] sm:$0xff] }
 0x9b0   :  { %v5290_v47 = vpop.f32.mrf.mxu1  ;;  %v1753_v30 = vmax.f32 %v1489_v6, 0.0 }
 0x9b1   :  { %v10154_v24 = vadd.f32 %v3795_v1, %v9689_v62  ;;  %v5291_v4 = vadd.f32 %v9606_v63, %v5290_v47  ;;  %3516 = vmatmul.bf16.gmra.mxu3 %v3179_v2  ;;  %v5064_v44 = vpack.c.bf16 %v4904_v25, %v4903_v10  ;;  %v2687_v29 = vmax.f32 %v2396_v45, 0.0 }
 0x9b2   :  { %v4384_v61 = vpop.f32.mrf.mxu0  ;;  %v10164_v62 = vadd.f32 %v1754_v50, %v13523_v22  ;;  %v10167_v13 = vadd.f32 %v1753_v30, %v13525_v49  ;;  %v10176_v50 = vld [vmem:[%s12409_s4 + $0x5] ss:$0 sm:$0xff]  ;;  %v13526_v30 = vld [vmem:[#allocation188_spill] sm:$0xff]  ;;  %v13530_v22 = vld [vmem:[#allocation185_spill] sm:$0xff] }
 0x9b3   :  { %5664 = vst.msk [vmem:[%s12413_s5 + $0x160] sm:$0xff] %vm5619_vm1, %v5291_v4  ;;  %5329 = vmatmul.bf16.gmra.mxu1 %v5064_v44  ;;  %v4122_v57 = vpack.c.bf16 %v10154_v24, %v10151_v52  ;;  %v4385_v17 = vadd.f32 %v9785_v42, %v4384_v61  ;;  %v2862_v10 = vadd.f32 %v2687_v29, %v9715_v40  ;;  %v13527_v29 = vld [vmem:[#allocation117_spill] sm:$0xff] }
 0x9b4   :  { %v3477_v5 = vpop.f32.mrf.mxu3  ;;  %13524 = vst [vmem:[#allocation56_spill] sm:$0xff] %v10164_v62  ;;  %v2062_v47 = vpack.c.bf16 %v10164_v62, %v10167_v13 }
 0x9b5   :  { %4423 = vmatmul.bf16.gmra.mxu0 %v4122_v57  ;;  %v3478_v1 = vadd.f32 %v10041_v56, %v3477_v5  ;;  %v4730_v44 = vmax.f32 %v4385_v17, 0.0  ;;  %v1496_v57 = vadd.f32 %v9742_v33, %v13526_v30  ;;  %v10190_v5 = vadd.f32 %v2862_v10, %v13527_v29 }
 0x9b6   :  { %v2397_v63 = vpop.f32.mrf.mxu2 }
 0x9b7   :  { %v2398_v6 = vadd.f32 %v9854_v31, %v2397_v63  ;;  %v1756_v29 = vmax.f32 %v1496_v57, 0.0 }
 0x9b8   :  { %v5292_v25 = vpop.f32.mrf.mxu1 }
 0x9b9   :  { %v2688_v2 = vmax.f32 %v2398_v6, 0.0  ;;  %v5293_v45 = vadd.f32 %v10176_v50, %v5292_v25  ;;  %v3796_v6 = vmax.f32 %v3478_v1, 0.0 }
 0x9ba   :  { %v4386_v4 = vpop.f32.mrf.mxu0 }
 0x9bb   :  { %v2863_v61 = vadd.f32 %v2688_v2, %v9712_v7  ;;  %5665 = vst.msk [vmem:[%s12413_s5 + $0x168] sm:$0xff] %vm5619_vm1, %v5293_v45  ;;  %v4387_v40 = vadd.f32 %v9785_v42, %v4386_v4  ;;  %2439 = vmatmul.bf16.gmra.mxu2 %v2062_v47  ;;  %v13528_v7 = vld [vmem:[#allocation118_spill] sm:$0xff]  ;;  %v1494_v45 = vadd.f32 %v9742_v33, %v13530_v22 }
 0x9bc   :  { %v3479_v63 = vpop.f32.mrf.mxu3  ;;  %v4905_v47 = vadd.f32 %v4730_v44, %v9752_v46 }
 0x9bd   :  { %v4731_v25 = vmax.f32 %v4387_v40, 0.0  ;;  %v3480_v17 = vadd.f32 %v10041_v56, %v3479_v63  ;;  %v10194_v2 = vadd.f32 %v2863_v61, %v13528_v7  ;;  %v13531_v63 = vld [vmem:[#allocation6_spill] sm:$0xff]  ;;  %v13532_v61 = vld [vmem:[#allocation7_spill] sm:$0xff] }
 0x9be   :  { %v2400_v49 = vpop.f32.mrf.mxu2  ;;  %v10204_v62 = vadd.f32 %v3796_v6, %v13531_v63 }
 0x9bf   :  { %13529 = vst [vmem:[#allocation43_spill] sm:$0xff] %v10194_v2  ;;  %v4906_v4 = vadd.f32 %v4731_v25, %v9755_v35  ;;  %v3797_v30 = vmax.f32 %v3480_v17, 0.0  ;;  %v3180_v10 = vpack.c.bf16 %v10194_v2, %v10190_v5  ;;  %v2401_v1 = vadd.f32 %v9854_v31, %v2400_v49  ;;  %v13533_v25 = vld [vmem:[#allocation151_spill] sm:$0xff]  ;;  %v13538_v2 = vld [vmem:[#allocation33_spill] sm:$0xff] }
 0x9c0   :  { %v5295_v40 = vpop.f32.mrf.mxu1  ;;  %v1755_v35 = vmax.f32 %v1494_v45, 0.0  ;;  %v10217_v17 = vadd.f32 %v1756_v29, %v13533_v25 }
 0x9c1   :  { %v10207_v7 = vadd.f32 %v3797_v30, %v13532_v61  ;;  %v5296_v22 = vadd.f32 %v10176_v50, %v5295_v40  ;;  %3521 = vmatmul.bf16.gmra.mxu3 %v3180_v10  ;;  %v5065_v46 = vpack.c.bf16 %v4906_v4, %v4905_v47  ;;  %v2689_v57 = vmax.f32 %v2401_v1, 0.0  ;;  %v13535_v10 = vld [vmem:[#allocation150_spill] sm:$0xff] }
 0x9c2   :  { %v4389_v44 = vpop.f32.mrf.mxu0  ;;  %13534 = vst [vmem:[#allocation44_spill] sm:$0xff] %v10217_v17  ;;  %v10220_v47 = vadd.f32 %v1755_v35, %v13535_v10  ;;  %v13537_v40 = vld [vmem:[#allocation34_spill] sm:$0xff] }
 0x9c3   :  { %5666 = vst.msk [vmem:[%s12413_s5 + $0x170] sm:$0xff] %vm5619_vm1, %v5296_v22  ;;  %5334 = vmatmul.bf16.gmra.mxu1 %v5065_v46  ;;  %v4123_v49 = vpack.c.bf16 %v10207_v7, %v10204_v62  ;;  %v4390_v45 = vadd.f32 %v9785_v42, %v4389_v44  ;;  %v2864_v63 = vadd.f32 %v2689_v57, %v13537_v40  ;;  %v13539_v57 = vld [vmem:[#allocation192_spill] sm:$0xff] }
 0x9c4   :  { %v3482_v6 = vpop.f32.mrf.mxu3  ;;  %13536 = vst [vmem:[#allocation45_spill] sm:$0xff] %v10220_v47  ;;  %v2063_v29 = vpack.c.bf16 %v10217_v17, %v10220_v47  ;;  %v13544_v17 = vld [vmem:[#allocation189_spill] sm:$0xff] }
 0x9c5   :  { %4428 = vmatmul.bf16.gmra.mxu0 %v4123_v49  ;;  %v3483_v22 = vadd.f32 %v10041_v56, %v3482_v6  ;;  %v4732_v25 = vmax.f32 %v4390_v45, 0.0  ;;  %v1501_v6 = vadd.f32 %v9742_v33, %v13539_v57 }
 0x9c6   :  { %v2402_v30 = vpop.f32.mrf.mxu2 }
 0x9c7   :  { %v2403_v4 = vadd.f32 %v9854_v31, %v2402_v30  ;;  %v13540_v30 = vld [vmem:[#allocation119_spill] sm:$0xff] }
 0x9c8   :  { %v5297_v61 = vpop.f32.mrf.mxu1 }
 0x9c9   :  { %v2690_v46 = vmax.f32 %v2403_v4, 0.0  ;;  %v5298_v1 = vadd.f32 %v10176_v50, %v5297_v61  ;;  %v10238_v4 = vadd.f32 %v2864_v63, %v13540_v30  ;;  %v3798_v61 = vmax.f32 %v3483_v22, 0.0 }
 0x9ca   :  { %v4391_v49 = vpop.f32.mrf.mxu0  ;;  %v1758_v30 = vmax.f32 %v1501_v6, 0.0  ;;  %v13548_v6 = vld [vmem:[#allocation155_spill] sm:$0xff] }
 0x9cb   :  { %v2865_v35 = vadd.f32 %v2690_v46, %v13538_v2  ;;  %5667 = vst.msk [vmem:[%s12413_s5 + $0x178] sm:$0xff] %vm5619_vm1, %v5298_v1  ;;  %v4392_v44 = vadd.f32 %v9785_v42, %v4391_v49  ;;  %2444 = vmatmul.bf16.gmra.mxu2 %v2063_v29  ;;  %v13542_v2 = vld [vmem:[#allocation120_spill] sm:$0xff]  ;;  %v1499_v1 = vadd.f32 %v9742_v33, %v13544_v17 }
 0x9cc   :  { %13541 = vst [vmem:[#allocation59_spill] sm:$0xff] %v10238_v4  ;;  %v3484_v40 = vpop.f32.mrf.mxu3  ;;  %v4907_v29 = vadd.f32 %v4732_v25, %v9805_v58 }
 0x9cd   :  { %v4733_v10 = vmax.f32 %v4392_v44, 0.0  ;;  %v3485_v45 = vadd.f32 %v10041_v56, %v3484_v40  ;;  %v10242_v46 = vadd.f32 %v2865_v35, %v13542_v2  ;;  %v10252_v40 = vadd.f32 %v3798_v61, %v9791_v28  ;;  %v13546_v35 = vld [vmem:[#allocation35_spill] sm:$0xff] }
 0x9ce   :  { %v2405_v47 = vpop.f32.mrf.mxu2  ;;  %v10265_v61 = vadd.f32 %v1758_v30, %v13548_v6 }
 0x9cf   :  { %13543 = vst [vmem:[#allocation23_spill] sm:$0xff] %v10242_v46  ;;  %v4908_v49 = vadd.f32 %v4733_v10, %v9808_v48  ;;  %v3799_v57 = vmax.f32 %v3485_v45, 0.0  ;;  %v3181_v63 = vpack.c.bf16 %v10242_v46, %v10238_v4  ;;  %v2406_v22 = vadd.f32 %v9854_v31, %v2405_v47  ;;  %v13553_v46 = vld [vmem:[#allocation36_spill] sm:$0xff]  ;;  %v13559_v4 = vld [vmem:[#allocation39_spill] sm:$0xff] }
 0x9d0   :  { %v5300_v44 = vpop.f32.mrf.mxu1  ;;  %13545 = vst [vmem:[#allocation53_spill] sm:$0xff] %v10252_v40  ;;  %v1757_v48 = vmax.f32 %v1499_v1, 0.0 }
 0x9d1   :  { %v10255_v2 = vadd.f32 %v3799_v57, %v13546_v35  ;;  %v5301_v17 = vadd.f32 %v10176_v50, %v5300_v44  ;;  %3526 = vmatmul.bf16.gmra.mxu3 %v3181_v63  ;;  %v5066_v58 = vpack.c.bf16 %v4908_v49, %v4907_v29  ;;  %v2691_v28 = vmax.f32 %v2406_v22, 0.0  ;;  %13549 = vst [vmem:[#allocation64_spill] sm:$0xff] %v10265_v61  ;;  %v13550_v57 = vld [vmem:[#allocation154_spill] sm:$0xff]  ;;  %v13552_v63 = vld [vmem:[#allocation29_spill] sm:$0xff] }
 0x9d2   :  { %v4394_v25 = vpop.f32.mrf.mxu0  ;;  %v10268_v29 = vadd.f32 %v1757_v48, %v13550_v57 }
 0x9d3   :  { %13547 = vst [vmem:[#allocation60_spill] sm:$0xff] %v10255_v2  ;;  %5339 = vmatmul.bf16.gmra.mxu1 %v5066_v58  ;;  %v4124_v10 = vpack.c.bf16 %v10255_v2, %v10252_v40  ;;  %v4395_v1 = vadd.f32 %v9785_v42, %v4394_v25  ;;  %v2866_v44 = vadd.f32 %v2691_v28, %v13552_v63  ;;  %v13554_v28 = vld [vmem:[#allocation196_spill] sm:$0xff] }
 0x9d4   :  { %5668 = vst.msk [vmem:[%s12413_s5 + $0x180] sm:$0xff] %vm5619_vm1, %v5301_v17  ;;  %v3487_v47 = vpop.f32.mrf.mxu3  ;;  %v2064_v30 = vpack.c.bf16 %v10265_v61, %v10268_v29  ;;  %v13557_v61 = vld [vmem:[#allocation193_spill] sm:$0xff] }
 0x9d5   :  { %4433 = vmatmul.bf16.gmra.mxu0 %v4124_v10  ;;  %13551 = vst [vmem:[#allocation46_spill] sm:$0xff] %v10268_v29  ;;  %v3488_v17 = vadd.f32 %v10041_v56, %v3487_v47  ;;  %v4734_v6 = vmax.f32 %v4395_v1, 0.0  ;;  %v1506_v47 = vadd.f32 %v9742_v33, %v13554_v28 }
 0x9d6   :  { %v2407_v45 = vpop.f32.mrf.mxu2 }
 0x9d7   :  { %v2408_v49 = vadd.f32 %v9854_v31, %v2407_v45  ;;  %v13555_v45 = vld [vmem:[#allocation121_spill] sm:$0xff] }
 0x9d8   :  { %v5302_v35 = vpop.f32.mrf.mxu1 }
 0x9d9   :  { %v2692_v58 = vmax.f32 %v2408_v49, 0.0  ;;  %v5303_v22 = vadd.f32 %v10176_v50, %v5302_v35  ;;  %v10286_v49 = vadd.f32 %v2866_v44, %v13555_v45  ;;  %v3800_v35 = vmax.f32 %v3488_v17, 0.0 }
 0x9da   :  { %v4396_v10 = vpop.f32.mrf.mxu0  ;;  %v1760_v45 = vmax.f32 %v1506_v47, 0.0 }
 0x9db   :  { %v2867_v48 = vadd.f32 %v2692_v58, %v13553_v46  ;;  %5669 = vst.msk [vmem:[%s12413_s5 + $0x188] sm:$0xff] %vm5619_vm1, %v5303_v22  ;;  %v4397_v25 = vadd.f32 %v9785_v42, %v4396_v10  ;;  %2449 = vmatmul.bf16.gmra.mxu2 %v2064_v30  ;;  %v13556_v46 = vld [vmem:[#allocation122_spill] sm:$0xff]  ;;  %v1504_v22 = vadd.f32 %v9742_v33, %v13557_v61  ;;  %v13558_v10 = vld [vmem:[#allocation41_spill] sm:$0xff] }
 0x9dc   :  { %v3489_v63 = vpop.f32.mrf.mxu3  ;;  %v4909_v30 = vadd.f32 %v4734_v6, %v13558_v10 }
 0x9dd   :  { %v4735_v57 = vmax.f32 %v4397_v25, 0.0  ;;  %v3490_v1 = vadd.f32 %v10041_v56, %v3489_v63  ;;  %v10290_v58 = vadd.f32 %v2867_v48, %v13556_v46  ;;  %v13560_v63 = vld [vmem:[#allocation42_spill] sm:$0xff]  ;;  %v13561_v48 = vld [vmem:[#allocation37_spill] sm:$0xff] }
 0x9de   :  { %v2410_v29 = vpop.f32.mrf.mxu2  ;;  %v10300_v40 = vadd.f32 %v3800_v35, %v13560_v63  ;;  %v13562_v35 = vld [vmem:[#allocation159_spill] sm:$0xff] }
 0x9df   :  { %v4910_v2 = vadd.f32 %v4735_v57, %v13559_v4  ;;  %v3801_v28 = vmax.f32 %v3490_v1, 0.0  ;;  %v3182_v44 = vpack.c.bf16 %v10290_v58, %v10286_v49  ;;  %v2411_v17 = vadd.f32 %v9854_v31, %v2410_v29 }
 0x9e0   :  { %v5305_v25 = vpop.f32.mrf.mxu1  ;;  %v1759_v4 = vmax.f32 %v1504_v22, 0.0  ;;  %v10313_v1 = vadd.f32 %v1760_v45, %v13562_v35  ;;  %v13567_v35 = vld [vmem:[#allocation40_spill] sm:$0xff] }
 0x9e1   :  { %v10303_v46 = vadd.f32 %v3801_v28, %v13561_v48  ;;  %v5306_v33 = vadd.f32 %v10176_v50, %v5305_v25  ;;  %3531 = vmatmul.bf16.gmra.mxu3 %v3182_v44  ;;  %v5067_v6 = vpack.c.bf16 %v4910_v2, %v4909_v30  ;;  %v2693_v29 = vmax.f32 %v2411_v17, 0.0  ;;  %v13564_v28 = vld [vmem:[#allocation158_spill] sm:$0xff] }
 0x9e2   :  { %v4399_v61 = vpop.f32.mrf.mxu0  ;;  %13563 = vst [vmem:[#allocation48_spill] sm:$0xff] %v10313_v1  ;;  %v10316_v2 = vadd.f32 %v1759_v4, %v13564_v28  ;;  %v13566_v44 = vld [vmem:[#allocation38_spill] sm:$0xff] }
 0x9e3   :  { %5670 = vst.msk [vmem:[%s12413_s5 + $0x190] sm:$0xff] %vm5619_vm1, %v5306_v33  ;;  %5344 = vmatmul.bf16.gmra.mxu1 %v5067_v6  ;;  %v4125_v57 = vpack.c.bf16 %v10303_v46, %v10300_v40  ;;  %v4400_v22 = vadd.f32 %v9785_v42, %v4399_v61  ;;  %v2868_v25 = vadd.f32 %v2693_v29, %v13566_v44  ;;  %v10334_v29 = vld [vmem:[%s12409_s4 + $0x1] ss:$0 sm:$0xff] }
 0x9e4   :  { %v3492_v47 = vpop.f32.mrf.mxu3  ;;  %13565 = vst [vmem:[#allocation63_spill] sm:$0xff] %v10316_v2  ;;  %v2065_v45 = vpack.c.bf16 %v10313_v1, %v10316_v2 }
 0x9e5   :  { %4438 = vmatmul.bf16.gmra.mxu0 %v4125_v57  ;;  %v3493_v48 = vadd.f32 %v10041_v56, %v3492_v47  ;;  %v4736_v57 = vmax.f32 %v4400_v22, 0.0  ;;  %v13568_v47 = vld [vmem:[#allocation200_spill] sm:$0xff] }
 0x9e6   :  { %v2412_v10 = vpop.f32.mrf.mxu2 }
 0x9e7   :  { %v2413_v30 = vadd.f32 %v9854_v31, %v2412_v10  ;;  %v1511_v10 = vadd.f32 %v10334_v29, %v13568_v47  ;;  %v3802_v44 = vmax.f32 %v3493_v48, 0.0  ;;  %v4911_v1 = vadd.f32 %v4736_v57, %v9906_v21 }
 0x9e8   :  { %v5307_v63 = vpop.f32.mrf.mxu1 }
 0x9e9   :  { %v2694_v33 = vmax.f32 %v2413_v30, 0.0  ;;  %v5308_v17 = vadd.f32 %v10176_v50, %v5307_v63  ;;  %v13569_v30 = vld [vmem:[#allocation123_spill] sm:$0xff] }
 0x9ea   :  { %v4401_v6 = vpop.f32.mrf.mxu0  ;;  %v10339_v22 = vadd.f32 %v2868_v25, %v13569_v30  ;;  %v1762_v30 = vmax.f32 %v1511_v10, 0.0 }
 0x9eb   :  { %v2869_v4 = vadd.f32 %v2694_v33, %v13567_v35  ;;  %5671 = vst.msk [vmem:[%s12413_s5 + $0x198] sm:$0xff] %vm5619_vm1, %v5308_v17  ;;  %v4402_v61 = vadd.f32 %v9785_v42, %v4401_v6  ;;  %2454 = vmatmul.bf16.gmra.mxu2 %v2065_v45  ;;  %v13571_v17 = vld [vmem:[#allocation124_spill] sm:$0xff]  ;;  %v13573_v42 = vld [vmem:[#allocation197_spill] sm:$0xff] }
 0x9ec   :  { %13570 = vst [vmem:[#allocation70_spill] sm:$0xff] %v10339_v22  ;;  %v3494_v35 = vpop.f32.mrf.mxu3  ;;  %v1509_v45 = vadd.f32 %v10334_v29, %v13573_v42 }
 0x9ed   :  { %v4737_v63 = vmax.f32 %v4402_v61, 0.0  ;;  %v3495_v33 = vadd.f32 %v10041_v56, %v3494_v35  ;;  %v10343_v28 = vadd.f32 %v2869_v4, %v13571_v17  ;;  %v10353_v35 = vadd.f32 %v3802_v44, %v9892_v32  ;;  %v13574_v4 = vld [vmem:[#allocation13_spill] sm:$0xff] }
 0x9ee   :  { %v2415_v6 = vpop.f32.mrf.mxu2 }
 0x9ef   :  { %13572 = vst [vmem:[#allocation50_spill] sm:$0xff] %v10343_v28  ;;  %v4912_v2 = vadd.f32 %v4737_v63, %v9909_v27  ;;  %v3803_v47 = vmax.f32 %v3495_v33, 0.0  ;;  %v3183_v25 = vpack.c.bf16 %v10343_v28, %v10339_v22  ;;  %v2416_v48 = vadd.f32 %v9854_v31, %v2415_v6  ;;  %v13575_v63 = vld [vmem:[#allocation163_spill] sm:$0xff] }
 0x9f0   :  { %v5310_v61 = vpop.f32.mrf.mxu1  ;;  %v1761_v27 = vmax.f32 %v1509_v45, 0.0  ;;  %v10366_v33 = vadd.f32 %v1762_v30, %v13575_v63 }
 0x9f1   :  { %v10356_v17 = vadd.f32 %v3803_v47, %v13574_v4  ;;  %v5311_v42 = vadd.f32 %v10176_v50, %v5310_v61  ;;  %3536 = vmatmul.bf16.gmra.mxu3 %v3183_v25  ;;  %v5068_v21 = vpack.c.bf16 %v4912_v2, %v4911_v1  ;;  %v2695_v32 = vmax.f32 %v2416_v48, 0.0  ;;  %v13577_v47 = vld [vmem:[#allocation162_spill] sm:$0xff]  ;;  %v13579_v61 = vld [vmem:[#allocation49_spill] sm:$0xff] }
 0x9f2   :  { %v4404_v57 = vpop.f32.mrf.mxu0  ;;  %13576 = vst [vmem:[#allocation51_spill] sm:$0xff] %v10366_v33  ;;  %v10369_v1 = vadd.f32 %v1761_v27, %v13577_v47  ;;  %v10374_v2 = vld [vmem:[%s12409_s4 + $0x4] ss:$0 sm:$0xff]  ;;  %v13580_v47 = vld [vmem:[#allocation47_spill] sm:$0xff] }
 0x9f3   :  { %5672 = vst.msk [vmem:[%s12413_s5 + $0x1a0] sm:$0xff] %vm5619_vm1, %v5311_v42  ;;  %5349 = vmatmul.bf16.gmra.mxu1 %v5068_v21  ;;  %v4126_v10 = vpack.c.bf16 %v10356_v17, %v10353_v35  ;;  %v4405_v45 = vadd.f32 %v10374_v2, %v4404_v57  ;;  %v2870_v48 = vadd.f32 %v2695_v32, %v13579_v61  ;;  %v13581_v32 = vld [vmem:[#allocation204_spill] sm:$0xff] }
 0x9f4   :  { %v3497_v44 = vpop.f32.mrf.mxu3  ;;  %13578 = vst [vmem:[#allocation67_spill] sm:$0xff] %v10369_v1  ;;  %v2066_v27 = vpack.c.bf16 %v10366_v33, %v10369_v1  ;;  %v13584_v1 = vld [vmem:[#allocation201_spill] sm:$0xff] }
 0x9f5   :  { %4443 = vmatmul.bf16.gmra.mxu0 %v4126_v10  ;;  %v3498_v30 = vadd.f32 %v10041_v56, %v3497_v44  ;;  %v4738_v63 = vmax.f32 %v4405_v45, 0.0  ;;  %v1516_v44 = vadd.f32 %v10334_v29, %v13581_v32 }
 0x9f6   :  { %v2417_v6 = vpop.f32.mrf.mxu2 }
 0x9f7   :  { %v2418_v25 = vadd.f32 %v9854_v31, %v2417_v6  ;;  %v13582_v6 = vld [vmem:[#allocation126_spill] sm:$0xff] }
 0x9f8   :  { %v5312_v4 = vpop.f32.mrf.mxu1 }
 0x9f9   :  { %v2696_v42 = vmax.f32 %v2418_v25, 0.0  ;;  %v5313_v21 = vadd.f32 %v10176_v50, %v5312_v4  ;;  %v10392_v25 = vadd.f32 %v2870_v48, %v13582_v6  ;;  %v3804_v4 = vmax.f32 %v3498_v30, 0.0 }
 0x9fa   :  { %v4406_v10 = vpop.f32.mrf.mxu0  ;;  %v1764_v6 = vmax.f32 %v1516_v44, 0.0 }
 0x9fb   :  { %v2871_v28 = vadd.f32 %v2696_v42, %v13580_v47  ;;  %5673 = vst.msk [vmem:[%s12413_s5 + $0x1a8] sm:$0xff] %vm5619_vm1, %v5313_v21  ;;  %v4407_v57 = vadd.f32 %v10374_v2, %v4406_v10  ;;  %2459 = vmatmul.bf16.gmra.mxu2 %v2066_v27  ;;  %v13583_v47 = vld [vmem:[#allocation127_spill] sm:$0xff]  ;;  %v1514_v21 = vadd.f32 %v10334_v29, %v13584_v1 }
 0x9fc   :  { %v3499_v61 = vpop.f32.mrf.mxu3  ;;  %v4913_v27 = vadd.f32 %v4738_v63, %v9954_v16 }
 0x9fd   :  { %v4739_v33 = vmax.f32 %v4407_v57, 0.0  ;;  %v3500_v45 = vadd.f32 %v10041_v56, %v3499_v61  ;;  %v10396_v42 = vadd.f32 %v2871_v28, %v13583_v47  ;;  %v10406_v61 = vadd.f32 %v3804_v4, %v9940_v53  ;;  %v13587_v4 = vld [vmem:[#allocation166_spill] sm:$0xff] }
 0x9fe   :  { %v2420_v22 = vpop.f32.mrf.mxu2 }
 0x9ff   :  { %v4914_v10 = vadd.f32 %v4739_v33, %v9957_v15  ;;  %v3805_v32 = vmax.f32 %v3500_v45, 0.0  ;;  %v3184_v48 = vpack.c.bf16 %v10396_v42, %v10392_v25  ;;  %v2421_v30 = vadd.f32 %v9854_v31, %v2420_v22  ;;  %v13585_v33 = vld [vmem:[#allocation167_spill] sm:$0xff] }
 0xa00   :  { %v5315_v57 = vpop.f32.mrf.mxu1  ;;  %v1763_v15 = vmax.f32 %v1514_v21, 0.0  ;;  %v10428_v21 = vld [vmem:[%s12409_s4 + $0x2] ss:$0 sm:$0xff] }
 0xa01   :  { %v10409_v28 = vadd.f32 %v3805_v32, %v9944_v12  ;;  %v5316_v1 = vadd.f32 %v10176_v50, %v5315_v57  ;;  %3541 = vmatmul.bf16.gmra.mxu3 %v3184_v48  ;;  %v5069_v16 = vpack.c.bf16 %v4914_v10, %v4913_v27  ;;  %v2697_v53 = vmax.f32 %v2421_v30, 0.0 }
 0xa02   :  { %v4409_v63 = vpop.f32.mrf.mxu0  ;;  %v10419_v12 = vadd.f32 %v1764_v6, %v13585_v33  ;;  %v10422_v45 = vadd.f32 %v1763_v15, %v13587_v4  ;;  %v13592_v4 = vld [vmem:[#allocation205_spill] sm:$0xff] }
 0xa03   :  { %5674 = vst.msk [vmem:[%s12413_s5 + $0x1b0] sm:$0xff] %vm5619_vm1, %v5316_v1  ;;  %5354 = vmatmul.bf16.gmra.mxu1 %v5069_v16  ;;  %v4127_v31 = vpack.c.bf16 %v10409_v28, %v10406_v61  ;;  %v4410_v47 = vadd.f32 %v10374_v2, %v4409_v63  ;;  %v2872_v10 = vadd.f32 %v2697_v53, %v9970_v8  ;;  %v13588_v63 = vld [vmem:[#allocation52_spill] sm:$0xff] }
 0xa04   :  { %v3502_v22 = vpop.f32.mrf.mxu3  ;;  %13586 = vst [vmem:[#allocation86_spill] sm:$0xff] %v10419_v12  ;;  %v2067_v57 = vpack.c.bf16 %v10419_v12, %v10422_v45 }
 0xa05   :  { %4448 = vmatmul.bf16.gmra.mxu0 %v4127_v31  ;;  %v3503_v48 = vadd.f32 %v10041_v56, %v3502_v22  ;;  %v4740_v16 = vmax.f32 %v4410_v47, 0.0  ;;  %v13589_v31 = vld [vmem:[#allocation208_spill] sm:$0xff]  ;;  %v13590_v22 = vld [vmem:[#allocation130_spill] sm:$0xff] }
 0xa06   :  { %v2422_v44 = vpop.f32.mrf.mxu2  ;;  %v1521_v53 = vadd.f32 %v10334_v29, %v13589_v31 }
 0xa07   :  { %v2423_v27 = vadd.f32 %v10428_v21, %v2422_v44  ;;  %v10445_v44 = vadd.f32 %v2872_v10, %v13590_v22 }
 0xa08   :  { %v5317_v32 = vpop.f32.mrf.mxu1  ;;  %v1766_v22 = vmax.f32 %v1521_v53, 0.0  ;;  %v13593_v53 = vld [vmem:[#allocation171_spill] sm:$0xff] }
 0xa09   :  { %v2698_v6 = vmax.f32 %v2423_v27, 0.0  ;;  %v5318_v30 = vadd.f32 %v10176_v50, %v5317_v32  ;;  %v3806_v32 = vmax.f32 %v3503_v48, 0.0 }
 0xa0a   :  { %v4411_v1 = vpop.f32.mrf.mxu0 }
 0xa0b   :  { %v2873_v15 = vadd.f32 %v2698_v6, %v13588_v63  ;;  %5675 = vst.msk [vmem:[%s12413_s5 + $0x1b8] sm:$0xff] %vm5619_vm1, %v5318_v30  ;;  %v4412_v8 = vadd.f32 %v10374_v2, %v4411_v1  ;;  %2464 = vmatmul.bf16.gmra.mxu2 %v2067_v57  ;;  %v13591_v6 = vld [vmem:[#allocation131_spill] sm:$0xff]  ;;  %v1519_v30 = vadd.f32 %v10334_v29, %v13592_v4 }
 0xa0c   :  { %v3504_v27 = vpop.f32.mrf.mxu3  ;;  %v4915_v57 = vadd.f32 %v4740_v16, %v10002_v11 }
 0xa0d   :  { %v4741_v33 = vmax.f32 %v4412_v8, 0.0  ;;  %v3505_v47 = vadd.f32 %v10041_v56, %v3504_v27  ;;  %v10449_v63 = vadd.f32 %v2873_v15, %v13591_v6  ;;  %v10459_v27 = vadd.f32 %v3806_v32, %v9988_v36 }
 0xa0e   :  { %v2425_v12 = vpop.f32.mrf.mxu2 }
 0xa0f   :  { %v4916_v1 = vadd.f32 %v4741_v33, %v10005_v18  ;;  %v3807_v31 = vmax.f32 %v3505_v47, 0.0  ;;  %v3185_v10 = vpack.c.bf16 %v10449_v63, %v10445_v44  ;;  %v2426_v48 = vadd.f32 %v10428_v21, %v2425_v12  ;;  %v13594_v47 = vld [vmem:[#allocation170_spill] sm:$0xff] }
 0xa10   :  { %v5320_v8 = vpop.f32.mrf.mxu1  ;;  %v1765_v18 = vmax.f32 %v1519_v30, 0.0 }
 0xa11   :  { %v10462_v15 = vadd.f32 %v3807_v31, %v9992_v34  ;;  %v5321_v4 = vadd.f32 %v10176_v50, %v5320_v8  ;;  %3546 = vmatmul.bf16.gmra.mxu3 %v3185_v10  ;;  %v5070_v11 = vpack.c.bf16 %v4916_v1, %v4915_v57  ;;  %v2699_v36 = vmax.f32 %v2426_v48, 0.0 }
 0xa12   :  { %v4414_v16 = vpop.f32.mrf.mxu0  ;;  %v10472_v34 = vadd.f32 %v1766_v22, %v13593_v53  ;;  %v10475_v6 = vadd.f32 %v1765_v18, %v13594_v47 }
 0xa13   :  { %5676 = vst.msk [vmem:[%s12413_s5 + $0x1c0] sm:$0xff] %vm5619_vm1, %v5321_v4  ;;  %5359 = vmatmul.bf16.gmra.mxu1 %v5070_v11  ;;  %v4128_v33 = vpack.c.bf16 %v10462_v15, %v10459_v27  ;;  %v4415_v30 = vadd.f32 %v10374_v2, %v4414_v16  ;;  %v2874_v1 = vadd.f32 %v2699_v36, %v10018_v51  ;;  %v13595_v16 = vld [vmem:[#allocation212_spill] sm:$0xff] }
 0xa14   :  { %v3507_v12 = vpop.f32.mrf.mxu3  ;;  %v2068_v22 = vpack.c.bf16 %v10472_v34, %v10475_v6 }
 0xa15   :  { %4453 = vmatmul.bf16.gmra.mxu0 %v4128_v33  ;;  %v3508_v10 = vadd.f32 %v10041_v56, %v3507_v12  ;;  %v4742_v11 = vmax.f32 %v4415_v30, 0.0  ;;  %v1526_v33 = vadd.f32 %v10334_v29, %v13595_v16  ;;  %v10493_v36 = vadd.f32 %v2874_v1, %v13508_v20 }
 0xa16   :  { %v2427_v32 = vpop.f32.mrf.mxu2 }
 0xa17   :  { %v2428_v57 = vadd.f32 %v10428_v21, %v2427_v32  ;;  %v3808_v32 = vmax.f32 %v3508_v10, 0.0  ;;  %v1768_v1 = vmax.f32 %v1526_v33, 0.0 }
 0xa18   :  { %v5322_v31 = vpop.f32.mrf.mxu1 }
 0xa19   :  { %v2700_v8 = vmax.f32 %v2428_v57, 0.0  ;;  %v5323_v48 = vadd.f32 %v10176_v50, %v5322_v31 }
 0xa1a   :  { %v4416_v4 = vpop.f32.mrf.mxu0 }
 0xa1b   :  { %v2875_v18 = vadd.f32 %v2700_v8, %v10015_v39  ;;  %5677 = vst.msk [vmem:[%s12413_s5 + $0x1c8] sm:$0xff] %vm5619_vm1, %v5323_v48  ;;  %v4417_v51 = vadd.f32 %v10374_v2, %v4416_v4  ;;  %2469 = vmatmul.bf16.gmra.mxu2 %v2068_v22  ;;  %v13596_v39 = vld [vmem:[#allocation135_spill] sm:$0xff]  ;;  %v13597_v8 = vld [vmem:[#allocation209_spill] sm:$0xff]  ;;  %v4917_v22 = vadd.f32 %v4742_v11, %v10055_v55 }
 0xa1c   :  { %v3509_v12 = vpop.f32.mrf.mxu3  ;;  %v1524_v48 = vadd.f32 %v10334_v29, %v13597_v8 }
 0xa1d   :  { %v4743_v57 = vmax.f32 %v4417_v51, 0.0  ;;  %v3510_v30 = vadd.f32 %v10041_v56, %v3509_v12  ;;  %v10497_v31 = vadd.f32 %v2875_v18, %v13596_v39  ;;  %v10507_v12 = vadd.f32 %v3808_v32, %v10036_v43  ;;  %v13598_v32 = vld [vmem:[#allocation175_spill] sm:$0xff] }
 0xa1e   :  { %v2430_v53 = vpop.f32.mrf.mxu2 }
 0xa1f   :  { %v4918_v4 = vadd.f32 %v4743_v57, %v10058_v26  ;;  %v3809_v16 = vmax.f32 %v3510_v30, 0.0  ;;  %v3186_v20 = vpack.c.bf16 %v10497_v31, %v10493_v36  ;;  %v2431_v10 = vadd.f32 %v10428_v21, %v2430_v53  ;;  %v13599_v30 = vld [vmem:[#allocation174_spill] sm:$0xff] }
 0xa20   :  { %v5325_v51 = vpop.f32.mrf.mxu1  ;;  %v1767_v26 = vmax.f32 %v1524_v48, 0.0 }
 0xa21   :  { %v10510_v18 = vadd.f32 %v3809_v16, %v10045_v14  ;;  %v5326_v39 = vadd.f32 %v10176_v50, %v5325_v51  ;;  %3551 = vmatmul.bf16.gmra.mxu3 %v3186_v20  ;;  %v5071_v55 = vpack.c.bf16 %v4918_v4, %v4917_v22  ;;  %v2701_v43 = vmax.f32 %v2431_v10, 0.0 }
 0xa22   :  { %v4419_v11 = vpop.f32.mrf.mxu0  ;;  %v10520_v14 = vadd.f32 %v1768_v1, %v13598_v32  ;;  %v10523_v8 = vadd.f32 %v1767_v26, %v13599_v30  ;;  %v13603_v32 = vld [vmem:[#allocation213_spill] sm:$0xff] }
 0xa23   :  { %5678 = vst.msk [vmem:[%s12413_s5 + $0x1d0] sm:$0xff] %vm5619_vm1, %v5326_v39  ;;  %5364 = vmatmul.bf16.gmra.mxu1 %v5071_v55  ;;  %v4129_v53 = vpack.c.bf16 %v10510_v18, %v10507_v12  ;;  %v4420_v48 = vadd.f32 %v10374_v2, %v4419_v11  ;;  %v2876_v4 = vadd.f32 %v2701_v43, %v10071_v3  ;;  %v13600_v11 = vld [vmem:[#allocation216_spill] sm:$0xff]  ;;  %v13601_v43 = vld [vmem:[#allocation138_spill] sm:$0xff] }
 0xa24   :  { %v3512_v33 = vpop.f32.mrf.mxu3  ;;  %v2069_v1 = vpack.c.bf16 %v10520_v14, %v10523_v8 }
 0xa25   :  { %4458 = vmatmul.bf16.gmra.mxu0 %v4129_v53  ;;  %v3513_v20 = vadd.f32 %v10041_v56, %v3512_v33  ;;  %v4744_v55 = vmax.f32 %v4420_v48, 0.0  ;;  %v1531_v53 = vadd.f32 %v10334_v29, %v13600_v11  ;;  %v10541_v33 = vadd.f32 %v2876_v4, %v13601_v43 }
 0xa26   :  { %v2432_v57 = vpop.f32.mrf.mxu2 }
 0xa27   :  { %v2433_v22 = vadd.f32 %v10428_v21, %v2432_v57  ;;  %v1770_v43 = vmax.f32 %v1531_v53, 0.0 }
 0xa28   :  { %v5327_v16 = vpop.f32.mrf.mxu1 }
 0xa29   :  { %v2702_v51 = vmax.f32 %v2433_v22, 0.0  ;;  %v5328_v10 = vadd.f32 %v10176_v50, %v5327_v16  ;;  %v3810_v22 = vmax.f32 %v3513_v20, 0.0 }
 0xa2a   :  { %v4421_v39 = vpop.f32.mrf.mxu0 }
 0xa2b   :  { %v2877_v26 = vadd.f32 %v2702_v51, %v10068_v9  ;;  %5679 = vst.msk [vmem:[%s12413_s5 + $0x1d8] sm:$0xff] %vm5619_vm1, %v5328_v10  ;;  %v4422_v3 = vadd.f32 %v10374_v2, %v4421_v39  ;;  %2474 = vmatmul.bf16.gmra.mxu2 %v2069_v1  ;;  %v13602_v9 = vld [vmem:[#allocation139_spill] sm:$0xff]  ;;  %v1529_v10 = vadd.f32 %v10334_v29, %v13603_v32 }
 0xa2c   :  { %v3514_v57 = vpop.f32.mrf.mxu3  ;;  %v4919_v1 = vadd.f32 %v4744_v55, %v10103_v0 }
 0xa2d   :  { %v4745_v16 = vmax.f32 %v4422_v3, 0.0  ;;  %v3515_v48 = vadd.f32 %v10041_v56, %v3514_v57  ;;  %v10545_v51 = vadd.f32 %v2877_v26, %v13602_v9  ;;  %v10555_v57 = vadd.f32 %v3810_v22, %v10089_v60  ;;  %v13604_v22 = vld [vmem:[#allocation179_spill] sm:$0xff] }
 0xa2e   :  { %v2435_v30 = vpop.f32.mrf.mxu2 }
 0xa2f   :  { %v4920_v39 = vadd.f32 %v4745_v16, %v10106_v38  ;;  %v3811_v11 = vmax.f32 %v3515_v48, 0.0  ;;  %v3187_v4 = vpack.c.bf16 %v10545_v51, %v10541_v33  ;;  %v2436_v20 = vadd.f32 %v10428_v21, %v2435_v30  ;;  %v13605_v48 = vld [vmem:[#allocation178_spill] sm:$0xff] }
 0xa30   :  { %v5330_v3 = vpop.f32.mrf.mxu1  ;;  %v1769_v38 = vmax.f32 %v1529_v10, 0.0 }
 0xa31   :  { %v10558_v26 = vadd.f32 %v3811_v11, %v10093_v54  ;;  %v5331_v32 = vadd.f32 %v10176_v50, %v5330_v3  ;;  %3556 = vmatmul.bf16.gmra.mxu3 %v3187_v4  ;;  %v5072_v0 = vpack.c.bf16 %v4920_v39, %v4919_v1  ;;  %v2703_v60 = vmax.f32 %v2436_v20, 0.0 }
 0xa32   :  { %v4424_v55 = vpop.f32.mrf.mxu0  ;;  %v10568_v54 = vadd.f32 %v1770_v43, %v13604_v22  ;;  %v10571_v9 = vadd.f32 %v1769_v38, %v13605_v48 }
 0xa33   :  { %5680 = vst.msk [vmem:[%s12413_s5 + $0x1e0] sm:$0xff] %vm5619_vm1, %v5331_v32  ;;  %5369 = vmatmul.bf16.gmra.mxu1 %v5072_v0  ;;  %v4130_v30 = vpack.c.bf16 %v10558_v26, %v10555_v57  ;;  %v4425_v10 = vadd.f32 %v10374_v2, %v4424_v55  ;;  %v2878_v39 = vadd.f32 %v2703_v60, %v10119_v59  ;;  %v13606_v55 = vld [vmem:[#allocation220_spill] sm:$0xff] }
 0xa34   :  { %v3517_v53 = vpop.f32.mrf.mxu3  ;;  %v2070_v43 = vpack.c.bf16 %v10568_v54, %v10571_v9 }
 0xa35   :  { %4463 = vmatmul.bf16.gmra.mxu0 %v4130_v30  ;;  %v3518_v4 = vadd.f32 %v10041_v56, %v3517_v53  ;;  %v4746_v0 = vmax.f32 %v4425_v10, 0.0  ;;  %v1536_v30 = vadd.f32 %v10334_v29, %v13606_v55  ;;  %v10589_v60 = vadd.f32 %v2878_v39, %v13519_v37 }
 0xa36   :  { %v2437_v16 = vpop.f32.mrf.mxu2 }
 0xa37   :  { %v2438_v1 = vadd.f32 %v10428_v21, %v2437_v16  ;;  %v3812_v16 = vmax.f32 %v3518_v4, 0.0  ;;  %v1772_v39 = vmax.f32 %v1536_v30, 0.0 }
 0xa38   :  { %v5332_v11 = vpop.f32.mrf.mxu1 }
 0xa39   :  { %v2704_v3 = vmax.f32 %v2438_v1, 0.0  ;;  %v5333_v20 = vadd.f32 %v10176_v50, %v5332_v11 }
 0xa3a   :  { %v4426_v32 = vpop.f32.mrf.mxu0 }
 0xa3b   :  { %v2879_v38 = vadd.f32 %v2704_v3, %v10116_v19  ;;  %5681 = vst.msk [vmem:[%s12413_s5 + $0x1e8] sm:$0xff] %vm5619_vm1, %v5333_v20  ;;  %v4427_v59 = vadd.f32 %v10374_v2, %v4426_v32  ;;  %2479 = vmatmul.bf16.gmra.mxu2 %v2070_v43  ;;  %v13607_v19 = vld [vmem:[#allocation143_spill] sm:$0xff]  ;;  %v13608_v3 = vld [vmem:[#allocation217_spill] sm:$0xff]  ;;  %v4921_v43 = vadd.f32 %v4746_v0, %v10151_v52 }
 0xa3c   :  { %v3519_v53 = vpop.f32.mrf.mxu3  ;;  %v1534_v20 = vadd.f32 %v10334_v29, %v13608_v3 }
 0xa3d   :  { %v4747_v1 = vmax.f32 %v4427_v59, 0.0  ;;  %v3520_v10 = vadd.f32 %v10041_v56, %v3519_v53  ;;  %v10593_v11 = vadd.f32 %v2879_v38, %v13607_v19  ;;  %v10603_v56 = vadd.f32 %v3812_v16, %v10137_v23  ;;  %v13609_v16 = vld [vmem:[#allocation183_spill] sm:$0xff] }
 0xa3e   :  { %v2440_v22 = vpop.f32.mrf.mxu2 }
 0xa3f   :  { %v4922_v32 = vadd.f32 %v4747_v1, %v10154_v24  ;;  %v3813_v55 = vmax.f32 %v3520_v10, 0.0  ;;  %v3188_v37 = vpack.c.bf16 %v10593_v11, %v10589_v60  ;;  %v2441_v4 = vadd.f32 %v10428_v21, %v2440_v22  ;;  %v13611_v10 = vld [vmem:[#allocation182_spill] sm:$0xff] }
 0xa40   :  { %v5335_v59 = vpop.f32.mrf.mxu1  ;;  %v1771_v24 = vmax.f32 %v1534_v20, 0.0 }
 0xa41   :  { %v10606_v38 = vadd.f32 %v3813_v55, %v10141_v41  ;;  %v5336_v53 = vadd.f32 %v10176_v50, %v5335_v59  ;;  %3561 = vmatmul.bf16.gmra.mxu3 %v3188_v37  ;;  %v5073_v52 = vpack.c.bf16 %v4922_v32, %v4921_v43  ;;  %v2705_v23 = vmax.f32 %v2441_v4, 0.0  ;;  %v10627_v55 = vld [vmem:[%s12409_s4 + $0x3] ss:$0 sm:$0xff] }
 0xa42   :  { %v4429_v0 = vpop.f32.mrf.mxu0  ;;  %v10616_v41 = vadd.f32 %v1772_v39, %v13609_v16  ;;  %v10619_v19 = vadd.f32 %v1771_v24, %v13611_v10  ;;  %v13618_v10 = vld [vmem:[#allocation221_spill] sm:$0xff] }
 0xa43   :  { %5682 = vst.msk [vmem:[%s12413_s5 + $0x1f0] sm:$0xff] %vm5619_vm1, %v5336_v53  ;;  %5374 = vmatmul.bf16.gmra.mxu1 %v5073_v52  ;;  %v4131_v22 = vpack.c.bf16 %v10606_v38, %v10603_v56  ;;  %v4430_v3 = vadd.f32 %v10374_v2, %v4429_v0  ;;  %v2880_v43 = vadd.f32 %v2705_v23, %v10167_v13  ;;  %v13612_v0 = vld [vmem:[#allocation56_spill] sm:$0xff] }
 0xa44   :  { %v3522_v30 = vpop.f32.mrf.mxu3  ;;  %13610 = vst [vmem:[#allocation74_spill] sm:$0xff] %v10616_v41  ;;  %v2071_v59 = vpack.c.bf16 %v10616_v41, %v10619_v19 }
 0xa45   :  { %4468 = vmatmul.bf16.gmra.mxu0 %v4131_v22  ;;  %v3523_v37 = vadd.f32 %v10627_v55, %v3522_v30  ;;  %v4748_v52 = vmax.f32 %v4430_v3, 0.0  ;;  %v13613_v22 = vld [vmem:[#allocation224_spill] sm:$0xff]  ;;  %v13614_v30 = vld [vmem:[#allocation146_spill] sm:$0xff] }
 0xa46   :  { %v2442_v1 = vpop.f32.mrf.mxu2  ;;  %v1541_v23 = vadd.f32 %v10334_v29, %v13613_v22 }
 0xa47   :  { %v2443_v20 = vadd.f32 %v10428_v21, %v2442_v1  ;;  %v10642_v1 = vadd.f32 %v2880_v43, %v13614_v30 }
 0xa48   :  { %v5337_v32 = vpop.f32.mrf.mxu1  ;;  %v1774_v30 = vmax.f32 %v1541_v23, 0.0  ;;  %v13622_v23 = vld [vmem:[#allocation187_spill] sm:$0xff] }
 0xa49   :  { %v2706_v39 = vmax.f32 %v2443_v20, 0.0  ;;  %v5338_v4 = vadd.f32 %v10176_v50, %v5337_v32  ;;  %13615 = vst [vmem:[#allocation54_spill] sm:$0xff] %v10642_v1  ;;  %v3814_v32 = vmax.f32 %v3523_v37, 0.0 }
 0xa4a   :  { %v4431_v53 = vpop.f32.mrf.mxu0 }
 0xa4b   :  { %v2881_v24 = vadd.f32 %v2706_v39, %v13612_v0  ;;  %5683 = vst.msk [vmem:[%s12413_s5 + $0x1f8] sm:$0xff] %vm5619_vm1, %v5338_v4  ;;  %v4432_v13 = vadd.f32 %v10374_v2, %v4431_v53  ;;  %2484 = vmatmul.bf16.gmra.mxu2 %v2071_v59  ;;  %v13616_v39 = vld [vmem:[#allocation147_spill] sm:$0xff]  ;;  %v1539_v4 = vadd.f32 %v10334_v29, %v13618_v10 }
 0xa4c   :  { %v3524_v20 = vpop.f32.mrf.mxu3  ;;  %v4923_v59 = vadd.f32 %v4748_v52, %v10204_v62 }
 0xa4d   :  { %v4749_v16 = vmax.f32 %v4432_v13, 0.0  ;;  %v3525_v3 = vadd.f32 %v10627_v55, %v3524_v20  ;;  %v10646_v0 = vadd.f32 %v2881_v24, %v13616_v39  ;;  %v10656_v20 = vadd.f32 %v3814_v32, %v10190_v5  ;;  %v13620_v24 = vld [vmem:[#allocation43_spill] sm:$0xff] }
 0xa4e   :  { %v2445_v41 = vpop.f32.mrf.mxu2  ;;  %v10669_v32 = vadd.f32 %v1774_v30, %v13622_v23 }
 0xa4f   :  { %13617 = vst [vmem:[#allocation55_spill] sm:$0xff] %v10646_v0  ;;  %v4924_v53 = vadd.f32 %v4749_v16, %v10207_v7  ;;  %v3815_v22 = vmax.f32 %v3525_v3, 0.0  ;;  %v3189_v43 = vpack.c.bf16 %v10646_v0, %v10642_v1  ;;  %v2446_v37 = vadd.f32 %v10428_v21, %v2445_v41  ;;  %v13627_v0 = vld [vmem:[#allocation44_spill] sm:$0xff] }
 0xa50   :  { %v5340_v13 = vpop.f32.mrf.mxu1  ;;  %13619 = vst [vmem:[#allocation8_spill] sm:$0xff] %v10656_v20  ;;  %v1773_v7 = vmax.f32 %v1539_v4, 0.0  ;;  %v13634_v1 = vld [vmem:[#allocation60_spill] sm:$0xff] }
 0xa51   :  { %v10659_v39 = vadd.f32 %v3815_v22, %v13620_v24  ;;  %v5341_v10 = vadd.f32 %v10176_v50, %v5340_v13  ;;  %3566 = vmatmul.bf16.gmra.mxu3 %v3189_v43  ;;  %v5074_v62 = vpack.c.bf16 %v4924_v53, %v4923_v59  ;;  %v2707_v5 = vmax.f32 %v2446_v37, 0.0  ;;  %13623 = vst [vmem:[#allocation57_spill] sm:$0xff] %v10669_v32  ;;  %v13624_v22 = vld [vmem:[#allocation186_spill] sm:$0xff]  ;;  %v13626_v43 = vld [vmem:[#allocation45_spill] sm:$0xff] }
 0xa52   :  { %v4434_v52 = vpop.f32.mrf.mxu0  ;;  %v10672_v59 = vadd.f32 %v1773_v7, %v13624_v22 }
 0xa53   :  { %13621 = vst [vmem:[#allocation90_spill] sm:$0xff] %v10659_v39  ;;  %5379 = vmatmul.bf16.gmra.mxu1 %v5074_v62  ;;  %v4132_v16 = vpack.c.bf16 %v10659_v39, %v10656_v20  ;;  %v4435_v4 = vadd.f32 %v10374_v2, %v4434_v52  ;;  %v2882_v13 = vadd.f32 %v2707_v5, %v13626_v43  ;;  %v13628_v5 = vld [vmem:[#allocation228_spill] sm:$0xff] }
 0xa54   :  { %5684 = vst.msk [vmem:[%s12413_s5 + $0x200] sm:$0xff] %vm5619_vm1, %v5341_v10  ;;  %v3527_v41 = vpop.f32.mrf.mxu3  ;;  %v2072_v30 = vpack.c.bf16 %v10669_v32, %v10672_v59  ;;  %v13632_v32 = vld [vmem:[#allocation225_spill] sm:$0xff] }
 0xa55   :  { %4473 = vmatmul.bf16.gmra.mxu0 %v4132_v16  ;;  %13625 = vst [vmem:[#allocation58_spill] sm:$0xff] %v10672_v59  ;;  %v3528_v10 = vadd.f32 %v10627_v55, %v3527_v41  ;;  %v4750_v23 = vmax.f32 %v4435_v4, 0.0  ;;  %v1546_v41 = vadd.f32 %v10334_v29, %v13628_v5 }
 0xa56   :  { %v2447_v3 = vpop.f32.mrf.mxu2 }
 0xa57   :  { %v2448_v53 = vadd.f32 %v10428_v21, %v2447_v3  ;;  %v13629_v3 = vld [vmem:[#allocation150_spill] sm:$0xff] }
 0xa58   :  { %v5342_v24 = vpop.f32.mrf.mxu1 }
 0xa59   :  { %v2708_v62 = vmax.f32 %v2448_v53, 0.0  ;;  %v5343_v37 = vadd.f32 %v10176_v50, %v5342_v24  ;;  %v10690_v53 = vadd.f32 %v2882_v13, %v13629_v3  ;;  %v3816_v24 = vmax.f32 %v3528_v10, 0.0 }
 0xa5a   :  { %v4436_v16 = vpop.f32.mrf.mxu0  ;;  %v1776_v3 = vmax.f32 %v1546_v41, 0.0 }
 0xa5b   :  { %v2883_v7 = vadd.f32 %v2708_v62, %v13627_v0  ;;  %5685 = vst.msk [vmem:[%s12413_s5 + $0x208] sm:$0xff] %vm5619_vm1, %v5343_v37  ;;  %v4437_v52 = vadd.f32 %v10374_v2, %v4436_v16  ;;  %2489 = vmatmul.bf16.gmra.mxu2 %v2072_v30  ;;  %v13630_v0 = vld [vmem:[#allocation151_spill] sm:$0xff]  ;;  %v1544_v37 = vadd.f32 %v10334_v29, %v13632_v32  ;;  %v13633_v16 = vld [vmem:[#allocation53_spill] sm:$0xff] }
 0xa5c   :  { %v3529_v43 = vpop.f32.mrf.mxu3  ;;  %v4925_v30 = vadd.f32 %v4750_v23, %v13633_v16 }
 0xa5d   :  { %v4751_v22 = vmax.f32 %v4437_v52, 0.0  ;;  %v3530_v4 = vadd.f32 %v10627_v55, %v3529_v43  ;;  %v10694_v62 = vadd.f32 %v2883_v7, %v13630_v0  ;;  %v13635_v43 = vld [vmem:[#allocation59_spill] sm:$0xff] }
 0xa5e   :  { %v2450_v59 = vpop.f32.mrf.mxu2  ;;  %v10704_v20 = vadd.f32 %v3816_v24, %v13635_v43  ;;  %v13636_v7 = vld [vmem:[#allocation23_spill] sm:$0xff] }
 0xa5f   :  { %13631 = vst [vmem:[#allocation71_spill] sm:$0xff] %v10694_v62  ;;  %v4926_v39 = vadd.f32 %v4751_v22, %v13634_v1  ;;  %v3817_v5 = vmax.f32 %v3530_v4, 0.0  ;;  %v3190_v13 = vpack.c.bf16 %v10694_v62, %v10690_v53  ;;  %v2451_v10 = vadd.f32 %v10428_v21, %v2450_v59  ;;  %v13637_v24 = vld [vmem:[#allocation191_spill] sm:$0xff]  ;;  %v13641_v62 = vld [vmem:[#allocation64_spill] sm:$0xff] }
 0xa60   :  { %v5345_v52 = vpop.f32.mrf.mxu1  ;;  %v1775_v1 = vmax.f32 %v1544_v37, 0.0  ;;  %v10717_v4 = vadd.f32 %v1776_v3, %v13637_v24 }
 0xa61   :  { %v10707_v0 = vadd.f32 %v3817_v5, %v13636_v7  ;;  %v5346_v32 = vadd.f32 %v10176_v50, %v5345_v52  ;;  %3571 = vmatmul.bf16.gmra.mxu3 %v3190_v13  ;;  %v5075_v23 = vpack.c.bf16 %v4926_v39, %v4925_v30  ;;  %v2709_v59 = vmax.f32 %v2451_v10, 0.0  ;;  %v13639_v13 = vld [vmem:[#allocation190_spill] sm:$0xff] }
 0xa62   :  { %v4439_v16 = vpop.f32.mrf.mxu0  ;;  %13638 = vst [vmem:[#allocation78_spill] sm:$0xff] %v10717_v4  ;;  %v10720_v39 = vadd.f32 %v1775_v1, %v13639_v13  ;;  %v13640_v52 = vld [vmem:[#allocation46_spill] sm:$0xff]  ;;  %v13647_v13 = vld [vmem:[#allocation229_spill] sm:$0xff] }
 0xa63   :  { %5686 = vst.msk [vmem:[%s12413_s5 + $0x210] sm:$0xff] %vm5619_vm1, %v5346_v32  ;;  %5384 = vmatmul.bf16.gmra.mxu1 %v5075_v23  ;;  %v4133_v22 = vpack.c.bf16 %v10707_v0, %v10704_v20  ;;  %v4440_v37 = vadd.f32 %v10374_v2, %v4439_v16  ;;  %v2884_v43 = vadd.f32 %v2709_v59, %v13640_v52  ;;  %v13642_v59 = vld [vmem:[#allocation232_spill] sm:$0xff] }
 0xa64   :  { %v3532_v41 = vpop.f32.mrf.mxu3  ;;  %v2073_v3 = vpack.c.bf16 %v10717_v4, %v10720_v39 }
 0xa65   :  { %4478 = vmatmul.bf16.gmra.mxu0 %v4133_v22  ;;  %v3533_v32 = vadd.f32 %v10627_v55, %v3532_v41  ;;  %v4752_v24 = vmax.f32 %v4440_v37, 0.0  ;;  %v1551_v41 = vadd.f32 %v10334_v29, %v13642_v59 }
 0xa66   :  { %v2452_v5 = vpop.f32.mrf.mxu2 }
 0xa67   :  { %v2453_v30 = vadd.f32 %v10428_v21, %v2452_v5  ;;  %v13643_v5 = vld [vmem:[#allocation154_spill] sm:$0xff]  ;;  %v3818_v52 = vmax.f32 %v3533_v32, 0.0 }
 0xa68   :  { %v5347_v7 = vpop.f32.mrf.mxu1 }
 0xa69   :  { %v2710_v23 = vmax.f32 %v2453_v30, 0.0  ;;  %v5348_v10 = vadd.f32 %v10176_v50, %v5347_v7  ;;  %v10738_v50 = vadd.f32 %v2884_v43, %v13643_v5  ;;  %v1778_v5 = vmax.f32 %v1551_v41, 0.0 }
 0xa6a   :  { %v4441_v22 = vpop.f32.mrf.mxu0 }
 0xa6b   :  { %v2885_v1 = vadd.f32 %v2710_v23, %v13641_v62  ;;  %5687 = vst.msk [vmem:[%s12413_s5 + $0x218] sm:$0xff] %vm5619_vm1, %v5348_v10  ;;  %v4442_v16 = vadd.f32 %v10374_v2, %v4441_v22  ;;  %2494 = vmatmul.bf16.gmra.mxu2 %v2073_v3  ;;  %v13645_v62 = vld [vmem:[#allocation155_spill] sm:$0xff]  ;;  %v1549_v10 = vadd.f32 %v10334_v29, %v13647_v13 }
 0xa6c   :  { %13644 = vst [vmem:[#allocation2_spill] sm:$0xff] %v10738_v50  ;;  %v3534_v30 = vpop.f32.mrf.mxu3  ;;  %v4927_v3 = vadd.f32 %v4752_v24, %v10300_v40  ;;  %v10760_v40 = vld [vmem:[%s12409_s4 + $0x5] ss:$0 sm:$0xff] }
 0xa6d   :  { %v4753_v7 = vmax.f32 %v4442_v16, 0.0  ;;  %v3535_v37 = vadd.f32 %v10627_v55, %v3534_v30  ;;  %v10742_v23 = vadd.f32 %v2885_v1, %v13645_v62  ;;  %v10752_v30 = vadd.f32 %v3818_v52, %v10286_v49  ;;  %v13648_v52 = vld [vmem:[#allocation195_spill] sm:$0xff]  ;;  %v13650_v62 = vld [vmem:[#allocation194_spill] sm:$0xff] }
 0xa6e   :  { %v2455_v4 = vpop.f32.mrf.mxu2  ;;  %v1777_v41 = vmax.f32 %v1549_v10, 0.0 }
 0xa6f   :  { %13646 = vst [vmem:[#allocation61_spill] sm:$0xff] %v10742_v23  ;;  %v4928_v22 = vadd.f32 %v4753_v7, %v10303_v46  ;;  %v3819_v59 = vmax.f32 %v3535_v37, 0.0  ;;  %v3191_v43 = vpack.c.bf16 %v10742_v23, %v10738_v50  ;;  %v2456_v32 = vadd.f32 %v10428_v21, %v2455_v4  ;;  %v13653_v23 = vld [vmem:[#allocation48_spill] sm:$0xff] }
 0xa70   :  { %v5350_v16 = vpop.f32.mrf.mxu1  ;;  %v10770_v7 = vadd.f32 %v1778_v5, %v13648_v52 }
 0xa71   :  { %v10755_v1 = vadd.f32 %v3819_v59, %v10290_v58  ;;  %v5351_v46 = vadd.f32 %v10760_v40, %v5350_v16  ;;  %3576 = vmatmul.bf16.gmra.mxu3 %v3191_v43  ;;  %v5076_v24 = vpack.c.bf16 %v4928_v22, %v4927_v3  ;;  %v2711_v58 = vmax.f32 %v2456_v32, 0.0  ;;  %v13652_v59 = vld [vmem:[#allocation63_spill] sm:$0xff] }
 0xa72   :  { %v4444_v13 = vpop.f32.mrf.mxu0  ;;  %13649 = vst [vmem:[#allocation62_spill] sm:$0xff] %v10770_v7  ;;  %v10773_v3 = vadd.f32 %v1777_v41, %v13650_v62 }
 0xa73   :  { %5688 = vst.msk [vmem:[%s12413_s5 + $0x220] sm:$0xff] %vm5619_vm1, %v5351_v46  ;;  %5389 = vmatmul.bf16.gmra.mxu1 %v5076_v24  ;;  %v4134_v49 = vpack.c.bf16 %v10755_v1, %v10752_v30  ;;  %v4445_v10 = vadd.f32 %v10374_v2, %v4444_v13  ;;  %v2886_v43 = vadd.f32 %v2711_v58, %v13652_v59  ;;  %v13654_v58 = vld [vmem:[#allocation236_spill] sm:$0xff] }
 0xa74   :  { %v3537_v4 = vpop.f32.mrf.mxu3  ;;  %13651 = vst [vmem:[#allocation10_spill] sm:$0xff] %v10773_v3  ;;  %v2074_v5 = vpack.c.bf16 %v10770_v7, %v10773_v3  ;;  %v13658_v7 = vld [vmem:[#allocation233_spill] sm:$0xff] }
 0xa75   :  { %4483 = vmatmul.bf16.gmra.mxu0 %v4134_v49  ;;  %v3538_v46 = vadd.f32 %v10627_v55, %v3537_v4  ;;  %v4754_v52 = vmax.f32 %v4445_v10, 0.0  ;;  %v1556_v4 = vadd.f32 %v10334_v29, %v13654_v58 }
 0xa76   :  { %v2457_v37 = vpop.f32.mrf.mxu2 }
 0xa77   :  { %v2458_v22 = vadd.f32 %v10428_v21, %v2457_v37  ;;  %v13655_v37 = vld [vmem:[#allocation158_spill] sm:$0xff] }
 0xa78   :  { %v5352_v16 = vpop.f32.mrf.mxu1 }
 0xa79   :  { %v2712_v24 = vmax.f32 %v2458_v22, 0.0  ;;  %v5353_v32 = vadd.f32 %v10760_v40, %v5352_v16  ;;  %v10791_v22 = vadd.f32 %v2886_v43, %v13655_v37  ;;  %v3820_v16 = vmax.f32 %v3538_v46, 0.0 }
 0xa7a   :  { %v4446_v49 = vpop.f32.mrf.mxu0  ;;  %v1780_v37 = vmax.f32 %v1556_v4, 0.0 }
 0xa7b   :  { %v2887_v41 = vadd.f32 %v2712_v24, %v13653_v23  ;;  %5689 = vst.msk [vmem:[%s12413_s5 + $0x228] sm:$0xff] %vm5619_vm1, %v5353_v32  ;;  %v4447_v13 = vadd.f32 %v10374_v2, %v4446_v49  ;;  %2499 = vmatmul.bf16.gmra.mxu2 %v2074_v5  ;;  %v13656_v23 = vld [vmem:[#allocation159_spill] sm:$0xff]  ;;  %v1554_v32 = vadd.f32 %v10334_v29, %v13658_v7 }
 0xa7c   :  { %v3539_v59 = vpop.f32.mrf.mxu3  ;;  %v4929_v5 = vadd.f32 %v4754_v52, %v10353_v35 }
 0xa7d   :  { %v4755_v62 = vmax.f32 %v4447_v13, 0.0  ;;  %v3540_v10 = vadd.f32 %v10627_v55, %v3539_v59  ;;  %v10795_v24 = vadd.f32 %v2887_v41, %v13656_v23  ;;  %v13659_v59 = vld [vmem:[#allocation70_spill] sm:$0xff] }
 0xa7e   :  { %v2460_v3 = vpop.f32.mrf.mxu2  ;;  %v10805_v50 = vadd.f32 %v3820_v16, %v13659_v59  ;;  %v13660_v41 = vld [vmem:[#allocation50_spill] sm:$0xff]  ;;  %v13661_v16 = vld [vmem:[#allocation199_spill] sm:$0xff] }
 0xa7f   :  { %13657 = vst [vmem:[#allocation9_spill] sm:$0xff] %v10795_v24  ;;  %v4930_v49 = vadd.f32 %v4755_v62, %v10356_v17  ;;  %v3821_v58 = vmax.f32 %v3540_v10, 0.0  ;;  %v3192_v43 = vpack.c.bf16 %v10795_v24, %v10791_v22  ;;  %v2461_v46 = vadd.f32 %v10428_v21, %v2460_v3  ;;  %v13666_v24 = vld [vmem:[#allocation51_spill] sm:$0xff] }
 0xa80   :  { %v5355_v13 = vpop.f32.mrf.mxu1  ;;  %v1779_v17 = vmax.f32 %v1554_v32, 0.0  ;;  %v10818_v10 = vadd.f32 %v1780_v37, %v13661_v16 }
 0xa81   :  { %v10808_v23 = vadd.f32 %v3821_v58, %v13660_v41  ;;  %v5356_v7 = vadd.f32 %v10760_v40, %v5355_v13  ;;  %3581 = vmatmul.bf16.gmra.mxu3 %v3192_v43  ;;  %v5077_v35 = vpack.c.bf16 %v4930_v49, %v4929_v5  ;;  %v2713_v3 = vmax.f32 %v2461_v46, 0.0  ;;  %v13663_v43 = vld [vmem:[#allocation198_spill] sm:$0xff]  ;;  %v13665_v13 = vld [vmem:[#allocation67_spill] sm:$0xff] }
 0xa82   :  { %v4449_v52 = vpop.f32.mrf.mxu0  ;;  %13662 = vst [vmem:[#allocation65_spill] sm:$0xff] %v10818_v10  ;;  %v10821_v5 = vadd.f32 %v1779_v17, %v13663_v43 }
 0xa83   :  { %5690 = vst.msk [vmem:[%s12413_s5 + $0x230] sm:$0xff] %vm5619_vm1, %v5356_v7  ;;  %5394 = vmatmul.bf16.gmra.mxu1 %v5077_v35  ;;  %v4135_v62 = vpack.c.bf16 %v10808_v23, %v10805_v50  ;;  %v4450_v32 = vadd.f32 %v10374_v2, %v4449_v52  ;;  %v2888_v59 = vadd.f32 %v2713_v3, %v13665_v13  ;;  %v13667_v3 = vld [vmem:[#allocation240_spill] sm:$0xff] }
 0xa84   :  { %v3542_v4 = vpop.f32.mrf.mxu3  ;;  %13664 = vst [vmem:[#allocation66_spill] sm:$0xff] %v10821_v5  ;;  %v2075_v37 = vpack.c.bf16 %v10818_v10, %v10821_v5  ;;  %v13670_v10 = vld [vmem:[#allocation237_spill] sm:$0xff] }
 0xa85   :  { %4488 = vmatmul.bf16.gmra.mxu0 %v4135_v62  ;;  %v3543_v7 = vadd.f32 %v10627_v55, %v3542_v4  ;;  %v4756_v16 = vmax.f32 %v4450_v32, 0.0  ;;  %v1561_v4 = vadd.f32 %v10334_v29, %v13667_v3 }
 0xa86   :  { %v2462_v58 = vpop.f32.mrf.mxu2 }
 0xa87   :  { %v2463_v49 = vadd.f32 %v10428_v21, %v2462_v58  ;;  %v13668_v58 = vld [vmem:[#allocation162_spill] sm:$0xff] }
 0xa88   :  { %v5357_v41 = vpop.f32.mrf.mxu1 }
 0xa89   :  { %v2714_v35 = vmax.f32 %v2463_v49, 0.0  ;;  %v5358_v46 = vadd.f32 %v10760_v40, %v5357_v41  ;;  %v10839_v49 = vadd.f32 %v2888_v59, %v13668_v58  ;;  %v3822_v41 = vmax.f32 %v3543_v7, 0.0 }
 0xa8a   :  { %v4451_v62 = vpop.f32.mrf.mxu0  ;;  %v1782_v58 = vmax.f32 %v1561_v4, 0.0  ;;  %v13671_v4 = vld [vmem:[#allocation203_spill] sm:$0xff] }
 0xa8b   :  { %v2889_v17 = vadd.f32 %v2714_v35, %v13666_v24  ;;  %5691 = vst.msk [vmem:[%s12413_s5 + $0x238] sm:$0xff] %vm5619_vm1, %v5358_v46  ;;  %v4452_v52 = vadd.f32 %v10374_v2, %v4451_v62  ;;  %2504 = vmatmul.bf16.gmra.mxu2 %v2075_v37  ;;  %v13669_v24 = vld [vmem:[#allocation163_spill] sm:$0xff]  ;;  %v1559_v46 = vadd.f32 %v10334_v29, %v13670_v10 }
 0xa8c   :  { %v3544_v13 = vpop.f32.mrf.mxu3  ;;  %v4931_v37 = vadd.f32 %v4756_v16, %v10406_v61 }
 0xa8d   :  { %v4757_v43 = vmax.f32 %v4452_v52, 0.0  ;;  %v3545_v32 = vadd.f32 %v10627_v55, %v3544_v13  ;;  %v10843_v35 = vadd.f32 %v2889_v17, %v13669_v24  ;;  %v10853_v13 = vadd.f32 %v3822_v41, %v10392_v25 }
 0xa8e   :  { %v2465_v5 = vpop.f32.mrf.mxu2 }
 0xa8f   :  { %v4932_v62 = vadd.f32 %v4757_v43, %v10409_v28  ;;  %v3823_v3 = vmax.f32 %v3545_v32, 0.0  ;;  %v3193_v59 = vpack.c.bf16 %v10843_v35, %v10839_v49  ;;  %v2466_v7 = vadd.f32 %v10428_v21, %v2465_v5  ;;  %v13672_v32 = vld [vmem:[#allocation202_spill] sm:$0xff] }
 0xa90   :  { %v5360_v52 = vpop.f32.mrf.mxu1  ;;  %v1781_v28 = vmax.f32 %v1559_v46, 0.0 }
 0xa91   :  { %v10856_v17 = vadd.f32 %v3823_v3, %v10396_v42  ;;  %v5361_v10 = vadd.f32 %v10760_v40, %v5360_v52  ;;  %3586 = vmatmul.bf16.gmra.mxu3 %v3193_v59  ;;  %v5078_v61 = vpack.c.bf16 %v4932_v62, %v4931_v37  ;;  %v2715_v25 = vmax.f32 %v2466_v7, 0.0 }
 0xa92   :  { %v4454_v16 = vpop.f32.mrf.mxu0  ;;  %v10866_v42 = vadd.f32 %v1782_v58, %v13671_v4  ;;  %v10869_v24 = vadd.f32 %v1781_v28, %v13672_v32 }
 0xa93   :  { %5692 = vst.msk [vmem:[%s12413_s5 + $0x240] sm:$0xff] %vm5619_vm1, %v5361_v10  ;;  %5399 = vmatmul.bf16.gmra.mxu1 %v5078_v61  ;;  %v4136_v43 = vpack.c.bf16 %v10856_v17, %v10853_v13  ;;  %v4455_v46 = vadd.f32 %v10374_v2, %v4454_v16  ;;  %v2890_v62 = vadd.f32 %v2715_v25, %v10422_v45  ;;  %v13674_v16 = vld [vmem:[#allocation244_spill] sm:$0xff] }
 0xa94   :  { %v3547_v5 = vpop.f32.mrf.mxu3  ;;  %v2076_v58 = vpack.c.bf16 %v10866_v42, %v10869_v24  ;;  %v1566_v25 = vadd.f32 %v10334_v29, %v13674_v16 }
 0xa95   :  { %4493 = vmatmul.bf16.gmra.mxu0 %v4136_v43  ;;  %v3548_v59 = vadd.f32 %v10627_v55, %v3547_v5  ;;  %v4758_v61 = vmax.f32 %v4455_v46, 0.0  ;;  %v13673_v43 = vld [vmem:[#allocation86_spill] sm:$0xff] }
 0xa96   :  { %v2467_v41 = vpop.f32.mrf.mxu2  ;;  %v13675_v5 = vld [vmem:[#allocation166_spill] sm:$0xff] }
 0xa97   :  { %v2468_v37 = vadd.f32 %v10428_v21, %v2467_v41  ;;  %v10887_v41 = vadd.f32 %v2890_v62, %v13675_v5  ;;  %v4933_v62 = vadd.f32 %v4758_v61, %v10459_v27  ;;  %v1784_v5 = vmax.f32 %v1566_v25, 0.0 }
 0xa98   :  { %v5362_v3 = vpop.f32.mrf.mxu1 }
 0xa99   :  { %v2716_v52 = vmax.f32 %v2468_v37, 0.0  ;;  %v5363_v7 = vadd.f32 %v10760_v40, %v5362_v3  ;;  %v3824_v3 = vmax.f32 %v3548_v59, 0.0 }
 0xa9a   :  { %v4456_v10 = vpop.f32.mrf.mxu0 }
 0xa9b   :  { %v2891_v28 = vadd.f32 %v2716_v52, %v13673_v43  ;;  %5693 = vst.msk [vmem:[%s12413_s5 + $0x248] sm:$0xff] %vm5619_vm1, %v5363_v7  ;;  %v4457_v45 = vadd.f32 %v10374_v2, %v4456_v10  ;;  %2509 = vmatmul.bf16.gmra.mxu2 %v2076_v58  ;;  %v13676_v52 = vld [vmem:[#allocation167_spill] sm:$0xff]  ;;  %v10896_v7 = vld [vmem:[%s12409_s4 + $0x1] ss:$0 sm:$0xff]  ;;  %v13677_v58 = vld [vmem:[#allocation241_spill] sm:$0xff] }
 0xa9c   :  { %v3549_v37 = vpop.f32.mrf.mxu3  ;;  %v1564_v10 = vadd.f32 %v10896_v7, %v13677_v58 }
 0xa9d   :  { %v4759_v4 = vmax.f32 %v4457_v45, 0.0  ;;  %v3550_v46 = vadd.f32 %v10627_v55, %v3549_v37  ;;  %v10891_v43 = vadd.f32 %v2891_v28, %v13676_v52  ;;  %v10906_v52 = vadd.f32 %v3824_v3, %v10445_v44  ;;  %v13678_v3 = vld [vmem:[#allocation207_spill] sm:$0xff] }
 0xa9e   :  { %v2470_v29 = vpop.f32.mrf.mxu2 }
 0xa9f   :  { %v4934_v16 = vadd.f32 %v4759_v4, %v10462_v15  ;;  %v3825_v59 = vmax.f32 %v3550_v46, 0.0  ;;  %v3194_v45 = vpack.c.bf16 %v10891_v43, %v10887_v41  ;;  %v2471_v28 = vadd.f32 %v10428_v21, %v2470_v29  ;;  %v13679_v29 = vld [vmem:[#allocation206_spill] sm:$0xff] }
 0xaa0   :  { %v5365_v37 = vpop.f32.mrf.mxu1  ;;  %v1783_v15 = vmax.f32 %v1564_v10, 0.0 }
 0xaa1   :  { %v10909_v32 = vadd.f32 %v3825_v59, %v10449_v63  ;;  %v5366_v58 = vadd.f32 %v10760_v40, %v5365_v37  ;;  %3591 = vmatmul.bf16.gmra.mxu3 %v3194_v45  ;;  %v5079_v27 = vpack.c.bf16 %v4934_v16, %v4933_v62  ;;  %v2717_v44 = vmax.f32 %v2471_v28, 0.0 }
 0xaa2   :  { %v4459_v61 = vpop.f32.mrf.mxu0  ;;  %v10919_v63 = vadd.f32 %v1784_v5, %v13678_v3  ;;  %v10922_v62 = vadd.f32 %v1783_v15, %v13679_v29 }
 0xaa3   :  { %5694 = vst.msk [vmem:[%s12413_s5 + $0x250] sm:$0xff] %vm5619_vm1, %v5366_v58  ;;  %5404 = vmatmul.bf16.gmra.mxu1 %v5079_v27  ;;  %v4137_v4 = vpack.c.bf16 %v10909_v32, %v10906_v52  ;;  %v4460_v10 = vadd.f32 %v10374_v2, %v4459_v61  ;;  %v2892_v59 = vadd.f32 %v2717_v44, %v10475_v6  ;;  %v10939_v2 = vld [vmem:[%s12409_s4 + $0x4] ss:$0 sm:$0xff]  ;;  %v13680_v61 = vld [vmem:[#allocation248_spill] sm:$0xff] }
 0xaa4   :  { %v3552_v25 = vpop.f32.mrf.mxu3  ;;  %v2077_v5 = vpack.c.bf16 %v10919_v63, %v10922_v62  ;;  %v1571_v44 = vadd.f32 %v10896_v7, %v13680_v61 }
 0xaa5   :  { %4498 = vmatmul.bf16.gmra.mxu0 %v4137_v4  ;;  %v3553_v37 = vadd.f32 %v10627_v55, %v3552_v25  ;;  %v4760_v4 = vmax.f32 %v4460_v10, 0.0  ;;  %v10945_v25 = vadd.f32 %v2892_v59, %v13594_v47 }
 0xaa6   :  { %v2472_v46 = vpop.f32.mrf.mxu2  ;;  %v1786_v59 = vmax.f32 %v1571_v44, 0.0 }
 0xaa7   :  { %v2473_v16 = vadd.f32 %v10428_v21, %v2472_v46  ;;  %v3826_v46 = vmax.f32 %v3553_v37, 0.0 }
 0xaa8   :  { %v5367_v45 = vpop.f32.mrf.mxu1 }
 0xaa9   :  { %v2718_v58 = vmax.f32 %v2473_v16, 0.0  ;;  %v5368_v28 = vadd.f32 %v10760_v40, %v5367_v45  ;;  %v13681_v45 = vld [vmem:[#allocation171_spill] sm:$0xff] }
 0xaaa   :  { %v4461_v27 = vpop.f32.mrf.mxu0 }
 0xaab   :  { %v2893_v15 = vadd.f32 %v2718_v58, %v10472_v34  ;;  %5695 = vst.msk [vmem:[%s12413_s5 + $0x258] sm:$0xff] %vm5619_vm1, %v5368_v28  ;;  %v4462_v6 = vadd.f32 %v10939_v2, %v4461_v27  ;;  %2514 = vmatmul.bf16.gmra.mxu2 %v2077_v5  ;;  %v13682_v28 = vld [vmem:[#allocation245_spill] sm:$0xff]  ;;  %v4935_v5 = vadd.f32 %v4760_v4, %v10507_v12 }
 0xaac   :  { %v3554_v34 = vpop.f32.mrf.mxu3  ;;  %v1569_v3 = vadd.f32 %v10896_v7, %v13682_v28 }
 0xaad   :  { %v4761_v10 = vmax.f32 %v4462_v6, 0.0  ;;  %v3555_v16 = vadd.f32 %v10627_v55, %v3554_v34  ;;  %v10949_v58 = vadd.f32 %v2893_v15, %v13681_v45  ;;  %v10959_v34 = vadd.f32 %v3826_v46, %v10493_v36  ;;  %v13683_v46 = vld [vmem:[#allocation211_spill] sm:$0xff] }
 0xaae   :  { %v2475_v29 = vpop.f32.mrf.mxu2 }
 0xaaf   :  { %v4936_v27 = vadd.f32 %v4761_v10, %v10510_v18  ;;  %v3827_v61 = vmax.f32 %v3555_v16, 0.0  ;;  %v3195_v47 = vpack.c.bf16 %v10949_v58, %v10945_v25  ;;  %v2476_v37 = vadd.f32 %v10428_v21, %v2475_v29  ;;  %v13684_v16 = vld [vmem:[#allocation210_spill] sm:$0xff] }
 0xab0   :  { %v5370_v6 = vpop.f32.mrf.mxu1  ;;  %v1785_v18 = vmax.f32 %v1569_v3, 0.0 }
 0xab1   :  { %v10962_v15 = vadd.f32 %v3827_v61, %v10497_v31  ;;  %v5371_v45 = vadd.f32 %v10760_v40, %v5370_v6  ;;  %3596 = vmatmul.bf16.gmra.mxu3 %v3195_v47  ;;  %v5080_v12 = vpack.c.bf16 %v4936_v27, %v4935_v5  ;;  %v2719_v36 = vmax.f32 %v2476_v37, 0.0 }
 0xab2   :  { %v4464_v4 = vpop.f32.mrf.mxu0  ;;  %v10972_v31 = vadd.f32 %v1786_v59, %v13683_v46  ;;  %v10975_v28 = vadd.f32 %v1785_v18, %v13684_v16 }
 0xab3   :  { %5696 = vst.msk [vmem:[%s12413_s5 + $0x260] sm:$0xff] %vm5619_vm1, %v5371_v45  ;;  %5409 = vmatmul.bf16.gmra.mxu1 %v5080_v12  ;;  %v4138_v29 = vpack.c.bf16 %v10962_v15, %v10959_v34  ;;  %v4465_v3 = vadd.f32 %v10939_v2, %v4464_v4  ;;  %v2894_v27 = vadd.f32 %v2719_v36, %v10523_v8  ;;  %v13685_v8 = vld [vmem:[#allocation252_spill] sm:$0xff] }
 0xab4   :  { %v3557_v44 = vpop.f32.mrf.mxu3  ;;  %v2078_v59 = vpack.c.bf16 %v10972_v31, %v10975_v28  ;;  %v1576_v4 = vadd.f32 %v10896_v7, %v13685_v8 }
 0xab5   :  { %4503 = vmatmul.bf16.gmra.mxu0 %v4138_v29  ;;  %v3558_v47 = vadd.f32 %v10627_v55, %v3557_v44  ;;  %v4762_v12 = vmax.f32 %v4465_v3, 0.0  ;;  %v13686_v29 = vld [vmem:[#allocation174_spill] sm:$0xff] }
 0xab6   :  { %v2477_v10 = vpop.f32.mrf.mxu2  ;;  %v10993_v36 = vadd.f32 %v2894_v27, %v13686_v29  ;;  %v1788_v29 = vmax.f32 %v1576_v4, 0.0 }
 0xab7   :  { %v2478_v5 = vadd.f32 %v10428_v21, %v2477_v10  ;;  %v3828_v10 = vmax.f32 %v3558_v47, 0.0  ;;  %v11008_v47 = vld [vmem:[%s12409_s4 + $0x2] ss:$0 sm:$0xff] }
 0xab8   :  { %v5372_v61 = vpop.f32.mrf.mxu1 }
 0xab9   :  { %v2720_v6 = vmax.f32 %v2478_v5, 0.0  ;;  %v5373_v37 = vadd.f32 %v10760_v40, %v5372_v61 }
 0xaba   :  { %v4466_v45 = vpop.f32.mrf.mxu0 }
 0xabb   :  { %v2895_v18 = vadd.f32 %v2720_v6, %v10520_v14  ;;  %5697 = vst.msk [vmem:[%s12413_s5 + $0x268] sm:$0xff] %vm5619_vm1, %v5373_v37  ;;  %v4467_v21 = vadd.f32 %v10939_v2, %v4466_v45  ;;  %2519 = vmatmul.bf16.gmra.mxu2 %v2078_v59  ;;  %v13687_v14 = vld [vmem:[#allocation175_spill] sm:$0xff]  ;;  %v13688_v6 = vld [vmem:[#allocation249_spill] sm:$0xff]  ;;  %v4937_v59 = vadd.f32 %v4762_v12, %v10555_v57 }
 0xabc   :  { %v3559_v44 = vpop.f32.mrf.mxu3  ;;  %v1574_v37 = vadd.f32 %v10896_v7, %v13688_v6  ;;  %v13690_v6 = vld [vmem:[#allocation214_spill] sm:$0xff] }
 0xabd   :  { %v4763_v5 = vmax.f32 %v4467_v21, 0.0  ;;  %v3560_v3 = vadd.f32 %v10627_v55, %v3559_v44  ;;  %v10997_v61 = vadd.f32 %v2895_v18, %v13687_v14  ;;  %v11012_v44 = vadd.f32 %v3828_v10, %v10541_v33 }
 0xabe   :  { %v2480_v46 = vpop.f32.mrf.mxu2  ;;  %v1787_v4 = vmax.f32 %v1574_v37, 0.0 }
 0xabf   :  { %v4938_v45 = vadd.f32 %v4763_v5, %v10558_v26  ;;  %v3829_v8 = vmax.f32 %v3560_v3, 0.0  ;;  %v3196_v27 = vpack.c.bf16 %v10997_v61, %v10993_v36  ;;  %v2481_v18 = vadd.f32 %v11008_v47, %v2480_v46  ;;  %v13689_v3 = vld [vmem:[#allocation215_spill] sm:$0xff] }
 0xac0   :  { %v5375_v21 = vpop.f32.mrf.mxu1 }
 0xac1   :  { %v11015_v57 = vadd.f32 %v3829_v8, %v10545_v51  ;;  %v5376_v26 = vadd.f32 %v10760_v40, %v5375_v21  ;;  %3601 = vmatmul.bf16.gmra.mxu3 %v3196_v27  ;;  %v5081_v12 = vpack.c.bf16 %v4938_v45, %v4937_v59  ;;  %v2721_v33 = vmax.f32 %v2481_v18, 0.0 }
 0xac2   :  { %v4469_v5 = vpop.f32.mrf.mxu0  ;;  %v11025_v51 = vadd.f32 %v1788_v29, %v13689_v3  ;;  %v11028_v59 = vadd.f32 %v1787_v4, %v13690_v6  ;;  %v13695_v3 = vld [vmem:[#allocation253_spill] sm:$0xff] }
 0xac3   :  { %5698 = vst.msk [vmem:[%s12413_s5 + $0x270] sm:$0xff] %vm5619_vm1, %v5376_v26  ;;  %5414 = vmatmul.bf16.gmra.mxu1 %v5081_v12  ;;  %v4139_v46 = vpack.c.bf16 %v11015_v57, %v11012_v44  ;;  %v4470_v37 = vadd.f32 %v10939_v2, %v4469_v5  ;;  %v2896_v8 = vadd.f32 %v2721_v33, %v10571_v9  ;;  %v13691_v5 = vld [vmem:[#allocation256_spill] sm:$0xff] }
 0xac4   :  { %v3562_v10 = vpop.f32.mrf.mxu3  ;;  %v2079_v29 = vpack.c.bf16 %v11025_v51, %v11028_v59  ;;  %v1581_v33 = vadd.f32 %v10896_v7, %v13691_v5 }
 0xac5   :  { %4508 = vmatmul.bf16.gmra.mxu0 %v4139_v46  ;;  %v3563_v21 = vadd.f32 %v10627_v55, %v3562_v10  ;;  %v4764_v46 = vmax.f32 %v4470_v37, 0.0  ;;  %v11046_v10 = vadd.f32 %v2896_v8, %v13605_v48 }
 0xac6   :  { %v2482_v14 = vpop.f32.mrf.mxu2  ;;  %v1790_v8 = vmax.f32 %v1581_v33, 0.0 }
 0xac7   :  { %v2483_v45 = vadd.f32 %v11008_v47, %v2482_v14  ;;  %13692 = vst [vmem:[#allocation77_spill] sm:$0xff] %v11046_v10 }
 0xac8   :  { %v5377_v27 = vpop.f32.mrf.mxu1 }
 0xac9   :  { %v2722_v26 = vmax.f32 %v2483_v45, 0.0  ;;  %v5378_v18 = vadd.f32 %v10760_v40, %v5377_v27  ;;  %v3830_v45 = vmax.f32 %v3563_v21, 0.0 }
 0xaca   :  { %v4471_v12 = vpop.f32.mrf.mxu0 }
 0xacb   :  { %v2897_v4 = vadd.f32 %v2722_v26, %v10568_v54  ;;  %5699 = vst.msk [vmem:[%s12413_s5 + $0x278] sm:$0xff] %vm5619_vm1, %v5378_v18  ;;  %v4472_v9 = vadd.f32 %v10939_v2, %v4471_v12  ;;  %2524 = vmatmul.bf16.gmra.mxu2 %v2079_v29  ;;  %v13693_v54 = vld [vmem:[#allocation179_spill] sm:$0xff]  ;;  %v1579_v18 = vadd.f32 %v10896_v7, %v13695_v3 }
 0xacc   :  { %v3564_v14 = vpop.f32.mrf.mxu3  ;;  %v4939_v29 = vadd.f32 %v4764_v46, %v10603_v56 }
 0xacd   :  { %v4765_v27 = vmax.f32 %v4472_v9, 0.0  ;;  %v3565_v37 = vadd.f32 %v10627_v55, %v3564_v14  ;;  %v11050_v26 = vadd.f32 %v2897_v4, %v13693_v54  ;;  %v11060_v14 = vadd.f32 %v3830_v45, %v10589_v60  ;;  %v13696_v45 = vld [vmem:[#allocation219_spill] sm:$0xff] }
 0xace   :  { %v2485_v6 = vpop.f32.mrf.mxu2 }
 0xacf   :  { %13694 = vst [vmem:[#allocation82_spill] sm:$0xff] %v11050_v26  ;;  %v4940_v12 = vadd.f32 %v4765_v27, %v10606_v38  ;;  %v3831_v5 = vmax.f32 %v3565_v37, 0.0  ;;  %v3197_v48 = vpack.c.bf16 %v11050_v26, %v11046_v10  ;;  %v2486_v21 = vadd.f32 %v11008_v47, %v2485_v6  ;;  %v13698_v37 = vld [vmem:[#allocation218_spill] sm:$0xff] }
 0xad0   :  { %v5380_v9 = vpop.f32.mrf.mxu1  ;;  %v1789_v38 = vmax.f32 %v1579_v18, 0.0 }
 0xad1   :  { %v11063_v4 = vadd.f32 %v3831_v5, %v10593_v11  ;;  %v5381_v3 = vadd.f32 %v10760_v40, %v5380_v9  ;;  %3606 = vmatmul.bf16.gmra.mxu3 %v3197_v48  ;;  %v5082_v56 = vpack.c.bf16 %v4940_v12, %v4939_v29  ;;  %v2723_v60 = vmax.f32 %v2486_v21, 0.0 }
 0xad2   :  { %v4474_v46 = vpop.f32.mrf.mxu0  ;;  %v11073_v11 = vadd.f32 %v1790_v8, %v13696_v45  ;;  %v11076_v54 = vadd.f32 %v1789_v38, %v13698_v37  ;;  %v13705_v37 = vld [vmem:[#allocation257_spill] sm:$0xff] }
 0xad3   :  { %5700 = vst.msk [vmem:[%s12413_s5 + $0x280] sm:$0xff] %vm5619_vm1, %v5381_v3  ;;  %5419 = vmatmul.bf16.gmra.mxu1 %v5082_v56  ;;  %v4140_v6 = vpack.c.bf16 %v11063_v4, %v11060_v14  ;;  %v4475_v18 = vadd.f32 %v10939_v2, %v4474_v46  ;;  %v2898_v12 = vadd.f32 %v2723_v60, %v10619_v19  ;;  %v13701_v46 = vld [vmem:[#allocation260_spill] sm:$0xff] }
 0xad4   :  { %v3567_v33 = vpop.f32.mrf.mxu3  ;;  %13697 = vst [vmem:[#allocation12_spill] sm:$0xff] %v11073_v11  ;;  %v2080_v8 = vpack.c.bf16 %v11073_v11, %v11076_v54  ;;  %v1586_v60 = vadd.f32 %v10896_v7, %v13701_v46 }
 0xad5   :  { %4513 = vmatmul.bf16.gmra.mxu0 %v4140_v6  ;;  %13699 = vst [vmem:[#allocation11_spill] sm:$0xff] %v11076_v54  ;;  %v3568_v48 = vadd.f32 %v10627_v55, %v3567_v33  ;;  %v4766_v56 = vmax.f32 %v4475_v18, 0.0  ;;  %v13700_v6 = vld [vmem:[#allocation74_spill] sm:$0xff] }
 0xad6   :  { %v2487_v27 = vpop.f32.mrf.mxu2  ;;  %v13702_v33 = vld [vmem:[#allocation182_spill] sm:$0xff] }
 0xad7   :  { %v2488_v29 = vadd.f32 %v11008_v47, %v2487_v27  ;;  %v11094_v27 = vadd.f32 %v2898_v12, %v13702_v33  ;;  %v13707_v54 = vld [vmem:[#allocation90_spill] sm:$0xff]  ;;  %v1792_v33 = vmax.f32 %v1586_v60, 0.0 }
 0xad8   :  { %v5382_v5 = vpop.f32.mrf.mxu1 }
 0xad9   :  { %v2724_v9 = vmax.f32 %v2488_v29, 0.0  ;;  %v5383_v21 = vadd.f32 %v10760_v40, %v5382_v5  ;;  %v3832_v5 = vmax.f32 %v3568_v48, 0.0 }
 0xada   :  { %v4476_v3 = vpop.f32.mrf.mxu0 }
 0xadb   :  { %v2899_v38 = vadd.f32 %v2724_v9, %v13700_v6  ;;  %5701 = vst.msk [vmem:[%s12413_s5 + $0x288] sm:$0xff] %vm5619_vm1, %v5383_v21  ;;  %v4477_v19 = vadd.f32 %v10939_v2, %v4476_v3  ;;  %2529 = vmatmul.bf16.gmra.mxu2 %v2080_v8  ;;  %v13703_v9 = vld [vmem:[#allocation183_spill] sm:$0xff]  ;;  %v1584_v21 = vadd.f32 %v10896_v7, %v13705_v37  ;;  %v13706_v3 = vld [vmem:[#allocation8_spill] sm:$0xff] }
 0xadc   :  { %v3569_v29 = vpop.f32.mrf.mxu3  ;;  %v4941_v8 = vadd.f32 %v4766_v56, %v13706_v3 }
 0xadd   :  { %v4767_v45 = vmax.f32 %v4477_v19, 0.0  ;;  %v3570_v18 = vadd.f32 %v10627_v55, %v3569_v29  ;;  %v11098_v6 = vadd.f32 %v2899_v38, %v13703_v9  ;;  %v13708_v29 = vld [vmem:[#allocation54_spill] sm:$0xff]  ;;  %v13709_v38 = vld [vmem:[#allocation55_spill] sm:$0xff] }
 0xade   :  { %v2490_v11 = vpop.f32.mrf.mxu2  ;;  %v11108_v10 = vadd.f32 %v3832_v5, %v13708_v29  ;;  %v13710_v5 = vld [vmem:[#allocation223_spill] sm:$0xff] }
 0xadf   :  { %13704 = vst [vmem:[#allocation68_spill] sm:$0xff] %v11098_v6  ;;  %v4942_v26 = vadd.f32 %v4767_v45, %v13707_v54  ;;  %v3833_v46 = vmax.f32 %v3570_v18, 0.0  ;;  %v3198_v12 = vpack.c.bf16 %v11098_v6, %v11094_v27  ;;  %v2491_v48 = vadd.f32 %v11008_v47, %v2490_v11  ;;  %v13715_v6 = vld [vmem:[#allocation57_spill] sm:$0xff] }
 0xae0   :  { %v5385_v19 = vpop.f32.mrf.mxu1  ;;  %v1791_v45 = vmax.f32 %v1584_v21, 0.0  ;;  %v11121_v18 = vadd.f32 %v1792_v33, %v13710_v5 }
 0xae1   :  { %v11111_v9 = vadd.f32 %v3833_v46, %v13709_v38  ;;  %v5386_v37 = vadd.f32 %v10760_v40, %v5385_v19  ;;  %3611 = vmatmul.bf16.gmra.mxu3 %v3198_v12  ;;  %v5083_v56 = vpack.c.bf16 %v4942_v26, %v4941_v8  ;;  %v2725_v54 = vmax.f32 %v2491_v48, 0.0  ;;  %v13712_v12 = vld [vmem:[#allocation222_spill] sm:$0xff] }
 0xae2   :  { %v4479_v3 = vpop.f32.mrf.mxu0  ;;  %13711 = vst [vmem:[#allocation69_spill] sm:$0xff] %v11121_v18  ;;  %v11124_v26 = vadd.f32 %v1791_v45, %v13712_v12  ;;  %v13714_v19 = vld [vmem:[#allocation58_spill] sm:$0xff] }
 0xae3   :  { %5702 = vst.msk [vmem:[%s12413_s5 + $0x290] sm:$0xff] %vm5619_vm1, %v5386_v37  ;;  %5424 = vmatmul.bf16.gmra.mxu1 %v5083_v56  ;;  %v4141_v11 = vpack.c.bf16 %v11111_v9, %v11108_v10  ;;  %v4480_v21 = vadd.f32 %v10939_v2, %v4479_v3  ;;  %v2900_v29 = vadd.f32 %v2725_v54, %v13714_v19  ;;  %v13716_v54 = vld [vmem:[#allocation263_spill] sm:$0xff] }
 0xae4   :  { %v3572_v60 = vpop.f32.mrf.mxu3  ;;  %13713 = vst [vmem:[#allocation15_spill] sm:$0xff] %v11124_v26  ;;  %v2081_v33 = vpack.c.bf16 %v11121_v18, %v11124_v26  ;;  %v13720_v18 = vld [vmem:[#allocation261_spill] sm:$0xff] }
 0xae5   :  { %4518 = vmatmul.bf16.gmra.mxu0 %v4141_v11  ;;  %v3573_v37 = vadd.f32 %v10627_v55, %v3572_v60  ;;  %v4768_v5 = vmax.f32 %v4480_v21, 0.0  ;;  %v1591_v60 = vadd.f32 %v10896_v7, %v13716_v54 }
 0xae6   :  { %v2492_v46 = vpop.f32.mrf.mxu2 }
 0xae7   :  { %v2493_v8 = vadd.f32 %v11008_v47, %v2492_v46  ;;  %v13717_v46 = vld [vmem:[#allocation186_spill] sm:$0xff] }
 0xae8   :  { %v5387_v38 = vpop.f32.mrf.mxu1 }
 0xae9   :  { %v2726_v56 = vmax.f32 %v2493_v8, 0.0  ;;  %v5388_v48 = vadd.f32 %v10760_v40, %v5387_v38  ;;  %v11142_v8 = vadd.f32 %v2900_v29, %v13717_v46  ;;  %v3834_v38 = vmax.f32 %v3573_v37, 0.0 }
 0xaea   :  { %v4481_v11 = vpop.f32.mrf.mxu0  ;;  %v1794_v46 = vmax.f32 %v1591_v60, 0.0  ;;  %v13722_v60 = vld [vmem:[#allocation227_spill] sm:$0xff] }
 0xaeb   :  { %v2901_v45 = vadd.f32 %v2726_v56, %v13715_v6  ;;  %5703 = vst.msk [vmem:[%s12413_s5 + $0x298] sm:$0xff] %vm5619_vm1, %v5388_v48  ;;  %v4482_v3 = vadd.f32 %v10939_v2, %v4481_v11  ;;  %2534 = vmatmul.bf16.gmra.mxu2 %v2081_v33  ;;  %v13718_v6 = vld [vmem:[#allocation187_spill] sm:$0xff]  ;;  %v1589_v48 = vadd.f32 %v10896_v7, %v13720_v18 }
 0xaec   :  { %v3574_v19 = vpop.f32.mrf.mxu3  ;;  %v4943_v33 = vadd.f32 %v4768_v5, %v10704_v20 }
 0xaed   :  { %v4769_v12 = vmax.f32 %v4482_v3, 0.0  ;;  %v3575_v21 = vadd.f32 %v10627_v55, %v3574_v19  ;;  %v11146_v56 = vadd.f32 %v2901_v45, %v13718_v6  ;;  %v11156_v19 = vadd.f32 %v3834_v38, %v10690_v53  ;;  %v13721_v45 = vld [vmem:[#allocation71_spill] sm:$0xff] }
 0xaee   :  { %v2495_v26 = vpop.f32.mrf.mxu2  ;;  %v11169_v38 = vadd.f32 %v1794_v46, %v13722_v60  ;;  %v13726_v60 = vld [vmem:[#allocation78_spill] sm:$0xff] }
 0xaef   :  { %13719 = vst [vmem:[#allocation14_spill] sm:$0xff] %v11146_v56  ;;  %v4944_v11 = vadd.f32 %v4769_v12, %v10707_v0  ;;  %v3835_v54 = vmax.f32 %v3575_v21, 0.0  ;;  %v3199_v29 = vpack.c.bf16 %v11146_v56, %v11142_v8  ;;  %v2496_v37 = vadd.f32 %v11008_v47, %v2495_v26 }
 0xaf0   :  { %v5390_v3 = vpop.f32.mrf.mxu1  ;;  %v1793_v0 = vmax.f32 %v1589_v48, 0.0  ;;  %13723 = vst [vmem:[#allocation85_spill] sm:$0xff] %v11169_v38 }
 0xaf1   :  { %v11159_v6 = vadd.f32 %v3835_v54, %v13721_v45  ;;  %v5391_v18 = vadd.f32 %v10760_v40, %v5390_v3  ;;  %3616 = vmatmul.bf16.gmra.mxu3 %v3199_v29  ;;  %v5084_v20 = vpack.c.bf16 %v4944_v11, %v4943_v33  ;;  %v2727_v53 = vmax.f32 %v2496_v37, 0.0  ;;  %v13724_v54 = vld [vmem:[#allocation226_spill] sm:$0xff] }
 0xaf2   :  { %v4484_v5 = vpop.f32.mrf.mxu0  ;;  %v11172_v33 = vadd.f32 %v1793_v0, %v13724_v54 }
 0xaf3   :  { %5704 = vst.msk [vmem:[%s12413_s5 + $0x2a0] sm:$0xff] %vm5619_vm1, %v5391_v18  ;;  %5429 = vmatmul.bf16.gmra.mxu1 %v5084_v20  ;;  %v4142_v12 = vpack.c.bf16 %v11159_v6, %v11156_v19  ;;  %v4485_v48 = vadd.f32 %v10939_v2, %v4484_v5  ;;  %v2902_v29 = vadd.f32 %v2727_v53, %v10720_v39  ;;  %v13727_v5 = vld [vmem:[#allocation265_spill] sm:$0xff]  ;;  %v13728_v53 = vld [vmem:[#allocation190_spill] sm:$0xff] }
 0xaf4   :  { %v3577_v26 = vpop.f32.mrf.mxu3  ;;  %13725 = vst [vmem:[#allocation81_spill] sm:$0xff] %v11172_v33  ;;  %v2082_v46 = vpack.c.bf16 %v11169_v38, %v11172_v33 }
 0xaf5   :  { %4523 = vmatmul.bf16.gmra.mxu0 %v4142_v12  ;;  %v3578_v45 = vadd.f32 %v10627_v55, %v3577_v26  ;;  %v4770_v12 = vmax.f32 %v4485_v48, 0.0  ;;  %v1596_v55 = vadd.f32 %v10896_v7, %v13727_v5  ;;  %v11190_v26 = vadd.f32 %v2902_v29, %v13728_v53 }
 0xaf6   :  { %v2497_v21 = vpop.f32.mrf.mxu2 }
 0xaf7   :  { %v2498_v11 = vadd.f32 %v11008_v47, %v2497_v21  ;;  %v4945_v29 = vadd.f32 %v4770_v12, %v10752_v30  ;;  %v1796_v54 = vmax.f32 %v1596_v55, 0.0 }
 0xaf8   :  { %v5392_v3 = vpop.f32.mrf.mxu1 }
 0xaf9   :  { %v2728_v18 = vmax.f32 %v2498_v11, 0.0  ;;  %v5393_v37 = vadd.f32 %v10760_v40, %v5392_v3  ;;  %v3836_v11 = vmax.f32 %v3578_v45, 0.0 }
 0xafa   :  { %v4486_v20 = vpop.f32.mrf.mxu0 }
 0xafb   :  { %v2903_v0 = vadd.f32 %v2728_v18, %v13726_v60  ;;  %5705 = vst.msk [vmem:[%s12413_s5 + $0x2a8] sm:$0xff] %vm5619_vm1, %v5393_v37  ;;  %v4487_v39 = vadd.f32 %v10939_v2, %v4486_v20  ;;  %2539 = vmatmul.bf16.gmra.mxu2 %v2082_v46  ;;  %v11195_v60 = vld [vmem:[%s12409_s4 + $0x3] ss:$0 sm:$0xff]  ;;  %v13729_v18 = vld [vmem:[#allocation191_spill] sm:$0xff]  ;;  %v13731_v46 = vld [vmem:[#allocation264_spill] sm:$0xff] }
 0xafc   :  { %v3579_v21 = vpop.f32.mrf.mxu3  ;;  %v1594_v20 = vadd.f32 %v10896_v7, %v13731_v46 }
 0xafd   :  { %v4771_v3 = vmax.f32 %v4487_v39, 0.0  ;;  %v3580_v48 = vadd.f32 %v11195_v60, %v3579_v21  ;;  %v11199_v37 = vadd.f32 %v2903_v0, %v13729_v18  ;;  %v13732_v21 = vld [vmem:[#allocation2_spill] sm:$0xff]  ;;  %v13733_v0 = vld [vmem:[#allocation61_spill] sm:$0xff] }
 0xafe   :  { %v2500_v5 = vpop.f32.mrf.mxu2  ;;  %v11209_v56 = vadd.f32 %v3836_v11, %v13732_v21 }
 0xaff   :  { %13730 = vst [vmem:[#allocation88_spill] sm:$0xff] %v11199_v37  ;;  %v4946_v53 = vadd.f32 %v4771_v3, %v10755_v1  ;;  %v3837_v45 = vmax.f32 %v3580_v48, 0.0  ;;  %v3200_v39 = vpack.c.bf16 %v11199_v37, %v11190_v26  ;;  %v2501_v38 = vadd.f32 %v11008_v47, %v2500_v5  ;;  %v13734_v48 = vld [vmem:[#allocation231_spill] sm:$0xff]  ;;  %v13739_v37 = vld [vmem:[#allocation62_spill] sm:$0xff] }
 0xb00   :  { %v5395_v33 = vpop.f32.mrf.mxu1  ;;  %v1795_v1 = vmax.f32 %v1594_v20, 0.0  ;;  %v11222_v5 = vadd.f32 %v1796_v54, %v13734_v48 }
 0xb01   :  { %v11212_v18 = vadd.f32 %v3837_v45, %v13733_v0  ;;  %v5396_v46 = vadd.f32 %v10760_v40, %v5395_v33  ;;  %3621 = vmatmul.bf16.gmra.mxu3 %v3200_v39  ;;  %v5085_v30 = vpack.c.bf16 %v4946_v53, %v4945_v29  ;;  %v2729_v11 = vmax.f32 %v2501_v38, 0.0  ;;  %v13736_v45 = vld [vmem:[#allocation230_spill] sm:$0xff] }
 0xb02   :  { %v4489_v12 = vpop.f32.mrf.mxu0  ;;  %13735 = vst [vmem:[#allocation21_spill] sm:$0xff] %v11222_v5  ;;  %v11225_v29 = vadd.f32 %v1795_v1, %v13736_v45  ;;  %v13738_v39 = vld [vmem:[#allocation10_spill] sm:$0xff] }
 0xb03   :  { %5706 = vst.msk [vmem:[%s12413_s5 + $0x2b0] sm:$0xff] %vm5619_vm1, %v5396_v46  ;;  %5434 = vmatmul.bf16.gmra.mxu1 %v5085_v30  ;;  %v4143_v55 = vpack.c.bf16 %v11212_v18, %v11209_v56  ;;  %v4490_v20 = vadd.f32 %v10939_v2, %v4489_v12  ;;  %v2904_v21 = vadd.f32 %v2729_v11, %v13738_v39  ;;  %v13740_v11 = vld [vmem:[#allocation267_spill] sm:$0xff] }
 0xb04   :  { %v3582_v3 = vpop.f32.mrf.mxu3  ;;  %13737 = vst [vmem:[#allocation22_spill] sm:$0xff] %v11225_v29  ;;  %v2083_v54 = vpack.c.bf16 %v11222_v5, %v11225_v29  ;;  %v13744_v5 = vld [vmem:[#allocation266_spill] sm:$0xff] }
 0xb05   :  { %4528 = vmatmul.bf16.gmra.mxu0 %v4143_v55  ;;  %v3583_v46 = vadd.f32 %v11195_v60, %v3582_v3  ;;  %v4772_v48 = vmax.f32 %v4490_v20, 0.0  ;;  %v1601_v3 = vadd.f32 %v10896_v7, %v13740_v11 }
 0xb06   :  { %v2502_v33 = vpop.f32.mrf.mxu2 }
 0xb07   :  { %v2503_v53 = vadd.f32 %v11008_v47, %v2502_v33  ;;  %v13741_v33 = vld [vmem:[#allocation194_spill] sm:$0xff] }
 0xb08   :  { %v5397_v0 = vpop.f32.mrf.mxu1 }
 0xb09   :  { %v2730_v30 = vmax.f32 %v2503_v53, 0.0  ;;  %v5398_v38 = vadd.f32 %v10760_v40, %v5397_v0  ;;  %v11243_v53 = vadd.f32 %v2904_v21, %v13741_v33  ;;  %v3838_v0 = vmax.f32 %v3583_v46, 0.0 }
 0xb0a   :  { %v4491_v55 = vpop.f32.mrf.mxu0  ;;  %v1798_v33 = vmax.f32 %v1601_v3, 0.0  ;;  %v13746_v3 = vld [vmem:[#allocation235_spill] sm:$0xff] }
 0xb0b   :  { %v2905_v1 = vadd.f32 %v2730_v30, %v13739_v37  ;;  %5707 = vst.msk [vmem:[%s12413_s5 + $0x2b8] sm:$0xff] %vm5619_vm1, %v5398_v38  ;;  %v4492_v12 = vadd.f32 %v10939_v2, %v4491_v55  ;;  %2544 = vmatmul.bf16.gmra.mxu2 %v2083_v54  ;;  %v13742_v37 = vld [vmem:[#allocation195_spill] sm:$0xff]  ;;  %v1599_v38 = vadd.f32 %v10896_v7, %v13744_v5 }
 0xb0c   :  { %v3584_v39 = vpop.f32.mrf.mxu3  ;;  %v4947_v54 = vadd.f32 %v4772_v48, %v10805_v50 }
 0xb0d   :  { %v4773_v45 = vmax.f32 %v4492_v12, 0.0  ;;  %v3585_v20 = vadd.f32 %v11195_v60, %v3584_v39  ;;  %v11247_v30 = vadd.f32 %v2905_v1, %v13742_v37  ;;  %v11257_v39 = vadd.f32 %v3838_v0, %v10791_v22  ;;  %v13745_v1 = vld [vmem:[#allocation9_spill] sm:$0xff] }
 0xb0e   :  { %v2505_v29 = vpop.f32.mrf.mxu2  ;;  %v11270_v0 = vadd.f32 %v1798_v33, %v13746_v3 }
 0xb0f   :  { %13743 = vst [vmem:[#allocation128_spill] sm:$0xff] %v11247_v30  ;;  %v4948_v55 = vadd.f32 %v4773_v45, %v10808_v23  ;;  %v3839_v11 = vmax.f32 %v3585_v20, 0.0  ;;  %v3201_v21 = vpack.c.bf16 %v11247_v30, %v11243_v53  ;;  %v2506_v46 = vadd.f32 %v11008_v47, %v2505_v29  ;;  %v13751_v30 = vld [vmem:[#allocation65_spill] sm:$0xff] }
 0xb10   :  { %v5400_v12 = vpop.f32.mrf.mxu1  ;;  %v1797_v23 = vmax.f32 %v1599_v38, 0.0  ;;  %13747 = vst [vmem:[#allocation72_spill] sm:$0xff] %v11270_v0 }
 0xb11   :  { %v11260_v37 = vadd.f32 %v3839_v11, %v13745_v1  ;;  %v5401_v5 = vadd.f32 %v10760_v40, %v5400_v12  ;;  %3626 = vmatmul.bf16.gmra.mxu3 %v3201_v21  ;;  %v5086_v50 = vpack.c.bf16 %v4948_v55, %v4947_v54  ;;  %v2731_v22 = vmax.f32 %v2506_v46, 0.0  ;;  %v13748_v11 = vld [vmem:[#allocation234_spill] sm:$0xff] }
 0xb12   :  { %v4494_v48 = vpop.f32.mrf.mxu0  ;;  %v11273_v54 = vadd.f32 %v1797_v23, %v13748_v11  ;;  %v13750_v21 = vld [vmem:[#allocation66_spill] sm:$0xff] }
 0xb13   :  { %5708 = vst.msk [vmem:[%s12413_s5 + $0x2c0] sm:$0xff] %vm5619_vm1, %v5401_v5  ;;  %5439 = vmatmul.bf16.gmra.mxu1 %v5086_v50  ;;  %v4144_v45 = vpack.c.bf16 %v11260_v37, %v11257_v39  ;;  %v4495_v38 = vadd.f32 %v10939_v2, %v4494_v48  ;;  %v2906_v12 = vadd.f32 %v2731_v22, %v13750_v21  ;;  %v13752_v22 = vld [vmem:[#allocation269_spill] sm:$0xff] }
 0xb14   :  { %v3587_v29 = vpop.f32.mrf.mxu3  ;;  %13749 = vst [vmem:[#allocation73_spill] sm:$0xff] %v11273_v54  ;;  %v2084_v33 = vpack.c.bf16 %v11270_v0, %v11273_v54  ;;  %v13755_v0 = vld [vmem:[#allocation268_spill] sm:$0xff] }
 0xb15   :  { %4533 = vmatmul.bf16.gmra.mxu0 %v4144_v45  ;;  %v3588_v5 = vadd.f32 %v11195_v60, %v3587_v29  ;;  %v4774_v3 = vmax.f32 %v4495_v38, 0.0  ;;  %v1606_v29 = vadd.f32 %v10896_v7, %v13752_v22 }
 0xb16   :  { %v2507_v20 = vpop.f32.mrf.mxu2 }
 0xb17   :  { %v2508_v55 = vadd.f32 %v11008_v47, %v2507_v20  ;;  %v13753_v20 = vld [vmem:[#allocation198_spill] sm:$0xff] }
 0xb18   :  { %v5402_v1 = vpop.f32.mrf.mxu1 }
 0xb19   :  { %v2732_v50 = vmax.f32 %v2508_v55, 0.0  ;;  %v5403_v46 = vadd.f32 %v10760_v40, %v5402_v1  ;;  %v11291_v55 = vadd.f32 %v2906_v12, %v13753_v20  ;;  %v3840_v1 = vmax.f32 %v3588_v5, 0.0 }
 0xb1a   :  { %v4496_v45 = vpop.f32.mrf.mxu0  ;;  %v1800_v20 = vmax.f32 %v1606_v29, 0.0  ;;  %v13756_v29 = vld [vmem:[#allocation239_spill] sm:$0xff] }
 0xb1b   :  { %v2907_v23 = vadd.f32 %v2732_v50, %v13751_v30  ;;  %5709 = vst.msk [vmem:[%s12413_s5 + $0x2c8] sm:$0xff] %vm5619_vm1, %v5403_v46  ;;  %v4497_v48 = vadd.f32 %v10939_v2, %v4496_v45  ;;  %2549 = vmatmul.bf16.gmra.mxu2 %v2084_v33  ;;  %v13754_v30 = vld [vmem:[#allocation199_spill] sm:$0xff]  ;;  %v1604_v46 = vadd.f32 %v10896_v7, %v13755_v0 }
 0xb1c   :  { %v3589_v21 = vpop.f32.mrf.mxu3  ;;  %v4949_v33 = vadd.f32 %v4774_v3, %v10853_v13 }
 0xb1d   :  { %v4775_v11 = vmax.f32 %v4497_v48, 0.0  ;;  %v3590_v38 = vadd.f32 %v11195_v60, %v3589_v21  ;;  %v11295_v50 = vadd.f32 %v2907_v23, %v13754_v30  ;;  %v11305_v21 = vadd.f32 %v3840_v1, %v10839_v49  ;;  %v13757_v1 = vld [vmem:[#allocation238_spill] sm:$0xff] }
 0xb1e   :  { %v2510_v54 = vpop.f32.mrf.mxu2 }
 0xb1f   :  { %v4950_v45 = vadd.f32 %v4775_v11, %v10856_v17  ;;  %v3841_v22 = vmax.f32 %v3590_v38, 0.0  ;;  %v3202_v12 = vpack.c.bf16 %v11295_v50, %v11291_v55  ;;  %v2511_v5 = vadd.f32 %v11008_v47, %v2510_v54 }
 0xb20   :  { %v5405_v48 = vpop.f32.mrf.mxu1  ;;  %v1799_v17 = vmax.f32 %v1604_v46, 0.0 }
 0xb21   :  { %v11308_v23 = vadd.f32 %v3841_v22, %v10843_v35  ;;  %v5406_v0 = vadd.f32 %v10760_v40, %v5405_v48  ;;  %3631 = vmatmul.bf16.gmra.mxu3 %v3202_v12  ;;  %v5087_v13 = vpack.c.bf16 %v4950_v45, %v4949_v33  ;;  %v2733_v49 = vmax.f32 %v2511_v5, 0.0 }
 0xb22   :  { %v4499_v3 = vpop.f32.mrf.mxu0  ;;  %v11318_v35 = vadd.f32 %v1800_v20, %v13756_v29  ;;  %v11321_v38 = vadd.f32 %v1799_v17, %v13757_v1  ;;  %v11330_v20 = vld [vmem:[%s12409_s4 + $0x5] ss:$0 sm:$0xff]  ;;  %v13758_v17 = vld [vmem:[#allocation271_spill] sm:$0xff] }
 0xb23   :  { %5710 = vst.msk [vmem:[%s12413_s5 + $0x2d0] sm:$0xff] %vm5619_vm1, %v5406_v0  ;;  %5444 = vmatmul.bf16.gmra.mxu1 %v5087_v13  ;;  %v4145_v11 = vpack.c.bf16 %v11308_v23, %v11305_v21  ;;  %v4500_v30 = vadd.f32 %v10939_v2, %v4499_v3  ;;  %v2908_v33 = vadd.f32 %v2733_v49, %v10869_v24  ;;  %v13759_v49 = vld [vmem:[#allocation202_spill] sm:$0xff] }
 0xb24   :  { %v3592_v54 = vpop.f32.mrf.mxu3  ;;  %v2085_v48 = vpack.c.bf16 %v11318_v35, %v11321_v38  ;;  %v13761_v29 = vld [vmem:[#allocation270_spill] sm:$0xff] }
 0xb25   :  { %4538 = vmatmul.bf16.gmra.mxu0 %v4145_v11  ;;  %v3593_v22 = vadd.f32 %v11195_v60, %v3592_v54  ;;  %v4776_v13 = vmax.f32 %v4500_v30, 0.0  ;;  %v1611_v11 = vadd.f32 %v10896_v7, %v13758_v17  ;;  %v11344_v54 = vadd.f32 %v2908_v33, %v13759_v49 }
 0xb26   :  { %v2512_v40 = vpop.f32.mrf.mxu2 }
 0xb27   :  { %v2513_v46 = vadd.f32 %v11008_v47, %v2512_v40  ;;  %v1802_v49 = vmax.f32 %v1611_v11, 0.0 }
 0xb28   :  { %v5407_v45 = vpop.f32.mrf.mxu1 }
 0xb29   :  { %v2734_v12 = vmax.f32 %v2513_v46, 0.0  ;;  %v5408_v5 = vadd.f32 %v11330_v20, %v5407_v45  ;;  %v3842_v46 = vmax.f32 %v3593_v22, 0.0 }
 0xb2a   :  { %v4501_v0 = vpop.f32.mrf.mxu0 }
 0xb2b   :  { %v2909_v3 = vadd.f32 %v2734_v12, %v10866_v42  ;;  %5711 = vst.msk [vmem:[%s12413_s5 + $0x2d8] sm:$0xff] %vm5619_vm1, %v5408_v5  ;;  %v4502_v24 = vadd.f32 %v10939_v2, %v4501_v0  ;;  %2554 = vmatmul.bf16.gmra.mxu2 %v2085_v48  ;;  %v13760_v42 = vld [vmem:[#allocation203_spill] sm:$0xff]  ;;  %v1609_v5 = vadd.f32 %v10896_v7, %v13761_v29 }
 0xb2c   :  { %v3594_v40 = vpop.f32.mrf.mxu3  ;;  %v4951_v48 = vadd.f32 %v4776_v13, %v10906_v52 }
 0xb2d   :  { %v4777_v45 = vmax.f32 %v4502_v24, 0.0  ;;  %v3595_v30 = vadd.f32 %v11195_v60, %v3594_v40  ;;  %v11348_v12 = vadd.f32 %v2909_v3, %v13760_v42  ;;  %v11358_v40 = vadd.f32 %v3842_v46, %v10887_v41  ;;  %v13762_v46 = vld [vmem:[#allocation243_spill] sm:$0xff] }
 0xb2e   :  { %v2515_v1 = vpop.f32.mrf.mxu2 }
 0xb2f   :  { %v4952_v0 = vadd.f32 %v4777_v45, %v10909_v32  ;;  %v3843_v17 = vmax.f32 %v3595_v30, 0.0  ;;  %v3203_v33 = vpack.c.bf16 %v11348_v12, %v11344_v54  ;;  %v2516_v22 = vadd.f32 %v11008_v47, %v2515_v1  ;;  %v13763_v30 = vld [vmem:[#allocation242_spill] sm:$0xff] }
 0xb30   :  { %v5410_v24 = vpop.f32.mrf.mxu1  ;;  %v1801_v32 = vmax.f32 %v1609_v5, 0.0 }
 0xb31   :  { %v11361_v3 = vadd.f32 %v3843_v17, %v10891_v43  ;;  %v5411_v29 = vadd.f32 %v11330_v20, %v5410_v24  ;;  %3636 = vmatmul.bf16.gmra.mxu3 %v3203_v33  ;;  %v5088_v52 = vpack.c.bf16 %v4952_v0, %v4951_v48  ;;  %v2735_v41 = vmax.f32 %v2516_v22, 0.0 }
 0xb32   :  { %v4504_v13 = vpop.f32.mrf.mxu0  ;;  %v11371_v43 = vadd.f32 %v1802_v49, %v13762_v46  ;;  %v11374_v42 = vadd.f32 %v1801_v32, %v13763_v30  ;;  %v13767_v46 = vld [vmem:[#allocation272_spill] sm:$0xff] }
 0xb33   :  { %5712 = vst.msk [vmem:[%s12413_s5 + $0x2e0] sm:$0xff] %vm5619_vm1, %v5411_v29  ;;  %5449 = vmatmul.bf16.gmra.mxu1 %v5088_v52  ;;  %v4146_v1 = vpack.c.bf16 %v11361_v3, %v11358_v40  ;;  %v4505_v5 = vadd.f32 %v10939_v2, %v4504_v13  ;;  %v2910_v0 = vadd.f32 %v2735_v41, %v10922_v62  ;;  %v13764_v13 = vld [vmem:[#allocation273_spill] sm:$0xff]  ;;  %v13765_v41 = vld [vmem:[#allocation206_spill] sm:$0xff] }
 0xb34   :  { %v3597_v11 = vpop.f32.mrf.mxu3  ;;  %v2086_v49 = vpack.c.bf16 %v11371_v43, %v11374_v42 }
 0xb35   :  { %4543 = vmatmul.bf16.gmra.mxu0 %v4146_v1  ;;  %v3598_v33 = vadd.f32 %v11195_v60, %v3597_v11  ;;  %v4778_v52 = vmax.f32 %v4505_v5, 0.0  ;;  %v1616_v1 = vadd.f32 %v10896_v7, %v13764_v13  ;;  %v11392_v11 = vadd.f32 %v2910_v0, %v13765_v41 }
 0xb36   :  { %v2517_v45 = vpop.f32.mrf.mxu2 }
 0xb37   :  { %v2518_v48 = vadd.f32 %v11008_v47, %v2517_v45  ;;  %v1804_v41 = vmax.f32 %v1616_v1, 0.0 }
 0xb38   :  { %v5412_v17 = vpop.f32.mrf.mxu1 }
 0xb39   :  { %v2736_v24 = vmax.f32 %v2518_v48, 0.0  ;;  %v5413_v22 = vadd.f32 %v11330_v20, %v5412_v17  ;;  %v3844_v48 = vmax.f32 %v3598_v33, 0.0 }
 0xb3a   :  { %v4506_v29 = vpop.f32.mrf.mxu0 }
 0xb3b   :  { %v2911_v32 = vadd.f32 %v2736_v24, %v10919_v63  ;;  %5713 = vst.msk [vmem:[%s12413_s5 + $0x2e8] sm:$0xff] %vm5619_vm1, %v5413_v22  ;;  %v4507_v62 = vadd.f32 %v10939_v2, %v4506_v29  ;;  %2559 = vmatmul.bf16.gmra.mxu2 %v2086_v49  ;;  %v13766_v63 = vld [vmem:[#allocation207_spill] sm:$0xff]  ;;  %v1614_v22 = vadd.f32 %v10896_v7, %v13767_v46 }
 0xb3c   :  { %v3599_v45 = vpop.f32.mrf.mxu3  ;;  %v4953_v49 = vadd.f32 %v4778_v52, %v10959_v34 }
 0xb3d   :  { %v4779_v17 = vmax.f32 %v4507_v62, 0.0  ;;  %v3600_v5 = vadd.f32 %v11195_v60, %v3599_v45  ;;  %v11396_v24 = vadd.f32 %v2911_v32, %v13766_v63  ;;  %v11406_v45 = vadd.f32 %v3844_v48, %v10945_v25  ;;  %v13768_v48 = vld [vmem:[#allocation247_spill] sm:$0xff] }
 0xb3e   :  { %v2520_v30 = vpop.f32.mrf.mxu2 }
 0xb3f   :  { %v4954_v29 = vadd.f32 %v4779_v17, %v10962_v15  ;;  %v3845_v13 = vmax.f32 %v3600_v5, 0.0  ;;  %v3204_v0 = vpack.c.bf16 %v11396_v24, %v11392_v11  ;;  %v2521_v33 = vadd.f32 %v11008_v47, %v2520_v30  ;;  %v13769_v5 = vld [vmem:[#allocation246_spill] sm:$0xff] }
 0xb40   :  { %v5415_v62 = vpop.f32.mrf.mxu1  ;;  %v1803_v15 = vmax.f32 %v1614_v22, 0.0 }
 0xb41   :  { %v11409_v32 = vadd.f32 %v3845_v13, %v10949_v58  ;;  %v5416_v46 = vadd.f32 %v11330_v20, %v5415_v62  ;;  %3641 = vmatmul.bf16.gmra.mxu3 %v3204_v0  ;;  %v5089_v34 = vpack.c.bf16 %v4954_v29, %v4953_v49  ;;  %v2737_v25 = vmax.f32 %v2521_v33, 0.0 }
 0xb42   :  { %v4509_v52 = vpop.f32.mrf.mxu0  ;;  %v11419_v58 = vadd.f32 %v1804_v41, %v13768_v48  ;;  %v11422_v63 = vadd.f32 %v1803_v15, %v13769_v5 }
 0xb43   :  { %5714 = vst.msk [vmem:[%s12413_s5 + $0x2f0] sm:$0xff] %vm5619_vm1, %v5416_v46  ;;  %5454 = vmatmul.bf16.gmra.mxu1 %v5089_v34  ;;  %v4147_v30 = vpack.c.bf16 %v11409_v32, %v11406_v45  ;;  %v4510_v22 = vadd.f32 %v10939_v2, %v4509_v52  ;;  %v2912_v29 = vadd.f32 %v2737_v25, %v10975_v28  ;;  %v13770_v52 = vld [vmem:[#allocation275_spill] sm:$0xff] }
 0xb44   :  { %v3602_v1 = vpop.f32.mrf.mxu3  ;;  %v2087_v41 = vpack.c.bf16 %v11419_v58, %v11422_v63 }
 0xb45   :  { %4548 = vmatmul.bf16.gmra.mxu0 %v4147_v30  ;;  %v3603_v0 = vadd.f32 %v11195_v60, %v3602_v1  ;;  %v4780_v34 = vmax.f32 %v4510_v22, 0.0  ;;  %v1621_v30 = vadd.f32 %v10896_v7, %v13770_v52  ;;  %v11440_v25 = vadd.f32 %v2912_v29, %v13684_v16 }
 0xb46   :  { %v2522_v17 = vpop.f32.mrf.mxu2 }
 0xb47   :  { %v2523_v49 = vadd.f32 %v11008_v47, %v2522_v17  ;;  %v3846_v17 = vmax.f32 %v3603_v0, 0.0  ;;  %v1806_v29 = vmax.f32 %v1621_v30, 0.0 }
 0xb48   :  { %v5417_v13 = vpop.f32.mrf.mxu1 }
 0xb49   :  { %v2738_v62 = vmax.f32 %v2523_v49, 0.0  ;;  %v5418_v33 = vadd.f32 %v11330_v20, %v5417_v13 }
 0xb4a   :  { %v4511_v46 = vpop.f32.mrf.mxu0 }
 0xb4b   :  { %v2913_v15 = vadd.f32 %v2738_v62, %v10972_v31  ;;  %5715 = vst.msk [vmem:[%s12413_s5 + $0x2f8] sm:$0xff] %vm5619_vm1, %v5418_v33  ;;  %v4512_v28 = vadd.f32 %v10939_v2, %v4511_v46  ;;  %2564 = vmatmul.bf16.gmra.mxu2 %v2087_v41  ;;  %v13771_v31 = vld [vmem:[#allocation211_spill] sm:$0xff]  ;;  %v13772_v62 = vld [vmem:[#allocation274_spill] sm:$0xff]  ;;  %v4955_v41 = vadd.f32 %v4780_v34, %v11012_v44 }
 0xb4c   :  { %v3604_v1 = vpop.f32.mrf.mxu3  ;;  %v1619_v33 = vadd.f32 %v10896_v7, %v13772_v62 }
 0xb4d   :  { %v4781_v49 = vmax.f32 %v4512_v28, 0.0  ;;  %v3605_v22 = vadd.f32 %v11195_v60, %v3604_v1  ;;  %v11444_v13 = vadd.f32 %v2913_v15, %v13771_v31  ;;  %v11454_v1 = vadd.f32 %v3846_v17, %v10993_v36  ;;  %v13773_v17 = vld [vmem:[#allocation251_spill] sm:$0xff] }
 0xb4e   :  { %v2525_v48 = vpop.f32.mrf.mxu2 }
 0xb4f   :  { %v4956_v46 = vadd.f32 %v4781_v49, %v11015_v57  ;;  %v3847_v52 = vmax.f32 %v3605_v22, 0.0  ;;  %v3205_v16 = vpack.c.bf16 %v11444_v13, %v11440_v25  ;;  %v2526_v0 = vadd.f32 %v11008_v47, %v2525_v48  ;;  %v13774_v22 = vld [vmem:[#allocation250_spill] sm:$0xff] }
 0xb50   :  { %v5420_v28 = vpop.f32.mrf.mxu1  ;;  %v1805_v57 = vmax.f32 %v1619_v33, 0.0 }
 0xb51   :  { %v11457_v15 = vadd.f32 %v3847_v52, %v10997_v61  ;;  %v5421_v7 = vadd.f32 %v11330_v20, %v5420_v28  ;;  %3646 = vmatmul.bf16.gmra.mxu3 %v3205_v16  ;;  %v5090_v44 = vpack.c.bf16 %v4956_v46, %v4955_v41  ;;  %v2739_v36 = vmax.f32 %v2526_v0, 0.0 }
 0xb52   :  { %v4514_v34 = vpop.f32.mrf.mxu0  ;;  %v11467_v61 = vadd.f32 %v1806_v29, %v13773_v17  ;;  %v11470_v31 = vadd.f32 %v1805_v57, %v13774_v22  ;;  %v13775_v57 = vld [vmem:[#allocation277_spill] sm:$0xff] }
 0xb53   :  { %5716 = vst.msk [vmem:[%s12413_s5 + $0x300] sm:$0xff] %vm5619_vm1, %v5421_v7  ;;  %5459 = vmatmul.bf16.gmra.mxu1 %v5090_v44  ;;  %v4148_v48 = vpack.c.bf16 %v11457_v15, %v11454_v1  ;;  %v4515_v62 = vadd.f32 %v10939_v2, %v4514_v34  ;;  %v2914_v41 = vadd.f32 %v2739_v36, %v11028_v59  ;;  %v11488_v34 = vld [vmem:[%s12409_s4 + $0x1] ss:$0 sm:$0xff] }
 0xb54   :  { %v3607_v30 = vpop.f32.mrf.mxu3  ;;  %v2088_v29 = vpack.c.bf16 %v11467_v61, %v11470_v31  ;;  %v13776_v36 = vld [vmem:[#allocation214_spill] sm:$0xff] }
 0xb55   :  { %4553 = vmatmul.bf16.gmra.mxu0 %v4148_v48  ;;  %v3608_v52 = vadd.f32 %v11195_v60, %v3607_v30  ;;  %v4782_v7 = vmax.f32 %v4515_v62, 0.0  ;;  %v1626_v48 = vadd.f32 %v11488_v34, %v13775_v57  ;;  %v11493_v30 = vadd.f32 %v2914_v41, %v13776_v36 }
 0xb56   :  { %v2527_v49 = vpop.f32.mrf.mxu2 }
 0xb57   :  { %v2528_v33 = vadd.f32 %v11008_v47, %v2527_v49  ;;  %13777 = vst [vmem:[#allocation125_spill] sm:$0xff] %v11493_v30  ;;  %v3848_v49 = vmax.f32 %v3608_v52, 0.0  ;;  %v1808_v36 = vmax.f32 %v1626_v48, 0.0 }
 0xb58   :  { %v5422_v46 = vpop.f32.mrf.mxu1 }
 0xb59   :  { %v2740_v16 = vmax.f32 %v2528_v33, 0.0  ;;  %v5423_v0 = vadd.f32 %v11330_v20, %v5422_v46  ;;  %v13778_v46 = vld [vmem:[#allocation215_spill] sm:$0xff] }
 0xb5a   :  { %v4516_v28 = vpop.f32.mrf.mxu0 }
 0xb5b   :  { %v2915_v44 = vadd.f32 %v2740_v16, %v11025_v51  ;;  %5717 = vst.msk [vmem:[%s12413_s5 + $0x308] sm:$0xff] %vm5619_vm1, %v5423_v0  ;;  %v4517_v59 = vadd.f32 %v10939_v2, %v4516_v28  ;;  %2569 = vmatmul.bf16.gmra.mxu2 %v2088_v29  ;;  %v13780_v2 = vld [vmem:[#allocation276_spill] sm:$0xff]  ;;  %v4957_v28 = vadd.f32 %v4782_v7, %v11060_v14 }
 0xb5c   :  { %v3609_v51 = vpop.f32.mrf.mxu3  ;;  %v1624_v0 = vadd.f32 %v11488_v34, %v13780_v2 }
 0xb5d   :  { %v4783_v62 = vmax.f32 %v4517_v59, 0.0  ;;  %v3610_v33 = vadd.f32 %v11195_v60, %v3609_v51  ;;  %v11497_v16 = vadd.f32 %v2915_v44, %v13778_v46  ;;  %v13781_v51 = vld [vmem:[#allocation77_spill] sm:$0xff]  ;;  %v13782_v44 = vld [vmem:[#allocation82_spill] sm:$0xff] }
 0xb5e   :  { %v2530_v29 = vpop.f32.mrf.mxu2  ;;  %v11507_v22 = vadd.f32 %v3848_v49, %v13781_v51  ;;  %v13787_v51 = vld [vmem:[#allocation11_spill] sm:$0xff] }
 0xb5f   :  { %13779 = vst [vmem:[#allocation16_spill] sm:$0xff] %v11497_v16  ;;  %v4958_v17 = vadd.f32 %v4783_v62, %v11063_v4  ;;  %v3849_v57 = vmax.f32 %v3610_v33, 0.0  ;;  %v3206_v41 = vpack.c.bf16 %v11497_v16, %v11493_v30  ;;  %v2531_v52 = vadd.f32 %v11008_v47, %v2530_v29  ;;  %v13783_v33 = vld [vmem:[#allocation255_spill] sm:$0xff] }
 0xb60   :  { %v5425_v59 = vpop.f32.mrf.mxu1  ;;  %v1807_v4 = vmax.f32 %v1624_v0, 0.0  ;;  %v11520_v29 = vadd.f32 %v1808_v36, %v13783_v33  ;;  %v11528_v0 = vld [vmem:[%s12409_s4 + $0x4] ss:$0 sm:$0xff] }
 0xb61   :  { %v11510_v46 = vadd.f32 %v3849_v57, %v13782_v44  ;;  %v5426_v2 = vadd.f32 %v11330_v20, %v5425_v59  ;;  %3651 = vmatmul.bf16.gmra.mxu3 %v3206_v41  ;;  %v5091_v14 = vpack.c.bf16 %v4958_v17, %v4957_v28  ;;  %v2741_v49 = vmax.f32 %v2531_v52, 0.0  ;;  %v13785_v41 = vld [vmem:[#allocation254_spill] sm:$0xff] }
 0xb62   :  { %v4519_v7 = vpop.f32.mrf.mxu0  ;;  %13784 = vst [vmem:[#allocation89_spill] sm:$0xff] %v11520_v29  ;;  %v11523_v17 = vadd.f32 %v1807_v4, %v13785_v41  ;;  %v13788_v41 = vld [vmem:[#allocation12_spill] sm:$0xff] }
 0xb63   :  { %5718 = vst.msk [vmem:[%s12413_s5 + $0x310] sm:$0xff] %vm5619_vm1, %v5426_v2  ;;  %5464 = vmatmul.bf16.gmra.mxu1 %v5091_v14  ;;  %v4149_v48 = vpack.c.bf16 %v11510_v46, %v11507_v22  ;;  %v4520_v28 = vadd.f32 %v11528_v0, %v4519_v7  ;;  %v2916_v52 = vadd.f32 %v2741_v49, %v13787_v51  ;;  %v13789_v49 = vld [vmem:[#allocation279_spill] sm:$0xff] }
 0xb64   :  { %v3612_v62 = vpop.f32.mrf.mxu3  ;;  %13786 = vst [vmem:[#allocation4_spill] sm:$0xff] %v11523_v17  ;;  %v2089_v4 = vpack.c.bf16 %v11520_v29, %v11523_v17  ;;  %v13791_v29 = vld [vmem:[#allocation219_spill] sm:$0xff]  ;;  %v13792_v17 = vld [vmem:[#allocation278_spill] sm:$0xff] }
 0xb65   :  { %4558 = vmatmul.bf16.gmra.mxu0 %v4149_v48  ;;  %v3613_v36 = vadd.f32 %v11195_v60, %v3612_v62  ;;  %v4784_v33 = vmax.f32 %v4520_v28, 0.0  ;;  %v1631_v62 = vadd.f32 %v11488_v34, %v13789_v49 }
 0xb66   :  { %v2532_v57 = vpop.f32.mrf.mxu2 }
 0xb67   :  { %v2533_v59 = vadd.f32 %v11008_v47, %v2532_v57  ;;  %v13790_v57 = vld [vmem:[#allocation218_spill] sm:$0xff] }
 0xb68   :  { %v5427_v44 = vpop.f32.mrf.mxu1 }
 0xb69   :  { %v2742_v2 = vmax.f32 %v2533_v59, 0.0  ;;  %v5428_v14 = vadd.f32 %v11330_v20, %v5427_v44  ;;  %v11546_v59 = vadd.f32 %v2916_v52, %v13790_v57  ;;  %v3850_v44 = vmax.f32 %v3613_v36, 0.0 }
 0xb6a   :  { %v4521_v48 = vpop.f32.mrf.mxu0  ;;  %v1810_v57 = vmax.f32 %v1631_v62, 0.0  ;;  %v13794_v62 = vld [vmem:[#allocation259_spill] sm:$0xff] }
 0xb6b   :  { %v2917_v16 = vadd.f32 %v2742_v2, %v13788_v41  ;;  %5719 = vst.msk [vmem:[%s12413_s5 + $0x318] sm:$0xff] %vm5619_vm1, %v5428_v14  ;;  %v4522_v7 = vadd.f32 %v11528_v0, %v4521_v48  ;;  %2574 = vmatmul.bf16.gmra.mxu2 %v2089_v4  ;;  %v1629_v14 = vadd.f32 %v11488_v34, %v13792_v17 }
 0xb6c   :  { %v3614_v51 = vpop.f32.mrf.mxu3  ;;  %v4959_v4 = vadd.f32 %v4784_v33, %v11108_v10 }
 0xb6d   :  { %v11549_v28 = vadd.f32 %v2917_v16, %v13791_v29  ;;  %v4785_v41 = vmax.f32 %v4522_v7, 0.0  ;;  %v3615_v2 = vadd.f32 %v11195_v60, %v3614_v51  ;;  %v11560_v29 = vadd.f32 %v3850_v44, %v11094_v27  ;;  %v13793_v7 = vld [vmem:[#allocation68_spill] sm:$0xff] }
 0xb6e   :  { %v2535_v30 = vpop.f32.mrf.mxu2  ;;  %v11573_v44 = vadd.f32 %v1810_v57, %v13794_v62 }
 0xb6f   :  { %v4960_v48 = vadd.f32 %v4785_v41, %v11111_v9  ;;  %v3851_v49 = vmax.f32 %v3615_v2, 0.0  ;;  %v3207_v52 = vpack.c.bf16 %v11549_v28, %v11546_v59  ;;  %v2536_v36 = vadd.f32 %v11008_v47, %v2535_v30  ;;  %v13796_v2 = vld [vmem:[#allocation258_spill] sm:$0xff] }
 0xb70   :  { %v5430_v16 = vpop.f32.mrf.mxu1  ;;  %v1809_v9 = vmax.f32 %v1629_v14, 0.0  ;;  %13795 = vst [vmem:[#allocation92_spill] sm:$0xff] %v11573_v44 }
 0xb71   :  { %v11563_v51 = vadd.f32 %v3851_v49, %v13793_v7  ;;  %v5431_v17 = vadd.f32 %v11330_v20, %v5430_v16  ;;  %3656 = vmatmul.bf16.gmra.mxu3 %v3207_v52  ;;  %v5092_v10 = vpack.c.bf16 %v4960_v48, %v4959_v4  ;;  %v2743_v27 = vmax.f32 %v2536_v36, 0.0  ;;  %v11582_v48 = vld [vmem:[%s12409_s4 + $0x2] ss:$0 sm:$0xff]  ;;  %v13798_v52 = vld [vmem:[#allocation15_spill] sm:$0xff] }
 0xb72   :  { %v4524_v33 = vpop.f32.mrf.mxu0  ;;  %v11576_v4 = vadd.f32 %v1809_v9, %v13796_v2 }
 0xb73   :  { %5720 = vst.msk [vmem:[%s12413_s5 + $0x320] sm:$0xff] %vm5619_vm1, %v5431_v17  ;;  %5469 = vmatmul.bf16.gmra.mxu1 %v5092_v10  ;;  %v4150_v47 = vpack.c.bf16 %v11563_v51, %v11560_v29  ;;  %v4525_v14 = vadd.f32 %v11528_v0, %v4524_v33  ;;  %v2918_v36 = vadd.f32 %v2743_v27, %v13798_v52 }
 0xb74   :  { %v3617_v30 = vpop.f32.mrf.mxu3  ;;  %13797 = vst [vmem:[#allocation17_spill] sm:$0xff] %v11576_v4  ;;  %v2090_v10 = vpack.c.bf16 %v11573_v44, %v11576_v4  ;;  %v13802_v44 = vld [vmem:[#allocation223_spill] sm:$0xff] }
 0xb75   :  { %4563 = vmatmul.bf16.gmra.mxu0 %v4150_v47  ;;  %v3618_v57 = vadd.f32 %v11195_v60, %v3617_v30  ;;  %v4786_v33 = vmax.f32 %v4525_v14, 0.0  ;;  %v13799_v47 = vld [vmem:[#allocation69_spill] sm:$0xff] }
 0xb76   :  { %v2537_v41 = vpop.f32.mrf.mxu2 }
 0xb77   :  { %v2538_v49 = vadd.f32 %v11582_v48, %v2537_v41  ;;  %v13800_v41 = vld [vmem:[#allocation280_spill] sm:$0xff]  ;;  %v3852_v2 = vmax.f32 %v3618_v57, 0.0 }
 0xb78   :  { %v5432_v16 = vpop.f32.mrf.mxu1  ;;  %v1634_v30 = vadd.f32 %v11488_v34, %v13800_v41 }
 0xb79   :  { %v2744_v7 = vmax.f32 %v2538_v49, 0.0  ;;  %v5433_v17 = vadd.f32 %v11330_v20, %v5432_v16  ;;  %v13801_v49 = vld [vmem:[#allocation222_spill] sm:$0xff]  ;;  %v11611_v57 = vadd.f32 %v3852_v2, %v11142_v8 }
 0xb7a   :  { %v4526_v9 = vpop.f32.mrf.mxu0  ;;  %v11599_v52 = vadd.f32 %v2918_v36, %v13801_v49  ;;  %v1811_v41 = vmax.f32 %v1634_v30, 0.0  ;;  %v13804_v2 = vld [vmem:[#allocation262_spill] sm:$0xff] }
 0xb7b   :  { %v2919_v62 = vadd.f32 %v2744_v7, %v13799_v47  ;;  %5721 = vst.msk [vmem:[%s12413_s5 + $0x328] sm:$0xff] %vm5619_vm1, %v5433_v17  ;;  %v4527_v27 = vadd.f32 %v11528_v0, %v4526_v9  ;;  %2579 = vmatmul.bf16.gmra.mxu2 %v2090_v10  ;;  %v4961_v17 = vadd.f32 %v4786_v33, %v11156_v19 }
 0xb7c   :  { %v3619_v16 = vpop.f32.mrf.mxu3  ;;  %v11624_v30 = vadd.f32 %v1811_v41, %v13804_v2 }
 0xb7d   :  { %v11602_v14 = vadd.f32 %v2919_v62, %v13802_v44  ;;  %v4787_v7 = vmax.f32 %v4527_v27, 0.0  ;;  %v3620_v47 = vadd.f32 %v11195_v60, %v3619_v16  ;;  %v13803_v62 = vld [vmem:[#allocation14_spill] sm:$0xff] }
 0xb7e   :  { %v2540_v4 = vpop.f32.mrf.mxu2  ;;  %13805 = vst [vmem:[#allocation96_spill] sm:$0xff] %v11624_v30 }
 0xb7f   :  { %v4962_v9 = vadd.f32 %v4787_v7, %v11159_v6  ;;  %v3853_v10 = vmax.f32 %v3620_v47, 0.0  ;;  %v3208_v34 = vpack.c.bf16 %v11602_v14, %v11599_v52  ;;  %v2541_v36 = vadd.f32 %v11582_v48, %v2540_v4 }
 0xb80   :  { %v5435_v49 = vpop.f32.mrf.mxu1 }
 0xb81   :  { %v11614_v44 = vadd.f32 %v3853_v10, %v13803_v62  ;;  %v5436_v27 = vadd.f32 %v11330_v20, %v5435_v49  ;;  %3661 = vmatmul.bf16.gmra.mxu3 %v3208_v34  ;;  %v5093_v19 = vpack.c.bf16 %v4962_v9, %v4961_v17  ;;  %v2745_v4 = vmax.f32 %v2541_v36, 0.0  ;;  %v13806_v17 = vld [vmem:[#allocation81_spill] sm:$0xff] }
 0xb82   :  { %v4529_v33 = vpop.f32.mrf.mxu0  ;;  %v2091_v36 = vpack.c.bf16 %v11624_v30, %v11624_v30 }
 0xb83   :  { %5722 = vst.msk [vmem:[%s12413_s5 + $0x330] sm:$0xff] %vm5619_vm1, %v5436_v27  ;;  %5474 = vmatmul.bf16.gmra.mxu1 %v5093_v19  ;;  %v4151_v6 = vpack.c.bf16 %v11614_v44, %v11611_v57  ;;  %v4530_v7 = vadd.f32 %v11528_v0, %v4529_v33  ;;  %v2920_v9 = vadd.f32 %v2745_v4, %v13806_v17  ;;  %v13807_v19 = vld [vmem:[#allocation85_spill] sm:$0xff]  ;;  %v13808_v4 = vld [vmem:[#allocation226_spill] sm:$0xff]  ;;  %v13809_v17 = vld [vmem:[#allocation227_spill] sm:$0xff] }
 0xb84   :  { %v3622_v8 = vpop.f32.mrf.mxu3 }
 0xb85   :  { %4568 = vmatmul.bf16.gmra.mxu0 %v4151_v6  ;;  %v3623_v34 = vadd.f32 %v11195_v60, %v3622_v8  ;;  %v4788_v41 = vmax.f32 %v4530_v7, 0.0  ;;  %v11640_v8 = vadd.f32 %v2920_v9, %v13808_v4 }
 0xb86   :  { %v2542_v16 = vpop.f32.mrf.mxu2 }
 0xb87   :  { %v2543_v47 = vadd.f32 %v11582_v48, %v2542_v16 }
 0xb88   :  { %v5437_v10 = vpop.f32.mrf.mxu1 }
 0xb89   :  { %v2746_v49 = vmax.f32 %v2543_v47, 0.0  ;;  %v5438_v62 = vadd.f32 %v11330_v20, %v5437_v10  ;;  %v3854_v47 = vmax.f32 %v3623_v34, 0.0 }
 0xb8a   :  { %v4531_v27 = vpop.f32.mrf.mxu0 }
 0xb8b   :  { %v2921_v6 = vadd.f32 %v2746_v49, %v13807_v19  ;;  %5723 = vst.msk [vmem:[%s12413_s5 + $0x338] sm:$0xff] %vm5619_vm1, %v5438_v62  ;;  %v4532_v33 = vadd.f32 %v11528_v0, %v4531_v27  ;;  %2584 = vmatmul.bf16.gmra.mxu2 %v2091_v36  ;;  %v4963_v19 = vadd.f32 %v4788_v41, %v11209_v56 }
 0xb8c   :  { %v3624_v16 = vpop.f32.mrf.mxu3  ;;  %v11652_v34 = vadd.f32 %v3854_v47, %v11190_v26 }
 0xb8d   :  { %v11643_v10 = vadd.f32 %v2921_v6, %v13809_v17  ;;  %v4789_v2 = vmax.f32 %v4532_v33, 0.0  ;;  %v3625_v7 = vadd.f32 %v11195_v60, %v3624_v16  ;;  %v13811_v6 = vld [vmem:[#allocation88_spill] sm:$0xff] }
 0xb8e   :  { %v2545_v49 = vpop.f32.mrf.mxu2 }
 0xb8f   :  { %13810 = vst [vmem:[#allocation132_spill] sm:$0xff] %v11643_v10  ;;  %v4964_v30 = vadd.f32 %v4789_v2, %v11212_v18  ;;  %v3855_v62 = vmax.f32 %v3625_v7, 0.0  ;;  %v3209_v36 = vpack.c.bf16 %v11643_v10, %v11640_v8  ;;  %v2546_v9 = vadd.f32 %v11582_v48, %v2545_v49  ;;  %v13812_v7 = vld [vmem:[#allocation22_spill] sm:$0xff] }
 0xb90   :  { %v5440_v27 = vpop.f32.mrf.mxu1 }
 0xb91   :  { %v11655_v4 = vadd.f32 %v3855_v62, %v13811_v6  ;;  %v5441_v33 = vadd.f32 %v11330_v20, %v5440_v27  ;;  %3666 = vmatmul.bf16.gmra.mxu3 %v3209_v36  ;;  %v5094_v16 = vpack.c.bf16 %v4964_v30, %v4963_v19  ;;  %v2747_v2 = vmax.f32 %v2546_v9, 0.0 }
 0xb92   :  { %v4534_v56 = vpop.f32.mrf.mxu0 }
 0xb93   :  { %5724 = vst.msk [vmem:[%s12413_s5 + $0x340] sm:$0xff] %vm5619_vm1, %v5441_v33  ;;  %5479 = vmatmul.bf16.gmra.mxu1 %v5094_v16  ;;  %v4152_v18 = vpack.c.bf16 %v11655_v4, %v11652_v34  ;;  %v4535_v47 = vadd.f32 %v11528_v0, %v4534_v56  ;;  %v2922_v30 = vadd.f32 %v2747_v2, %v13812_v7  ;;  %v13813_v33 = vld [vmem:[#allocation21_spill] sm:$0xff]  ;;  %v13814_v56 = vld [vmem:[#allocation230_spill] sm:$0xff] }
 0xb94   :  { %v3627_v26 = vpop.f32.mrf.mxu3 }
 0xb95   :  { %4573 = vmatmul.bf16.gmra.mxu0 %v4152_v18  ;;  %v3628_v19 = vadd.f32 %v11195_v60, %v3627_v26  ;;  %v4790_v6 = vmax.f32 %v4535_v47, 0.0  ;;  %v11676_v18 = vadd.f32 %v2922_v30, %v13814_v56  ;;  %v13815_v26 = vld [vmem:[#allocation231_spill] sm:$0xff] }
 0xb96   :  { %v2547_v41 = vpop.f32.mrf.mxu2 }
 0xb97   :  { %v2548_v17 = vadd.f32 %v11582_v48, %v2547_v41  ;;  %v3856_v41 = vmax.f32 %v3628_v19, 0.0 }
 0xb98   :  { %v5442_v49 = vpop.f32.mrf.mxu1 }
 0xb99   :  { %v2748_v62 = vmax.f32 %v2548_v17, 0.0  ;;  %v5443_v36 = vadd.f32 %v11330_v20, %v5442_v49  ;;  %v11688_v19 = vadd.f32 %v3856_v41, %v11243_v53 }
 0xb9a   :  { %v4536_v27 = vpop.f32.mrf.mxu0 }
 0xb9b   :  { %v2923_v16 = vadd.f32 %v2748_v62, %v13813_v33  ;;  %5725 = vst.msk [vmem:[%s12413_s5 + $0x348] sm:$0xff] %vm5619_vm1, %v5443_v36  ;;  %v4537_v9 = vadd.f32 %v11528_v0, %v4536_v27  ;;  %v4965_v62 = vadd.f32 %v4790_v6, %v11257_v39 }
 0xb9c   :  { %v3629_v2 = vpop.f32.mrf.mxu3 }
 0xb9d   :  { %v11679_v17 = vadd.f32 %v2923_v16, %v13815_v26  ;;  %v4791_v7 = vmax.f32 %v4537_v9, 0.0  ;;  %v3630_v47 = vadd.f32 %v11195_v60, %v3629_v2  ;;  %v13817_v16 = vld [vmem:[#allocation128_spill] sm:$0xff] }
 0xb9e   :  { %v2550_v49 = vpop.f32.mrf.mxu2 }
 0xb9f   :  { %13816 = vst [vmem:[#allocation75_spill] sm:$0xff] %v11679_v17  ;;  %v4966_v33 = vadd.f32 %v4791_v7, %v11260_v37  ;;  %v3857_v10 = vmax.f32 %v3630_v47, 0.0  ;;  %v3210_v36 = vpack.c.bf16 %v11679_v17, %v11676_v18  ;;  %v2551_v30 = vadd.f32 %v11582_v48, %v2550_v49  ;;  %v13818_v7 = vld [vmem:[#allocation73_spill] sm:$0xff] }
 0xba0   :  { %v5445_v27 = vpop.f32.mrf.mxu1 }
 0xba1   :  { %v11691_v56 = vadd.f32 %v3857_v10, %v13817_v16  ;;  %v5446_v9 = vadd.f32 %v11330_v20, %v5445_v27  ;;  %3671 = vmatmul.bf16.gmra.mxu3 %v3210_v36  ;;  %v5095_v2 = vpack.c.bf16 %v4966_v33, %v4965_v62  ;;  %v2749_v6 = vmax.f32 %v2551_v30, 0.0 }
 0xba2   :  { %v4539_v39 = vpop.f32.mrf.mxu0 }
 0xba3   :  { %5726 = vst.msk [vmem:[%s12413_s5 + $0x350] sm:$0xff] %vm5619_vm1, %v5446_v9  ;;  %5484 = vmatmul.bf16.gmra.mxu1 %v5095_v2  ;;  %v4153_v37 = vpack.c.bf16 %v11691_v56, %v11688_v19  ;;  %v4540_v10 = vadd.f32 %v11528_v0, %v4539_v39  ;;  %v2924_v47 = vadd.f32 %v2749_v6, %v13818_v7  ;;  %v13819_v9 = vld [vmem:[#allocation72_spill] sm:$0xff]  ;;  %v13820_v39 = vld [vmem:[#allocation234_spill] sm:$0xff] }
 0xba4   :  { %v3632_v53 = vpop.f32.mrf.mxu3 }
 0xba5   :  { %4578 = vmatmul.bf16.gmra.mxu0 %v4153_v37  ;;  %v3633_v62 = vadd.f32 %v11195_v60, %v3632_v53  ;;  %v4792_v16 = vmax.f32 %v4540_v10, 0.0  ;;  %v11712_v37 = vadd.f32 %v2924_v47, %v13820_v39  ;;  %v13821_v53 = vld [vmem:[#allocation235_spill] sm:$0xff] }
 0xba6   :  { %v2552_v41 = vpop.f32.mrf.mxu2 }
 0xba7   :  { %v2553_v26 = vadd.f32 %v11582_v48, %v2552_v41  ;;  %v3858_v41 = vmax.f32 %v3633_v62, 0.0 }
 0xba8   :  { %v5447_v49 = vpop.f32.mrf.mxu1 }
 0xba9   :  { %v2750_v33 = vmax.f32 %v2553_v26, 0.0  ;;  %v5448_v36 = vadd.f32 %v11330_v20, %v5447_v49  ;;  %v11724_v62 = vadd.f32 %v3858_v41, %v11291_v55 }
 0xbaa   :  { %v4541_v27 = vpop.f32.mrf.mxu0 }
 0xbab   :  { %v2925_v2 = vadd.f32 %v2750_v33, %v13819_v9  ;;  %5727 = vst.msk [vmem:[%s12413_s5 + $0x358] sm:$0xff] %vm5619_vm1, %v5448_v36  ;;  %v4542_v30 = vadd.f32 %v11528_v0, %v4541_v27  ;;  %v4967_v33 = vadd.f32 %v4792_v16, %v11305_v21 }
 0xbac   :  { %v3634_v6 = vpop.f32.mrf.mxu3 }
 0xbad   :  { %v11715_v26 = vadd.f32 %v2925_v2, %v13821_v53  ;;  %v4793_v7 = vmax.f32 %v4542_v30, 0.0  ;;  %v3635_v10 = vadd.f32 %v11195_v60, %v3634_v6  ;;  %v11742_v53 = vld [vmem:[%s12409_s4 + $0x3] ss:$0 sm:$0xff] }
 0xbae   :  { %v2555_v49 = vpop.f32.mrf.mxu2 }
 0xbaf   :  { %v4968_v9 = vadd.f32 %v4793_v7, %v11308_v23  ;;  %v3859_v17 = vmax.f32 %v3635_v10, 0.0  ;;  %v3211_v36 = vpack.c.bf16 %v11715_v26, %v11712_v37  ;;  %v2556_v47 = vadd.f32 %v11582_v48, %v2555_v49 }
 0xbb0   :  { %v5450_v27 = vpop.f32.mrf.mxu1 }
 0xbb1   :  { %v11727_v2 = vadd.f32 %v3859_v17, %v11295_v50  ;;  %v5451_v60 = vadd.f32 %v11330_v20, %v5450_v27  ;;  %3676 = vmatmul.bf16.gmra.mxu3 %v3211_v36  ;;  %v5096_v30 = vpack.c.bf16 %v4968_v9, %v4967_v33  ;;  %v2751_v16 = vmax.f32 %v2556_v47, 0.0  ;;  %v13822_v47 = vld [vmem:[#allocation238_spill] sm:$0xff] }
 0xbb2   :  { %v4544_v21 = vpop.f32.mrf.mxu0 }
 0xbb3   :  { %5728 = vst.msk [vmem:[%s12413_s5 + $0x360] sm:$0xff] %vm5619_vm1, %v5451_v60  ;;  %5489 = vmatmul.bf16.gmra.mxu1 %v5096_v30  ;;  %v4154_v23 = vpack.c.bf16 %v11727_v2, %v11724_v62  ;;  %v4545_v50 = vadd.f32 %v11528_v0, %v4544_v21  ;;  %v2926_v6 = vadd.f32 %v2751_v16, %v11321_v38  ;;  %v13823_v21 = vld [vmem:[#allocation239_spill] sm:$0xff] }
 0xbb4   :  { %v3637_v55 = vpop.f32.mrf.mxu3 }
 0xbb5   :  { %4583 = vmatmul.bf16.gmra.mxu0 %v4154_v23  ;;  %v3638_v7 = vadd.f32 %v11742_v53, %v3637_v55  ;;  %v4794_v9 = vmax.f32 %v4545_v50, 0.0  ;;  %v11753_v27 = vadd.f32 %v2926_v6, %v13822_v47 }
 0xbb6   :  { %v2557_v39 = vpop.f32.mrf.mxu2 }
 0xbb7   :  { %v2558_v17 = vadd.f32 %v11582_v48, %v2557_v39  ;;  %v3860_v30 = vmax.f32 %v3638_v7, 0.0 }
 0xbb8   :  { %v5452_v41 = vpop.f32.mrf.mxu1 }
 0xbb9   :  { %v2752_v10 = vmax.f32 %v2558_v17, 0.0  ;;  %v5453_v49 = vadd.f32 %v11330_v20, %v5452_v41  ;;  %v11765_v7 = vadd.f32 %v3860_v30, %v11344_v54 }
 0xbba   :  { %v4546_v33 = vpop.f32.mrf.mxu0 }
 0xbbb   :  { %v2927_v36 = vadd.f32 %v2752_v10, %v11318_v35  ;;  %5729 = vst.msk [vmem:[%s12413_s5 + $0x368] sm:$0xff] %vm5619_vm1, %v5453_v49  ;;  %v4547_v38 = vadd.f32 %v11528_v0, %v4546_v33  ;;  %v4969_v35 = vadd.f32 %v4794_v9, %v11358_v40 }
 0xbbc   :  { %v3639_v60 = vpop.f32.mrf.mxu3 }
 0xbbd   :  { %v11756_v23 = vadd.f32 %v2927_v36, %v13823_v21  ;;  %v4795_v16 = vmax.f32 %v4547_v38, 0.0  ;;  %v3640_v55 = vadd.f32 %v11742_v53, %v3639_v60 }
 0xbbe   :  { %v2560_v39 = vpop.f32.mrf.mxu2 }
 0xbbf   :  { %v4970_v50 = vadd.f32 %v4795_v16, %v11361_v3  ;;  %v3861_v17 = vmax.f32 %v3640_v55, 0.0  ;;  %v3212_v41 = vpack.c.bf16 %v11756_v23, %v11753_v27  ;;  %v2561_v6 = vadd.f32 %v11582_v48, %v2560_v39 }
 0xbc0   :  { %v5455_v10 = vpop.f32.mrf.mxu1 }
 0xbc1   :  { %v11768_v49 = vadd.f32 %v3861_v17, %v11348_v12  ;;  %v5456_v33 = vadd.f32 %v11330_v20, %v5455_v10  ;;  %3681 = vmatmul.bf16.gmra.mxu3 %v3212_v41  ;;  %v5097_v36 = vpack.c.bf16 %v4970_v50, %v4969_v35  ;;  %v2753_v9 = vmax.f32 %v2561_v6, 0.0  ;;  %v13824_v41 = vld [vmem:[#allocation242_spill] sm:$0xff] }
 0xbc2   :  { %v4549_v40 = vpop.f32.mrf.mxu0 }
 0xbc3   :  { %5730 = vst.msk [vmem:[%s12413_s5 + $0x370] sm:$0xff] %vm5619_vm1, %v5456_v33  ;;  %5494 = vmatmul.bf16.gmra.mxu1 %v5097_v36  ;;  %v4155_v3 = vpack.c.bf16 %v11768_v49, %v11765_v7  ;;  %v4550_v12 = vadd.f32 %v11528_v0, %v4549_v40  ;;  %v2928_v60 = vadd.f32 %v2753_v9, %v11374_v42  ;;  %v13825_v33 = vld [vmem:[#allocation243_spill] sm:$0xff] }
 0xbc4   :  { %v3642_v54 = vpop.f32.mrf.mxu3 }
 0xbc5   :  { %4588 = vmatmul.bf16.gmra.mxu0 %v4155_v3  ;;  %v3643_v21 = vadd.f32 %v11742_v53, %v3642_v54  ;;  %v4796_v35 = vmax.f32 %v4550_v12, 0.0  ;;  %v11789_v6 = vadd.f32 %v2928_v60, %v13824_v41 }
 0xbc6   :  { %v2562_v38 = vpop.f32.mrf.mxu2 }
 0xbc7   :  { %v2563_v47 = vadd.f32 %v11582_v48, %v2562_v38  ;;  %v3862_v10 = vmax.f32 %v3643_v21, 0.0 }
 0xbc8   :  { %v5457_v30 = vpop.f32.mrf.mxu1 }
 0xbc9   :  { %v2754_v16 = vmax.f32 %v2563_v47, 0.0  ;;  %v5458_v55 = vadd.f32 %v11330_v20, %v5457_v30  ;;  %v11801_v30 = vadd.f32 %v3862_v10, %v11392_v11 }
 0xbca   :  { %v4551_v39 = vpop.f32.mrf.mxu0 }
 0xbcb   :  { %v2929_v50 = vadd.f32 %v2754_v16, %v11371_v43  ;;  %5731 = vst.msk [vmem:[%s12413_s5 + $0x378] sm:$0xff] %vm5619_vm1, %v5458_v55  ;;  %v4552_v17 = vadd.f32 %v11528_v0, %v4551_v39  ;;  %v4971_v43 = vadd.f32 %v4796_v35, %v11406_v45 }
 0xbcc   :  { %v3644_v42 = vpop.f32.mrf.mxu3 }
 0xbcd   :  { %v11792_v36 = vadd.f32 %v2929_v50, %v13825_v33  ;;  %v4797_v40 = vmax.f32 %v4552_v17, 0.0  ;;  %v3645_v3 = vadd.f32 %v11742_v53, %v3644_v42 }
 0xbce   :  { %v2565_v9 = vpop.f32.mrf.mxu2 }
 0xbcf   :  { %v4972_v54 = vadd.f32 %v4797_v40, %v11409_v32  ;;  %v3863_v38 = vmax.f32 %v3645_v3, 0.0  ;;  %v3213_v12 = vpack.c.bf16 %v11792_v36, %v11789_v6  ;;  %v2566_v47 = vadd.f32 %v11582_v48, %v2565_v9 }
 0xbd0   :  { %v5460_v60 = vpop.f32.mrf.mxu1 }
 0xbd1   :  { %v11804_v21 = vadd.f32 %v3863_v38, %v11396_v24  ;;  %v5461_v16 = vadd.f32 %v11330_v20, %v5460_v60  ;;  %3686 = vmatmul.bf16.gmra.mxu3 %v3213_v12  ;;  %v5098_v55 = vpack.c.bf16 %v4972_v54, %v4971_v43  ;;  %v2755_v39 = vmax.f32 %v2566_v47, 0.0  ;;  %v13826_v12 = vld [vmem:[#allocation247_spill] sm:$0xff] }
 0xbd2   :  { %v4554_v45 = vpop.f32.mrf.mxu0 }
 0xbd3   :  { %5732 = vst.msk [vmem:[%s12413_s5 + $0x380] sm:$0xff] %vm5619_vm1, %v5461_v16  ;;  %5499 = vmatmul.bf16.gmra.mxu1 %v5098_v55  ;;  %v4156_v32 = vpack.c.bf16 %v11804_v21, %v11801_v30  ;;  %v4555_v24 = vadd.f32 %v11528_v0, %v4554_v45  ;;  %v2930_v17 = vadd.f32 %v2755_v39, %v11422_v63 }
 0xbd4   :  { %v3647_v11 = vpop.f32.mrf.mxu3 }
 0xbd5   :  { %4593 = vmatmul.bf16.gmra.mxu0 %v4156_v32  ;;  %v3648_v42 = vadd.f32 %v11742_v53, %v3647_v11  ;;  %v4798_v3 = vmax.f32 %v4555_v24, 0.0  ;;  %v11825_v54 = vadd.f32 %v2930_v17, %v13769_v5 }
 0xbd6   :  { %v2567_v35 = vpop.f32.mrf.mxu2 }
 0xbd7   :  { %v2568_v50 = vadd.f32 %v11582_v48, %v2567_v35  ;;  %v3864_v38 = vmax.f32 %v3648_v42, 0.0 }
 0xbd8   :  { %v5462_v41 = vpop.f32.mrf.mxu1 }
 0xbd9   :  { %v2756_v10 = vmax.f32 %v2568_v50, 0.0  ;;  %v5463_v33 = vadd.f32 %v11330_v20, %v5462_v41  ;;  %v11837_v35 = vadd.f32 %v3864_v38, %v11440_v25 }
 0xbda   :  { %v4556_v40 = vpop.f32.mrf.mxu0 }
 0xbdb   :  { %v2931_v9 = vadd.f32 %v2756_v10, %v11419_v58  ;;  %5733 = vst.msk [vmem:[%s12413_s5 + $0x388] sm:$0xff] %vm5619_vm1, %v5463_v33  ;;  %v4557_v43 = vadd.f32 %v11528_v0, %v4556_v40  ;;  %v4973_v58 = vadd.f32 %v4798_v3, %v11454_v1 }
 0xbdc   :  { %v3649_v63 = vpop.f32.mrf.mxu3 }
 0xbdd   :  { %v11828_v47 = vadd.f32 %v2931_v9, %v13826_v12  ;;  %v4799_v60 = vmax.f32 %v4557_v43, 0.0  ;;  %v3650_v16 = vadd.f32 %v11742_v53, %v3649_v63 }
 0xbde   :  { %v2570_v55 = vpop.f32.mrf.mxu2 }
 0xbdf   :  { %v4974_v45 = vadd.f32 %v4799_v60, %v11457_v15  ;;  %v3865_v32 = vmax.f32 %v3650_v16, 0.0  ;;  %v3214_v39 = vpack.c.bf16 %v11828_v47, %v11825_v54  ;;  %v2571_v5 = vadd.f32 %v11582_v48, %v2570_v55  ;;  %v13827_v16 = vld [vmem:[#allocation250_spill] sm:$0xff] }
 0xbe0   :  { %v5465_v11 = vpop.f32.mrf.mxu1 }
 0xbe1   :  { %v11840_v24 = vadd.f32 %v3865_v32, %v11444_v13  ;;  %v5466_v50 = vadd.f32 %v11330_v20, %v5465_v11  ;;  %3691 = vmatmul.bf16.gmra.mxu3 %v3214_v39  ;;  %v5099_v17 = vpack.c.bf16 %v4974_v45, %v4973_v58  ;;  %v2757_v41 = vmax.f32 %v2571_v5, 0.0  ;;  %v13828_v45 = vld [vmem:[#allocation251_spill] sm:$0xff] }
 0xbe2   :  { %v4559_v1 = vpop.f32.mrf.mxu0 }
 0xbe3   :  { %5734 = vst.msk [vmem:[%s12413_s5 + $0x390] sm:$0xff] %vm5619_vm1, %v5466_v50  ;;  %5504 = vmatmul.bf16.gmra.mxu1 %v5099_v17  ;;  %v4157_v15 = vpack.c.bf16 %v11840_v24, %v11837_v35  ;;  %v4560_v13 = vadd.f32 %v11528_v0, %v4559_v1  ;;  %v2932_v33 = vadd.f32 %v2757_v41, %v11470_v31  ;;  %v13829_v41 = vld [vmem:[#allocation125_spill] sm:$0xff] }
 0xbe4   :  { %v3652_v25 = vpop.f32.mrf.mxu3 }
 0xbe5   :  { %4598 = vmatmul.bf16.gmra.mxu0 %v4157_v15  ;;  %v3653_v3 = vadd.f32 %v11742_v53, %v3652_v25  ;;  %v4800_v38 = vmax.f32 %v4560_v13, 0.0  ;;  %v11861_v55 = vadd.f32 %v2932_v33, %v13827_v16 }
 0xbe6   :  { %v2572_v42 = vpop.f32.mrf.mxu2 }
 0xbe7   :  { %v2573_v10 = vadd.f32 %v11582_v48, %v2572_v42  ;;  %v3866_v58 = vmax.f32 %v3653_v3, 0.0  ;;  %v13830_v42 = vld [vmem:[#allocation16_spill] sm:$0xff] }
 0xbe8   :  { %v5467_v40 = vpop.f32.mrf.mxu1 }
 0xbe9   :  { %v2758_v9 = vmax.f32 %v2573_v10, 0.0  ;;  %v5468_v43 = vadd.f32 %v11330_v20, %v5467_v40  ;;  %v11873_v25 = vadd.f32 %v3866_v58, %v13829_v41  ;;  %v11881_v10 = vld [vmem:[%s12409_s4 + $0x5] ss:$0 sm:$0xff]  ;;  %v13834_v41 = vld [vmem:[#allocation255_spill] sm:$0xff] }
 0xbea   :  { %v4561_v63 = vpop.f32.mrf.mxu0 }
 0xbeb   :  { %v2933_v12 = vadd.f32 %v2758_v9, %v11467_v61  ;;  %5735 = vst.msk [vmem:[%s12413_s5 + $0x398] sm:$0xff] %vm5619_vm1, %v5468_v43  ;;  %v4562_v60 = vadd.f32 %v11528_v0, %v4561_v63  ;;  %v4975_v61 = vadd.f32 %v4800_v38, %v11507_v22 }
 0xbec   :  { %v3654_v31 = vpop.f32.mrf.mxu3 }
 0xbed   :  { %v11864_v32 = vadd.f32 %v2933_v12, %v13828_v45  ;;  %v4801_v20 = vmax.f32 %v4562_v60, 0.0  ;;  %v3655_v39 = vadd.f32 %v11742_v53, %v3654_v31  ;;  %v13831_v12 = vld [vmem:[#allocation4_spill] sm:$0xff] }
 0xbee   :  { %v2575_v5 = vpop.f32.mrf.mxu2 }
 0xbef   :  { %v4976_v11 = vadd.f32 %v4801_v20, %v11510_v46  ;;  %v3867_v50 = vmax.f32 %v3655_v39, 0.0  ;;  %v3215_v17 = vpack.c.bf16 %v11864_v32, %v11861_v55  ;;  %v2576_v1 = vadd.f32 %v11582_v48, %v2575_v5  ;;  %v13832_v5 = vld [vmem:[#allocation89_spill] sm:$0xff] }
 0xbf0   :  { %v5470_v15 = vpop.f32.mrf.mxu1 }
 0xbf1   :  { %v11876_v13 = vadd.f32 %v3867_v50, %v13830_v42  ;;  %v5471_v22 = vadd.f32 %v11881_v10, %v5470_v15  ;;  %3696 = vmatmul.bf16.gmra.mxu3 %v3215_v17  ;;  %v5100_v46 = vpack.c.bf16 %v4976_v11, %v4975_v61  ;;  %v2759_v3 = vmax.f32 %v2576_v1, 0.0  ;;  %v13833_v50 = vld [vmem:[#allocation254_spill] sm:$0xff] }
 0xbf2   :  { %v4564_v33 = vpop.f32.mrf.mxu0 }
 0xbf3   :  { %5736 = vst.msk [vmem:[%s12413_s5 + $0x3a0] sm:$0xff] %vm5619_vm1, %v5471_v22  ;;  %5509 = vmatmul.bf16.gmra.mxu1 %v5100_v46  ;;  %v4158_v40 = vpack.c.bf16 %v11876_v13, %v11873_v25  ;;  %v4565_v63 = vadd.f32 %v11528_v0, %v4564_v33  ;;  %v2934_v60 = vadd.f32 %v2759_v3, %v13831_v12 }
 0xbf4   :  { %v3657_v9 = vpop.f32.mrf.mxu3 }
 0xbf5   :  { %4603 = vmatmul.bf16.gmra.mxu0 %v4158_v40  ;;  %v3658_v31 = vadd.f32 %v11742_v53, %v3657_v9  ;;  %v4802_v39 = vmax.f32 %v4565_v63, 0.0  ;;  %v11902_v17 = vadd.f32 %v2934_v60, %v13833_v50 }
 0xbf6   :  { %v2577_v43 = vpop.f32.mrf.mxu2 }
 0xbf7   :  { %v2578_v38 = vadd.f32 %v11582_v48, %v2577_v43  ;;  %v3868_v15 = vmax.f32 %v3658_v31, 0.0  ;;  %v4977_v40 = vadd.f32 %v4802_v39, %v11560_v29  ;;  %v13835_v39 = vld [vmem:[#allocation17_spill] sm:$0xff] }
 0xbf8   :  { %v5472_v16 = vpop.f32.mrf.mxu1 }
 0xbf9   :  { %v2760_v58 = vmax.f32 %v2578_v38, 0.0  ;;  %v5473_v45 = vadd.f32 %v11881_v10, %v5472_v16  ;;  %v11914_v12 = vadd.f32 %v3868_v15, %v11546_v59 }
 0xbfa   :  { %v4566_v20 = vpop.f32.mrf.mxu0 }
 0xbfb   :  { %v2935_v61 = vadd.f32 %v2760_v58, %v13832_v5  ;;  %5737 = vst.msk [vmem:[%s12413_s5 + $0x3a8] sm:$0xff] %vm5619_vm1, %v5473_v45  ;;  %v4567_v11 = vadd.f32 %v11528_v0, %v4566_v20 }
 0xbfc   :  { %v3659_v1 = vpop.f32.mrf.mxu3 }
 0xbfd   :  { %v11905_v42 = vadd.f32 %v2935_v61, %v13834_v41  ;;  %v4803_v22 = vmax.f32 %v4567_v11, 0.0  ;;  %v3660_v46 = vadd.f32 %v11742_v53, %v3659_v1 }
 0xbfe   :  { %v2580_v33 = vpop.f32.mrf.mxu2 }
 0xbff   :  { %v4978_v3 = vadd.f32 %v4803_v22, %v11563_v51  ;;  %v3869_v9 = vmax.f32 %v3660_v46, 0.0  ;;  %v3216_v43 = vpack.c.bf16 %v11905_v42, %v11902_v17  ;;  %v2581_v63 = vadd.f32 %v11582_v48, %v2580_v33  ;;  %v13836_v22 = vld [vmem:[#allocation92_spill] sm:$0xff] }
 0xc00   :  { %v5475_v38 = vpop.f32.mrf.mxu1 }
 0xc01   :  { %v11917_v60 = vadd.f32 %v3869_v9, %v11549_v28  ;;  %v5476_v16 = vadd.f32 %v11881_v10, %v5475_v38  ;;  %3701 = vmatmul.bf16.gmra.mxu3 %v3216_v43  ;;  %v5101_v31 = vpack.c.bf16 %v4978_v3, %v4977_v40  ;;  %v2761_v58 = vmax.f32 %v2581_v63, 0.0  ;;  %v13837_v40 = vld [vmem:[#allocation258_spill] sm:$0xff]  ;;  %v13838_v63 = vld [vmem:[#allocation259_spill] sm:$0xff] }
 0xc02   :  { %v4569_v29 = vpop.f32.mrf.mxu0 }
 0xc03   :  { %5738 = vst.msk [vmem:[%s12413_s5 + $0x3b0] sm:$0xff] %vm5619_vm1, %v5476_v16  ;;  %5514 = vmatmul.bf16.gmra.mxu1 %v5101_v31  ;;  %v4159_v51 = vpack.c.bf16 %v11917_v60, %v11914_v12  ;;  %v4570_v28 = vadd.f32 %v11528_v0, %v4569_v29  ;;  %v2936_v5 = vadd.f32 %v2761_v58, %v13835_v39 }
 0xc04   :  { %v3662_v59 = vpop.f32.mrf.mxu3 }
 0xc05   :  { %4608 = vmatmul.bf16.gmra.mxu0 %v4159_v51  ;;  %v3663_v11 = vadd.f32 %v11742_v53, %v3662_v59  ;;  %v4804_v15 = vmax.f32 %v4570_v28, 0.0  ;;  %v11938_v3 = vadd.f32 %v2936_v5, %v13837_v40  ;;  %v13840_v40 = vld [vmem:[#allocation262_spill] sm:$0xff] }
 0xc06   :  { %v2582_v45 = vpop.f32.mrf.mxu2 }
 0xc07   :  { %v2583_v20 = vadd.f32 %v11582_v48, %v2582_v45  ;;  %v3870_v43 = vmax.f32 %v3663_v11, 0.0  ;;  %v4979_v29 = vadd.f32 %v4804_v15, %v11611_v57 }
 0xc08   :  { %v5477_v61 = vpop.f32.mrf.mxu1 }
 0xc09   :  { %v2762_v50 = vmax.f32 %v2583_v20, 0.0  ;;  %v5478_v1 = vadd.f32 %v11881_v10, %v5477_v61  ;;  %v11950_v39 = vadd.f32 %v3870_v43, %v11599_v52 }
 0xc0a   :  { %v4571_v41 = vpop.f32.mrf.mxu0 }
 0xc0b   :  { %v2937_v46 = vadd.f32 %v2762_v50, %v13836_v22  ;;  %5739 = vst.msk [vmem:[%s12413_s5 + $0x3b8] sm:$0xff] %vm5619_vm1, %v5478_v1  ;;  %v4572_v33 = vadd.f32 %v11528_v0, %v4571_v41 }
 0xc0c   :  { %v3664_v9 = vpop.f32.mrf.mxu3 }
 0xc0d   :  { %v11941_v38 = vadd.f32 %v2937_v46, %v13838_v63  ;;  %v4805_v16 = vmax.f32 %v4572_v33, 0.0  ;;  %v3665_v31 = vadd.f32 %v11742_v53, %v3664_v9 }
 0xc0e   :  { %v2585_v51 = vpop.f32.mrf.mxu2 }
 0xc0f   :  { %v4980_v58 = vadd.f32 %v4805_v16, %v11614_v44  ;;  %v3871_v59 = vmax.f32 %v3665_v31, 0.0  ;;  %v2586_v28 = vadd.f32 %v11582_v48, %v2585_v51  ;;  %v3217_v45 = vpack.c.bf16 %v11941_v38, %v11938_v3 }
 0xc10   :  { %v5480_v20 = vpop.f32.mrf.mxu1 }
 0xc11   :  { %v11953_v5 = vadd.f32 %v3871_v59, %v11602_v14  ;;  %v5481_v61 = vadd.f32 %v11881_v10, %v5480_v20  ;;  %3706 = vmatmul.bf16.gmra.mxu3 %v3217_v45  ;;  %v5102_v57 = vpack.c.bf16 %v4980_v58, %v4979_v29  ;;  %v2763_v50 = vmax.f32 %v2586_v28, 0.0  ;;  %v13839_v14 = vld [vmem:[#allocation96_spill] sm:$0xff] }
 0xc12   :  { %v4574_v11 = vpop.f32.mrf.mxu0 }
 0xc13   :  { %5740 = vst.msk [vmem:[%s12413_s5 + $0x3c0] sm:$0xff] %vm5619_vm1, %v5481_v61  ;;  %5519 = vmatmul.bf16.gmra.mxu1 %v5102_v57  ;;  %v4160_v48 = vpack.c.bf16 %v11953_v5, %v11950_v39  ;;  %v2938_v1 = vadd.f32 %v2763_v50, %v13839_v14  ;;  %v4575_v15 = vadd.f32 %v11528_v0, %v4574_v11  ;;  %v13841_v57 = vld [vmem:[#allocation132_spill] sm:$0xff] }
 0xc14   :  { %v3667_v52 = vpop.f32.mrf.mxu3 }
 0xc15   :  { %4613 = vmatmul.bf16.gmra.mxu0 %v4160_v48  ;;  %v3668_v22 = vadd.f32 %v11742_v53, %v3667_v52  ;;  %v11967_v9 = vadd.f32 %v2938_v1, %v13840_v40  ;;  %v4806_v43 = vmax.f32 %v4575_v15, 0.0 }
 0xc16   :  { %v2587_v44 = vpop.f32.mrf.mxu2 }
 0xc17   :  { %v3872_v31 = vmax.f32 %v3668_v22, 0.0  ;;  %v4981_v58 = vadd.f32 %v4806_v43, %v11652_v34  ;;  %v3218_v45 = vpack.c.bf16 %v11967_v9, %v11967_v9 }
 0xc18   :  { %v5482_v41 = vpop.f32.mrf.mxu1 }
 0xc19   :  { %v5483_v46 = vadd.f32 %v11881_v10, %v5482_v41  ;;  %v11980_v61 = vadd.f32 %v3872_v31, %v11640_v8 }
 0xc1a   :  { %v4576_v33 = vpop.f32.mrf.mxu0 }
 0xc1b   :  { %5741 = vst.msk [vmem:[%s12413_s5 + $0x3c8] sm:$0xff] %vm5619_vm1, %v5483_v46  ;;  %v4577_v63 = vadd.f32 %v11528_v0, %v4576_v33 }
 0xc1c   :  { %v3669_v16 = vpop.f32.mrf.mxu3 }
 0xc1d   :  { %v4807_v29 = vmax.f32 %v4577_v63, 0.0  ;;  %v3670_v51 = vadd.f32 %v11742_v53, %v3669_v16 }
 0xc1f   :  { %v4982_v59 = vadd.f32 %v4807_v29, %v11655_v4  ;;  %v3873_v28 = vmax.f32 %v3670_v51, 0.0 }
 0xc20   :  { %v5485_v20 = vpop.f32.mrf.mxu1 }
 0xc21   :  { %v11983_v11 = vadd.f32 %v3873_v28, %v13841_v57  ;;  %v5486_v50 = vadd.f32 %v11881_v10, %v5485_v20  ;;  %3711 = vmatmul.bf16.gmra.mxu3 %v3218_v45  ;;  %v5103_v48 = vpack.c.bf16 %v4982_v59, %v4981_v58  ;;  %v13842_v58 = vld [vmem:[#allocation75_spill] sm:$0xff] }
 0xc22   :  { %v4579_v52 = vpop.f32.mrf.mxu0 }
 0xc23   :  { %5742 = vst.msk [vmem:[%s12413_s5 + $0x3d0] sm:$0xff] %vm5619_vm1, %v5486_v50  ;;  %5524 = vmatmul.bf16.gmra.mxu1 %v5103_v48  ;;  %v4161_v34 = vpack.c.bf16 %v11983_v11, %v11980_v61  ;;  %v4580_v8 = vadd.f32 %v11528_v0, %v4579_v52 }
 0xc24   :  { %v3672_v4 = vpop.f32.mrf.mxu3 }
 0xc25   :  { %4618 = vmatmul.bf16.gmra.mxu0 %v4161_v34  ;;  %v3673_v14 = vadd.f32 %v11742_v53, %v3672_v4  ;;  %v4808_v41 = vmax.f32 %v4580_v8, 0.0 }
 0xc27   :  { %v3874_v33 = vmax.f32 %v3673_v14, 0.0  ;;  %v4983_v63 = vadd.f32 %v4808_v41, %v11688_v19 }
 0xc28   :  { %v5487_v44 = vpop.f32.mrf.mxu1 }
 0xc29   :  { %v5488_v1 = vadd.f32 %v11881_v10, %v5487_v44  ;;  %v12004_v51 = vadd.f32 %v3874_v33, %v11676_v18 }
 0xc2a   :  { %v4581_v15 = vpop.f32.mrf.mxu0 }
 0xc2b   :  { %5743 = vst.msk [vmem:[%s12413_s5 + $0x3d8] sm:$0xff] %vm5619_vm1, %v5488_v1  ;;  %v4582_v22 = vadd.f32 %v11528_v0, %v4581_v15 }
 0xc2c   :  { %v3674_v46 = vpop.f32.mrf.mxu3 }
 0xc2d   :  { %v4809_v40 = vmax.f32 %v4582_v22, 0.0  ;;  %v3675_v43 = vadd.f32 %v11742_v53, %v3674_v46 }
 0xc2f   :  { %v4984_v16 = vadd.f32 %v4809_v40, %v11691_v56  ;;  %v3875_v31 = vmax.f32 %v3675_v43, 0.0 }
 0xc30   :  { %v5490_v29 = vpop.f32.mrf.mxu1 }
 0xc31   :  { %v12007_v59 = vadd.f32 %v3875_v31, %v13842_v58  ;;  %v5491_v28 = vadd.f32 %v11881_v10, %v5490_v29  ;;  %v5104_v45 = vpack.c.bf16 %v4984_v16, %v4983_v63 }
 0xc32   :  { %v4584_v20 = vpop.f32.mrf.mxu0 }
 0xc33   :  { %5744 = vst.msk [vmem:[%s12413_s5 + $0x3e0] sm:$0xff] %vm5619_vm1, %v5491_v28  ;;  %5529 = vmatmul.bf16.gmra.mxu1 %v5104_v45  ;;  %v4162_v19 = vpack.c.bf16 %v12007_v59, %v12004_v51  ;;  %v4585_v18 = vadd.f32 %v11528_v0, %v4584_v20 }
 0xc34   :  { %v3677_v56 = vpop.f32.mrf.mxu3 }
 0xc35   :  { %4623 = vmatmul.bf16.gmra.mxu0 %v4162_v19  ;;  %v3678_v50 = vadd.f32 %v11742_v53, %v3677_v56  ;;  %v4810_v34 = vmax.f32 %v4585_v18, 0.0 }
 0xc37   :  { %v3876_v44 = vmax.f32 %v3678_v50, 0.0  ;;  %v4985_v15 = vadd.f32 %v4810_v34, %v11724_v62 }
 0xc38   :  { %v5492_v57 = vpop.f32.mrf.mxu1 }
 0xc39   :  { %v5493_v48 = vadd.f32 %v11881_v10, %v5492_v57  ;;  %v12028_v33 = vadd.f32 %v3876_v44, %v11712_v37  ;;  %v12043_v37 = vld [vmem:[%s12409_s4 + $0x4] ss:$0 sm:$0xff] }
 0xc3a   :  { %v4586_v52 = vpop.f32.mrf.mxu0 }
 0xc3b   :  { %5745 = vst.msk [vmem:[%s12413_s5 + $0x3e8] sm:$0xff] %vm5619_vm1, %v5493_v48  ;;  %v4587_v4 = vadd.f32 %v11528_v0, %v4586_v52 }
 0xc3c   :  { %v3679_v8 = vpop.f32.mrf.mxu3 }
 0xc3d   :  { %v4811_v14 = vmax.f32 %v4587_v4, 0.0  ;;  %v3680_v1 = vadd.f32 %v11742_v53, %v3679_v8 }
 0xc3f   :  { %v4986_v41 = vadd.f32 %v4811_v14, %v11727_v2  ;;  %v3877_v22 = vmax.f32 %v3680_v1, 0.0 }
 0xc40   :  { %v5495_v46 = vpop.f32.mrf.mxu1 }
 0xc41   :  { %v12031_v40 = vadd.f32 %v3877_v22, %v11715_v26  ;;  %v5496_v43 = vadd.f32 %v11881_v10, %v5495_v46  ;;  %v5105_v0 = vpack.c.bf16 %v4986_v41, %v4985_v15 }
 0xc42   :  { %v4589_v63 = vpop.f32.mrf.mxu0 }
 0xc43   :  { %5746 = vst.msk [vmem:[%s12413_s5 + $0x3f0] sm:$0xff] %vm5619_vm1, %v5496_v43  ;;  %5534 = vmatmul.bf16.gmra.mxu1 %v5105_v0  ;;  %v4163_v62 = vpack.c.bf16 %v12031_v40, %v12028_v33  ;;  %v4590_v26 = vadd.f32 %v12043_v37, %v4589_v63 }
 0xc44   :  { %v3682_v2 = vpop.f32.mrf.mxu3 }
 0xc45   :  { %4628 = vmatmul.bf16.gmra.mxu0 %v4163_v62  ;;  %v3683_v31 = vadd.f32 %v11742_v53, %v3682_v2  ;;  %v4812_v28 = vmax.f32 %v4590_v26, 0.0 }
 0xc47   :  { %v3878_v19 = vmax.f32 %v3683_v31, 0.0  ;;  %v4987_v57 = vadd.f32 %v4812_v28, %v11765_v7 }
 0xc48   :  { %v5497_v16 = vpop.f32.mrf.mxu1 }
 0xc49   :  { %v5498_v29 = vadd.f32 %v11881_v10, %v5497_v16  ;;  %v12057_v34 = vadd.f32 %v3878_v19, %v11753_v27 }
 0xc4a   :  { %v4591_v58 = vpop.f32.mrf.mxu0 }
 0xc4b   :  { %5747 = vst.msk [vmem:[%s12413_s5 + $0x3f8] sm:$0xff] %vm5619_vm1, %v5498_v29  ;;  %v4592_v45 = vadd.f32 %v12043_v37, %v4591_v58 }
 0xc4c   :  { %v3684_v20 = vpop.f32.mrf.mxu3 }
 0xc4d   :  { %v4813_v56 = vmax.f32 %v4592_v45, 0.0  ;;  %v3685_v18 = vadd.f32 %v11742_v53, %v3684_v20 }
 0xc4f   :  { %v4988_v50 = vadd.f32 %v4813_v56, %v11768_v49  ;;  %v3879_v48 = vmax.f32 %v3685_v18, 0.0 }
 0xc50   :  { %v5500_v52 = vpop.f32.mrf.mxu1 }
 0xc51   :  { %v12060_v4 = vadd.f32 %v3879_v48, %v11756_v23  ;;  %v5501_v8 = vadd.f32 %v11881_v10, %v5500_v52  ;;  %v5106_v44 = vpack.c.bf16 %v4988_v50, %v4987_v57 }
 0xc52   :  { %v4594_v14 = vpop.f32.mrf.mxu0 }
 0xc53   :  { %5748 = vst.msk [vmem:[%s12413_s5 + $0x400] sm:$0xff] %vm5619_vm1, %v5501_v8  ;;  %5539 = vmatmul.bf16.gmra.mxu1 %v5106_v44  ;;  %v4164_v7 = vpack.c.bf16 %v12060_v4, %v12057_v34  ;;  %v4595_v27 = vadd.f32 %v12043_v37, %v4594_v14 }
 0xc54   :  { %v3687_v49 = vpop.f32.mrf.mxu3 }
 0xc55   :  { %4633 = vmatmul.bf16.gmra.mxu0 %v4164_v7  ;;  %v3688_v23 = vadd.f32 %v11742_v53, %v3687_v49  ;;  %v4814_v22 = vmax.f32 %v4595_v27, 0.0 }
 0xc57   :  { %v3880_v0 = vmax.f32 %v3688_v23, 0.0  ;;  %v4989_v2 = vadd.f32 %v4814_v22, %v11801_v30 }
 0xc58   :  { %v5502_v1 = vpop.f32.mrf.mxu1 }
 0xc59   :  { %v5503_v15 = vadd.f32 %v11881_v10, %v5502_v1  ;;  %v12081_v29 = vadd.f32 %v3880_v0, %v11789_v6 }
 0xc5a   :  { %v4596_v41 = vpop.f32.mrf.mxu0 }
 0xc5b   :  { %5749 = vst.msk [vmem:[%s12413_s5 + $0x408] sm:$0xff] %vm5619_vm1, %v5503_v15  ;;  %v4597_v46 = vadd.f32 %v12043_v37, %v4596_v41 }
 0xc5c   :  { %v3689_v43 = vpop.f32.mrf.mxu3 }
 0xc5d   :  { %v4815_v63 = vmax.f32 %v4597_v46, 0.0  ;;  %v3690_v62 = vadd.f32 %v11742_v53, %v3689_v43 }
 0xc5f   :  { %v4990_v26 = vadd.f32 %v4815_v63, %v11804_v21  ;;  %v3881_v16 = vmax.f32 %v3690_v62, 0.0 }
 0xc60   :  { %v5505_v31 = vpop.f32.mrf.mxu1 }
 0xc61   :  { %v12084_v58 = vadd.f32 %v3881_v16, %v11792_v36  ;;  %v5506_v28 = vadd.f32 %v11881_v10, %v5505_v31  ;;  %v5107_v45 = vpack.c.bf16 %v4990_v26, %v4989_v2 }
 0xc62   :  { %v4599_v20 = vpop.f32.mrf.mxu0 }
 0xc63   :  { %5750 = vst.msk [vmem:[%s12413_s5 + $0x410] sm:$0xff] %vm5619_vm1, %v5506_v28  ;;  %5544 = vmatmul.bf16.gmra.mxu1 %v5107_v45  ;;  %v4165_v30 = vpack.c.bf16 %v12084_v58, %v12081_v29  ;;  %v4600_v6 = vadd.f32 %v12043_v37, %v4599_v20 }
 0xc64   :  { %v3692_v21 = vpop.f32.mrf.mxu3 }
 0xc65   :  { %4638 = vmatmul.bf16.gmra.mxu0 %v4165_v30  ;;  %v3693_v36 = vadd.f32 %v11742_v53, %v3692_v21  ;;  %v4816_v57 = vmax.f32 %v4600_v6, 0.0 }
 0xc67   :  { %v3882_v52 = vmax.f32 %v3693_v36, 0.0  ;;  %v4991_v14 = vadd.f32 %v4816_v57, %v11837_v35 }
 0xc68   :  { %v5507_v19 = vpop.f32.mrf.mxu1 }
 0xc69   :  { %v5508_v56 = vadd.f32 %v11881_v10, %v5507_v19  ;;  %v12105_v1 = vadd.f32 %v3882_v52, %v11825_v54 }
 0xc6a   :  { %v4601_v18 = vpop.f32.mrf.mxu0 }
 0xc6b   :  { %5751 = vst.msk [vmem:[%s12413_s5 + $0x418] sm:$0xff] %vm5619_vm1, %v5508_v56  ;;  %v4602_v50 = vadd.f32 %v12043_v37, %v4601_v18 }
 0xc6c   :  { %v3694_v48 = vpop.f32.mrf.mxu3 }
 0xc6d   :  { %v4817_v8 = vmax.f32 %v4602_v50, 0.0  ;;  %v3695_v44 = vadd.f32 %v11742_v53, %v3694_v48 }
 0xc6f   :  { %v4992_v7 = vadd.f32 %v4817_v8, %v11840_v24  ;;  %v3883_v49 = vmax.f32 %v3695_v44, 0.0 }
 0xc70   :  { %v5510_v27 = vpop.f32.mrf.mxu1 }
 0xc71   :  { %v12108_v23 = vadd.f32 %v3883_v49, %v11828_v47  ;;  %v5511_v15 = vadd.f32 %v11881_v10, %v5510_v27  ;;  %v5108_v41 = vpack.c.bf16 %v4992_v7, %v4991_v14 }
 0xc72   :  { %v4604_v22 = vpop.f32.mrf.mxu0 }
 0xc73   :  { %5752 = vst.msk [vmem:[%s12413_s5 + $0x420] sm:$0xff] %vm5619_vm1, %v5511_v15  ;;  %5549 = vmatmul.bf16.gmra.mxu1 %v5108_v41  ;;  %v4166_v35 = vpack.c.bf16 %v12108_v23, %v12105_v1  ;;  %v4605_v54 = vadd.f32 %v12043_v37, %v4604_v22 }
 0xc74   :  { %v3697_v24 = vpop.f32.mrf.mxu3 }
 0xc75   :  { %4643 = vmatmul.bf16.gmra.mxu0 %v4166_v35  ;;  %v3698_v47 = vadd.f32 %v11742_v53, %v3697_v24  ;;  %v4818_v63 = vmax.f32 %v4605_v54, 0.0 }
 0xc77   :  { %v3884_v26 = vmax.f32 %v3698_v47, 0.0  ;;  %v4993_v28 = vadd.f32 %v4818_v63, %v11873_v25 }
 0xc78   :  { %v5512_v46 = vpop.f32.mrf.mxu1 }
 0xc79   :  { %v5513_v43 = vadd.f32 %v11881_v10, %v5512_v46  ;;  %v12129_v21 = vadd.f32 %v3884_v26, %v11861_v55 }
 0xc7a   :  { %v4606_v0 = vpop.f32.mrf.mxu0 }
 0xc7b   :  { %5753 = vst.msk [vmem:[%s12413_s5 + $0x428] sm:$0xff] %vm5619_vm1, %v5513_v43  ;;  %v4607_v62 = vadd.f32 %v12043_v37, %v4606_v0 }
 0xc7c   :  { %v3699_v2 = vpop.f32.mrf.mxu3 }
 0xc7d   :  { %v4819_v16 = vmax.f32 %v4607_v62, 0.0  ;;  %v3700_v31 = vadd.f32 %v11742_v53, %v3699_v2 }
 0xc7f   :  { %v4994_v45 = vadd.f32 %v4819_v16, %v11876_v13  ;;  %v3885_v20 = vmax.f32 %v3700_v31, 0.0 }
 0xc80   :  { %v5515_v30 = vpop.f32.mrf.mxu1 }
 0xc81   :  { %v12132_v6 = vadd.f32 %v3885_v20, %v11864_v32  ;;  %v5516_v19 = vadd.f32 %v11881_v10, %v5515_v30  ;;  %v5109_v36 = vpack.c.bf16 %v4994_v45, %v4993_v28 }
 0xc82   :  { %v4609_v56 = vpop.f32.mrf.mxu0 }
 0xc83   :  { %5754 = vst.msk [vmem:[%s12413_s5 + $0x430] sm:$0xff] %vm5619_vm1, %v5516_v19  ;;  %5554 = vmatmul.bf16.gmra.mxu1 %v5109_v36  ;;  %v4167_v25 = vpack.c.bf16 %v12132_v6, %v12129_v21  ;;  %v4610_v55 = vadd.f32 %v12043_v37, %v4609_v56 }
 0xc84   :  { %v3702_v13 = vpop.f32.mrf.mxu3 }
 0xc85   :  { %4648 = vmatmul.bf16.gmra.mxu0 %v4167_v25  ;;  %v3703_v32 = vadd.f32 %v11742_v53, %v3702_v13  ;;  %v4820_v48 = vmax.f32 %v4610_v55, 0.0 }
 0xc87   :  { %v3886_v44 = vmax.f32 %v3703_v32, 0.0  ;;  %v4995_v49 = vadd.f32 %v4820_v48, %v11914_v12 }
 0xc88   :  { %v5517_v18 = vpop.f32.mrf.mxu1 }
 0xc89   :  { %v5518_v57 = vadd.f32 %v11881_v10, %v5517_v18  ;;  %v12153_v22 = vadd.f32 %v3886_v44, %v11902_v17 }
 0xc8a   :  { %v4611_v50 = vpop.f32.mrf.mxu0 }
 0xc8b   :  { %5755 = vst.msk [vmem:[%s12413_s5 + $0x438] sm:$0xff] %vm5619_vm1, %v5518_v57  ;;  %v4612_v52 = vadd.f32 %v12043_v37, %v4611_v50 }
 0xc8c   :  { %v3704_v8 = vpop.f32.mrf.mxu3 }
 0xc8d   :  { %v4821_v14 = vmax.f32 %v4612_v52, 0.0  ;;  %v3705_v7 = vadd.f32 %v11742_v53, %v3704_v8 }
 0xc8f   :  { %v4996_v27 = vadd.f32 %v4821_v14, %v11917_v60  ;;  %v3887_v15 = vmax.f32 %v3705_v7, 0.0 }
 0xc90   :  { %v5520_v41 = vpop.f32.mrf.mxu1 }
 0xc91   :  { %v12156_v35 = vadd.f32 %v3887_v15, %v11905_v42  ;;  %v5521_v24 = vadd.f32 %v11881_v10, %v5520_v41  ;;  %v5110_v54 = vpack.c.bf16 %v4996_v27, %v4995_v49 }
 0xc92   :  { %v4614_v46 = vpop.f32.mrf.mxu0 }
 0xc93   :  { %5756 = vst.msk [vmem:[%s12413_s5 + $0x440] sm:$0xff] %vm5619_vm1, %v5521_v24  ;;  %5559 = vmatmul.bf16.gmra.mxu1 %v5110_v54  ;;  %v4168_v12 = vpack.c.bf16 %v12156_v35, %v12153_v22  ;;  %v4615_v17 = vadd.f32 %v12043_v37, %v4614_v46 }
 0xc94   :  { %v3707_v60 = vpop.f32.mrf.mxu3 }
 0xc95   :  { %4653 = vmatmul.bf16.gmra.mxu0 %v4168_v12  ;;  %v3708_v42 = vadd.f32 %v11742_v53, %v3707_v60  ;;  %v4822_v63 = vmax.f32 %v4615_v17, 0.0 }
 0xc97   :  { %v3888_v26 = vmax.f32 %v3708_v42, 0.0  ;;  %v4997_v28 = vadd.f32 %v4822_v63, %v11950_v39 }
 0xc98   :  { %v5522_v47 = vpop.f32.mrf.mxu1 }
 0xc99   :  { %v5523_v43 = vadd.f32 %v11881_v10, %v5522_v47  ;;  %v12177_v19 = vadd.f32 %v3888_v26, %v11938_v3 }
 0xc9a   :  { %v4616_v0 = vpop.f32.mrf.mxu0 }
 0xc9b   :  { %5757 = vst.msk [vmem:[%s12413_s5 + $0x448] sm:$0xff] %vm5619_vm1, %v5523_v43  ;;  %v4617_v62 = vadd.f32 %v12043_v37, %v4616_v0 }
 0xc9c   :  { %v3709_v2 = vpop.f32.mrf.mxu3 }
 0xc9d   :  { %v4823_v16 = vmax.f32 %v4617_v62, 0.0  ;;  %v3710_v31 = vadd.f32 %v11742_v53, %v3709_v2 }
 0xc9f   :  { %v4998_v45 = vadd.f32 %v4823_v16, %v11953_v5  ;;  %v3889_v20 = vmax.f32 %v3710_v31, 0.0 }
 0xca0   :  { %v5525_v30 = vpop.f32.mrf.mxu1 }
 0xca1   :  { %v12180_v36 = vadd.f32 %v3889_v20, %v11941_v38  ;;  %v5526_v56 = vadd.f32 %v11881_v10, %v5525_v30  ;;  %v5111_v25 = vpack.c.bf16 %v4998_v45, %v4997_v28 }
 0xca2   :  { %v4619_v13 = vpop.f32.mrf.mxu0 }
 0xca3   :  { %5758 = vst.msk [vmem:[%s12413_s5 + $0x450] sm:$0xff] %vm5619_vm1, %v5526_v56  ;;  %5564 = vmatmul.bf16.gmra.mxu1 %v5111_v25  ;;  %v4169_v39 = vpack.c.bf16 %v12180_v36, %v12177_v19  ;;  %v4620_v3 = vadd.f32 %v12043_v37, %v4619_v13 }
 0xca4   :  { %v3712_v5 = vpop.f32.mrf.mxu3 }
 0xca5   :  { %4658 = vmatmul.bf16.gmra.mxu0 %v4169_v39  ;;  %v3713_v38 = vadd.f32 %v11742_v53, %v3712_v5  ;;  %v4824_v57 = vmax.f32 %v4620_v3, 0.0 }
 0xca7   :  { %v3890_v50 = vmax.f32 %v3713_v38, 0.0  ;;  %v4999_v44 = vadd.f32 %v4824_v57, %v11980_v61 }
 0xca8   :  { %v5527_v55 = vpop.f32.mrf.mxu1 }
 0xca9   :  { %v5528_v18 = vadd.f32 %v11881_v10, %v5527_v55  ;;  %v12199_v14 = vadd.f32 %v3890_v50, %v11967_v9 }
 0xcaa   :  { %v4621_v32 = vpop.f32.mrf.mxu0 }
 0xcab   :  { %5759 = vst.msk [vmem:[%s12413_s5 + $0x458] sm:$0xff] %vm5619_vm1, %v5528_v18  ;;  %v4622_v48 = vadd.f32 %v12043_v37, %v4621_v32  ;;  %v4170_v41 = vpack.c.bf16 %v12199_v14, %v12199_v14 }
 0xcac   :  { %v3714_v52 = vpop.f32.mrf.mxu3 }
 0xcad   :  { %v4825_v8 = vmax.f32 %v4622_v48, 0.0 }
 0xcaf   :  { %v5000_v53 = vadd.f32 %v4825_v8, %v11983_v11 }
 0xcb0   :  { %v5530_v7 = vpop.f32.mrf.mxu1 }
 0xcb1   :  { %v5531_v49 = vadd.f32 %v11881_v10, %v5530_v7  ;;  %v5112_v27 = vpack.c.bf16 %v5000_v53, %v4999_v44 }
 0xcb2   :  { %v4624_v15 = vpop.f32.mrf.mxu0 }
 0xcb3   :  { %5760 = vst.msk [vmem:[%s12413_s5 + $0x460] sm:$0xff] %vm5619_vm1, %v5531_v49  ;;  %5569 = vmatmul.bf16.gmra.mxu1 %v5112_v27  ;;  %v4625_v9 = vadd.f32 %v12043_v37, %v4624_v15 }
 0xcb5   :  { %4663 = vmatmul.bf16.gmra.mxu0 %v4170_v41  ;;  %v4826_v54 = vmax.f32 %v4625_v9, 0.0 }
 0xcb7   :  { %v5001_v60 = vadd.f32 %v4826_v54, %v12004_v51 }
 0xcb8   :  { %v5532_v61 = vpop.f32.mrf.mxu1 }
 0xcb9   :  { %v5533_v11 = vadd.f32 %v11881_v10, %v5532_v61 }
 0xcba   :  { %v4626_v24 = vpop.f32.mrf.mxu0 }
 0xcbb   :  { %5761 = vst.msk [vmem:[%s12413_s5 + $0x468] sm:$0xff] %vm5619_vm1, %v5533_v11  ;;  %v4627_v46 = vadd.f32 %v12043_v37, %v4626_v24 }
 0xcbd   :  { %v4827_v12 = vmax.f32 %v4627_v46, 0.0 }
 0xcbf   :  { %v5002_v17 = vadd.f32 %v4827_v12, %v12007_v59 }
 0xcc0   :  { %v5535_v47 = vpop.f32.mrf.mxu1 }
 0xcc1   :  { %v5536_v42 = vadd.f32 %v11881_v10, %v5535_v47  ;;  %v5113_v43 = vpack.c.bf16 %v5002_v17, %v5001_v60 }
 0xcc2   :  { %v4629_v0 = vpop.f32.mrf.mxu0 }
 0xcc3   :  { %5762 = vst.msk [vmem:[%s12413_s5 + $0x470] sm:$0xff] %vm5619_vm1, %v5536_v42  ;;  %5574 = vmatmul.bf16.gmra.mxu1 %v5113_v43  ;;  %v4630_v63 = vadd.f32 %v12043_v37, %v4629_v0 }
 0xcc5   :  { %v4828_v51 = vmax.f32 %v4630_v63, 0.0 }
 0xcc7   :  { %v5003_v31 = vadd.f32 %v4828_v51, %v12028_v33 }
 0xcc8   :  { %v5537_v62 = vpop.f32.mrf.mxu1 }
 0xcc9   :  { %v5538_v2 = vadd.f32 %v11881_v10, %v5537_v62 }
 0xcca   :  { %v4631_v26 = vpop.f32.mrf.mxu0 }
 0xccb   :  { %5763 = vst.msk [vmem:[%s12413_s5 + $0x478] sm:$0xff] %vm5619_vm1, %v5538_v2  ;;  %v4632_v59 = vadd.f32 %v12043_v37, %v4631_v26 }
 0xccd   :  { %v4829_v16 = vmax.f32 %v4632_v59, 0.0 }
 0xccf   :  { %v5004_v28 = vadd.f32 %v4829_v16, %v12031_v40 }
 0xcd0   :  { %v5540_v45 = vpop.f32.mrf.mxu1 }
 0xcd1   :  { %v5541_v20 = vadd.f32 %v11881_v10, %v5540_v45  ;;  %v5114_v30 = vpack.c.bf16 %v5004_v28, %v5003_v31 }
 0xcd2   :  { %v4634_v56 = vpop.f32.mrf.mxu0 }
 0xcd3   :  { %5764 = vst.msk [vmem:[%s12413_s5 + $0x480] sm:$0xff] %vm5619_vm1, %v5541_v20  ;;  %5579 = vmatmul.bf16.gmra.mxu1 %v5114_v30  ;;  %v4635_v25 = vadd.f32 %v12043_v37, %v4634_v56 }
 0xcd5   :  { %v4830_v33 = vmax.f32 %v4635_v25, 0.0 }
 0xcd7   :  { %v5005_v38 = vadd.f32 %v4830_v33, %v12057_v34 }
 0xcd8   :  { %v5542_v13 = vpop.f32.mrf.mxu1 }
 0xcd9   :  { %v5543_v39 = vadd.f32 %v11881_v10, %v5542_v13 }
 0xcda   :  { %v4636_v5 = vpop.f32.mrf.mxu0 }
 0xcdb   :  { %5765 = vst.msk [vmem:[%s12413_s5 + $0x488] sm:$0xff] %vm5619_vm1, %v5543_v39  ;;  %v4637_v40 = vadd.f32 %v12043_v37, %v4636_v5 }
 0xcdd   :  { %v4831_v3 = vmax.f32 %v4637_v40, 0.0 }
 0xcdf   :  { %v5006_v55 = vadd.f32 %v4831_v3, %v12060_v4 }
 0xce0   :  { %v5545_v18 = vpop.f32.mrf.mxu1 }
 0xce1   :  { %v5546_v32 = vadd.f32 %v11881_v10, %v5545_v18  ;;  %v5115_v57 = vpack.c.bf16 %v5006_v55, %v5005_v38 }
 0xce2   :  { %v4639_v50 = vpop.f32.mrf.mxu0 }
 0xce3   :  { %5766 = vst.msk [vmem:[%s12413_s5 + $0x490] sm:$0xff] %vm5619_vm1, %v5546_v32  ;;  %5584 = vmatmul.bf16.gmra.mxu1 %v5115_v57  ;;  %v4640_v48 = vadd.f32 %v12043_v37, %v4639_v50 }
 0xce5   :  { %v4832_v34 = vmax.f32 %v4640_v48, 0.0 }
 0xce7   :  { %v5007_v7 = vadd.f32 %v4832_v34, %v12081_v29 }
 0xce8   :  { %v5547_v52 = vpop.f32.mrf.mxu1 }
 0xce9   :  { %v5548_v8 = vadd.f32 %v11881_v10, %v5547_v52 }
 0xcea   :  { %v4641_v44 = vpop.f32.mrf.mxu0 }
 0xceb   :  { %5767 = vst.msk [vmem:[%s12413_s5 + $0x498] sm:$0xff] %vm5619_vm1, %v5548_v8  ;;  %v4642_v4 = vadd.f32 %v12043_v37, %v4641_v44 }
 0xced   :  { %v4833_v53 = vmax.f32 %v4642_v4, 0.0 }
 0xcef   :  { %v5008_v49 = vadd.f32 %v4833_v53, %v12084_v58 }
 0xcf0   :  { %v5550_v27 = vpop.f32.mrf.mxu1 }
 0xcf1   :  { %v5551_v15 = vadd.f32 %v11881_v10, %v5550_v27  ;;  %v5116_v41 = vpack.c.bf16 %v5008_v49, %v5007_v7 }
 0xcf2   :  { %v4644_v9 = vpop.f32.mrf.mxu0 }
 0xcf3   :  { %5768 = vst.msk [vmem:[%s12413_s5 + $0x4a0] sm:$0xff] %vm5619_vm1, %v5551_v15  ;;  %5589 = vmatmul.bf16.gmra.mxu1 %v5116_v41  ;;  %v4645_v61 = vadd.f32 %v12043_v37, %v4644_v9 }
 0xcf5   :  { %v4834_v29 = vmax.f32 %v4645_v61, 0.0 }
 0xcf7   :  { %v5009_v12 = vadd.f32 %v4834_v29, %v12105_v1 }
 0xcf8   :  { %v5552_v11 = vpop.f32.mrf.mxu1 }
 0xcf9   :  { %v5553_v24 = vadd.f32 %v11881_v10, %v5552_v11 }
 0xcfa   :  { %v4646_v54 = vpop.f32.mrf.mxu0 }
 0xcfb   :  { %5769 = vst.msk [vmem:[%s12413_s5 + $0x4a8] sm:$0xff] %vm5619_vm1, %v5553_v24  ;;  %v4647_v58 = vadd.f32 %v12043_v37, %v4646_v54 }
 0xcfd   :  { %v4835_v46 = vmax.f32 %v4647_v58, 0.0 }
 0xcff   :  { %v5010_v60 = vadd.f32 %v4835_v46, %v12108_v23 }
 0xd00   :  { %v5555_v17 = vpop.f32.mrf.mxu1 }
 0xd01   :  { %v5556_v47 = vadd.f32 %v11881_v10, %v5555_v17  ;;  %v5117_v42 = vpack.c.bf16 %v5010_v60, %v5009_v12 }
 0xd02   :  { %v4649_v43 = vpop.f32.mrf.mxu0 }
 0xd03   :  { %5770 = vst.msk [vmem:[%s12413_s5 + $0x4b0] sm:$0xff] %vm5619_vm1, %v5556_v47  ;;  %5594 = vmatmul.bf16.gmra.mxu1 %v5117_v42  ;;  %v4650_v0 = vadd.f32 %v12043_v37, %v4649_v43 }
 0xd05   :  { %v4836_v1 = vmax.f32 %v4650_v0, 0.0 }
 0xd07   :  { %v5011_v51 = vadd.f32 %v4836_v1, %v12129_v21 }
 0xd08   :  { %v5557_v63 = vpop.f32.mrf.mxu1 }
 0xd09   :  { %v5558_v62 = vadd.f32 %v11881_v10, %v5557_v63 }
 0xd0a   :  { %v4651_v2 = vpop.f32.mrf.mxu0 }
 0xd0b   :  { %5771 = vst.msk [vmem:[%s12413_s5 + $0x4b8] sm:$0xff] %vm5619_vm1, %v5558_v62  ;;  %v4652_v23 = vadd.f32 %v12043_v37, %v4651_v2  ;;  %v6203_v62 = vld [vmem:[%s12409_s4 + $0x5] ss:$0 sm:$0xff] }
 0xd0d   :  { %v4837_v26 = vmax.f32 %v4652_v23, 0.0 }
 0xd0f   :  { %v5012_v59 = vadd.f32 %v4837_v26, %v12132_v6 }
 0xd10   :  { %v5560_v16 = vpop.f32.mrf.mxu1 }
 0xd11   :  { %v5561_v31 = vadd.f32 %v11881_v10, %v5560_v16  ;;  %v5118_v28 = vpack.c.bf16 %v5012_v59, %v5011_v51 }
 0xd12   :  { %v4654_v45 = vpop.f32.mrf.mxu0 }
 0xd13   :  { %5772 = vst.msk [vmem:[%s12413_s5 + $0x4c0] sm:$0xff] %vm5619_vm1, %v5561_v31  ;;  %5599 = vmatmul.bf16.gmra.mxu1 %v5118_v28  ;;  %v4655_v20 = vadd.f32 %v12043_v37, %v4654_v45 }
 0xd15   :  { %v4838_v21 = vmax.f32 %v4655_v20, 0.0 }
 0xd17   :  { %v5013_v39 = vadd.f32 %v4838_v21, %v12153_v22 }
 0xd18   :  { %v5562_v30 = vpop.f32.mrf.mxu1 }
 0xd19   :  { %v5563_v56 = vadd.f32 %v11881_v10, %v5562_v30 }
 0xd1a   :  { %v4656_v25 = vpop.f32.mrf.mxu0 }
 0xd1b   :  { %5773 = vst.msk [vmem:[%s12413_s5 + $0x4c8] sm:$0xff] %vm5619_vm1, %v5563_v56  ;;  %v4657_v6 = vadd.f32 %v12043_v37, %v4656_v25 }
 0xd1d   :  { %v4839_v13 = vmax.f32 %v4657_v6, 0.0 }
 0xd1f   :  { %v5014_v5 = vadd.f32 %v4839_v13, %v12156_v35 }
 0xd20   :  { %v5565_v33 = vpop.f32.mrf.mxu1 }
 0xd21   :  { %v5566_v40 = vadd.f32 %v11881_v10, %v5565_v33  ;;  %v5119_v3 = vpack.c.bf16 %v5014_v5, %v5013_v39 }
 0xd22   :  { %v4659_v38 = vpop.f32.mrf.mxu0 }
 0xd23   :  { %5774 = vst.msk [vmem:[%s12413_s5 + $0x4d0] sm:$0xff] %vm5619_vm1, %v5566_v40  ;;  %5604 = vmatmul.bf16.gmra.mxu1 %v5119_v3  ;;  %v4660_v55 = vadd.f32 %v12043_v37, %v4659_v38 }
 0xd25   :  { %v4840_v22 = vmax.f32 %v4660_v55, 0.0 }
 0xd27   :  { %v5015_v48 = vadd.f32 %v4840_v22, %v12177_v19 }
 0xd28   :  { %v5567_v18 = vpop.f32.mrf.mxu1 }
 0xd29   :  { %v5568_v32 = vadd.f32 %v11881_v10, %v5567_v18 }
 0xd2a   :  { %v4661_v57 = vpop.f32.mrf.mxu0 }
 0xd2b   :  { %5775 = vst.msk [vmem:[%s12413_s5 + $0x4d8] sm:$0xff] %vm5619_vm1, %v5568_v32  ;;  %v4662_v35 = vadd.f32 %v12043_v37, %v4661_v57 }
 0xd2d   :  { %v4841_v50 = vmax.f32 %v4662_v35, 0.0 }
 0xd2f   :  { %v5016_v52 = vadd.f32 %v4841_v50, %v12180_v36 }
 0xd30   :  { %v5570_v8 = vpop.f32.mrf.mxu1 }
 0xd31   :  { %v5571_v44 = vadd.f32 %v11881_v10, %v5570_v8  ;;  %v5120_v34 = vpack.c.bf16 %v5016_v52, %v5015_v48 }
 0xd32   :  { %v4664_v4 = vpop.f32.mrf.mxu0 }
 0xd33   :  { %5776 = vst.msk [vmem:[%s12413_s5 + $0x4e0] sm:$0xff] %vm5619_vm1, %v5571_v44  ;;  %5609 = vmatmul.bf16.gmra.mxu1 %v5120_v34  ;;  %v4665_v53 = vadd.f32 %v12043_v37, %v4664_v4 }
 0xd35   :  { %v4842_v49 = vmax.f32 %v4665_v53, 0.0 }
 0xd37   :  { %v5017_v36 = vadd.f32 %v4842_v49, %v12199_v14 }
 0xd38   :  { %v5572_v7 = vpop.f32.mrf.mxu1 }
 0xd39   :  { %v5573_v27 = vadd.f32 %v11881_v10, %v5572_v7  ;;  %v5121_v41 = vpack.c.bf16 %v5017_v36, %v5017_v36 }
 0xd3a   :  { %v4666_v19 = vpop.f32.mrf.mxu0 }
 0xd3b   :  { %5777 = vst.msk [vmem:[%s12413_s5 + $0x4e8] sm:$0xff] %vm5619_vm1, %v5573_v27 }
 0xd40   :  { %v5575_v15 = vpop.f32.mrf.mxu1 }
 0xd41   :  { %v5576_v9 = vadd.f32 %v11881_v10, %v5575_v15 }
 0xd43   :  { %5778 = vst.msk [vmem:[%s12413_s5 + $0x4f0] sm:$0xff] %vm5619_vm1, %v5576_v9  ;;  %5614 = vmatmul.bf16.gmra.mxu1 %v5121_v41 }
 0xd48   :  { %v5577_v37 = vpop.f32.mrf.mxu1 }
 0xd49   :  { %v5578_v61 = vadd.f32 %v11881_v10, %v5577_v37 }
 0xd4b   :  { %5779 = vst.msk [vmem:[%s12413_s5 + $0x4f8] sm:$0xff] %vm5619_vm1, %v5578_v61 }
 0xd50   :  { %v5580_v11 = vpop.f32.mrf.mxu1 }
 0xd51   :  { %v5581_v14 = vadd.f32 %v11881_v10, %v5580_v11 }
 0xd53   :  { %5780 = vst.msk [vmem:[%s12413_s5 + $0x500] sm:$0xff] %vm5619_vm1, %v5581_v14 }
 0xd58   :  { %v5582_v24 = vpop.f32.mrf.mxu1 }
 0xd59   :  { %v5583_v54 = vadd.f32 %v11881_v10, %v5582_v24 }
 0xd5b   :  { %5781 = vst.msk [vmem:[%s12413_s5 + $0x508] sm:$0xff] %vm5619_vm1, %v5583_v54 }
 0xd60   :  { %v5585_v29 = vpop.f32.mrf.mxu1 }
 0xd61   :  { %v5586_v58 = vadd.f32 %v11881_v10, %v5585_v29 }
 0xd63   :  { %5782 = vst.msk [vmem:[%s12413_s5 + $0x510] sm:$0xff] %vm5619_vm1, %v5586_v58 }
 0xd68   :  { %v5587_v46 = vpop.f32.mrf.mxu1 }
 0xd69   :  { %v5588_v12 = vadd.f32 %v11881_v10, %v5587_v46 }
 0xd6b   :  { %5783 = vst.msk [vmem:[%s12413_s5 + $0x518] sm:$0xff] %vm5619_vm1, %v5588_v12 }
 0xd70   :  { %v5590_v60 = vpop.f32.mrf.mxu1 }
 0xd71   :  { %v5591_v17 = vadd.f32 %v11881_v10, %v5590_v60 }
 0xd73   :  { %5784 = vst.msk [vmem:[%s12413_s5 + $0x520] sm:$0xff] %vm5619_vm1, %v5591_v17 }
 0xd78   :  { %v5592_v47 = vpop.f32.mrf.mxu1 }
 0xd79   :  { %v5593_v42 = vadd.f32 %v11881_v10, %v5592_v47 }
 0xd7b   :  { %5785 = vst.msk [vmem:[%s12413_s5 + $0x528] sm:$0xff] %vm5619_vm1, %v5593_v42 }
 0xd80   :  { %v5595_v43 = vpop.f32.mrf.mxu1 }
 0xd81   :  { %v5596_v0 = vadd.f32 %v11881_v10, %v5595_v43 }
 0xd83   :  { %5786 = vst.msk [vmem:[%s12413_s5 + $0x530] sm:$0xff] %vm5619_vm1, %v5596_v0 }
 0xd88   :  { %v5597_v63 = vpop.f32.mrf.mxu1 }
 0xd89   :  { %v5598_v2 = vadd.f32 %v6203_v62, %v5597_v63 }
 0xd8b   :  { %5787 = vst.msk [vmem:[%s12413_s5 + $0x538] sm:$0xff] %vm5619_vm1, %v5598_v2 }
 0xd90   :  { %v5600_v1 = vpop.f32.mrf.mxu1 }
 0xd91   :  { %v5601_v23 = vadd.f32 %v6203_v62, %v5600_v1 }
 0xd93   :  { %5788 = vst.msk [vmem:[%s12413_s5 + $0x540] sm:$0xff] %vm5619_vm1, %v5601_v23 }
 0xd98   :  { %v5602_v10 = vpop.f32.mrf.mxu1 }
 0xd99   :  { %v5603_v26 = vadd.f32 %v6203_v62, %v5602_v10 }
 0xd9b   :  { %5789 = vst.msk [vmem:[%s12413_s5 + $0x548] sm:$0xff] %vm5619_vm1, %v5603_v26 }
 0xda0   :  { %v5605_v51 = vpop.f32.mrf.mxu1 }
 0xda1   :  { %v5606_v59 = vadd.f32 %v6203_v62, %v5605_v51 }
 0xda3   :  { %5790 = vst.msk [vmem:[%s12413_s5 + $0x550] sm:$0xff] %vm5619_vm1, %v5606_v59 }
 0xda8   :  { %v5607_v16 = vpop.f32.mrf.mxu1 }
 0xda9   :  { %v5608_v31 = vadd.f32 %v6203_v62, %v5607_v16 }
 0xdab   :  { %5791 = vst.msk [vmem:[%s12413_s5 + $0x558] sm:$0xff] %vm5619_vm1, %v5608_v31 }
 0xdb0   :  { %v5610_v28 = vpop.f32.mrf.mxu1 }
 0xdb1   :  { %v5611_v45 = vadd.f32 %v6203_v62, %v5610_v28 }
 0xdb3   :  { %5792 = vst.msk [vmem:[%s12413_s5 + $0x560] sm:$0xff] %vm5619_vm1, %v5611_v45 }
 0xdb8   :  { %v5612_v20 = vpop.f32.mrf.mxu1 }
 0xdb9   :  { %v5613_v30 = vadd.f32 %v6203_v62, %v5612_v20 }
 0xdbb   :  { %5793 = vst.msk [vmem:[%s12413_s5 + $0x568] sm:$0xff] %vm5619_vm1, %v5613_v30 }
 0xdc0   :  { %v5615_v56 = vpop.f32.mrf.mxu1 }
 0xdc1   :  { %v5616_v25 = vadd.f32 %v6203_v62, %v5615_v56 }
 0xdc3   :  { %5794 = vst.msk [vmem:[%s12413_s5 + $0x570] sm:$0xff] %vm5619_vm1, %v5616_v25 }
 0xdc8   :  { %v5617_v21 = vpop.f32.mrf.mxu1 }

</bundles_post_ra>
